<compile_context>
chip_gen: v5e
topology: v5e:2x2
jax: 0.10.0
libtpu: 0.0.40
codegen_flags: <defaults>
</compile_context>

<pallas_src>
import jax
import jax.numpy as jnp
from jax import lax
from jax.experimental import pallas as pl
from jax.experimental.pallas import tpu as pltpu

LANES = 128  # TPU lane width; conv channel dims are zero-padded to this.


# ---------------------------------------------------------------------------
# Pallas kernels
# ---------------------------------------------------------------------------
def _conv_relu_pool_kernel(c_ref, w_ref, b_ref, o_ref):
    """Fused conv (as matmul) + bias + ReLU + 2x2 maxpool.

    c_ref: (4, M, K) bf16  im2col columns; leading dim = 2x2 pool-window tap
    w_ref: (K, 128)  bf16  (i, j, c)-ordered weights, out-channels padded to 128
    b_ref: (1, 128)  f32
    o_ref: (M, 128)  bf16  pooled output, rows = (n, ph, pw), lane-dense
    """
    w = w_ref[...]
    b = b_ref[...]
    y = None
    for t in range(4):                      # static unroll: 4 MXU matmuls
        acc = jnp.dot(c_ref[t], w, preferred_element_type=jnp.float32) + b
        acc = jnp.maximum(acc, 0.0)         # ReLU in f32 (VPU)
        y = acc if y is None else jnp.maximum(y, acc)   # 2x2 max pool
    o_ref[...] = y.astype(o_ref.dtype)


def _fc_stack_kernel(a_ref, w1_ref, b1_ref, w2_ref, b2_ref, w3_ref, b3_ref,
                     o_ref):
    """fc3(relu(fc2(relu(fc1(a))))) in a single kernel (weights VMEM-resident)."""
    h = jnp.dot(a_ref[...], w1_ref[...],
                preferred_element_type=jnp.float32) + b1_ref[...]
    h = jnp.maximum(h, 0.0).astype(jnp.bfloat16)
    h = jnp.dot(h, w2_ref[...],
                preferred_element_type=jnp.float32) + b2_ref[...]
    h = jnp.maximum(h, 0.0).astype(jnp.bfloat16)
    o_ref[...] = jnp.dot(h, w3_ref[...],
                         preferred_element_type=jnp.float32) + b3_ref[...]


# ---------------------------------------------------------------------------
# Pallas wrappers (full-array blocks, no activation padding/slicing)
# ---------------------------------------------------------------------------
def _full_spec(shape):
    nd = len(shape)
    return pl.BlockSpec(shape, lambda i, _nd=nd: (0,) * _nd)


def conv_relu_pool_pallas(cols, w_p, b_p):
    """cols: (4, M, K) bf16, w_p: (K, 128) bf16, b_p: (1, 128) f32 -> (M,128) bf16."""
    _, M, _ = cols.shape
    return pl.pallas_call(
        _conv_relu_pool_kernel,
        grid=(1,),
        out_shape=jax.ShapeDtypeStruct((M, LANES), jnp.bfloat16),
        in_specs=[_full_spec(cols.shape), _full_spec(w_p.shape),
                  _full_spec(b_p.shape)],
        out_specs=_full_spec((M, LANES)),
        compiler_params=pltpu.CompilerParams(dimension_semantics=("arbitrary",)),
    )(cols, w_p, b_p)


def fc_stack_pallas(a, pp):
    """a: (M, 3200) bf16 -> (M, 10) f32 through three fused linear layers."""
    M = a.shape[0]
    args = (a, pp["fc1_w"], pp["fc1_b"], pp["fc2_w"], pp["fc2_b"],
            pp["fc3_w"], pp["fc3_b"])
    return pl.pallas_call(
        _fc_stack_kernel,
        grid=(1,),
        out_shape=jax.ShapeDtypeStruct((M, 10), jnp.float32),
        in_specs=[_full_spec(t.shape) for t in args],
        out_specs=_full_spec((M, 10)),
        compiler_params=pltpu.CompilerParams(dimension_semantics=("arbitrary",)),
    )(*args)


# ---------------------------------------------------------------------------
# Glue: im2col arranged as the 4 taps of the 2x2 maxpool window
# ---------------------------------------------------------------------------
def _im2col_pool_taps(x, kh, kw):
    """x: (N, H, W, C) -> (4, N*PH*PW, kh*kw*C); column order (i, j, c).

    Tap t = dy*2+dx holds the im2col rows of conv-output pixel (2*ph+dy, 2*pw+dx),
    so max over the leading dim == 2x2/2 max pool of the conv output.
    """
    N, H, W, C = x.shape
    OH, OW = H - kh + 1, W - kw + 1
    PH, PW = OH // 2, OW // 2
    taps = []
    for dy in (0, 1):
        for dx in (0, 1):
            patch = jnp.stack(
                [x[:, dy + i: dy + i + 2 * PH: 2,
                     dx + j: dx + j + 2 * PW: 2, :]
                 for i in range(kh) for j in range(kw)],
                axis=3)                               # (N, PH, PW, kh*kw, C)
            taps.append(patch.reshape(N * PH * PW, kh * kw * C))
    return jnp.stack(taps, axis=0), PH, PW


# ---------------------------------------------------------------------------
# One-time weight preprocessing (hoisted out of the forward pass)
# ---------------------------------------------------------------------------
def preprocess_params(p):
    def pad_to(a, shape):
        out = jnp.zeros(shape, a.dtype)
        return out.at[tuple(slice(0, s) for s in a.shape)].set(a)

    def conv_w(w, icp):
        # OIHW -> (KH, KW, IC, OC) -> pad -> (KH*KW*ICp, 128), bf16
        kh, kw = w.shape[2], w.shape[3]
        wt = w.transpose(2, 3, 1, 0)
        wt = pad_to(wt, (kh, kw, icp, LANES))
        return wt.reshape(kh * kw * icp, LANES).astype(jnp.bfloat16)

    def conv_b(b):
        return pad_to(b[None, :], (1, LANES)).astype(jnp.float32)

    # fc1 weight rows reordered to match the (h, w, c_padded) activation flatten
    # of the 128-channel-padded conv2 output (replaces torch's NCHW flatten).
    w1 = p["fc1_w"].reshape(120, 16, 5, 5).transpose(2, 3, 1, 0)   # (5,5,16,120)
    w1 = pad_to(w1, (5, 5, LANES, LANES)).reshape(5 * 5 * LANES, LANES)

    w2 = pad_to(p["fc2_w"].T, (LANES, LANES))    # (120, 84) -> (128, 128)
    w3 = pad_to(p["fc3_w"].T, (LANES, 10))       # (84, 10)  -> (128, 10)

    return {
        "conv1_w": conv_w(p["conv1_w"], 3),
        "conv1_b": conv_b(p["conv1_b"]),
        "conv2_w": conv_w(p["conv2_w"], LANES),
        "conv2_b": conv_b(p["conv2_b"]),
        "fc1_w": w1.astype(jnp.bfloat16),
        "fc1_b": pad_to(p["fc1_b"][None, :], (1, LANES)).astype(jnp.float32),
        "fc2_w": w2.astype(jnp.bfloat16),
        "fc2_b": pad_to(p["fc2_b"][None, :], (1, LANES)).astype(jnp.float32),
        "fc3_w": w3.astype(jnp.bfloat16),
        "fc3_b": p["fc3_b"][None, :].astype(jnp.float32),
    }


# ---------------------------------------------------------------------------
# Model forward (3 pallas_calls total)
# ---------------------------------------------------------------------------
def simple_cnn_forward(x_nchw, pp):
    N = x_nchw.shape[0]
    x = x_nchw.transpose(0, 2, 3, 1).astype(jnp.bfloat16)   # NCHW -> NHWC, bf16

    # stage 1: conv1 + ReLU + pool, fused
    cols, PH, PW = _im2col_pool_taps(x, 5, 5)                # (4, N*14*14, 75)
    y = conv_relu_pool_pallas(cols, pp["conv1_w"], pp["conv1_b"])
    y = y.reshape(N, PH, PW, LANES)                          # lane-dense (pad ch = 0)

    # stage 2: conv2 + ReLU + pool, fused (padded channels carried; weights 0 there)
    cols, PH, PW = _im2col_pool_taps(y, 5, 5)                # (4, N*5*5, 3200)
    y = conv_relu_pool_pallas(cols, pp["conv2_w"], pp["conv2_b"])
    y = y.reshape(N, PH * PW * LANES)                        # (N, 3200) pure reshape

    # fc1 -> fc2 -> fc3, fused (fc1 rows pre-permuted to (h, w, c_pad) order)
    return fc_stack_pallas(y, pp)


# ---------------------------------------------------------------------------
# Pure-JAX/XLA reference matching PyTorch semantics
# ---------------------------------------------------------------------------
def reference_forward(x, p):
    def conv(x, w, b):
        y = lax.conv_general_dilated(
            x, w, (1, 1), "VALID",
            dimension_numbers=("NCHW", "OIHW", "NCHW"))
        return y + b[None, :, None, None]

    def pool(x):
        return lax.reduce_window(x, -jnp.inf, lax.max,
                                 (1, 1, 2, 2), (1, 1, 2, 2), "VALID")

    y = pool(jax.nn.relu(conv(x, p["conv1_w"], p["conv1_b"])))
    y = pool(jax.nn.relu(conv(y, p["conv2_w"], p["conv2_b"])))
    y = y.reshape(y.shape[0], -1)
    y = jax.nn.relu(y @ p["fc1_w"].T + p["fc1_b"])
    y = jax.nn.relu(y @ p["fc2_w"].T + p["fc2_b"])
    return y @ p["fc3_w"].T + p["fc3_b"]


def init_params(key):
    def u(k, shape, fan_in):
        bound = 1.0 / jnp.sqrt(jnp.float32(fan_in))
        return jax.random.uniform(k, shape, jnp.float32, -bound, bound)

    ks = jax.random.split(key, 10)
    return {
        "conv1_w": u(ks[0], (6, 3, 5, 5), 3 * 5 * 5),
        "conv1_b": u(ks[1], (6,), 3 * 5 * 5),
        "conv2_w": u(ks[2], (16, 6, 5, 5), 6 * 5 * 5),
        "conv2_b": u(ks[3], (16,), 6 * 5 * 5),
        "fc1_w": u(ks[4], (120, 16 * 5 * 5), 16 * 5 * 5),
        "fc1_b": u(ks[5], (120,), 16 * 5 * 5),
        "fc2_w": u(ks[6], (84, 120), 120),
        "fc2_b": u(ks[7], (84,), 120),
        "fc3_w": u(ks[8], (10, 84), 84),
        "fc3_b": u(ks[9], (10,), 84),
    }


if __name__ == "__main__":
    key = jax.random.PRNGKey(0)
    pkey, xkey = jax.random.split(key)
    params = init_params(pkey)
    # Input implied by the module (fc1 expects 16*5*5): NCHW (2, 3, 32, 32)
    x = jax.random.normal(xkey, (2, 3, 32, 32), jnp.float32)

    prep = preprocess_params(params)          # one-time weight prep (not per call)
    fwd = jax.jit(simple_cnn_forward)

    out = jax.block_until_ready(fwd(x, prep))
    ref = jax.block_until_ready(reference_forward(x, params))

    assert out.shape == (2, 10), out.shape
    assert jnp.all(jnp.isfinite(out))
    max_err = float(jnp.max(jnp.abs(out - ref)))
    assert jnp.allclose(out, ref, atol=5e-2, rtol=5e-2), max_err
    print("KERNEL_OK")
</pallas_src>

<mosaic_0001>
module attributes {stable_mosaic.version = 11 : i64} {
  func.func @_conv_relu_pool_kernel(%arg0: i32, %arg1: memref<4x392x75xbf16, #tpu.memory_space<vmem>>, %arg2: memref<75x128xbf16, #tpu.memory_space<vmem>>, %arg3: memref<1x128xf32, #tpu.memory_space<vmem>>, %arg4: memref<392x128xbf16, #tpu.memory_space<vmem>>) attributes {dimension_semantics = [#tpu.dimension_semantics<arbitrary>], iteration_bounds = array<i64: 1>, scalar_prefetch = 0 : i64, scratch_operands = 0 : i64, tpu.core_type = #tpu.core_type<tc>, window_params = [{pipeline_mode = #tpu.pipeline_mode<synchronous>, transform_indices = @transform_0, window_bounds = array<i64: 4, 392, 75>}, {pipeline_mode = #tpu.pipeline_mode<synchronous>, transform_indices = @transform_1, window_bounds = array<i64: 75, 128>}, {pipeline_mode = #tpu.pipeline_mode<synchronous>, transform_indices = @transform_2, window_bounds = array<i64: 1, 128>}, {pipeline_mode = #tpu.pipeline_mode<synchronous>, transform_indices = @transform_3, window_bounds = array<i64: 392, 128>}]} {
    %c0 = arith.constant 0 : index
    %c0_0 = arith.constant 0 : index
    %0 = vector.load %arg2[%c0, %c0_0] : memref<75x128xbf16, #tpu.memory_space<vmem>>, vector<75x128xbf16>
    %c0_1 = arith.constant 0 : index
    %c0_2 = arith.constant 0 : index
    %1 = vector.load %arg3[%c0_1, %c0_2] : memref<1x128xf32, #tpu.memory_space<vmem>>, vector<1x128xf32>
    %c0_3 = arith.constant 0 : index
    %c0_4 = arith.constant 0 : index
    %c0_5 = arith.constant 0 : index
    %2 = vector.load %arg1[%c0_3, %c0_4, %c0_5] : memref<4x392x75xbf16, #tpu.memory_space<vmem>>, vector<1x392x75xbf16>
    %3 = vector.shape_cast %2 : vector<1x392x75xbf16> to vector<392x75xbf16>
    %cst = arith.constant dense<0.000000e+00> : vector<392x128xf32>
    %4 = tpu.matmul %3, %0, %cst {dimension_numbers = #tpu.dot_dimension_numbers<[1], [0], [0], [1], [0, 0, 1, 1], [], []>} : vector<392x75xbf16>, vector<75x128xbf16>, vector<392x128xf32> -> vector<392x128xf32>
    %5 = vector.broadcast %1 : vector<1x128xf32> to vector<392x128xf32>
    %6 = arith.addf %4, %5 : vector<392x128xf32>
    %cst_6 = arith.constant 0.000000e+00 : f32
    %7 = vector.broadcast %cst_6 : f32 to vector<392x128xf32>
    %8 = arith.maximumf %6, %7 : vector<392x128xf32>
    %c1 = arith.constant 1 : index
    %c0_7 = arith.constant 0 : index
    %c0_8 = arith.constant 0 : index
    %9 = vector.load %arg1[%c1, %c0_7, %c0_8] : memref<4x392x75xbf16, #tpu.memory_space<vmem>>, vector<1x392x75xbf16>
    %10 = vector.shape_cast %9 : vector<1x392x75xbf16> to vector<392x75xbf16>
    %cst_9 = arith.constant dense<0.000000e+00> : vector<392x128xf32>
    %11 = tpu.matmul %10, %0, %cst_9 {dimension_numbers = #tpu.dot_dimension_numbers<[1], [0], [0], [1], [0, 0, 1, 1], [], []>} : vector<392x75xbf16>, vector<75x128xbf16>, vector<392x128xf32> -> vector<392x128xf32>
    %12 = vector.broadcast %1 : vector<1x128xf32> to vector<392x128xf32>
    %13 = arith.addf %11, %12 : vector<392x128xf32>
    %cst_10 = arith.constant 0.000000e+00 : f32
    %14 = vector.broadcast %cst_10 : f32 to vector<392x128xf32>
    %15 = arith.maximumf %13, %14 : vector<392x128xf32>
    %16 = arith.maximumf %8, %15 : vector<392x128xf32>
    %c2 = arith.constant 2 : index
    %c0_11 = arith.constant 0 : index
    %c0_12 = arith.constant 0 : index
    %17 = vector.load %arg1[%c2, %c0_11, %c0_12] : memref<4x392x75xbf16, #tpu.memory_space<vmem>>, vector<1x392x75xbf16>
    %18 = vector.shape_cast %17 : vector<1x392x75xbf16> to vector<392x75xbf16>
    %cst_13 = arith.constant dense<0.000000e+00> : vector<392x128xf32>
    %19 = tpu.matmul %18, %0, %cst_13 {dimension_numbers = #tpu.dot_dimension_numbers<[1], [0], [0], [1], [0, 0, 1, 1], [], []>} : vector<392x75xbf16>, vector<75x128xbf16>, vector<392x128xf32> -> vector<392x128xf32>
    %20 = vector.broadcast %1 : vector<1x128xf32> to vector<392x128xf32>
    %21 = arith.addf %19, %20 : vector<392x128xf32>
    %cst_14 = arith.constant 0.000000e+00 : f32
    %22 = vector.broadcast %cst_14 : f32 to vector<392x128xf32>
    %23 = arith.maximumf %21, %22 : vector<392x128xf32>
    %24 = arith.maximumf %16, %23 : vector<392x128xf32>
    %c3 = arith.constant 3 : index
    %c0_15 = arith.constant 0 : index
    %c0_16 = arith.constant 0 : index
    %25 = vector.load %arg1[%c3, %c0_15, %c0_16] : memref<4x392x75xbf16, #tpu.memory_space<vmem>>, vector<1x392x75xbf16>
    %26 = vector.shape_cast %25 : vector<1x392x75xbf16> to vector<392x75xbf16>
    %cst_17 = arith.constant dense<0.000000e+00> : vector<392x128xf32>
    %27 = tpu.matmul %26, %0, %cst_17 {dimension_numbers = #tpu.dot_dimension_numbers<[1], [0], [0], [1], [0, 0, 1, 1], [], []>} : vector<392x75xbf16>, vector<75x128xbf16>, vector<392x128xf32> -> vector<392x128xf32>
    %28 = vector.broadcast %1 : vector<1x128xf32> to vector<392x128xf32>
    %29 = arith.addf %27, %28 : vector<392x128xf32>
    %cst_18 = arith.constant 0.000000e+00 : f32
    %30 = vector.broadcast %cst_18 : f32 to vector<392x128xf32>
    %31 = arith.maximumf %29, %30 : vector<392x128xf32>
    %32 = arith.maximumf %24, %31 : vector<392x128xf32>
    %33 = arith.truncf %32 : vector<392x128xf32> to vector<392x128xbf16>
    %c0_19 = arith.constant 0 : index
    %c0_20 = arith.constant 0 : index
    %34 = vector.load %arg4[%c0_19, %c0_20] : memref<392x128xbf16, #tpu.memory_space<vmem>>, vector<392x128xbf16>
    tpu.vector_store %arg4[%c0_19, %c0_20], %33 {strides = array<i32>} : memref<392x128xbf16, #tpu.memory_space<vmem>>, vector<392x128xbf16>,
    return
  }
  func.func @transform_0(%arg0: i32) -> (i32, i32, i32) {
    %c0_i32 = arith.constant 0 : i32
    %c0_i32_0 = arith.constant 0 : i32
    %c0_i32_1 = arith.constant 0 : i32
    %c0_i32_2 = arith.constant 0 : i32
    return %c0_i32, %c0_i32_0, %c0_i32_1 : i32, i32, i32
  }
  func.func @transform_1(%arg0: i32) -> (i32, i32) {
    %c0_i32 = arith.constant 0 : i32
    %c0_i32_0 = arith.constant 0 : i32
    %c0_i32_1 = arith.constant 0 : i32
    return %c0_i32, %c0_i32_0 : i32, i32
  }
  func.func @transform_2(%arg0: i32) -> (i32, i32) {
    %c0_i32 = arith.constant 0 : i32
    %c0_i32_0 = arith.constant 0 : i32
    %c0_i32_1 = arith.constant 0 : i32
    return %c0_i32, %c0_i32_0 : i32, i32
  }
  func.func @transform_3(%arg0: i32) -> (i32, i32) {
    %c0_i32 = arith.constant 0 : i32
    %c0_i32_0 = arith.constant 0 : i32
    %c0_i32_1 = arith.constant 0 : i32
    return %c0_i32, %c0_i32_0 : i32, i32
  }
}

module attributes {stable_mosaic.version = 11 : i64} {
  func.func @_conv_relu_pool_kernel(%arg0: i32, %arg1: memref<4x50x3200xbf16, #tpu.memory_space<vmem>>, %arg2: memref<3200x128xbf16, #tpu.memory_space<vmem>>, %arg3: memref<1x128xf32, #tpu.memory_space<vmem>>, %arg4: memref<50x128xbf16, #tpu.memory_space<vmem>>) attributes {dimension_semantics = [#tpu.dimension_semantics<arbitrary>], iteration_bounds = array<i64: 1>, scalar_prefetch = 0 : i64, scratch_operands = 0 : i64, tpu.core_type = #tpu.core_type<tc>, window_params = [{pipeline_mode = #tpu.pipeline_mode<synchronous>, transform_indices = @transform_0, window_bounds = array<i64: 4, 50, 3200>}, {pipeline_mode = #tpu.pipeline_mode<synchronous>, transform_indices = @transform_1, window_bounds = array<i64: 3200, 128>}, {pipeline_mode = #tpu.pipeline_mode<synchronous>, transform_indices = @transform_2, window_bounds = array<i64: 1, 128>}, {pipeline_mode = #tpu.pipeline_mode<synchronous>, transform_indices = @transform_3, window_bounds = array<i64: 50, 128>}]} {
    %c0 = arith.constant 0 : index
    %c0_0 = arith.constant 0 : index
    %0 = vector.load %arg2[%c0, %c0_0] : memref<3200x128xbf16, #tpu.memory_space<vmem>>, vector<3200x128xbf16>
    %c0_1 = arith.constant 0 : index
    %c0_2 = arith.constant 0 : index
    %1 = vector.load %arg3[%c0_1, %c0_2] : memref<1x128xf32, #tpu.memory_space<vmem>>, vector<1x128xf32>
    %c0_3 = arith.constant 0 : index
    %c0_4 = arith.constant 0 : index
    %c0_5 = arith.constant 0 : index
    %2 = vector.load %arg1[%c0_3, %c0_4, %c0_5] : memref<4x50x3200xbf16, #tpu.memory_space<vmem>>, vector<1x50x3200xbf16>
    %3 = vector.shape_cast %2 : vector<1x50x3200xbf16> to vector<50x3200xbf16>
    %cst = arith.constant dense<0.000000e+00> : vector<50x128xf32>
    %4 = tpu.matmul %3, %0, %cst {dimension_numbers = #tpu.dot_dimension_numbers<[1], [0], [0], [1], [0, 0, 1, 1], [], []>} : vector<50x3200xbf16>, vector<3200x128xbf16>, vector<50x128xf32> -> vector<50x128xf32>
    %5 = vector.broadcast %1 : vector<1x128xf32> to vector<50x128xf32>
    %6 = arith.addf %4, %5 : vector<50x128xf32>
    %cst_6 = arith.constant 0.000000e+00 : f32
    %7 = vector.broadcast %cst_6 : f32 to vector<50x128xf32>
    %8 = arith.maximumf %6, %7 : vector<50x128xf32>
    %c1 = arith.constant 1 : index
    %c0_7 = arith.constant 0 : index
    %c0_8 = arith.constant 0 : index
    %9 = vector.load %arg1[%c1, %c0_7, %c0_8] : memref<4x50x3200xbf16, #tpu.memory_space<vmem>>, vector<1x50x3200xbf16>
    %10 = vector.shape_cast %9 : vector<1x50x3200xbf16> to vector<50x3200xbf16>
    %cst_9 = arith.constant dense<0.000000e+00> : vector<50x128xf32>
    %11 = tpu.matmul %10, %0, %cst_9 {dimension_numbers = #tpu.dot_dimension_numbers<[1], [0], [0], [1], [0, 0, 1, 1], [], []>} : vector<50x3200xbf16>, vector<3200x128xbf16>, vector<50x128xf32> -> vector<50x128xf32>
    %12 = vector.broadcast %1 : vector<1x128xf32> to vector<50x128xf32>
    %13 = arith.addf %11, %12 : vector<50x128xf32>
    %cst_10 = arith.constant 0.000000e+00 : f32
    %14 = vector.broadcast %cst_10 : f32 to vector<50x128xf32>
    %15 = arith.maximumf %13, %14 : vector<50x128xf32>
    %16 = arith.maximumf %8, %15 : vector<50x128xf32>
    %c2 = arith.constant 2 : index
    %c0_11 = arith.constant 0 : index
    %c0_12 = arith.constant 0 : index
    %17 = vector.load %arg1[%c2, %c0_11, %c0_12] : memref<4x50x3200xbf16, #tpu.memory_space<vmem>>, vector<1x50x3200xbf16>
    %18 = vector.shape_cast %17 : vector<1x50x3200xbf16> to vector<50x3200xbf16>
    %cst_13 = arith.constant dense<0.000000e+00> : vector<50x128xf32>
    %19 = tpu.matmul %18, %0, %cst_13 {dimension_numbers = #tpu.dot_dimension_numbers<[1], [0], [0], [1], [0, 0, 1, 1], [], []>} : vector<50x3200xbf16>, vector<3200x128xbf16>, vector<50x128xf32> -> vector<50x128xf32>
    %20 = vector.broadcast %1 : vector<1x128xf32> to vector<50x128xf32>
    %21 = arith.addf %19, %20 : vector<50x128xf32>
    %cst_14 = arith.constant 0.000000e+00 : f32
    %22 = vector.broadcast %cst_14 : f32 to vector<50x128xf32>
    %23 = arith.maximumf %21, %22 : vector<50x128xf32>
    %24 = arith.maximumf %16, %23 : vector<50x128xf32>
    %c3 = arith.constant 3 : index
    %c0_15 = arith.constant 0 : index
    %c0_16 = arith.constant 0 : index
    %25 = vector.load %arg1[%c3, %c0_15, %c0_16] : memref<4x50x3200xbf16, #tpu.memory_space<vmem>>, vector<1x50x3200xbf16>
    %26 = vector.shape_cast %25 : vector<1x50x3200xbf16> to vector<50x3200xbf16>
    %cst_17 = arith.constant dense<0.000000e+00> : vector<50x128xf32>
    %27 = tpu.matmul %26, %0, %cst_17 {dimension_numbers = #tpu.dot_dimension_numbers<[1], [0], [0], [1], [0, 0, 1, 1], [], []>} : vector<50x3200xbf16>, vector<3200x128xbf16>, vector<50x128xf32> -> vector<50x128xf32>
    %28 = vector.broadcast %1 : vector<1x128xf32> to vector<50x128xf32>
    %29 = arith.addf %27, %28 : vector<50x128xf32>
    %cst_18 = arith.constant 0.000000e+00 : f32
    %30 = vector.broadcast %cst_18 : f32 to vector<50x128xf32>
    %31 = arith.maximumf %29, %30 : vector<50x128xf32>
    %32 = arith.maximumf %24, %31 : vector<50x128xf32>
    %33 = arith.truncf %32 : vector<50x128xf32> to vector<50x128xbf16>
    %c0_19 = arith.constant 0 : index
    %c0_20 = arith.constant 0 : index
    %34 = vector.load %arg4[%c0_19, %c0_20] : memref<50x128xbf16, #tpu.memory_space<vmem>>, vector<50x128xbf16>
    tpu.vector_store %arg4[%c0_19, %c0_20], %33 {strides = array<i32>} : memref<50x128xbf16, #tpu.memory_space<vmem>>, vector<50x128xbf16>,
    return
  }
  func.func @transform_0(%arg0: i32) -> (i32, i32, i32) {
    %c0_i32 = arith.constant 0 : i32
    %c0_i32_0 = arith.constant 0 : i32
    %c0_i32_1 = arith.constant 0 : i32
    %c0_i32_2 = arith.constant 0 : i32
    return %c0_i32, %c0_i32_0, %c0_i32_1 : i32, i32, i32
  }
  func.func @transform_1(%arg0: i32) -> (i32, i32) {
    %c0_i32 = arith.constant 0 : i32
    %c0_i32_0 = arith.constant 0 : i32
    %c0_i32_1 = arith.constant 0 : i32
    return %c0_i32, %c0_i32_0 : i32, i32
  }
  func.func @transform_2(%arg0: i32) -> (i32, i32) {
    %c0_i32 = arith.constant 0 : i32
    %c0_i32_0 = arith.constant 0 : i32
    %c0_i32_1 = arith.constant 0 : i32
    return %c0_i32, %c0_i32_0 : i32, i32
  }
  func.func @transform_3(%arg0: i32) -> (i32, i32) {
    %c0_i32 = arith.constant 0 : i32
    %c0_i32_0 = arith.constant 0 : i32
    %c0_i32_1 = arith.constant 0 : i32
    return %c0_i32, %c0_i32_0 : i32, i32
  }
}

module attributes {stable_mosaic.version = 11 : i64} {
  func.func @_fc_stack_kernel(%arg0: i32, %arg1: memref<2x3200xbf16, #tpu.memory_space<vmem>>, %arg2: memref<3200x128xbf16, #tpu.memory_space<vmem>>, %arg3: memref<1x128xf32, #tpu.memory_space<vmem>>, %arg4: memref<128x128xbf16, #tpu.memory_space<vmem>>, %arg5: memref<1x128xf32, #tpu.memory_space<vmem>>, %arg6: memref<128x10xbf16, #tpu.memory_space<vmem>>, %arg7: memref<1x10xf32, #tpu.memory_space<vmem>>, %arg8: memref<2x10xf32, #tpu.memory_space<vmem>>) attributes {dimension_semantics = [#tpu.dimension_semantics<arbitrary>], iteration_bounds = array<i64: 1>, scalar_prefetch = 0 : i64, scratch_operands = 0 : i64, tpu.core_type = #tpu.core_type<tc>, window_params = [{pipeline_mode = #tpu.pipeline_mode<synchronous>, transform_indices = @transform_0, window_bounds = array<i64: 2, 3200>}, {pipeline_mode = #tpu.pipeline_mode<synchronous>, transform_indices = @transform_1, window_bounds = array<i64: 3200, 128>}, {pipeline_mode = #tpu.pipeline_mode<synchronous>, transform_indices = @transform_2, window_bounds = array<i64: 1, 128>}, {pipeline_mode = #tpu.pipeline_mode<synchronous>, transform_indices = @transform_3, window_bounds = array<i64: 128, 128>}, {pipeline_mode = #tpu.pipeline_mode<synchronous>, transform_indices = @transform_4, window_bounds = array<i64: 1, 128>}, {pipeline_mode = #tpu.pipeline_mode<synchronous>, transform_indices = @transform_5, window_bounds = array<i64: 128, 10>}, {pipeline_mode = #tpu.pipeline_mode<synchronous>, transform_indices = @transform_6, window_bounds = array<i64: 1, 10>}, {pipeline_mode = #tpu.pipeline_mode<synchronous>, transform_indices = @transform_7, window_bounds = array<i64: 2, 10>}]} {
    %c0 = arith.constant 0 : index
    %c0_0 = arith.constant 0 : index
    %0 = vector.load %arg1[%c0, %c0_0] : memref<2x3200xbf16, #tpu.memory_space<vmem>>, vector<2x3200xbf16>
    %c0_1 = arith.constant 0 : index
    %c0_2 = arith.constant 0 : index
    %1 = vector.load %arg2[%c0_1, %c0_2] : memref<3200x128xbf16, #tpu.memory_space<vmem>>, vector<3200x128xbf16>
    %cst = arith.constant dense<0.000000e+00> : vector<2x128xf32>
    %2 = tpu.matmul %0, %1, %cst {dimension_numbers = #tpu.dot_dimension_numbers<[1], [0], [0], [1], [0, 0, 1, 1], [], []>} : vector<2x3200xbf16>, vector<3200x128xbf16>, vector<2x128xf32> -> vector<2x128xf32>
    %c0_3 = arith.constant 0 : index
    %c0_4 = arith.constant 0 : index
    %3 = vector.load %arg3[%c0_3, %c0_4] : memref<1x128xf32, #tpu.memory_space<vmem>>, vector<1x128xf32>
    %4 = vector.broadcast %3 : vector<1x128xf32> to vector<2x128xf32>
    %5 = arith.addf %2, %4 : vector<2x128xf32>
    %cst_5 = arith.constant 0.000000e+00 : f32
    %6 = vector.broadcast %cst_5 : f32 to vector<2x128xf32>
    %7 = arith.maximumf %5, %6 : vector<2x128xf32>
    %8 = arith.truncf %7 : vector<2x128xf32> to vector<2x128xbf16>
    %c0_6 = arith.constant 0 : index
    %c0_7 = arith.constant 0 : index
    %9 = vector.load %arg4[%c0_6, %c0_7] : memref<128x128xbf16, #tpu.memory_space<vmem>>, vector<128x128xbf16>
    %cst_8 = arith.constant dense<0.000000e+00> : vector<2x128xf32>
    %10 = tpu.matmul %8, %9, %cst_8 {dimension_numbers = #tpu.dot_dimension_numbers<[1], [0], [0], [1], [0, 0, 1, 1], [], []>} : vector<2x128xbf16>, vector<128x128xbf16>, vector<2x128xf32> -> vector<2x128xf32>
    %c0_9 = arith.constant 0 : index
    %c0_10 = arith.constant 0 : index
    %11 = vector.load %arg5[%c0_9, %c0_10] : memref<1x128xf32, #tpu.memory_space<vmem>>, vector<1x128xf32>
    %12 = vector.broadcast %11 : vector<1x128xf32> to vector<2x128xf32>
    %13 = arith.addf %10, %12 : vector<2x128xf32>
    %cst_11 = arith.constant 0.000000e+00 : f32
    %14 = vector.broadcast %cst_11 : f32 to vector<2x128xf32>
    %15 = arith.maximumf %13, %14 : vector<2x128xf32>
    %16 = arith.truncf %15 : vector<2x128xf32> to vector<2x128xbf16>
    %c0_12 = arith.constant 0 : index
    %c0_13 = arith.constant 0 : index
    %17 = vector.load %arg6[%c0_12, %c0_13] : memref<128x10xbf16, #tpu.memory_space<vmem>>, vector<128x10xbf16>
    %cst_14 = arith.constant dense<0.000000e+00> : vector<2x10xf32>
    %18 = tpu.matmul %16, %17, %cst_14 {dimension_numbers = #tpu.dot_dimension_numbers<[1], [0], [0], [1], [0, 0, 1, 1], [], []>} : vector<2x128xbf16>, vector<128x10xbf16>, vector<2x10xf32> -> vector<2x10xf32>
    %c0_15 = arith.constant 0 : index
    %c0_16 = arith.constant 0 : index
    %19 = vector.load %arg7[%c0_15, %c0_16] : memref<1x10xf32, #tpu.memory_space<vmem>>, vector<1x10xf32>
    %20 = vector.broadcast %19 : vector<1x10xf32> to vector<2x10xf32>
    %21 = arith.addf %18, %20 : vector<2x10xf32>
    %c0_17 = arith.constant 0 : index
    %c0_18 = arith.constant 0 : index
    %22 = vector.load %arg8[%c0_17, %c0_18] : memref<2x10xf32, #tpu.memory_space<vmem>>, vector<2x10xf32>
    tpu.vector_store %arg8[%c0_17, %c0_18], %21 {strides = array<i32>} : memref<2x10xf32, #tpu.memory_space<vmem>>, vector<2x10xf32>,
    return
  }
  func.func @transform_0(%arg0: i32) -> (i32, i32) {
    %c0_i32 = arith.constant 0 : i32
    %c0_i32_0 = arith.constant 0 : i32
    %c0_i32_1 = arith.constant 0 : i32
    return %c0_i32, %c0_i32_0 : i32, i32
  }
  func.func @transform_1(%arg0: i32) -> (i32, i32) {
    %c0_i32 = arith.constant 0 : i32
    %c0_i32_0 = arith.constant 0 : i32
    %c0_i32_1 = arith.constant 0 : i32
    return %c0_i32, %c0_i32_0 : i32, i32
  }
  func.func @transform_2(%arg0: i32) -> (i32, i32) {
    %c0_i32 = arith.constant 0 : i32
    %c0_i32_0 = arith.constant 0 : i32
    %c0_i32_1 = arith.constant 0 : i32
    return %c0_i32, %c0_i32_0 : i32, i32
  }
  func.func @transform_3(%arg0: i32) -> (i32, i32) {
    %c0_i32 = arith.constant 0 : i32
    %c0_i32_0 = arith.constant 0 : i32
    %c0_i32_1 = arith.constant 0 : i32
    return %c0_i32, %c0_i32_0 : i32, i32
  }
  func.func @transform_4(%arg0: i32) -> (i32, i32) {
    %c0_i32 = arith.constant 0 : i32
    %c0_i32_0 = arith.constant 0 : i32
    %c0_i32_1 = arith.constant 0 : i32
    return %c0_i32, %c0_i32_0 : i32, i32
  }
  func.func @transform_5(%arg0: i32) -> (i32, i32) {
    %c0_i32 = arith.constant 0 : i32
    %c0_i32_0 = arith.constant 0 : i32
    %c0_i32_1 = arith.constant 0 : i32
    return %c0_i32, %c0_i32_0 : i32, i32
  }
  func.func @transform_6(%arg0: i32) -> (i32, i32) {
    %c0_i32 = arith.constant 0 : i32
    %c0_i32_0 = arith.constant 0 : i32
    %c0_i32_1 = arith.constant 0 : i32
    return %c0_i32, %c0_i32_0 : i32, i32
  }
  func.func @transform_7(%arg0: i32) -> (i32, i32) {
    %c0_i32 = arith.constant 0 : i32
    %c0_i32_0 = arith.constant 0 : i32
    %c0_i32_1 = arith.constant 0 : i32
    return %c0_i32, %c0_i32_0 : i32, i32
  }
}

</mosaic_0001>

<bundles_post_ra>
// kernel: simple_cnn_forward.3
= control target key start
LH: loop header
LB: loop body
LE: loop exit
PB: predicated region body
PF: predicated region fallthrough
CT: control target
= control target key end

     0   :  { %vm306_vm0 = vcmask 1044480   ;;  %vm307_vm1 = vcmask 1045504   ;;  %v2932_v2 = vmov 65535   ;;  %vm230_vm2 = vcmask 613376   ;;  %s3652_s1 = inlined_call_operand.vmem [shape: bf16[75,128], index: 1, kind: input, shape index: {}]   ;;  %s3653_s2 = inlined_call_operand.vmem [shape: f32[1,128], index: 2, kind: input, shape index: {}]   ;;  %s3654_s0 = inlined_call_operand.vmem [shape: bf16[4,392,75], index: 0, kind: input, shape index: {}]   ;;  %s3655_s3 = inlined_call_operand.vmem [shape: bf16[392,128], index: 3, kind: output, shape index: {}]  }
   0x1   :  { %v2148_v0 = vld [vmem:[%s3652_s1 + $0x20] sm:$0xf]  ;;  %v2689_v1 = vld [vmem:[%s3652_s1 + $0x20] sm:$0x30]  ;;  %v308_v3 = vsel %vm306_vm0, 4294967295, %v2932_v2  ;;  %v2688_v7 = vld [vmem:[%s3652_s1 + $0x18] sm:$0xff] }
   0x2   :  { %v2149_v4 = vor.u32 %v2689_v1, %v2148_v0  ;;  %v309_v5 = vsel %vm307_vm1, %v308_v3, 0  ;;  %v2687_v8 = vld [vmem:[%s3652_s1 + $0x10] sm:$0xff]  ;;  %v2686_v9 = vld [vmem:[%s3652_s1 + $0x8] sm:$0xff]  ;;  %v2685_v10 = vld [vmem:[%s3652_s1] sm:$0xff] }
   0x3   :  { %v2690_v11 = vld [vmem:[%s3654_s0] sm:$0xff]  ;;  %v2738_v13 = vld [vmem:[%s3654_s0 + $0x188] sm:$0xff]  ;;  %v2739_v17 = vld [vmem:[%s3654_s0 + $0x190] sm:$0xff] }
   0x4   :  { %v311_v6 = vand.u32 %v2149_v4, %v309_v5  ;;  %v2714_v12 = vld [vmem:[%s3654_s0 + $0xc4] sm:$0xff]  ;;  %v2762_v14 = vld [vmem:[%s3654_s0 + $0x24c] sm:$0xff]  ;;  %v2763_v18 = vld [vmem:[%s3654_s0 + $0x254] sm:$0xff] }
   0x5   :  { %v2691_v15 = vld [vmem:[%s3654_s0 + $0x8] sm:$0xff]  ;;  %v2692_v19 = vld [vmem:[%s3654_s0 + $0x10] sm:$0xff]  ;;  %v2740_v21 = vld [vmem:[%s3654_s0 + $0x198] sm:$0xff] }
   0x6   :  { %316 = vmatpush.bf16.msra.mxu0 %v311_v6  ;;  %746 = vmatpush.bf16.msra.mxu1 %v311_v6  ;;  %v2715_v16 = vld [vmem:[%s3654_s0 + $0xcc] sm:$0xff]  ;;  %v2716_v20 = vld [vmem:[%s3654_s0 + $0xd4] sm:$0xff]  ;;  %v2764_v22 = vld [vmem:[%s3654_s0 + $0x25c] sm:$0xff] }
   0x7   :  { %1225 = vmatpush.bf16.msra.mxu2 %v311_v6  ;;  %1704 = vmatpush.bf16.msra.mxu3 %v311_v6  ;;  %v2693_v23 = vld [vmem:[%s3654_s0 + $0x18] sm:$0xff]  ;;  %v2741_v25 = vld [vmem:[%s3654_s0 + $0x1a0] sm:$0xff]  ;;  %v2742_v29 = vld [vmem:[%s3654_s0 + $0x1a8] sm:$0xff] }
   0x8   :  { %v2717_v24 = vld [vmem:[%s3654_s0 + $0xdc] sm:$0xff]  ;;  %v2765_v26 = vld [vmem:[%s3654_s0 + $0x264] sm:$0xff]  ;;  %v2766_v30 = vld [vmem:[%s3654_s0 + $0x26c] sm:$0xff] }
   0x9   :  { %v2694_v27 = vld [vmem:[%s3654_s0 + $0x20] sm:$0xff]  ;;  %v2695_v31 = vld [vmem:[%s3654_s0 + $0x28] sm:$0xff]  ;;  %v2743_v33 = vld [vmem:[%s3654_s0 + $0x1b0] sm:$0xff] }
   0xa   :  { %317 = vmatpush.bf16.msra.mxu0 %v2688_v7  ;;  %747 = vmatpush.bf16.msra.mxu1 %v2688_v7  ;;  %v2718_v28 = vld [vmem:[%s3654_s0 + $0xe4] sm:$0xff]  ;;  %v2719_v32 = vld [vmem:[%s3654_s0 + $0xec] sm:$0xff]  ;;  %v2767_v34 = vld [vmem:[%s3654_s0 + $0x274] sm:$0xff] }
   0xb   :  { %1226 = vmatpush.bf16.msra.mxu2 %v2688_v7  ;;  %1705 = vmatpush.bf16.msra.mxu3 %v2688_v7  ;;  %v2696_v35 = vld [vmem:[%s3654_s0 + $0x30] sm:$0xff]  ;;  %v2744_v37 = vld [vmem:[%s3654_s0 + $0x1b8] sm:$0xff]  ;;  %v2745_v41 = vld [vmem:[%s3654_s0 + $0x1c0] sm:$0xff] }
   0xc   :  { %v2720_v36 = vld [vmem:[%s3654_s0 + $0xf4] sm:$0xff]  ;;  %v2768_v38 = vld [vmem:[%s3654_s0 + $0x27c] sm:$0xff]  ;;  %v2769_v42 = vld [vmem:[%s3654_s0 + $0x284] sm:$0xff] }
   0xd   :  { %v2697_v39 = vld [vmem:[%s3654_s0 + $0x38] sm:$0xff]  ;;  %v2698_v43 = vld [vmem:[%s3654_s0 + $0x40] sm:$0xff]  ;;  %v2746_v47 = vld [vmem:[%s3654_s0 + $0x1c8] sm:$0xff] }
   0xe   :  { %318 = vmatpush.bf16.msra.mxu0 %v2687_v8  ;;  %748 = vmatpush.bf16.msra.mxu1 %v2687_v8  ;;  %v2721_v40 = vld [vmem:[%s3654_s0 + $0xfc] sm:$0xff]  ;;  %v2722_v44 = vld [vmem:[%s3654_s0 + $0x104] sm:$0xff]  ;;  %v2770_v48 = vld [vmem:[%s3654_s0 + $0x28c] sm:$0xff] }
   0xf   :  { %1227 = vmatpush.bf16.msra.mxu2 %v2687_v8  ;;  %1706 = vmatpush.bf16.msra.mxu3 %v2687_v8  ;;  %v3114_v49 = vld [vmem:[%s3653_s2] ss:$0 sm:$0xff]  ;;  %v2699_v4 = vld [vmem:[%s3654_s0 + $0x48] sm:$0xff] }
  0x10   :  { %v2723_v5 = vld [vmem:[%s3654_s0 + $0x10c] sm:$0xff] }
  0x12   :  { %319 = vmatpush.bf16.msra.mxu0 %v2686_v9  ;;  %749 = vmatpush.bf16.msra.mxu1 %v2686_v9 }
  0x13   :  { %1228 = vmatpush.bf16.msra.mxu2 %v2686_v9  ;;  %1707 = vmatpush.bf16.msra.mxu3 %v2686_v9 }
  0x16   :  { %320 = vmatpush.bf16.msra.mxu0 %v2685_v10  ;;  %750 = vmatpush.bf16.msra.mxu1 %v2685_v10 }
  0x17   :  { %1229 = vmatpush.bf16.msra.mxu2 %v2685_v10  ;;  %1708 = vmatpush.bf16.msra.mxu3 %v2685_v10  ;;  %v2747_v10 = vld [vmem:[%s3654_s0 + $0x1d0] sm:$0xff] }
  0x19   :  { %2150 = vmatmul.msk.bf16.vlgmr.msra.gmra.mxu0 %vm230_vm2, %v2690_v11  ;;  %2320 = vmatmul.msk.bf16.vlgmr.msra.gmra.mxu1 %vm230_vm2, %v2714_v12  ;;  %v2771_v11 = vld [vmem:[%s3654_s0 + $0x294] sm:$0xff] }
  0x1a   :  { %2490 = vmatmul.msk.bf16.vlgmr.msra.gmra.mxu2 %vm230_vm2, %v2738_v13  ;;  %2660 = vmatmul.msk.bf16.vlgmr.msra.gmra.mxu3 %vm230_vm2, %v2762_v14 }
  0x29   :  { %2151 = vmatmul.msk.bf16.gmra.mxu0 %vm230_vm2, %v2691_v15  ;;  %2321 = vmatmul.msk.bf16.gmra.mxu1 %vm230_vm2, %v2715_v16 }
  0x2a   :  { %2491 = vmatmul.msk.bf16.gmra.mxu2 %vm230_vm2, %v2739_v17  ;;  %2661 = vmatmul.msk.bf16.gmra.mxu3 %vm230_vm2, %v2763_v18 }
  0x39   :  { %2152 = vmatmul.msk.bf16.gmra.mxu0 %vm230_vm2, %v2692_v19  ;;  %2322 = vmatmul.msk.bf16.gmra.mxu1 %vm230_vm2, %v2716_v20 }
  0x3a   :  { %2492 = vmatmul.msk.bf16.gmra.mxu2 %vm230_vm2, %v2740_v21  ;;  %2662 = vmatmul.msk.bf16.gmra.mxu3 %vm230_vm2, %v2764_v22 }
  0x49   :  { %2153 = vmatmul.msk.bf16.gmra.mxu0 %vm230_vm2, %v2693_v23  ;;  %2323 = vmatmul.msk.bf16.gmra.mxu1 %vm230_vm2, %v2717_v24 }
  0x4a   :  { %2493 = vmatmul.msk.bf16.gmra.mxu2 %vm230_vm2, %v2741_v25  ;;  %2663 = vmatmul.msk.bf16.gmra.mxu3 %vm230_vm2, %v2765_v26 }
  0x59   :  { %2154 = vmatmul.msk.bf16.gmra.mxu0 %vm230_vm2, %v2694_v27  ;;  %2324 = vmatmul.msk.bf16.gmra.mxu1 %vm230_vm2, %v2718_v28 }
  0x5a   :  { %2494 = vmatmul.msk.bf16.gmra.mxu2 %vm230_vm2, %v2742_v29  ;;  %2664 = vmatmul.msk.bf16.gmra.mxu3 %vm230_vm2, %v2766_v30 }
  0x69   :  { %2155 = vmatmul.msk.bf16.gmra.mxu0 %vm230_vm2, %v2695_v31  ;;  %2325 = vmatmul.msk.bf16.gmra.mxu1 %vm230_vm2, %v2719_v32 }
  0x6a   :  { %2495 = vmatmul.msk.bf16.gmra.mxu2 %vm230_vm2, %v2743_v33  ;;  %2665 = vmatmul.msk.bf16.gmra.mxu3 %vm230_vm2, %v2767_v34 }
  0x79   :  { %2156 = vmatmul.msk.bf16.gmra.mxu0 %vm230_vm2, %v2696_v35  ;;  %2326 = vmatmul.msk.bf16.gmra.mxu1 %vm230_vm2, %v2720_v36 }
  0x7a   :  { %2496 = vmatmul.msk.bf16.gmra.mxu2 %vm230_vm2, %v2744_v37  ;;  %2666 = vmatmul.msk.bf16.gmra.mxu3 %vm230_vm2, %v2768_v38 }
  0x89   :  { %2157 = vmatmul.msk.bf16.gmra.mxu0 %vm230_vm2, %v2697_v39  ;;  %2327 = vmatmul.msk.bf16.gmra.mxu1 %vm230_vm2, %v2721_v40  ;;  %v2700_v39 = vld [vmem:[%s3654_s0 + $0x50] sm:$0xff] }
  0x8a   :  { %2497 = vmatmul.msk.bf16.gmra.mxu2 %vm230_vm2, %v2745_v41  ;;  %2667 = vmatmul.msk.bf16.gmra.mxu3 %vm230_vm2, %v2769_v42  ;;  %v2724_v40 = vld [vmem:[%s3654_s0 + $0x114] sm:$0xff] }
  0x96   :  { %v322_v45 = vpop.f32.mrf.mxu0  ;;  %v752_v46 = vpop.f32.mrf.mxu1 }
  0x97   :  { %v323_v50 = vadd.f32 %v3114_v49, %v322_v45  ;;  %v753_v51 = vadd.f32 %v3114_v49, %v752_v46  ;;  %v2748_v45 = vld [vmem:[%s3654_s0 + $0x1d8] sm:$0xff] }
  0x98   :  { %v2772_v46 = vld [vmem:[%s3654_s0 + $0x29c] sm:$0xff] }
  0x99   :  { %2158 = vmatmul.msk.bf16.gmra.mxu0 %vm230_vm2, %v2698_v43  ;;  %2328 = vmatmul.msk.bf16.gmra.mxu1 %vm230_vm2, %v2722_v44  ;;  %v446_v56 = vmax.f32 %v323_v50, 0.0  ;;  %v876_v57 = vmax.f32 %v753_v51, 0.0 }
  0x9a   :  { %2498 = vmatmul.msk.bf16.gmra.mxu2 %vm230_vm2, %v2746_v47  ;;  %2668 = vmatmul.msk.bf16.gmra.mxu3 %vm230_vm2, %v2770_v48 }
  0x9b   :  { %v925_v61 = vmax.f32 %v446_v56, %v876_v57 }
  0x9d   :  { %v1231_v52 = vpop.f32.mrf.mxu2  ;;  %v1710_v53 = vpop.f32.mrf.mxu3 }
  0x9e   :  { %v324_v54 = vpop.f32.mrf.mxu0  ;;  %v754_v55 = vpop.f32.mrf.mxu1  ;;  %v1232_v58 = vadd.f32 %v3114_v49, %v1231_v52  ;;  %v1711_v63 = vadd.f32 %v3114_v49, %v1710_v53 }
  0x9f   :  { %v325_v59 = vadd.f32 %v3114_v49, %v324_v54  ;;  %v755_v60 = vadd.f32 %v3114_v49, %v754_v55 }
  0xa0   :  { %v1355_v62 = vmax.f32 %v1232_v58, 0.0  ;;  %v1834_v13 = vmax.f32 %v1711_v63, 0.0 }
  0xa1   :  { %v447_v0 = vmax.f32 %v325_v59, 0.0  ;;  %v877_v1 = vmax.f32 %v755_v60, 0.0 }
  0xa2   :  { %v1404_v12 = vmax.f32 %v925_v61, %v1355_v62 }
  0xa3   :  { %v926_v14 = vmax.f32 %v447_v0, %v877_v1 }
  0xa4   :  { %v1883_v20 = vmax.f32 %v1404_v12, %v1834_v13  ;;  %v2725_v12 = vld [vmem:[%s3654_s0 + $0x11c] sm:$0xff] }
  0xa5   :  { %v1233_v2 = vpop.f32.mrf.mxu2  ;;  %v1712_v3 = vpop.f32.mrf.mxu3 }
  0xa6   :  { %v1234_v6 = vadd.f32 %v3114_v49, %v1233_v2  ;;  %v1713_v7 = vadd.f32 %v3114_v49, %v1712_v3  ;;  %v327_v8 = vpop.f32.mrf.mxu0  ;;  %v757_v9 = vpop.f32.mrf.mxu1 }
  0xa7   :  { %v328_v18 = vadd.f32 %v3114_v49, %v327_v8  ;;  %v758_v19 = vadd.f32 %v3114_v49, %v757_v9 }
  0xa8   :  { %v1356_v15 = vmax.f32 %v1234_v6, 0.0  ;;  %v1835_v17 = vmax.f32 %v1713_v7, 0.0 }
  0xa9   :  { %2159 = vmatmul.msk.bf16.gmra.mxu0 %vm230_vm2, %v2699_v4  ;;  %2329 = vmatmul.msk.bf16.gmra.mxu1 %vm230_vm2, %v2723_v5  ;;  %v448_v27 = vmax.f32 %v328_v18, 0.0  ;;  %v878_v28 = vmax.f32 %v758_v19, 0.0  ;;  %v2773_v18 = vld [vmem:[%s3654_s0 + $0x2a4] sm:$0xff] }
  0xaa   :  { %v1405_v16 = vmax.f32 %v926_v14, %v1356_v15  ;;  %2499 = vmatmul.msk.bf16.gmra.mxu2 %vm230_vm2, %v2747_v10  ;;  %2669 = vmatmul.msk.bf16.gmra.mxu3 %vm230_vm2, %v2771_v11  ;;  %v2701_v11 = vld [vmem:[%s3654_s0 + $0x58] sm:$0xff] }
  0xab   :  { %v927_v32 = vmax.f32 %v448_v27, %v878_v28 }
  0xac   :  { %v1884_v21 = vmax.f32 %v1405_v16, %v1835_v17  ;;  %v2749_v17 = vld [vmem:[%s3654_s0 + $0x1e0] sm:$0xff] }
  0xad   :  { %v1236_v22 = vpop.f32.mrf.mxu2  ;;  %v1715_v23 = vpop.f32.mrf.mxu3 }
  0xae   :  { %v2789_v24 = vpack.c.bf16 %v1884_v21, %v1883_v20  ;;  %v329_v25 = vpop.f32.mrf.mxu0  ;;  %v759_v26 = vpop.f32.mrf.mxu1  ;;  %v1237_v29 = vadd.f32 %v3114_v49, %v1236_v22  ;;  %v1716_v34 = vadd.f32 %v3114_v49, %v1715_v23 }
  0xaf   :  { %v330_v30 = vadd.f32 %v3114_v49, %v329_v25  ;;  %v760_v31 = vadd.f32 %v3114_v49, %v759_v26 }
  0xb0   :  { %2790 = vst [vmem:[%s3655_s3] sm:$0xff] %v2789_v24   ;;  %v1357_v33 = vmax.f32 %v1237_v29, 0.0  ;;  %v1836_v48 = vmax.f32 %v1716_v34, 0.0 }
  0xb1   :  { %v449_v35 = vmax.f32 %v330_v30, 0.0  ;;  %v879_v36 = vmax.f32 %v760_v31, 0.0 }
  0xb2   :  { %v1406_v47 = vmax.f32 %v927_v32, %v1357_v33 }
  0xb3   :  { %v928_v50 = vmax.f32 %v449_v35, %v879_v36 }
  0xb4   :  { %v1885_v56 = vmax.f32 %v1406_v47, %v1836_v48  ;;  %v2726_v47 = vld [vmem:[%s3654_s0 + $0x124] sm:$0xff] }
  0xb5   :  { %v1238_v37 = vpop.f32.mrf.mxu2  ;;  %v1717_v38 = vpop.f32.mrf.mxu3 }
  0xb6   :  { %v1239_v41 = vadd.f32 %v3114_v49, %v1238_v37  ;;  %v1718_v42 = vadd.f32 %v3114_v49, %v1717_v38  ;;  %v332_v43 = vpop.f32.mrf.mxu0  ;;  %v762_v44 = vpop.f32.mrf.mxu1 }
  0xb7   :  { %v333_v54 = vadd.f32 %v3114_v49, %v332_v43  ;;  %v763_v55 = vadd.f32 %v3114_v49, %v762_v44 }
  0xb8   :  { %v1358_v51 = vmax.f32 %v1239_v41, 0.0  ;;  %v1837_v53 = vmax.f32 %v1718_v42, 0.0 }
  0xb9   :  { %2160 = vmatmul.msk.bf16.gmra.mxu0 %vm230_vm2, %v2700_v39  ;;  %2330 = vmatmul.msk.bf16.gmra.mxu1 %vm230_vm2, %v2724_v40  ;;  %v450_v63 = vmax.f32 %v333_v54, 0.0  ;;  %v880_v0 = vmax.f32 %v763_v55, 0.0  ;;  %v2774_v54 = vld [vmem:[%s3654_s0 + $0x2ac] sm:$0xff] }
  0xba   :  { %v1407_v52 = vmax.f32 %v928_v50, %v1358_v51  ;;  %2500 = vmatmul.msk.bf16.gmra.mxu2 %vm230_vm2, %v2748_v45  ;;  %2670 = vmatmul.msk.bf16.gmra.mxu3 %vm230_vm2, %v2772_v46  ;;  %v2702_v46 = vld [vmem:[%s3654_s0 + $0x60] sm:$0xff] }
  0xbb   :  { %v929_v4 = vmax.f32 %v450_v63, %v880_v0 }
  0xbc   :  { %v1886_v57 = vmax.f32 %v1407_v52, %v1837_v53  ;;  %v2750_v53 = vld [vmem:[%s3654_s0 + $0x1e8] sm:$0xff] }
  0xbd   :  { %v1241_v58 = vpop.f32.mrf.mxu2  ;;  %v1720_v59 = vpop.f32.mrf.mxu3 }
  0xbe   :  { %v2794_v60 = vpack.c.bf16 %v1886_v57, %v1885_v56  ;;  %v334_v61 = vpop.f32.mrf.mxu0  ;;  %v764_v62 = vpop.f32.mrf.mxu1  ;;  %v1242_v1 = vadd.f32 %v3114_v49, %v1241_v58  ;;  %v1721_v6 = vadd.f32 %v3114_v49, %v1720_v59 }
  0xbf   :  { %v335_v2 = vadd.f32 %v3114_v49, %v334_v61  ;;  %v765_v3 = vadd.f32 %v3114_v49, %v764_v62 }
  0xc0   :  { %2906 = vst [vmem:[%s3655_s3 + $0x8] sm:$0xff] %v2794_v60   ;;  %v1359_v5 = vmax.f32 %v1242_v1, 0.0  ;;  %v1838_v20 = vmax.f32 %v1721_v6, 0.0 }
  0xc1   :  { %v451_v7 = vmax.f32 %v335_v2, 0.0  ;;  %v881_v8 = vmax.f32 %v765_v3, 0.0 }
  0xc2   :  { %v1408_v19 = vmax.f32 %v929_v4, %v1359_v5 }
  0xc3   :  { %v930_v21 = vmax.f32 %v451_v7, %v881_v8 }
  0xc4   :  { %v1887_v27 = vmax.f32 %v1408_v19, %v1838_v20  ;;  %v2727_v19 = vld [vmem:[%s3654_s0 + $0x12c] sm:$0xff] }
  0xc5   :  { %v1243_v9 = vpop.f32.mrf.mxu2  ;;  %v1722_v10 = vpop.f32.mrf.mxu3 }
  0xc6   :  { %v1244_v13 = vadd.f32 %v3114_v49, %v1243_v9  ;;  %v1723_v14 = vadd.f32 %v3114_v49, %v1722_v10  ;;  %v337_v15 = vpop.f32.mrf.mxu0  ;;  %v767_v16 = vpop.f32.mrf.mxu1 }
  0xc7   :  { %v338_v25 = vadd.f32 %v3114_v49, %v337_v15  ;;  %v768_v26 = vadd.f32 %v3114_v49, %v767_v16 }
  0xc8   :  { %v1360_v22 = vmax.f32 %v1244_v13, 0.0  ;;  %v1839_v24 = vmax.f32 %v1723_v14, 0.0 }
  0xc9   :  { %2161 = vmatmul.msk.bf16.gmra.mxu0 %vm230_vm2, %v2701_v11  ;;  %2331 = vmatmul.msk.bf16.gmra.mxu1 %vm230_vm2, %v2725_v12  ;;  %v452_v34 = vmax.f32 %v338_v25, 0.0  ;;  %v882_v35 = vmax.f32 %v768_v26, 0.0  ;;  %v2775_v25 = vld [vmem:[%s3654_s0 + $0x2b4] sm:$0xff] }
  0xca   :  { %v1409_v23 = vmax.f32 %v930_v21, %v1360_v22  ;;  %2501 = vmatmul.msk.bf16.gmra.mxu2 %vm230_vm2, %v2749_v17  ;;  %2671 = vmatmul.msk.bf16.gmra.mxu3 %vm230_vm2, %v2773_v18  ;;  %v2703_v18 = vld [vmem:[%s3654_s0 + $0x68] sm:$0xff] }
  0xcb   :  { %v931_v39 = vmax.f32 %v452_v34, %v882_v35 }
  0xcc   :  { %v1888_v28 = vmax.f32 %v1409_v23, %v1839_v24  ;;  %v2751_v24 = vld [vmem:[%s3654_s0 + $0x1f0] sm:$0xff] }
  0xcd   :  { %v1246_v29 = vpop.f32.mrf.mxu2  ;;  %v1725_v30 = vpop.f32.mrf.mxu3 }
  0xce   :  { %v2799_v31 = vpack.c.bf16 %v1888_v28, %v1887_v27  ;;  %v339_v32 = vpop.f32.mrf.mxu0  ;;  %v769_v33 = vpop.f32.mrf.mxu1  ;;  %v1247_v36 = vadd.f32 %v3114_v49, %v1246_v29  ;;  %v1726_v41 = vadd.f32 %v3114_v49, %v1725_v30 }
  0xcf   :  { %v340_v37 = vadd.f32 %v3114_v49, %v339_v32  ;;  %v770_v38 = vadd.f32 %v3114_v49, %v769_v33 }
  0xd0   :  { %2907 = vst [vmem:[%s3655_s3 + $0x10] sm:$0xff] %v2799_v31   ;;  %v1361_v40 = vmax.f32 %v1247_v36, 0.0  ;;  %v1840_v56 = vmax.f32 %v1726_v41, 0.0 }
  0xd1   :  { %v453_v42 = vmax.f32 %v340_v37, 0.0  ;;  %v883_v43 = vmax.f32 %v770_v38, 0.0 }
  0xd2   :  { %v1410_v55 = vmax.f32 %v931_v39, %v1361_v40 }
  0xd3   :  { %v932_v57 = vmax.f32 %v453_v42, %v883_v43 }
  0xd4   :  { %v1889_v63 = vmax.f32 %v1410_v55, %v1840_v56  ;;  %v2728_v55 = vld [vmem:[%s3654_s0 + $0x134] sm:$0xff] }
  0xd5   :  { %v1248_v44 = vpop.f32.mrf.mxu2  ;;  %v1727_v45 = vpop.f32.mrf.mxu3 }
  0xd6   :  { %v1249_v48 = vadd.f32 %v3114_v49, %v1248_v44  ;;  %v1728_v50 = vadd.f32 %v3114_v49, %v1727_v45  ;;  %v342_v51 = vpop.f32.mrf.mxu0  ;;  %v772_v52 = vpop.f32.mrf.mxu1 }
  0xd7   :  { %v343_v61 = vadd.f32 %v3114_v49, %v342_v51  ;;  %v773_v62 = vadd.f32 %v3114_v49, %v772_v52 }
  0xd8   :  { %v1362_v58 = vmax.f32 %v1249_v48, 0.0  ;;  %v1841_v60 = vmax.f32 %v1728_v50, 0.0 }
  0xd9   :  { %2162 = vmatmul.msk.bf16.gmra.mxu0 %vm230_vm2, %v2702_v46  ;;  %2332 = vmatmul.msk.bf16.gmra.mxu1 %vm230_vm2, %v2726_v47  ;;  %v454_v6 = vmax.f32 %v343_v61, 0.0  ;;  %v884_v7 = vmax.f32 %v773_v62, 0.0  ;;  %v2776_v61 = vld [vmem:[%s3654_s0 + $0x2bc] sm:$0xff] }
  0xda   :  { %v1411_v59 = vmax.f32 %v932_v57, %v1362_v58  ;;  %2502 = vmatmul.msk.bf16.gmra.mxu2 %vm230_vm2, %v2750_v53  ;;  %2672 = vmatmul.msk.bf16.gmra.mxu3 %vm230_vm2, %v2774_v54  ;;  %v2704_v54 = vld [vmem:[%s3654_s0 + $0x70] sm:$0xff] }
  0xdb   :  { %v933_v11 = vmax.f32 %v454_v6, %v884_v7 }
  0xdc   :  { %v1890_v0 = vmax.f32 %v1411_v59, %v1841_v60  ;;  %v2752_v60 = vld [vmem:[%s3654_s0 + $0x1f8] sm:$0xff] }
  0xdd   :  { %v1251_v1 = vpop.f32.mrf.mxu2  ;;  %v1730_v2 = vpop.f32.mrf.mxu3 }
  0xde   :  { %v2804_v3 = vpack.c.bf16 %v1890_v0, %v1889_v63  ;;  %v344_v4 = vpop.f32.mrf.mxu0  ;;  %v774_v5 = vpop.f32.mrf.mxu1  ;;  %v1252_v8 = vadd.f32 %v3114_v49, %v1251_v1  ;;  %v1731_v13 = vadd.f32 %v3114_v49, %v1730_v2 }
  0xdf   :  { %v345_v9 = vadd.f32 %v3114_v49, %v344_v4  ;;  %v775_v10 = vadd.f32 %v3114_v49, %v774_v5 }
  0xe0   :  { %2908 = vst [vmem:[%s3655_s3 + $0x18] sm:$0xff] %v2804_v3   ;;  %v1363_v12 = vmax.f32 %v1252_v8, 0.0  ;;  %v1842_v27 = vmax.f32 %v1731_v13, 0.0 }
  0xe1   :  { %v455_v14 = vmax.f32 %v345_v9, 0.0  ;;  %v885_v15 = vmax.f32 %v775_v10, 0.0 }
  0xe2   :  { %v1412_v26 = vmax.f32 %v933_v11, %v1363_v12 }
  0xe3   :  { %v934_v28 = vmax.f32 %v455_v14, %v885_v15 }
  0xe4   :  { %v1891_v34 = vmax.f32 %v1412_v26, %v1842_v27  ;;  %v2729_v26 = vld [vmem:[%s3654_s0 + $0x13c] sm:$0xff] }
  0xe5   :  { %v1253_v16 = vpop.f32.mrf.mxu2  ;;  %v1732_v17 = vpop.f32.mrf.mxu3 }
  0xe6   :  { %v1254_v20 = vadd.f32 %v3114_v49, %v1253_v16  ;;  %v1733_v21 = vadd.f32 %v3114_v49, %v1732_v17  ;;  %v347_v22 = vpop.f32.mrf.mxu0  ;;  %v777_v23 = vpop.f32.mrf.mxu1 }
  0xe7   :  { %v348_v32 = vadd.f32 %v3114_v49, %v347_v22  ;;  %v778_v33 = vadd.f32 %v3114_v49, %v777_v23 }
  0xe8   :  { %v1364_v29 = vmax.f32 %v1254_v20, 0.0  ;;  %v1843_v31 = vmax.f32 %v1733_v21, 0.0 }
  0xe9   :  { %2163 = vmatmul.msk.bf16.gmra.mxu0 %vm230_vm2, %v2703_v18  ;;  %2333 = vmatmul.msk.bf16.gmra.mxu1 %vm230_vm2, %v2727_v19  ;;  %v456_v41 = vmax.f32 %v348_v32, 0.0  ;;  %v886_v42 = vmax.f32 %v778_v33, 0.0  ;;  %v2777_v32 = vld [vmem:[%s3654_s0 + $0x2c4] sm:$0xff] }
  0xea   :  { %v1413_v30 = vmax.f32 %v934_v28, %v1364_v29  ;;  %2503 = vmatmul.msk.bf16.gmra.mxu2 %vm230_vm2, %v2751_v24  ;;  %2673 = vmatmul.msk.bf16.gmra.mxu3 %vm230_vm2, %v2775_v25  ;;  %v2705_v25 = vld [vmem:[%s3654_s0 + $0x78] sm:$0xff] }
  0xeb   :  { %v935_v46 = vmax.f32 %v456_v41, %v886_v42 }
  0xec   :  { %v1892_v35 = vmax.f32 %v1413_v30, %v1843_v31  ;;  %v2753_v31 = vld [vmem:[%s3654_s0 + $0x200] sm:$0xff] }
  0xed   :  { %v1256_v36 = vpop.f32.mrf.mxu2  ;;  %v1735_v37 = vpop.f32.mrf.mxu3 }
  0xee   :  { %v2809_v38 = vpack.c.bf16 %v1892_v35, %v1891_v34  ;;  %v349_v39 = vpop.f32.mrf.mxu0  ;;  %v779_v40 = vpop.f32.mrf.mxu1  ;;  %v1257_v43 = vadd.f32 %v3114_v49, %v1256_v36  ;;  %v1736_v48 = vadd.f32 %v3114_v49, %v1735_v37 }
  0xef   :  { %v350_v44 = vadd.f32 %v3114_v49, %v349_v39  ;;  %v780_v45 = vadd.f32 %v3114_v49, %v779_v40 }
  0xf0   :  { %2909 = vst [vmem:[%s3655_s3 + $0x20] sm:$0xff] %v2809_v38   ;;  %v1365_v47 = vmax.f32 %v1257_v43, 0.0  ;;  %v1844_v63 = vmax.f32 %v1736_v48, 0.0 }
  0xf1   :  { %v457_v50 = vmax.f32 %v350_v44, 0.0  ;;  %v887_v51 = vmax.f32 %v780_v45, 0.0 }
  0xf2   :  { %v1414_v62 = vmax.f32 %v935_v46, %v1365_v47 }
  0xf3   :  { %v936_v0 = vmax.f32 %v457_v50, %v887_v51 }
  0xf4   :  { %v1893_v6 = vmax.f32 %v1414_v62, %v1844_v63  ;;  %v2730_v62 = vld [vmem:[%s3654_s0 + $0x144] sm:$0xff] }
  0xf5   :  { %v1258_v52 = vpop.f32.mrf.mxu2  ;;  %v1737_v53 = vpop.f32.mrf.mxu3 }
  0xf6   :  { %v1259_v56 = vadd.f32 %v3114_v49, %v1258_v52  ;;  %v1738_v57 = vadd.f32 %v3114_v49, %v1737_v53  ;;  %v352_v58 = vpop.f32.mrf.mxu0  ;;  %v782_v59 = vpop.f32.mrf.mxu1 }
  0xf7   :  { %v353_v4 = vadd.f32 %v3114_v49, %v352_v58  ;;  %v783_v5 = vadd.f32 %v3114_v49, %v782_v59 }
  0xf8   :  { %v1366_v1 = vmax.f32 %v1259_v56, 0.0  ;;  %v1845_v3 = vmax.f32 %v1738_v57, 0.0 }
  0xf9   :  { %2164 = vmatmul.msk.bf16.gmra.mxu0 %vm230_vm2, %v2704_v54  ;;  %2334 = vmatmul.msk.bf16.gmra.mxu1 %vm230_vm2, %v2728_v55  ;;  %v458_v13 = vmax.f32 %v353_v4, 0.0  ;;  %v888_v14 = vmax.f32 %v783_v5, 0.0  ;;  %v2778_v4 = vld [vmem:[%s3654_s0 + $0x2cc] sm:$0xff] }
  0xfa   :  { %v1415_v2 = vmax.f32 %v936_v0, %v1366_v1  ;;  %2504 = vmatmul.msk.bf16.gmra.mxu2 %vm230_vm2, %v2752_v60  ;;  %2674 = vmatmul.msk.bf16.gmra.mxu3 %vm230_vm2, %v2776_v61  ;;  %v2706_v61 = vld [vmem:[%s3654_s0 + $0x80] sm:$0xff] }
  0xfb   :  { %v937_v18 = vmax.f32 %v458_v13, %v888_v14 }
  0xfc   :  { %v1894_v7 = vmax.f32 %v1415_v2, %v1845_v3  ;;  %v2754_v3 = vld [vmem:[%s3654_s0 + $0x208] sm:$0xff] }
  0xfd   :  { %v1261_v8 = vpop.f32.mrf.mxu2  ;;  %v1740_v9 = vpop.f32.mrf.mxu3 }
  0xfe   :  { %v2814_v10 = vpack.c.bf16 %v1894_v7, %v1893_v6  ;;  %v354_v11 = vpop.f32.mrf.mxu0  ;;  %v784_v12 = vpop.f32.mrf.mxu1  ;;  %v1262_v15 = vadd.f32 %v3114_v49, %v1261_v8  ;;  %v1741_v20 = vadd.f32 %v3114_v49, %v1740_v9 }
  0xff   :  { %v355_v16 = vadd.f32 %v3114_v49, %v354_v11  ;;  %v785_v17 = vadd.f32 %v3114_v49, %v784_v12 }
 0x100   :  { %2910 = vst [vmem:[%s3655_s3 + $0x28] sm:$0xff] %v2814_v10   ;;  %v1367_v19 = vmax.f32 %v1262_v15, 0.0  ;;  %v1846_v34 = vmax.f32 %v1741_v20, 0.0 }
 0x101   :  { %v459_v21 = vmax.f32 %v355_v16, 0.0  ;;  %v889_v22 = vmax.f32 %v785_v17, 0.0 }
 0x102   :  { %v1416_v33 = vmax.f32 %v937_v18, %v1367_v19 }
 0x103   :  { %v938_v35 = vmax.f32 %v459_v21, %v889_v22 }
 0x104   :  { %v1895_v41 = vmax.f32 %v1416_v33, %v1846_v34  ;;  %v2731_v33 = vld [vmem:[%s3654_s0 + $0x14c] sm:$0xff] }
 0x105   :  { %v1263_v23 = vpop.f32.mrf.mxu2  ;;  %v1742_v24 = vpop.f32.mrf.mxu3 }
 0x106   :  { %v1264_v27 = vadd.f32 %v3114_v49, %v1263_v23  ;;  %v1743_v28 = vadd.f32 %v3114_v49, %v1742_v24  ;;  %v357_v29 = vpop.f32.mrf.mxu0  ;;  %v787_v30 = vpop.f32.mrf.mxu1 }
 0x107   :  { %v358_v39 = vadd.f32 %v3114_v49, %v357_v29  ;;  %v788_v40 = vadd.f32 %v3114_v49, %v787_v30 }
 0x108   :  { %v1368_v36 = vmax.f32 %v1264_v27, 0.0  ;;  %v1847_v38 = vmax.f32 %v1743_v28, 0.0 }
 0x109   :  { %2165 = vmatmul.msk.bf16.gmra.mxu0 %vm230_vm2, %v2705_v25  ;;  %2335 = vmatmul.msk.bf16.gmra.mxu1 %vm230_vm2, %v2729_v26  ;;  %v460_v48 = vmax.f32 %v358_v39, 0.0  ;;  %v890_v50 = vmax.f32 %v788_v40, 0.0  ;;  %v2779_v39 = vld [vmem:[%s3654_s0 + $0x2d4] sm:$0xff] }
 0x10a   :  { %v1417_v37 = vmax.f32 %v938_v35, %v1368_v36  ;;  %2505 = vmatmul.msk.bf16.gmra.mxu2 %vm230_vm2, %v2753_v31  ;;  %2675 = vmatmul.msk.bf16.gmra.mxu3 %vm230_vm2, %v2777_v32  ;;  %v2707_v32 = vld [vmem:[%s3654_s0 + $0x88] sm:$0xff] }
 0x10b   :  { %v939_v54 = vmax.f32 %v460_v48, %v890_v50 }
 0x10c   :  { %v1896_v42 = vmax.f32 %v1417_v37, %v1847_v38  ;;  %v2755_v38 = vld [vmem:[%s3654_s0 + $0x210] sm:$0xff] }
 0x10d   :  { %v1266_v43 = vpop.f32.mrf.mxu2  ;;  %v1745_v44 = vpop.f32.mrf.mxu3 }
 0x10e   :  { %v2819_v45 = vpack.c.bf16 %v1896_v42, %v1895_v41  ;;  %v359_v46 = vpop.f32.mrf.mxu0  ;;  %v789_v47 = vpop.f32.mrf.mxu1  ;;  %v1267_v51 = vadd.f32 %v3114_v49, %v1266_v43  ;;  %v1746_v56 = vadd.f32 %v3114_v49, %v1745_v44 }
 0x10f   :  { %v360_v52 = vadd.f32 %v3114_v49, %v359_v46  ;;  %v790_v53 = vadd.f32 %v3114_v49, %v789_v47 }
 0x110   :  { %2911 = vst [vmem:[%s3655_s3 + $0x30] sm:$0xff] %v2819_v45   ;;  %v1369_v55 = vmax.f32 %v1267_v51, 0.0  ;;  %v1848_v6 = vmax.f32 %v1746_v56, 0.0 }
 0x111   :  { %v461_v57 = vmax.f32 %v360_v52, 0.0  ;;  %v891_v58 = vmax.f32 %v790_v53, 0.0 }
 0x112   :  { %v1418_v5 = vmax.f32 %v939_v54, %v1369_v55 }
 0x113   :  { %v940_v7 = vmax.f32 %v461_v57, %v891_v58 }
 0x114   :  { %v1897_v13 = vmax.f32 %v1418_v5, %v1848_v6  ;;  %v2732_v5 = vld [vmem:[%s3654_s0 + $0x154] sm:$0xff] }
 0x115   :  { %v1268_v59 = vpop.f32.mrf.mxu2  ;;  %v1747_v60 = vpop.f32.mrf.mxu3 }
 0x116   :  { %v1269_v63 = vadd.f32 %v3114_v49, %v1268_v59  ;;  %v1748_v0 = vadd.f32 %v3114_v49, %v1747_v60  ;;  %v362_v1 = vpop.f32.mrf.mxu0  ;;  %v792_v2 = vpop.f32.mrf.mxu1 }
 0x117   :  { %v363_v11 = vadd.f32 %v3114_v49, %v362_v1  ;;  %v793_v12 = vadd.f32 %v3114_v49, %v792_v2 }
 0x118   :  { %v1370_v8 = vmax.f32 %v1269_v63, 0.0  ;;  %v1849_v10 = vmax.f32 %v1748_v0, 0.0 }
 0x119   :  { %2166 = vmatmul.msk.bf16.gmra.mxu0 %vm230_vm2, %v2706_v61  ;;  %2336 = vmatmul.msk.bf16.gmra.mxu1 %vm230_vm2, %v2730_v62  ;;  %v462_v20 = vmax.f32 %v363_v11, 0.0  ;;  %v892_v21 = vmax.f32 %v793_v12, 0.0  ;;  %v2780_v11 = vld [vmem:[%s3654_s0 + $0x2dc] sm:$0xff] }
 0x11a   :  { %v1419_v9 = vmax.f32 %v940_v7, %v1370_v8  ;;  %2506 = vmatmul.msk.bf16.gmra.mxu2 %vm230_vm2, %v2754_v3  ;;  %2676 = vmatmul.msk.bf16.gmra.mxu3 %vm230_vm2, %v2778_v4  ;;  %v2708_v4 = vld [vmem:[%s3654_s0 + $0x90] sm:$0xff] }
 0x11b   :  { %v941_v25 = vmax.f32 %v462_v20, %v892_v21 }
 0x11c   :  { %v1898_v14 = vmax.f32 %v1419_v9, %v1849_v10  ;;  %v2756_v10 = vld [vmem:[%s3654_s0 + $0x218] sm:$0xff] }
 0x11d   :  { %v1271_v15 = vpop.f32.mrf.mxu2  ;;  %v1750_v16 = vpop.f32.mrf.mxu3 }
 0x11e   :  { %v2824_v17 = vpack.c.bf16 %v1898_v14, %v1897_v13  ;;  %v364_v18 = vpop.f32.mrf.mxu0  ;;  %v794_v19 = vpop.f32.mrf.mxu1  ;;  %v1272_v22 = vadd.f32 %v3114_v49, %v1271_v15  ;;  %v1751_v27 = vadd.f32 %v3114_v49, %v1750_v16 }
 0x11f   :  { %v365_v23 = vadd.f32 %v3114_v49, %v364_v18  ;;  %v795_v24 = vadd.f32 %v3114_v49, %v794_v19 }
 0x120   :  { %2912 = vst [vmem:[%s3655_s3 + $0x38] sm:$0xff] %v2824_v17   ;;  %v1371_v26 = vmax.f32 %v1272_v22, 0.0  ;;  %v1850_v41 = vmax.f32 %v1751_v27, 0.0 }
 0x121   :  { %v463_v28 = vmax.f32 %v365_v23, 0.0  ;;  %v893_v29 = vmax.f32 %v795_v24, 0.0 }
 0x122   :  { %v1420_v40 = vmax.f32 %v941_v25, %v1371_v26 }
 0x123   :  { %v942_v42 = vmax.f32 %v463_v28, %v893_v29 }
 0x124   :  { %v1899_v48 = vmax.f32 %v1420_v40, %v1850_v41  ;;  %v2733_v40 = vld [vmem:[%s3654_s0 + $0x15c] sm:$0xff] }
 0x125   :  { %v1273_v30 = vpop.f32.mrf.mxu2  ;;  %v1752_v31 = vpop.f32.mrf.mxu3 }
 0x126   :  { %v1274_v34 = vadd.f32 %v3114_v49, %v1273_v30  ;;  %v1753_v35 = vadd.f32 %v3114_v49, %v1752_v31  ;;  %v367_v36 = vpop.f32.mrf.mxu0  ;;  %v797_v37 = vpop.f32.mrf.mxu1 }
 0x127   :  { %v368_v46 = vadd.f32 %v3114_v49, %v367_v36  ;;  %v798_v47 = vadd.f32 %v3114_v49, %v797_v37 }
 0x128   :  { %v1372_v43 = vmax.f32 %v1274_v34, 0.0  ;;  %v1851_v45 = vmax.f32 %v1753_v35, 0.0 }
 0x129   :  { %2167 = vmatmul.msk.bf16.gmra.mxu0 %vm230_vm2, %v2707_v32  ;;  %2337 = vmatmul.msk.bf16.gmra.mxu1 %vm230_vm2, %v2731_v33  ;;  %v464_v56 = vmax.f32 %v368_v46, 0.0  ;;  %v894_v57 = vmax.f32 %v798_v47, 0.0  ;;  %v2781_v46 = vld [vmem:[%s3654_s0 + $0x2e4] sm:$0xff] }
 0x12a   :  { %v1421_v44 = vmax.f32 %v942_v42, %v1372_v43  ;;  %2507 = vmatmul.msk.bf16.gmra.mxu2 %vm230_vm2, %v2755_v38  ;;  %2677 = vmatmul.msk.bf16.gmra.mxu3 %vm230_vm2, %v2779_v39  ;;  %v2709_v39 = vld [vmem:[%s3654_s0 + $0x98] sm:$0xff] }
 0x12b   :  { %v943_v61 = vmax.f32 %v464_v56, %v894_v57 }
 0x12c   :  { %v1900_v50 = vmax.f32 %v1421_v44, %v1851_v45  ;;  %v2757_v45 = vld [vmem:[%s3654_s0 + $0x220] sm:$0xff] }
 0x12d   :  { %v1276_v51 = vpop.f32.mrf.mxu2  ;;  %v1755_v52 = vpop.f32.mrf.mxu3 }
 0x12e   :  { %v2829_v53 = vpack.c.bf16 %v1900_v50, %v1899_v48  ;;  %v369_v54 = vpop.f32.mrf.mxu0  ;;  %v799_v55 = vpop.f32.mrf.mxu1  ;;  %v1277_v58 = vadd.f32 %v3114_v49, %v1276_v51  ;;  %v1756_v63 = vadd.f32 %v3114_v49, %v1755_v52 }
 0x12f   :  { %v370_v59 = vadd.f32 %v3114_v49, %v369_v54  ;;  %v800_v60 = vadd.f32 %v3114_v49, %v799_v55 }
 0x130   :  { %2913 = vst [vmem:[%s3655_s3 + $0x40] sm:$0xff] %v2829_v53   ;;  %v1373_v62 = vmax.f32 %v1277_v58, 0.0  ;;  %v1852_v13 = vmax.f32 %v1756_v63, 0.0 }
 0x131   :  { %v465_v0 = vmax.f32 %v370_v59, 0.0  ;;  %v895_v1 = vmax.f32 %v800_v60, 0.0 }
 0x132   :  { %v1422_v12 = vmax.f32 %v943_v61, %v1373_v62 }
 0x133   :  { %v944_v14 = vmax.f32 %v465_v0, %v895_v1 }
 0x134   :  { %v1901_v20 = vmax.f32 %v1422_v12, %v1852_v13  ;;  %v2734_v12 = vld [vmem:[%s3654_s0 + $0x164] sm:$0xff] }
 0x135   :  { %v1278_v2 = vpop.f32.mrf.mxu2  ;;  %v1757_v3 = vpop.f32.mrf.mxu3 }
 0x136   :  { %v1279_v6 = vadd.f32 %v3114_v49, %v1278_v2  ;;  %v1758_v7 = vadd.f32 %v3114_v49, %v1757_v3  ;;  %v372_v8 = vpop.f32.mrf.mxu0  ;;  %v802_v9 = vpop.f32.mrf.mxu1 }
 0x137   :  { %v373_v18 = vadd.f32 %v3114_v49, %v372_v8  ;;  %v803_v19 = vadd.f32 %v3114_v49, %v802_v9 }
 0x138   :  { %v1374_v15 = vmax.f32 %v1279_v6, 0.0  ;;  %v1853_v17 = vmax.f32 %v1758_v7, 0.0 }
 0x139   :  { %2168 = vmatmul.msk.bf16.gmra.mxu0 %vm230_vm2, %v2708_v4  ;;  %2338 = vmatmul.msk.bf16.gmra.mxu1 %vm230_vm2, %v2732_v5  ;;  %v466_v27 = vmax.f32 %v373_v18, 0.0  ;;  %v896_v28 = vmax.f32 %v803_v19, 0.0  ;;  %v2782_v18 = vld [vmem:[%s3654_s0 + $0x2ec] sm:$0xff] }
 0x13a   :  { %v1423_v16 = vmax.f32 %v944_v14, %v1374_v15  ;;  %2508 = vmatmul.msk.bf16.gmra.mxu2 %vm230_vm2, %v2756_v10  ;;  %2678 = vmatmul.msk.bf16.gmra.mxu3 %vm230_vm2, %v2780_v11  ;;  %v2710_v11 = vld [vmem:[%s3654_s0 + $0xa0] sm:$0xff] }
 0x13b   :  { %v945_v32 = vmax.f32 %v466_v27, %v896_v28 }
 0x13c   :  { %v1902_v21 = vmax.f32 %v1423_v16, %v1853_v17  ;;  %v2758_v17 = vld [vmem:[%s3654_s0 + $0x228] sm:$0xff] }
 0x13d   :  { %v1281_v22 = vpop.f32.mrf.mxu2  ;;  %v1760_v23 = vpop.f32.mrf.mxu3 }
 0x13e   :  { %v2834_v24 = vpack.c.bf16 %v1902_v21, %v1901_v20  ;;  %v374_v25 = vpop.f32.mrf.mxu0  ;;  %v804_v26 = vpop.f32.mrf.mxu1  ;;  %v1282_v29 = vadd.f32 %v3114_v49, %v1281_v22  ;;  %v1761_v34 = vadd.f32 %v3114_v49, %v1760_v23 }
 0x13f   :  { %v375_v30 = vadd.f32 %v3114_v49, %v374_v25  ;;  %v805_v31 = vadd.f32 %v3114_v49, %v804_v26 }
 0x140   :  { %2914 = vst [vmem:[%s3655_s3 + $0x48] sm:$0xff] %v2834_v24   ;;  %v1375_v33 = vmax.f32 %v1282_v29, 0.0  ;;  %v1854_v48 = vmax.f32 %v1761_v34, 0.0 }
 0x141   :  { %v467_v35 = vmax.f32 %v375_v30, 0.0  ;;  %v897_v36 = vmax.f32 %v805_v31, 0.0 }
 0x142   :  { %v1424_v47 = vmax.f32 %v945_v32, %v1375_v33 }
 0x143   :  { %v946_v50 = vmax.f32 %v467_v35, %v897_v36 }
 0x144   :  { %v1903_v56 = vmax.f32 %v1424_v47, %v1854_v48  ;;  %v2735_v47 = vld [vmem:[%s3654_s0 + $0x16c] sm:$0xff] }
 0x145   :  { %v1283_v37 = vpop.f32.mrf.mxu2  ;;  %v1762_v38 = vpop.f32.mrf.mxu3 }
 0x146   :  { %v1284_v41 = vadd.f32 %v3114_v49, %v1283_v37  ;;  %v1763_v42 = vadd.f32 %v3114_v49, %v1762_v38  ;;  %v377_v43 = vpop.f32.mrf.mxu0  ;;  %v807_v44 = vpop.f32.mrf.mxu1 }
 0x147   :  { %v378_v54 = vadd.f32 %v3114_v49, %v377_v43  ;;  %v808_v55 = vadd.f32 %v3114_v49, %v807_v44 }
 0x148   :  { %v1376_v51 = vmax.f32 %v1284_v41, 0.0  ;;  %v1855_v53 = vmax.f32 %v1763_v42, 0.0 }
 0x149   :  { %2169 = vmatmul.msk.bf16.gmra.mxu0 %vm230_vm2, %v2709_v39  ;;  %2339 = vmatmul.msk.bf16.gmra.mxu1 %vm230_vm2, %v2733_v40  ;;  %v468_v63 = vmax.f32 %v378_v54, 0.0  ;;  %v898_v0 = vmax.f32 %v808_v55, 0.0  ;;  %v2783_v54 = vld [vmem:[%s3654_s0 + $0x2f4] sm:$0xff] }
 0x14a   :  { %v1425_v52 = vmax.f32 %v946_v50, %v1376_v51  ;;  %2509 = vmatmul.msk.bf16.gmra.mxu2 %vm230_vm2, %v2757_v45  ;;  %2679 = vmatmul.msk.bf16.gmra.mxu3 %vm230_vm2, %v2781_v46  ;;  %v2711_v46 = vld [vmem:[%s3654_s0 + $0xa8] sm:$0xff] }
 0x14b   :  { %v947_v4 = vmax.f32 %v468_v63, %v898_v0 }
 0x14c   :  { %v1904_v57 = vmax.f32 %v1425_v52, %v1855_v53  ;;  %v2759_v53 = vld [vmem:[%s3654_s0 + $0x230] sm:$0xff] }
 0x14d   :  { %v1286_v58 = vpop.f32.mrf.mxu2  ;;  %v1765_v59 = vpop.f32.mrf.mxu3 }
 0x14e   :  { %v2839_v60 = vpack.c.bf16 %v1904_v57, %v1903_v56  ;;  %v379_v61 = vpop.f32.mrf.mxu0  ;;  %v809_v62 = vpop.f32.mrf.mxu1  ;;  %v1287_v1 = vadd.f32 %v3114_v49, %v1286_v58  ;;  %v1766_v6 = vadd.f32 %v3114_v49, %v1765_v59 }
 0x14f   :  { %v380_v2 = vadd.f32 %v3114_v49, %v379_v61  ;;  %v810_v3 = vadd.f32 %v3114_v49, %v809_v62 }
 0x150   :  { %2915 = vst [vmem:[%s3655_s3 + $0x50] sm:$0xff] %v2839_v60   ;;  %v1377_v5 = vmax.f32 %v1287_v1, 0.0  ;;  %v1856_v20 = vmax.f32 %v1766_v6, 0.0  ;;  %v3471_v60 = vld [vmem:[%s3653_s2] ss:$0 sm:$0xff] }
 0x151   :  { %v469_v7 = vmax.f32 %v380_v2, 0.0  ;;  %v899_v8 = vmax.f32 %v810_v3, 0.0 }
 0x152   :  { %v1426_v19 = vmax.f32 %v947_v4, %v1377_v5 }
 0x153   :  { %v948_v21 = vmax.f32 %v469_v7, %v899_v8 }
 0x154   :  { %v1905_v27 = vmax.f32 %v1426_v19, %v1856_v20  ;;  %v2736_v19 = vld [vmem:[%s3654_s0 + $0x174] sm:$0xff] }
 0x155   :  { %v1288_v9 = vpop.f32.mrf.mxu2  ;;  %v1767_v10 = vpop.f32.mrf.mxu3 }
 0x156   :  { %v1289_v13 = vadd.f32 %v3114_v49, %v1288_v9  ;;  %v1768_v14 = vadd.f32 %v3114_v49, %v1767_v10  ;;  %v382_v15 = vpop.f32.mrf.mxu0  ;;  %v812_v16 = vpop.f32.mrf.mxu1 }
 0x157   :  { %v383_v25 = vadd.f32 %v3114_v49, %v382_v15  ;;  %v813_v26 = vadd.f32 %v3114_v49, %v812_v16 }
 0x158   :  { %v1378_v22 = vmax.f32 %v1289_v13, 0.0  ;;  %v1857_v24 = vmax.f32 %v1768_v14, 0.0 }
 0x159   :  { %2170 = vmatmul.msk.bf16.gmra.mxu0 %vm230_vm2, %v2710_v11  ;;  %2340 = vmatmul.msk.bf16.gmra.mxu1 %vm230_vm2, %v2734_v12  ;;  %v470_v34 = vmax.f32 %v383_v25, 0.0  ;;  %v900_v35 = vmax.f32 %v813_v26, 0.0  ;;  %v2784_v25 = vld [vmem:[%s3654_s0 + $0x2fc] sm:$0xff] }
 0x15a   :  { %v1427_v23 = vmax.f32 %v948_v21, %v1378_v22  ;;  %2510 = vmatmul.msk.bf16.gmra.mxu2 %vm230_vm2, %v2758_v17  ;;  %2680 = vmatmul.msk.bf16.gmra.mxu3 %vm230_vm2, %v2782_v18  ;;  %v2712_v18 = vld [vmem:[%s3654_s0 + $0xb0] sm:$0xff] }
 0x15b   :  { %v949_v39 = vmax.f32 %v470_v34, %v900_v35 }
 0x15c   :  { %v1906_v28 = vmax.f32 %v1427_v23, %v1857_v24  ;;  %v2760_v24 = vld [vmem:[%s3654_s0 + $0x238] sm:$0xff] }
 0x15d   :  { %v1291_v29 = vpop.f32.mrf.mxu2  ;;  %v1770_v30 = vpop.f32.mrf.mxu3 }
 0x15e   :  { %v2844_v31 = vpack.c.bf16 %v1906_v28, %v1905_v27  ;;  %v384_v32 = vpop.f32.mrf.mxu0  ;;  %v814_v33 = vpop.f32.mrf.mxu1  ;;  %v1292_v36 = vadd.f32 %v3114_v49, %v1291_v29  ;;  %v1771_v41 = vadd.f32 %v3114_v49, %v1770_v30 }
 0x15f   :  { %v385_v37 = vadd.f32 %v3114_v49, %v384_v32  ;;  %v815_v38 = vadd.f32 %v3114_v49, %v814_v33 }
 0x160   :  { %2916 = vst [vmem:[%s3655_s3 + $0x58] sm:$0xff] %v2844_v31   ;;  %v1379_v40 = vmax.f32 %v1292_v36, 0.0  ;;  %v1858_v56 = vmax.f32 %v1771_v41, 0.0 }
 0x161   :  { %v471_v42 = vmax.f32 %v385_v37, 0.0  ;;  %v901_v43 = vmax.f32 %v815_v38, 0.0 }
 0x162   :  { %v1428_v55 = vmax.f32 %v949_v39, %v1379_v40 }
 0x163   :  { %v950_v57 = vmax.f32 %v471_v42, %v901_v43 }
 0x164   :  { %v1907_v63 = vmax.f32 %v1428_v55, %v1858_v56  ;;  %v2737_v55 = vld [vmem:[%s3654_s0 + $0x17c] sm:$0xff] }
 0x165   :  { %v1293_v44 = vpop.f32.mrf.mxu2  ;;  %v1772_v45 = vpop.f32.mrf.mxu3 }
 0x166   :  { %v1294_v48 = vadd.f32 %v3114_v49, %v1293_v44  ;;  %v1773_v50 = vadd.f32 %v3114_v49, %v1772_v45  ;;  %v387_v51 = vpop.f32.mrf.mxu0  ;;  %v817_v52 = vpop.f32.mrf.mxu1 }
 0x167   :  { %v388_v61 = vadd.f32 %v3471_v60, %v387_v51  ;;  %v818_v62 = vadd.f32 %v3471_v60, %v817_v52 }
 0x168   :  { %v1380_v58 = vmax.f32 %v1294_v48, 0.0  ;;  %v1859_v49 = vmax.f32 %v1773_v50, 0.0 }
 0x169   :  { %2171 = vmatmul.msk.bf16.gmra.mxu0 %vm230_vm2, %v2711_v46  ;;  %2341 = vmatmul.msk.bf16.gmra.mxu1 %vm230_vm2, %v2735_v47  ;;  %v472_v6 = vmax.f32 %v388_v61, 0.0  ;;  %v902_v7 = vmax.f32 %v818_v62, 0.0  ;;  %v2785_v61 = vld [vmem:[%s3654_s0 + $0x304] sm:$0xff] }
 0x16a   :  { %v1429_v59 = vmax.f32 %v950_v57, %v1380_v58  ;;  %2511 = vmatmul.msk.bf16.gmra.mxu2 %vm230_vm2, %v2759_v53  ;;  %2681 = vmatmul.msk.bf16.gmra.mxu3 %vm230_vm2, %v2783_v54  ;;  %v2713_v54 = vld [vmem:[%s3654_s0 + $0xb8] sm:$0xff] }
 0x16b   :  { %v951_v11 = vmax.f32 %v472_v6, %v902_v7 }
 0x16c   :  { %v1908_v0 = vmax.f32 %v1429_v59, %v1859_v49  ;;  %v2761_v49 = vld [vmem:[%s3654_s0 + $0x240] sm:$0xff] }
 0x16d   :  { %v1296_v1 = vpop.f32.mrf.mxu2  ;;  %v1775_v2 = vpop.f32.mrf.mxu3 }
 0x16e   :  { %v2849_v3 = vpack.c.bf16 %v1908_v0, %v1907_v63  ;;  %v389_v4 = vpop.f32.mrf.mxu0  ;;  %v819_v5 = vpop.f32.mrf.mxu1  ;;  %v1297_v8 = vadd.f32 %v3471_v60, %v1296_v1  ;;  %v1776_v13 = vadd.f32 %v3471_v60, %v1775_v2 }
 0x16f   :  { %v390_v9 = vadd.f32 %v3471_v60, %v389_v4  ;;  %v820_v10 = vadd.f32 %v3471_v60, %v819_v5 }
 0x170   :  { %2917 = vst [vmem:[%s3655_s3 + $0x60] sm:$0xff] %v2849_v3   ;;  %v1381_v12 = vmax.f32 %v1297_v8, 0.0  ;;  %v1860_v27 = vmax.f32 %v1776_v13, 0.0  ;;  %v74_v13 = vld [vmem:[%s3654_s0 + $0xc0] sm:$0xf] }
 0x171   :  { %v473_v14 = vmax.f32 %v390_v9, 0.0  ;;  %v903_v15 = vmax.f32 %v820_v10, 0.0 }
 0x172   :  { %v1430_v26 = vmax.f32 %v951_v11, %v1381_v12 }
 0x173   :  { %v952_v28 = vmax.f32 %v473_v14, %v903_v15  ;;  %v2223_v14 = vld [vmem:[%s3654_s0 + $0x184] sm:$0xf] }
 0x174   :  { %v1909_v34 = vmax.f32 %v1430_v26, %v1860_v27 }
 0x175   :  { %v1298_v16 = vpop.f32.mrf.mxu2  ;;  %v1777_v17 = vpop.f32.mrf.mxu3 }
 0x176   :  { %v1299_v20 = vadd.f32 %v3471_v60, %v1298_v16  ;;  %v1778_v21 = vadd.f32 %v3471_v60, %v1777_v17  ;;  %v392_v22 = vpop.f32.mrf.mxu0  ;;  %v822_v23 = vpop.f32.mrf.mxu1  ;;  %v2393_v17 = vld [vmem:[%s3654_s0 + $0x248] sm:$0xf] }
 0x177   :  { %v393_v32 = vadd.f32 %v3471_v60, %v392_v22  ;;  %v823_v33 = vadd.f32 %v3471_v60, %v822_v23  ;;  %v175_v22 = vunpack.c.l.b16 %v74_v13  ;;  %v642_v23 = vunpack.c.l.b16 %v2223_v14 }
 0x178   :  { %v1382_v29 = vmax.f32 %v1299_v20, 0.0  ;;  %v1861_v31 = vmax.f32 %v1778_v21, 0.0 }
 0x179   :  { %2172 = vmatmul.msk.bf16.gmra.mxu0 %vm230_vm2, %v2712_v18  ;;  %2342 = vmatmul.msk.bf16.gmra.mxu1 %vm230_vm2, %v2736_v19  ;;  %v474_v41 = vmax.f32 %v393_v32, 0.0  ;;  %v904_v42 = vmax.f32 %v823_v33, 0.0  ;;  %v2563_v18 = vld [vmem:[%s3654_s0 + $0x30c] sm:$0xf]  ;;  %v200_v33 = vpack.c.b16 %v175_v22, %v175_v22 }
 0x17a   :  { %v1431_v30 = vmax.f32 %v952_v28, %v1382_v29  ;;  %2512 = vmatmul.msk.bf16.gmra.mxu2 %vm230_vm2, %v2760_v24  ;;  %2682 = vmatmul.msk.bf16.gmra.mxu3 %vm230_vm2, %v2784_v25  ;;  %v1121_v24 = vunpack.c.l.b16 %v2393_v17  ;;  %v1600_v25 = vunpack.c.l.b16 %v2563_v18 }
 0x17b   :  { %v953_v46 = vmax.f32 %v474_v41, %v904_v42 }
 0x17c   :  { %v1910_v35 = vmax.f32 %v1431_v30, %v1861_v31 }
 0x17d   :  { %v1301_v36 = vpop.f32.mrf.mxu2  ;;  %v1780_v37 = vpop.f32.mrf.mxu3 }
 0x17e   :  { %v2854_v38 = vpack.c.bf16 %v1910_v35, %v1909_v34  ;;  %v394_v39 = vpop.f32.mrf.mxu0  ;;  %v824_v40 = vpop.f32.mrf.mxu1  ;;  %v1302_v43 = vadd.f32 %v3471_v60, %v1301_v36  ;;  %v1781_v48 = vadd.f32 %v3471_v60, %v1780_v37  ;;  %v667_v34 = vpack.c.b16 %v642_v23, %v642_v23 }
 0x17f   :  { %v395_v44 = vadd.f32 %v3471_v60, %v394_v39  ;;  %v825_v45 = vadd.f32 %v3471_v60, %v824_v40  ;;  %v1146_v39 = vpack.c.b16 %v1121_v24, %v1121_v24  ;;  %v1625_v40 = vpack.c.b16 %v1600_v25, %v1600_v25 }
 0x180   :  { %2918 = vst [vmem:[%s3655_s3 + $0x68] sm:$0xff] %v2854_v38   ;;  %v1383_v47 = vmax.f32 %v1302_v43, 0.0  ;;  %v1862_v63 = vmax.f32 %v1781_v48, 0.0 }
 0x181   :  { %v475_v50 = vmax.f32 %v395_v44, 0.0  ;;  %v905_v51 = vmax.f32 %v825_v45, 0.0 }
 0x182   :  { %v1432_v62 = vmax.f32 %v953_v46, %v1383_v47 }
 0x183   :  { %v954_v0 = vmax.f32 %v475_v50, %v905_v51 }
 0x184   :  { %v1911_v6 = vmax.f32 %v1432_v62, %v1862_v63 }
 0x185   :  { %v1303_v52 = vpop.f32.mrf.mxu2  ;;  %v1782_v53 = vpop.f32.mrf.mxu3 }
 0x186   :  { %v1304_v56 = vadd.f32 %v3471_v60, %v1303_v52  ;;  %v1783_v57 = vadd.f32 %v3471_v60, %v1782_v53  ;;  %v397_v58 = vpop.f32.mrf.mxu0  ;;  %v827_v59 = vpop.f32.mrf.mxu1 }
 0x187   :  { %v398_v4 = vadd.f32 %v3471_v60, %v397_v58  ;;  %v828_v5 = vadd.f32 %v3471_v60, %v827_v59 }
 0x188   :  { %v1384_v1 = vmax.f32 %v1304_v56, 0.0  ;;  %v1863_v3 = vmax.f32 %v1783_v57, 0.0 }
 0x189   :  { %2173 = vmatmul.msk.bf16.gmra.mxu0 %vm230_vm2, %v2713_v54  ;;  %2343 = vmatmul.msk.bf16.gmra.mxu1 %vm230_vm2, %v2737_v55  ;;  %v476_v15 = vmax.f32 %v398_v4, 0.0  ;;  %v906_v16 = vmax.f32 %v828_v5, 0.0 }
 0x18a   :  { %v1433_v2 = vmax.f32 %v954_v0, %v1384_v1  ;;  %2513 = vmatmul.msk.bf16.gmra.mxu2 %vm230_vm2, %v2761_v49  ;;  %2683 = vmatmul.msk.bf16.gmra.mxu3 %vm230_vm2, %v2785_v61 }
 0x18b   :  { %v955_v26 = vmax.f32 %v476_v15, %v906_v16 }
 0x18c   :  { %v1912_v7 = vmax.f32 %v1433_v2, %v1863_v3 }
 0x18d   :  { %v1306_v8 = vpop.f32.mrf.mxu2  ;;  %v1785_v9 = vpop.f32.mrf.mxu3 }
 0x18e   :  { %v2859_v10 = vpack.c.bf16 %v1912_v7, %v1911_v6  ;;  %v399_v11 = vpop.f32.mrf.mxu0  ;;  %v829_v12 = vpop.f32.mrf.mxu1  ;;  %v1307_v19 = vadd.f32 %v3471_v60, %v1306_v8  ;;  %v1786_v28 = vadd.f32 %v3471_v60, %v1785_v9 }
 0x18f   :  { %v400_v20 = vadd.f32 %v3471_v60, %v399_v11  ;;  %v830_v21 = vadd.f32 %v3471_v60, %v829_v12 }
 0x190   :  { %2919 = vst [vmem:[%s3655_s3 + $0x70] sm:$0xff] %v2859_v10   ;;  %v1385_v27 = vmax.f32 %v1307_v19, 0.0  ;;  %v1864_v42 = vmax.f32 %v1786_v28, 0.0 }
 0x191   :  { %v477_v29 = vmax.f32 %v400_v20, 0.0  ;;  %v907_v30 = vmax.f32 %v830_v21, 0.0 }
 0x192   :  { %v1434_v41 = vmax.f32 %v955_v26, %v1385_v27 }
 0x193   :  { %v956_v43 = vmax.f32 %v477_v29, %v907_v30 }
 0x194   :  { %v1913_v50 = vmax.f32 %v1434_v41, %v1864_v42 }
 0x195   :  { %v1308_v31 = vpop.f32.mrf.mxu2  ;;  %v1787_v32 = vpop.f32.mrf.mxu3 }
 0x196   :  { %v1309_v35 = vadd.f32 %v3471_v60, %v1308_v31  ;;  %v1788_v36 = vadd.f32 %v3471_v60, %v1787_v32  ;;  %v402_v37 = vpop.f32.mrf.mxu0  ;;  %v832_v38 = vpop.f32.mrf.mxu1 }
 0x197   :  { %v403_v47 = vadd.f32 %v3471_v60, %v402_v37  ;;  %v833_v48 = vadd.f32 %v3471_v60, %v832_v38 }
 0x198   :  { %v1386_v44 = vmax.f32 %v1309_v35, 0.0  ;;  %v1865_v46 = vmax.f32 %v1788_v36, 0.0 }
 0x199   :  { %2174 = vmatmul.msk.bf16.gmra.mxu0 %vm230_vm2, %v200_v33  ;;  %2344 = vmatmul.msk.bf16.gmra.mxu1 %vm230_vm2, %v667_v34  ;;  %v478_v57 = vmax.f32 %v403_v47, 0.0  ;;  %v908_v58 = vmax.f32 %v833_v48, 0.0 }
 0x19a   :  { %v1435_v45 = vmax.f32 %v956_v43, %v1386_v44  ;;  %2514 = vmatmul.msk.bf16.gmra.mxu2 %vm230_vm2, %v1146_v39  ;;  %2684 = vmatmul.msk.bf16.gmra.mxu3 %vm230_vm2, %v1625_v40 }
 0x19b   :  { %v957_v62 = vmax.f32 %v478_v57, %v908_v58 }
 0x19c   :  { %v1914_v51 = vmax.f32 %v1435_v45, %v1865_v46 }
 0x19d   :  { %v1311_v52 = vpop.f32.mrf.mxu2  ;;  %v1790_v53 = vpop.f32.mrf.mxu3 }
 0x19e   :  { %v2864_v54 = vpack.c.bf16 %v1914_v51, %v1913_v50  ;;  %v404_v55 = vpop.f32.mrf.mxu0  ;;  %v834_v56 = vpop.f32.mrf.mxu1  ;;  %v1312_v59 = vadd.f32 %v3471_v60, %v1311_v52  ;;  %v1791_v0 = vadd.f32 %v3471_v60, %v1790_v53 }
 0x19f   :  { %v405_v49 = vadd.f32 %v3471_v60, %v404_v55  ;;  %v835_v61 = vadd.f32 %v3471_v60, %v834_v56 }
 0x1a0   :  { %2920 = vst [vmem:[%s3655_s3 + $0x78] sm:$0xff] %v2864_v54   ;;  %v1387_v63 = vmax.f32 %v1312_v59, 0.0  ;;  %v1866_v10 = vmax.f32 %v1791_v0, 0.0 }
 0x1a1   :  { %v479_v1 = vmax.f32 %v405_v49, 0.0  ;;  %v909_v2 = vmax.f32 %v835_v61, 0.0 }
 0x1a2   :  { %v1436_v9 = vmax.f32 %v957_v62, %v1387_v63 }
 0x1a3   :  { %v958_v11 = vmax.f32 %v479_v1, %v909_v2 }
 0x1a4   :  { %v1915_v17 = vmax.f32 %v1436_v9, %v1866_v10 }
 0x1a5   :  { %v1313_v3 = vpop.f32.mrf.mxu2  ;;  %v1792_v4 = vpop.f32.mrf.mxu3 }
 0x1a6   :  { %v1314_v5 = vadd.f32 %v3471_v60, %v1313_v3  ;;  %v1793_v6 = vadd.f32 %v3471_v60, %v1792_v4  ;;  %v407_v7 = vpop.f32.mrf.mxu0  ;;  %v837_v8 = vpop.f32.mrf.mxu1 }
 0x1a7   :  { %v408_v15 = vadd.f32 %v3471_v60, %v407_v7  ;;  %v838_v16 = vadd.f32 %v3471_v60, %v837_v8 }
 0x1a8   :  { %v1388_v12 = vmax.f32 %v1314_v5, 0.0  ;;  %v1867_v14 = vmax.f32 %v1793_v6, 0.0 }
 0x1a9   :  { %v480_v24 = vmax.f32 %v408_v15, 0.0  ;;  %v910_v25 = vmax.f32 %v838_v16, 0.0 }
 0x1aa   :  { %v1437_v13 = vmax.f32 %v958_v11, %v1388_v12 }
 0x1ab   :  { %v959_v29 = vmax.f32 %v480_v24, %v910_v25 }
 0x1ac   :  { %v1916_v18 = vmax.f32 %v1437_v13, %v1867_v14 }
 0x1ad   :  { %v1316_v19 = vpop.f32.mrf.mxu2  ;;  %v1795_v20 = vpop.f32.mrf.mxu3 }
 0x1ae   :  { %v2869_v21 = vpack.c.bf16 %v1916_v18, %v1915_v17  ;;  %v409_v22 = vpop.f32.mrf.mxu0  ;;  %v839_v23 = vpop.f32.mrf.mxu1  ;;  %v1317_v26 = vadd.f32 %v3471_v60, %v1316_v19  ;;  %v1796_v31 = vadd.f32 %v3471_v60, %v1795_v20 }
 0x1af   :  { %v410_v27 = vadd.f32 %v3471_v60, %v409_v22  ;;  %v840_v28 = vadd.f32 %v3471_v60, %v839_v23 }
 0x1b0   :  { %2921 = vst [vmem:[%s3655_s3 + $0x80] sm:$0xff] %v2869_v21   ;;  %v1389_v30 = vmax.f32 %v1317_v26, 0.0  ;;  %v1868_v41 = vmax.f32 %v1796_v31, 0.0 }
 0x1b1   :  { %v481_v32 = vmax.f32 %v410_v27, 0.0  ;;  %v911_v33 = vmax.f32 %v840_v28, 0.0 }
 0x1b2   :  { %v1438_v40 = vmax.f32 %v959_v29, %v1389_v30 }
 0x1b3   :  { %v960_v42 = vmax.f32 %v481_v32, %v911_v33 }
 0x1b4   :  { %v1917_v48 = vmax.f32 %v1438_v40, %v1868_v41 }
 0x1b5   :  { %v1318_v34 = vpop.f32.mrf.mxu2  ;;  %v1797_v35 = vpop.f32.mrf.mxu3 }
 0x1b6   :  { %v1319_v36 = vadd.f32 %v3471_v60, %v1318_v34  ;;  %v1798_v37 = vadd.f32 %v3471_v60, %v1797_v35  ;;  %v412_v38 = vpop.f32.mrf.mxu0  ;;  %v842_v39 = vpop.f32.mrf.mxu1 }
 0x1b7   :  { %v413_v46 = vadd.f32 %v3471_v60, %v412_v38  ;;  %v843_v47 = vadd.f32 %v3471_v60, %v842_v39 }
 0x1b8   :  { %v1390_v43 = vmax.f32 %v1319_v36, 0.0  ;;  %v1869_v45 = vmax.f32 %v1798_v37, 0.0 }
 0x1b9   :  { %v482_v56 = vmax.f32 %v413_v46, 0.0  ;;  %v912_v57 = vmax.f32 %v843_v47, 0.0 }
 0x1ba   :  { %v1439_v44 = vmax.f32 %v960_v42, %v1390_v43 }
 0x1bb   :  { %v961_v61 = vmax.f32 %v482_v56, %v912_v57 }
 0x1bc   :  { %v1918_v50 = vmax.f32 %v1439_v44, %v1869_v45 }
 0x1bd   :  { %v1321_v51 = vpop.f32.mrf.mxu2  ;;  %v1800_v52 = vpop.f32.mrf.mxu3 }
 0x1be   :  { %v2874_v53 = vpack.c.bf16 %v1918_v50, %v1917_v48  ;;  %v414_v54 = vpop.f32.mrf.mxu0  ;;  %v844_v55 = vpop.f32.mrf.mxu1  ;;  %v1322_v58 = vadd.f32 %v3471_v60, %v1321_v51  ;;  %v1801_v63 = vadd.f32 %v3471_v60, %v1800_v52 }
 0x1bf   :  { %v415_v59 = vadd.f32 %v3471_v60, %v414_v54  ;;  %v845_v49 = vadd.f32 %v3471_v60, %v844_v55 }
 0x1c0   :  { %2922 = vst [vmem:[%s3655_s3 + $0x88] sm:$0xff] %v2874_v53   ;;  %v1391_v62 = vmax.f32 %v1322_v58, 0.0  ;;  %v1870_v9 = vmax.f32 %v1801_v63, 0.0 }
 0x1c1   :  { %v483_v0 = vmax.f32 %v415_v59, 0.0  ;;  %v913_v1 = vmax.f32 %v845_v49, 0.0 }
 0x1c2   :  { %v1440_v8 = vmax.f32 %v961_v61, %v1391_v62 }
 0x1c3   :  { %v962_v10 = vmax.f32 %v483_v0, %v913_v1 }
 0x1c4   :  { %v1919_v16 = vmax.f32 %v1440_v8, %v1870_v9 }
 0x1c5   :  { %v1323_v2 = vpop.f32.mrf.mxu2  ;;  %v1802_v3 = vpop.f32.mrf.mxu3 }
 0x1c6   :  { %v1324_v4 = vadd.f32 %v3471_v60, %v1323_v2  ;;  %v1803_v5 = vadd.f32 %v3471_v60, %v1802_v3  ;;  %v417_v6 = vpop.f32.mrf.mxu0  ;;  %v847_v7 = vpop.f32.mrf.mxu1 }
 0x1c7   :  { %v418_v14 = vadd.f32 %v3471_v60, %v417_v6  ;;  %v848_v15 = vadd.f32 %v3471_v60, %v847_v7 }
 0x1c8   :  { %v1392_v11 = vmax.f32 %v1324_v4, 0.0  ;;  %v1871_v13 = vmax.f32 %v1803_v5, 0.0 }
 0x1c9   :  { %v484_v23 = vmax.f32 %v418_v14, 0.0  ;;  %v914_v24 = vmax.f32 %v848_v15, 0.0 }
 0x1ca   :  { %v1441_v12 = vmax.f32 %v962_v10, %v1392_v11 }
 0x1cb   :  { %v963_v28 = vmax.f32 %v484_v23, %v914_v24 }
 0x1cc   :  { %v1920_v17 = vmax.f32 %v1441_v12, %v1871_v13 }
 0x1cd   :  { %v1326_v18 = vpop.f32.mrf.mxu2  ;;  %v1805_v19 = vpop.f32.mrf.mxu3 }
 0x1ce   :  { %v2879_v20 = vpack.c.bf16 %v1920_v17, %v1919_v16  ;;  %v419_v21 = vpop.f32.mrf.mxu0  ;;  %v849_v22 = vpop.f32.mrf.mxu1  ;;  %v1327_v25 = vadd.f32 %v3471_v60, %v1326_v18  ;;  %v1806_v30 = vadd.f32 %v3471_v60, %v1805_v19 }
 0x1cf   :  { %v420_v26 = vadd.f32 %v3471_v60, %v419_v21  ;;  %v850_v27 = vadd.f32 %v3471_v60, %v849_v22 }
 0x1d0   :  { %2923 = vst [vmem:[%s3655_s3 + $0x90] sm:$0xff] %v2879_v20   ;;  %v1393_v29 = vmax.f32 %v1327_v25, 0.0  ;;  %v1872_v40 = vmax.f32 %v1806_v30, 0.0 }
 0x1d1   :  { %v485_v31 = vmax.f32 %v420_v26, 0.0  ;;  %v915_v32 = vmax.f32 %v850_v27, 0.0 }
 0x1d2   :  { %v1442_v39 = vmax.f32 %v963_v28, %v1393_v29 }
 0x1d3   :  { %v964_v41 = vmax.f32 %v485_v31, %v915_v32 }
 0x1d4   :  { %v1921_v47 = vmax.f32 %v1442_v39, %v1872_v40 }
 0x1d5   :  { %v1328_v33 = vpop.f32.mrf.mxu2  ;;  %v1807_v34 = vpop.f32.mrf.mxu3 }
 0x1d6   :  { %v1329_v35 = vadd.f32 %v3471_v60, %v1328_v33  ;;  %v1808_v36 = vadd.f32 %v3471_v60, %v1807_v34  ;;  %v422_v37 = vpop.f32.mrf.mxu0  ;;  %v852_v38 = vpop.f32.mrf.mxu1 }
 0x1d7   :  { %v423_v45 = vadd.f32 %v3471_v60, %v422_v37  ;;  %v853_v46 = vadd.f32 %v3471_v60, %v852_v38 }
 0x1d8   :  { %v1394_v42 = vmax.f32 %v1329_v35, 0.0  ;;  %v1873_v44 = vmax.f32 %v1808_v36, 0.0 }
 0x1d9   :  { %v486_v55 = vmax.f32 %v423_v45, 0.0  ;;  %v916_v56 = vmax.f32 %v853_v46, 0.0 }
 0x1da   :  { %v1443_v43 = vmax.f32 %v964_v41, %v1394_v42 }
 0x1db   :  { %v965_v49 = vmax.f32 %v486_v55, %v916_v56 }
 0x1dc   :  { %v1922_v48 = vmax.f32 %v1443_v43, %v1873_v44 }
 0x1dd   :  { %v1331_v50 = vpop.f32.mrf.mxu2  ;;  %v1810_v51 = vpop.f32.mrf.mxu3 }
 0x1de   :  { %v2884_v52 = vpack.c.bf16 %v1922_v48, %v1921_v47  ;;  %v424_v53 = vpop.f32.mrf.mxu0  ;;  %v854_v54 = vpop.f32.mrf.mxu1  ;;  %v1332_v57 = vadd.f32 %v3471_v60, %v1331_v50  ;;  %v1811_v62 = vadd.f32 %v3471_v60, %v1810_v51 }
 0x1df   :  { %v425_v58 = vadd.f32 %v3471_v60, %v424_v53  ;;  %v855_v59 = vadd.f32 %v3471_v60, %v854_v54 }
 0x1e0   :  { %2924 = vst [vmem:[%s3655_s3 + $0x98] sm:$0xff] %v2884_v52   ;;  %v1395_v61 = vmax.f32 %v1332_v57, 0.0  ;;  %v1874_v8 = vmax.f32 %v1811_v62, 0.0 }
 0x1e1   :  { %v487_v63 = vmax.f32 %v425_v58, 0.0  ;;  %v917_v0 = vmax.f32 %v855_v59, 0.0 }
 0x1e2   :  { %v1444_v7 = vmax.f32 %v965_v49, %v1395_v61 }
 0x1e3   :  { %v966_v9 = vmax.f32 %v487_v63, %v917_v0 }
 0x1e4   :  { %v1923_v15 = vmax.f32 %v1444_v7, %v1874_v8 }
 0x1e5   :  { %v1333_v1 = vpop.f32.mrf.mxu2  ;;  %v1812_v2 = vpop.f32.mrf.mxu3 }
 0x1e6   :  { %v1334_v3 = vadd.f32 %v3471_v60, %v1333_v1  ;;  %v1813_v4 = vadd.f32 %v3471_v60, %v1812_v2  ;;  %v427_v5 = vpop.f32.mrf.mxu0  ;;  %v857_v6 = vpop.f32.mrf.mxu1 }
 0x1e7   :  { %v428_v13 = vadd.f32 %v3471_v60, %v427_v5  ;;  %v858_v14 = vadd.f32 %v3471_v60, %v857_v6 }
 0x1e8   :  { %v1396_v10 = vmax.f32 %v1334_v3, 0.0  ;;  %v1875_v12 = vmax.f32 %v1813_v4, 0.0 }
 0x1e9   :  { %v488_v22 = vmax.f32 %v428_v13, 0.0  ;;  %v918_v23 = vmax.f32 %v858_v14, 0.0 }
 0x1ea   :  { %v1445_v11 = vmax.f32 %v966_v9, %v1396_v10 }
 0x1eb   :  { %v967_v27 = vmax.f32 %v488_v22, %v918_v23 }
 0x1ec   :  { %v1924_v16 = vmax.f32 %v1445_v11, %v1875_v12 }
 0x1ed   :  { %v1336_v17 = vpop.f32.mrf.mxu2  ;;  %v1815_v18 = vpop.f32.mrf.mxu3 }
 0x1ee   :  { %v2889_v19 = vpack.c.bf16 %v1924_v16, %v1923_v15  ;;  %v429_v20 = vpop.f32.mrf.mxu0  ;;  %v859_v21 = vpop.f32.mrf.mxu1  ;;  %v1337_v24 = vadd.f32 %v3471_v60, %v1336_v17  ;;  %v1816_v29 = vadd.f32 %v3471_v60, %v1815_v18 }
 0x1ef   :  { %v430_v25 = vadd.f32 %v3471_v60, %v429_v20  ;;  %v860_v26 = vadd.f32 %v3471_v60, %v859_v21 }
 0x1f0   :  { %2925 = vst [vmem:[%s3655_s3 + $0xa0] sm:$0xff] %v2889_v19   ;;  %v1397_v28 = vmax.f32 %v1337_v24, 0.0  ;;  %v1876_v39 = vmax.f32 %v1816_v29, 0.0 }
 0x1f1   :  { %v489_v30 = vmax.f32 %v430_v25, 0.0  ;;  %v919_v31 = vmax.f32 %v860_v26, 0.0 }
 0x1f2   :  { %v1446_v38 = vmax.f32 %v967_v27, %v1397_v28 }
 0x1f3   :  { %v968_v40 = vmax.f32 %v489_v30, %v919_v31 }
 0x1f4   :  { %v1925_v46 = vmax.f32 %v1446_v38, %v1876_v39 }
 0x1f5   :  { %v1338_v32 = vpop.f32.mrf.mxu2  ;;  %v1817_v33 = vpop.f32.mrf.mxu3 }
 0x1f6   :  { %v1339_v34 = vadd.f32 %v3471_v60, %v1338_v32  ;;  %v1818_v35 = vadd.f32 %v3471_v60, %v1817_v33  ;;  %v432_v36 = vpop.f32.mrf.mxu0  ;;  %v862_v37 = vpop.f32.mrf.mxu1 }
 0x1f7   :  { %v433_v44 = vadd.f32 %v3471_v60, %v432_v36  ;;  %v863_v45 = vadd.f32 %v3471_v60, %v862_v37 }
 0x1f8   :  { %v1398_v41 = vmax.f32 %v1339_v34, 0.0  ;;  %v1877_v43 = vmax.f32 %v1818_v35, 0.0 }
 0x1f9   :  { %v490_v54 = vmax.f32 %v433_v44, 0.0  ;;  %v920_v55 = vmax.f32 %v863_v45, 0.0 }
 0x1fa   :  { %v1447_v42 = vmax.f32 %v968_v40, %v1398_v41 }
 0x1fb   :  { %v969_v59 = vmax.f32 %v490_v54, %v920_v55 }
 0x1fc   :  { %v1926_v47 = vmax.f32 %v1447_v42, %v1877_v43 }
 0x1fd   :  { %v1341_v48 = vpop.f32.mrf.mxu2  ;;  %v1820_v50 = vpop.f32.mrf.mxu3 }
 0x1fe   :  { %v2894_v51 = vpack.c.bf16 %v1926_v47, %v1925_v46  ;;  %v434_v52 = vpop.f32.mrf.mxu0  ;;  %v864_v53 = vpop.f32.mrf.mxu1  ;;  %v1342_v56 = vadd.f32 %v3471_v60, %v1341_v48  ;;  %v1821_v61 = vadd.f32 %v3471_v60, %v1820_v50 }
 0x1ff   :  { %v435_v57 = vadd.f32 %v3471_v60, %v434_v52  ;;  %v865_v58 = vadd.f32 %v3471_v60, %v864_v53 }
 0x200   :  { %2926 = vst [vmem:[%s3655_s3 + $0xa8] sm:$0xff] %v2894_v51   ;;  %v1399_v49 = vmax.f32 %v1342_v56, 0.0  ;;  %v1878_v7 = vmax.f32 %v1821_v61, 0.0 }
 0x201   :  { %v491_v62 = vmax.f32 %v435_v57, 0.0  ;;  %v921_v63 = vmax.f32 %v865_v58, 0.0 }
 0x202   :  { %v1448_v6 = vmax.f32 %v969_v59, %v1399_v49 }
 0x203   :  { %v970_v8 = vmax.f32 %v491_v62, %v921_v63 }
 0x204   :  { %v1927_v14 = vmax.f32 %v1448_v6, %v1878_v7 }
 0x205   :  { %v1343_v0 = vpop.f32.mrf.mxu2  ;;  %v1822_v1 = vpop.f32.mrf.mxu3 }
 0x206   :  { %v1344_v2 = vadd.f32 %v3471_v60, %v1343_v0  ;;  %v1823_v3 = vadd.f32 %v3471_v60, %v1822_v1  ;;  %v437_v4 = vpop.f32.mrf.mxu0  ;;  %v867_v5 = vpop.f32.mrf.mxu1 }
 0x207   :  { %v438_v12 = vadd.f32 %v3471_v60, %v437_v4  ;;  %v868_v13 = vadd.f32 %v3471_v60, %v867_v5 }
 0x208   :  { %v1400_v9 = vmax.f32 %v1344_v2, 0.0  ;;  %v1879_v11 = vmax.f32 %v1823_v3, 0.0 }
 0x209   :  { %v492_v21 = vmax.f32 %v438_v12, 0.0  ;;  %v922_v22 = vmax.f32 %v868_v13, 0.0 }
 0x20a   :  { %v1449_v10 = vmax.f32 %v970_v8, %v1400_v9 }
 0x20b   :  { %v971_v26 = vmax.f32 %v492_v21, %v922_v22 }
 0x20c   :  { %v1928_v15 = vmax.f32 %v1449_v10, %v1879_v11 }
 0x20d   :  { %v1346_v16 = vpop.f32.mrf.mxu2  ;;  %v1825_v17 = vpop.f32.mrf.mxu3 }
 0x20e   :  { %v2899_v18 = vpack.c.bf16 %v1928_v15, %v1927_v14  ;;  %v439_v19 = vpop.f32.mrf.mxu0  ;;  %v869_v20 = vpop.f32.mrf.mxu1  ;;  %v1347_v23 = vadd.f32 %v3471_v60, %v1346_v16  ;;  %v1826_v28 = vadd.f32 %v3471_v60, %v1825_v17 }
 0x20f   :  { %v440_v24 = vadd.f32 %v3471_v60, %v439_v19  ;;  %v870_v25 = vadd.f32 %v3471_v60, %v869_v20 }
 0x210   :  { %2927 = vst [vmem:[%s3655_s3 + $0xb0] sm:$0xff] %v2899_v18   ;;  %v1401_v27 = vmax.f32 %v1347_v23, 0.0  ;;  %v1880_v40 = vmax.f32 %v1826_v28, 0.0 }
 0x211   :  { %v493_v29 = vmax.f32 %v440_v24, 0.0  ;;  %v923_v30 = vmax.f32 %v870_v25, 0.0 }
 0x212   :  { %v1450_v39 = vmax.f32 %v971_v26, %v1401_v27 }
 0x213   :  { %v972_v41 = vmax.f32 %v493_v29, %v923_v30 }
 0x214   :  { %v1929_v47 = vmax.f32 %v1450_v39, %v1880_v40 }
 0x215   :  { %v1348_v31 = vpop.f32.mrf.mxu2  ;;  %v1827_v32 = vpop.f32.mrf.mxu3 }
 0x216   :  { %v1349_v33 = vadd.f32 %v3471_v60, %v1348_v31  ;;  %v1828_v34 = vadd.f32 %v3471_v60, %v1827_v32  ;;  %v442_v35 = vpop.f32.mrf.mxu0  ;;  %v872_v36 = vpop.f32.mrf.mxu1 }
 0x217   :  { %v443_v37 = vadd.f32 %v3471_v60, %v442_v35  ;;  %v873_v38 = vadd.f32 %v3471_v60, %v872_v36 }
 0x218   :  { %v1402_v42 = vmax.f32 %v1349_v33, 0.0  ;;  %v1881_v44 = vmax.f32 %v1828_v34, 0.0 }
 0x219   :  { %v494_v45 = vmax.f32 %v443_v37, 0.0  ;;  %v924_v46 = vmax.f32 %v873_v38, 0.0 }
 0x21a   :  { %v1451_v43 = vmax.f32 %v972_v41, %v1402_v42 }
 0x21b   :  { %v973_v53 = vmax.f32 %v494_v45, %v924_v46 }
 0x21c   :  { %v1930_v48 = vmax.f32 %v1451_v43, %v1881_v44 }
 0x21d   :  { %v1351_v50 = vpop.f32.mrf.mxu2  ;;  %v1830_v51 = vpop.f32.mrf.mxu3 }
 0x21e   :  { %v2904_v52 = vpack.c.bf16 %v1930_v48, %v1929_v47  ;;  %v1352_v54 = vadd.f32 %v3471_v60, %v1351_v50  ;;  %v1831_v55 = vadd.f32 %v3471_v60, %v1830_v51  ;;  %v444_v56 = vpop.f32.mrf.mxu0  ;;  %v874_v57 = vpop.f32.mrf.mxu1 }
 0x220   :  { %2928 = vst [vmem:[%s3655_s3 + $0xb8] sm:$0xff] %v2904_v52   ;;  %v1403_v58 = vmax.f32 %v1352_v54, 0.0  ;;  %v1882_v59 = vmax.f32 %v1831_v55, 0.0 }
 0x222   :  { %v1452_v49 = vmax.f32 %v973_v53, %v1403_v58 }
 0x224   :  { %v1931_v61 = vmax.f32 %v1452_v49, %v1882_v59 }
 0x225   :  { %v1353_v62 = vpop.f32.mrf.mxu2  ;;  %v1832_v63 = vpop.f32.mrf.mxu3 }
 0x226   :  { %v1980_v0 = vpack.c.bf16 %v1931_v61, %v1931_v61 }
 0x228   :  { %2029 = vst [vmem:[%s3655_s3 + $0xc0] sm:$0xf] %v1980_v0 }

// kernel: simple_cnn_forward.5
= control target key start
LH: loop header
LB: loop body
LE: loop exit
PB: predicated region body
PF: predicated region fallthrough
CT: control target
= control target key end

     0   :  { %s4037_s0 = inlined_call_operand.vmem [shape: bf16[2,3200], index: 0, kind: input, shape index: {}]   ;;  %s4038_s1 = inlined_call_operand.vmem [shape: bf16[3200,128], index: 1, kind: input, shape index: {}]   ;;  %s4039_s2 = inlined_call_operand.vmem [shape: f32[1,128], index: 2, kind: input, shape index: {}]   ;;  %s4040_s3 = inlined_call_operand.vmem [shape: bf16[128,128], index: 3, kind: input, shape index: {}]   ;;  %s4041_s4 = inlined_call_operand.vmem [shape: f32[1,128], index: 4, kind: input, shape index: {}]   ;;  %s4042_s5 = inlined_call_operand.vmem [shape: bf16[128,10], index: 5, kind: input, shape index: {}]   ;;  %s4043_s6 = inlined_call_operand.vmem [shape: f32[1,10], index: 6, kind: input, shape index: {}]   ;;  %s4044_s7 = inlined_call_operand.hbm [shape: f32[2,10], index: 7, kind: output, shape index: {}]  }
   0x1   :  { %v3073_v0 = vld [vmem:[%s4038_s1 + $0x38] sm:$0xff]  ;;  %v3072_v4 = vld [vmem:[%s4038_s1 + $0x30] sm:$0xff]  ;;  %v3071_v8 = vld [vmem:[%s4038_s1 + $0x28] sm:$0xff] }
   0x2   :  { %v3089_v1 = vld [vmem:[%s4038_s1 + $0xb8] sm:$0xff]  ;;  %1693 = vmatpush.bf16.msra.mxu0 %v3073_v0  ;;  %v3088_v5 = vld [vmem:[%s4038_s1 + $0xb0] sm:$0xff]  ;;  %v3087_v9 = vld [vmem:[%s4038_s1 + $0xa8] sm:$0xff] }
   0x3   :  { %v3081_v2 = vld [vmem:[%s4038_s1 + $0x78] sm:$0xff]  ;;  %1719 = vmatpush.bf16.msra.mxu2 %v3089_v1  ;;  %v3080_v6 = vld [vmem:[%s4038_s1 + $0x70] sm:$0xff]  ;;  %v3079_v10 = vld [vmem:[%s4038_s1 + $0x68] sm:$0xff] }
   0x4   :  { %v3097_v3 = vld [vmem:[%s4038_s1 + $0xf8] sm:$0xff]  ;;  %1706 = vmatpush.bf16.msra.mxu1 %v3081_v2  ;;  %v3096_v7 = vld [vmem:[%s4038_s1 + $0xf0] sm:$0xff]  ;;  %v3095_v11 = vld [vmem:[%s4038_s1 + $0xe8] sm:$0xff] }
   0x5   :  { %1732 = vmatpush.bf16.msra.mxu3 %v3097_v3  ;;  %v3070_v12 = vld [vmem:[%s4038_s1 + $0x20] sm:$0xff]  ;;  %v3069_v16 = vld [vmem:[%s4038_s1 + $0x18] sm:$0xff]  ;;  %v3068_v21 = vld [vmem:[%s4038_s1 + $0x10] sm:$0xff] }
   0x6   :  { %1694 = vmatpush.bf16.msra.mxu0 %v3072_v4  ;;  %v3086_v13 = vld [vmem:[%s4038_s1 + $0xa0] sm:$0xff]  ;;  %v3085_v17 = vld [vmem:[%s4038_s1 + $0x98] sm:$0xff]  ;;  %v3084_v22 = vld [vmem:[%s4038_s1 + $0x90] sm:$0xff] }
   0x7   :  { %1720 = vmatpush.bf16.msra.mxu2 %v3088_v5  ;;  %v3078_v14 = vld [vmem:[%s4038_s1 + $0x60] sm:$0xff]  ;;  %v3077_v18 = vld [vmem:[%s4038_s1 + $0x58] sm:$0xff]  ;;  %v3076_v23 = vld [vmem:[%s4038_s1 + $0x50] sm:$0xff] }
   0x8   :  { %1707 = vmatpush.bf16.msra.mxu1 %v3080_v6  ;;  %v3094_v15 = vld [vmem:[%s4038_s1 + $0xe0] sm:$0xff]  ;;  %v3093_v19 = vld [vmem:[%s4038_s1 + $0xd8] sm:$0xff]  ;;  %v3092_v24 = vld [vmem:[%s4038_s1 + $0xd0] sm:$0xff] }
   0x9   :  { %1733 = vmatpush.bf16.msra.mxu3 %v3096_v7  ;;  %v27_v20 = vld [vmem:[%s4037_s0] sm:$0xff] }
   0xa   :  { %1695 = vmatpush.bf16.msra.mxu0 %v3071_v8  ;;  %436 = vst [vmem:[#allocation1] ss:$9 sm:$0xff] %v27_v20 }
   0xb   :  { %1721 = vmatpush.bf16.msra.mxu2 %v3087_v9 }
   0xc   :  { %1708 = vmatpush.bf16.msra.mxu1 %v3079_v10 }
   0xd   :  { %1734 = vmatpush.bf16.msra.mxu3 %v3095_v11 }
   0xe   :  { %1696 = vmatpush.bf16.msra.mxu0 %v3070_v12 }
   0xf   :  { %1722 = vmatpush.bf16.msra.mxu2 %v3086_v13 }
  0x10   :  { %1709 = vmatpush.bf16.msra.mxu1 %v3078_v14 }
  0x11   :  { %1735 = vmatpush.bf16.msra.mxu3 %v3094_v15 }
  0x12   :  { %1697 = vmatpush.bf16.msra.mxu0 %v3069_v16 }
  0x13   :  { %1723 = vmatpush.bf16.msra.mxu2 %v3085_v17 }
  0x14   :  { %1710 = vmatpush.bf16.msra.mxu1 %v3077_v18 }
  0x15   :  { %1736 = vmatpush.bf16.msra.mxu3 %v3093_v19 }
  0x16   :  { %12 = vsyncpa [#allocation3], 0  ;;  %1698 = vmatpush.bf16.msra.mxu0 %v3068_v21  ;;  %v3067_v25 = vld [vmem:[%s4038_s1 + $0x8] sm:$0xff]  ;;  %v3066_v29 = vld [vmem:[%s4038_s1] sm:$0xff]  ;;  %s3312_s23 = smov [#allocation2]   ;;  %vm2184_vm0 = vcmask 74752  }
  0x17   :  { %1724 = vmatpush.bf16.msra.mxu2 %v3084_v22  ;;  %v3083_v26 = vld [vmem:[%s4038_s1 + $0x88] sm:$0xff]  ;;  %v3082_v30 = vld [vmem:[%s4038_s1 + $0x80] sm:$0xff]  ;;  %v3105_v31 = vld [vmem:[%s4038_s1 + $0x138] sm:$0xff]  ;;  %s2191_s24 = sshll.u32 %s3312_s23, 4  ;;  %s2192_s24 = int_to_ptr.vmem [resolvable:$true] %s2191_s24 }
  0x18   :  { %1711 = vmatpush.bf16.msra.mxu1 %v3076_v23  ;;  %v3075_v27 = vld [vmem:[%s4038_s1 + $0x48] sm:$0xff]  ;;  %v3121_v32 = vld [vmem:[%s4038_s1 + $0x1b8] sm:$0xff]  ;;  %v3074_v33 = vld [vmem:[%s4038_s1 + $0x40] sm:$0xff] }
  0x19   :  { %1737 = vmatpush.bf16.msra.mxu3 %v3092_v24  ;;  %v3091_v28 = vld [vmem:[%s4038_s1 + $0xc8] sm:$0xff]  ;;  %v3090_v34 = vld [vmem:[%s4038_s1 + $0xc0] sm:$0xff]  ;;  %v3113_v35 = vld [vmem:[%s4038_s1 + $0x178] sm:$0xff] }
  0x1a   :  { %1699 = vmatpush.bf16.msra.mxu0 %v3067_v25  ;;  %v3129_v36 = vld [vmem:[%s4038_s1 + $0x1f8] sm:$0xff]  ;;  %v3104_v37 = vld [vmem:[%s4038_s1 + $0x130] sm:$0xff]  ;;  %v437_v40 = vld [vmem:[#allocation1] sm:$0xff] }
  0x1b   :  { %1725 = vmatpush.bf16.msra.mxu2 %v3083_v26  ;;  %v3120_v38 = vld [vmem:[%s4038_s1 + $0x1b0] sm:$0xff]  ;;  %v440_v43 = vld [vmem:[#allocation1 + $0x1b] sm:$0xff]  ;;  %v3103_v45 = vld [vmem:[%s4038_s1 + $0x128] sm:$0xff] }
  0x1c   :  { %1712 = vmatpush.bf16.msra.mxu1 %v3075_v27  ;;  %v439_v39 = vld [vmem:[#allocation1 + $0x12] sm:$0xff]  ;;  %v438_v44 = vld [vmem:[#allocation1 + $0x9] sm:$0xff]  ;;  %v3486_v49 = vld [vmem:[#allocation1 + $0x3f] sm:$0xff] }
  0x1d   :  { %1738 = vmatpush.bf16.msra.mxu3 %v3091_v28  ;;  %v3112_v41 = vld [vmem:[%s4038_s1 + $0x170] sm:$0xff]  ;;  %v3119_v46 = vld [vmem:[%s4038_s1 + $0x1a8] sm:$0xff]  ;;  %v3102_v54 = vld [vmem:[%s4038_s1 + $0x120] sm:$0xff] }
  0x1e   :  { %1700 = vmatpush.bf16.msra.mxu0 %v3066_v29  ;;  %v3128_v42 = vld [vmem:[%s4038_s1 + $0x1f0] sm:$0xff]  ;;  %v3484_v48 = vld [vmem:[#allocation1 + $0x24] sm:$0xff]  ;;  %v3101_v58 = vld [vmem:[%s4038_s1 + $0x118] sm:$0xff] }
  0x1f   :  { %1726 = vmatpush.bf16.msra.mxu2 %v3082_v30  ;;  %v3482_v47 = vld [vmem:[#allocation1 + $0x36] sm:$0xff]  ;;  %v28_v50 = vld [vmem:[%s4037_s0 + $0x8] sm:$0xff]  ;;  %v3118_v55 = vld [vmem:[%s4038_s1 + $0x1a0] sm:$0xff] }
  0x20   :  { %1713 = vmatpush.bf16.msra.mxu1 %v3074_v33  ;;  %v3491_v51 = vld [vmem:[#allocation1 + $0x2d] sm:$0xff]  ;;  %v3110_v56 = vld [vmem:[%s4038_s1 + $0x160] sm:$0xff]  ;;  %v3117_v59 = vld [vmem:[%s4038_s1 + $0x198] sm:$0xff] }
  0x21   :  { %1739 = vmatpush.bf16.msra.mxu3 %v3090_v34  ;;  %1701 = vmatmul.bf16.vlgmr.msra.gmra.mxu0 %v437_v40  ;;  %v3111_v52 = vld [vmem:[%s4038_s1 + $0x168] sm:$0xff]  ;;  %446 = vst [vmem:[#allocation1] ss:$9 sm:$0xff] %v28_v50  ;;  %v3126_v57 = vld [vmem:[%s4038_s1 + $0x1e0] sm:$0xff]  ;;  %v3109_v60 = vld [vmem:[%s4038_s1 + $0x158] sm:$0xff] }
  0x22   :  { %1745 = vmatpush.bf16.msrb.mxu0 %v3105_v31  ;;  %1727 = vmatmul.bf16.vlgmr.msra.gmra.mxu2 %v439_v39  ;;  %v3127_v53 = vld [vmem:[%s4038_s1 + $0x1e8] sm:$0xff]  ;;  %v3125_v61 = vld [vmem:[%s4038_s1 + $0x1d8] sm:$0xff]  ;;  %v3100_v62 = vld [vmem:[%s4038_s1 + $0x110] sm:$0xff] }
  0x23   :  { %1771 = vmatpush.bf16.msrb.mxu2 %v3121_v32  ;;  %1714 = vmatmul.bf16.vlgmr.msra.gmra.mxu1 %v438_v44  ;;  %v3116_v63 = vld [vmem:[%s4038_s1 + $0x190] sm:$0xff]  ;;  %v3099_v2 = vld [vmem:[%s4038_s1 + $0x108] sm:$0xff]  ;;  %v3098_v6 = vld [vmem:[%s4038_s1 + $0x100] sm:$0xff] }
  0x24   :  { %1758 = vmatpush.bf16.msrb.mxu1 %v3113_v35  ;;  %1740 = vmatmul.bf16.vlgmr.msra.gmra.mxu3 %v440_v43  ;;  %v3108_v0 = vld [vmem:[%s4038_s1 + $0x150] sm:$0xff]  ;;  %v3115_v3 = vld [vmem:[%s4038_s1 + $0x188] sm:$0xff]  ;;  %v3114_v7 = vld [vmem:[%s4038_s1 + $0x180] sm:$0xff] }
  0x25   :  { %1784 = vmatpush.bf16.msrb.mxu3 %v3129_v36  ;;  %v3124_v1 = vld [vmem:[%s4038_s1 + $0x1d0] sm:$0xff]  ;;  %v3107_v4 = vld [vmem:[%s4038_s1 + $0x148] sm:$0xff]  ;;  %v3137_v8 = vld [vmem:[%s4038_s1 + $0x238] sm:$0xff] }
  0x26   :  { %1746 = vmatpush.bf16.msrb.mxu0 %v3104_v37  ;;  %v3123_v5 = vld [vmem:[%s4038_s1 + $0x1c8] sm:$0xff]  ;;  %v3153_v9 = vld [vmem:[%s4038_s1 + $0x2b8] sm:$0xff]  ;;  %v3106_v10 = vld [vmem:[%s4038_s1 + $0x140] sm:$0xff] }
  0x27   :  { %1772 = vmatpush.bf16.msrb.mxu2 %v3120_v38  ;;  %v3122_v11 = vld [vmem:[%s4038_s1 + $0x1c0] sm:$0xff]  ;;  %v3145_v12 = vld [vmem:[%s4038_s1 + $0x278] sm:$0xff]  ;;  %v3136_v14 = vld [vmem:[%s4038_s1 + $0x230] sm:$0xff] }
  0x28   :  { %1759 = vmatpush.bf16.msrb.mxu1 %v3112_v41  ;;  %v3161_v13 = vld [vmem:[%s4038_s1 + $0x2f8] sm:$0xff]  ;;  %v3152_v15 = vld [vmem:[%s4038_s1 + $0x2b0] sm:$0xff]  ;;  %v3135_v18 = vld [vmem:[%s4038_s1 + $0x228] sm:$0xff] }
  0x29   :  { %1785 = vmatpush.bf16.msrb.mxu3 %v3128_v42  ;;  %v3144_v16 = vld [vmem:[%s4038_s1 + $0x270] sm:$0xff]  ;;  %v3151_v19 = vld [vmem:[%s4038_s1 + $0x2a8] sm:$0xff]  ;;  %v3134_v22 = vld [vmem:[%s4038_s1 + $0x220] sm:$0xff] }
  0x2a   :  { %1747 = vmatpush.bf16.msrb.mxu0 %v3103_v45  ;;  %v3160_v17 = vld [vmem:[%s4038_s1 + $0x2f0] sm:$0xff]  ;;  %v3143_v20 = vld [vmem:[%s4038_s1 + $0x268] sm:$0xff]  ;;  %v3150_v23 = vld [vmem:[%s4038_s1 + $0x2a0] sm:$0xff] }
  0x2b   :  { %1773 = vmatpush.bf16.msrb.mxu2 %v3119_v46  ;;  %v3159_v21 = vld [vmem:[%s4038_s1 + $0x2e8] sm:$0xff]  ;;  %v3142_v24 = vld [vmem:[%s4038_s1 + $0x260] sm:$0xff]  ;;  %v3133_v26 = vld [vmem:[%s4038_s1 + $0x218] sm:$0xff] }
  0x2c   :  { %1760 = vmatpush.bf16.msrb.mxu1 %v3111_v52  ;;  %v3158_v25 = vld [vmem:[%s4038_s1 + $0x2e0] sm:$0xff]  ;;  %v3149_v27 = vld [vmem:[%s4038_s1 + $0x298] sm:$0xff]  ;;  %v3132_v30 = vld [vmem:[%s4038_s1 + $0x210] sm:$0xff] }
  0x2d   :  { %1786 = vmatpush.bf16.msrb.mxu3 %v3127_v53  ;;  %v3141_v28 = vld [vmem:[%s4038_s1 + $0x258] sm:$0xff]  ;;  %v3148_v31 = vld [vmem:[%s4038_s1 + $0x290] sm:$0xff]  ;;  %v3131_v34 = vld [vmem:[%s4038_s1 + $0x208] sm:$0xff] }
  0x2e   :  { %1748 = vmatpush.bf16.msrb.mxu0 %v3102_v54  ;;  %v3157_v29 = vld [vmem:[%s4038_s1 + $0x2d8] sm:$0xff]  ;;  %v3140_v32 = vld [vmem:[%s4038_s1 + $0x250] sm:$0xff]  ;;  %v3147_v35 = vld [vmem:[%s4038_s1 + $0x288] sm:$0xff] }
  0x2f   :  { %1774 = vmatpush.bf16.msrb.mxu2 %v3118_v55  ;;  %v3156_v33 = vld [vmem:[%s4038_s1 + $0x2d0] sm:$0xff]  ;;  %v3139_v36 = vld [vmem:[%s4038_s1 + $0x248] sm:$0xff]  ;;  %v3130_v38 = vld [vmem:[%s4038_s1 + $0x200] sm:$0xff] }
  0x30   :  { %1761 = vmatpush.bf16.msrb.mxu1 %v3110_v56  ;;  %v3155_v37 = vld [vmem:[%s4038_s1 + $0x2c8] sm:$0xff]  ;;  %v3146_v39 = vld [vmem:[%s4038_s1 + $0x280] sm:$0xff]  ;;  %v3169_v40 = vld [vmem:[%s4038_s1 + $0x338] sm:$0xff] }
  0x31   :  { %1787 = vmatpush.bf16.msrb.mxu3 %v3126_v57  ;;  %v3185_v41 = vld [vmem:[%s4038_s1 + $0x3b8] sm:$0xff]  ;;  %v3138_v42 = vld [vmem:[%s4038_s1 + $0x240] sm:$0xff]  ;;  %v3168_v50 = vld [vmem:[%s4038_s1 + $0x330] sm:$0xff] }
  0x32   :  { %1749 = vmatpush.bf16.msrb.mxu0 %v3101_v58  ;;  %v3154_v43 = vld [vmem:[%s4038_s1 + $0x2c0] sm:$0xff]  ;;  %v3177_v44 = vld [vmem:[%s4038_s1 + $0x378] sm:$0xff]  ;;  %v3176_v52 = vld [vmem:[%s4038_s1 + $0x370] sm:$0xff] }
  0x33   :  { %1775 = vmatpush.bf16.msrb.mxu2 %v3117_v59  ;;  %v447_v45 = vld [vmem:[#allocation1] sm:$0xff]  ;;  %v449_v46 = vld [vmem:[#allocation1 + $0x12] sm:$0xff]  ;;  %v3167_v54 = vld [vmem:[%s4038_s1 + $0x328] sm:$0xff] }
  0x34   :  { %1762 = vmatpush.bf16.msrb.mxu1 %v3109_v60  ;;  %v3192_v53 = vld [vmem:[%s4038_s1 + $0x3f0] sm:$0xff]  ;;  %v3183_v55 = vld [vmem:[%s4038_s1 + $0x3a8] sm:$0xff]  ;;  %v3166_v58 = vld [vmem:[%s4038_s1 + $0x320] sm:$0xff] }
  0x35   :  { %1788 = vmatpush.bf16.msrb.mxu3 %v3125_v61  ;;  %v3175_v56 = vld [vmem:[%s4038_s1 + $0x368] sm:$0xff]  ;;  %v3182_v59 = vld [vmem:[%s4038_s1 + $0x3a0] sm:$0xff] }
  0x36   :  { %1750 = vmatpush.bf16.msrb.mxu0 %v3100_v62  ;;  %v3191_v57 = vld [vmem:[%s4038_s1 + $0x3e8] sm:$0xff]  ;;  %v3174_v60 = vld [vmem:[%s4038_s1 + $0x360] sm:$0xff]  ;;  %v3165_v62 = vld [vmem:[%s4038_s1 + $0x318] sm:$0xff] }
  0x37   :  { %1776 = vmatpush.bf16.msrb.mxu2 %v3116_v63  ;;  %v3190_v61 = vld [vmem:[%s4038_s1 + $0x3e0] sm:$0xff]  ;;  %v3181_v63 = vld [vmem:[%s4038_s1 + $0x398] sm:$0xff] }
  0x38   :  { %1763 = vmatpush.bf16.msrb.mxu1 %v3108_v0  ;;  %v3173_v0 = vld [vmem:[%s4038_s1 + $0x358] sm:$0xff] }
  0x39   :  { %1789 = vmatpush.bf16.msrb.mxu3 %v3124_v1  ;;  %v3189_v1 = vld [vmem:[%s4038_s1 + $0x3d8] sm:$0xff] }
  0x3a   :  { %1751 = vmatpush.bf16.msrb.mxu0 %v3099_v2  ;;  %v3164_v2 = vld [vmem:[%s4038_s1 + $0x310] sm:$0xff] }
  0x3b   :  { %1777 = vmatpush.bf16.msrb.mxu2 %v3115_v3  ;;  %v3180_v3 = vld [vmem:[%s4038_s1 + $0x390] sm:$0xff] }
  0x3c   :  { %1764 = vmatpush.bf16.msrb.mxu1 %v3107_v4  ;;  %v3172_v4 = vld [vmem:[%s4038_s1 + $0x350] sm:$0xff] }
  0x3d   :  { %1790 = vmatpush.bf16.msrb.mxu3 %v3123_v5  ;;  %v3188_v5 = vld [vmem:[%s4038_s1 + $0x3d0] sm:$0xff] }
  0x3e   :  { %1752 = vmatpush.bf16.msrb.mxu0 %v3098_v6  ;;  %v3163_v6 = vld [vmem:[%s4038_s1 + $0x308] sm:$0xff] }
  0x3f   :  { %1778 = vmatpush.bf16.msrb.mxu2 %v3114_v7  ;;  %v3179_v7 = vld [vmem:[%s4038_s1 + $0x388] sm:$0xff] }
  0x40   :  { %1765 = vmatpush.bf16.msrb.mxu1 %v3106_v10  ;;  %v452_v10 = vld [vmem:[#allocation1 + $0x2d] sm:$0xff] }
  0x41   :  { %1791 = vmatpush.bf16.msrb.mxu3 %v3122_v11  ;;  %1753 = vmatmul.bf16.vlgmr.msrb.gmra.mxu0 %v3484_v48  ;;  %v448_v48 = vld [vmem:[#allocation1 + $0x9] sm:$0xff]  ;;  %v454_v11 = vld [vmem:[#allocation1 + $0x3f] sm:$0xff] }
  0x42   :  { %1797 = vmatpush.bf16.msra.mxu0 %v3137_v8  ;;  %1779 = vmatmul.bf16.vlgmr.msrb.gmra.mxu2 %v3482_v47  ;;  %v3193_v47 = vld [vmem:[%s4038_s1 + $0x3f8] sm:$0xff]  ;;  %v451_v8 = vld [vmem:[#allocation1 + $0x24] sm:$0xff] }
  0x43   :  { %1823 = vmatpush.bf16.msra.mxu2 %v3153_v9  ;;  %1766 = vmatmul.bf16.vlgmr.msrb.gmra.mxu1 %v3491_v51  ;;  %v3184_v51 = vld [vmem:[%s4038_s1 + $0x3b0] sm:$0xff] }
  0x44   :  { %1810 = vmatpush.bf16.msra.mxu1 %v3145_v12  ;;  %1792 = vmatmul.bf16.vlgmr.msrb.gmra.mxu3 %v3486_v49  ;;  %v450_v49 = vld [vmem:[#allocation1 + $0x1b] sm:$0xff]  ;;  %v29_v12 = vld [vmem:[%s4037_s0 + $0x10] sm:$0xff] }
  0x45   :  { %1836 = vmatpush.bf16.msra.mxu3 %v3161_v13  ;;  %v453_v9 = vld [vmem:[#allocation1 + $0x36] sm:$0xff]  ;;  %v3171_v13 = vld [vmem:[%s4038_s1 + $0x348] sm:$0xff] }
  0x46   :  { %1798 = vmatpush.bf16.msra.mxu0 %v3136_v14  ;;  %456 = vst [vmem:[#allocation1] ss:$9 sm:$0xff] %v29_v12  ;;  %v3187_v14 = vld [vmem:[%s4038_s1 + $0x3c8] sm:$0xff]  ;;  %v3245_v12 = vld [vmem:[%s4038_s1 + $0x598] sm:$0xff] }
  0x47   :  { %1824 = vmatpush.bf16.msra.mxu2 %v3152_v15  ;;  %v3162_v15 = vld [vmem:[%s4038_s1 + $0x300] sm:$0xff] }
  0x48   :  { %1811 = vmatpush.bf16.msra.mxu1 %v3144_v16  ;;  %v3178_v16 = vld [vmem:[%s4038_s1 + $0x380] sm:$0xff] }
  0x49   :  { %1837 = vmatpush.bf16.msra.mxu3 %v3160_v17  ;;  %v3201_v17 = vld [vmem:[%s4038_s1 + $0x438] sm:$0xff] }
  0x4a   :  { %1799 = vmatpush.bf16.msra.mxu0 %v3135_v18  ;;  %v3217_v18 = vld [vmem:[%s4038_s1 + $0x4b8] sm:$0xff] }
  0x4b   :  { %1825 = vmatpush.bf16.msra.mxu2 %v3151_v19  ;;  %v3170_v19 = vld [vmem:[%s4038_s1 + $0x340] sm:$0xff] }
  0x4c   :  { %1812 = vmatpush.bf16.msra.mxu1 %v3143_v20  ;;  %v3186_v20 = vld [vmem:[%s4038_s1 + $0x3c0] sm:$0xff] }
  0x4d   :  { %1838 = vmatpush.bf16.msra.mxu3 %v3159_v21  ;;  %v3209_v21 = vld [vmem:[%s4038_s1 + $0x478] sm:$0xff] }
  0x4e   :  { %1800 = vmatpush.bf16.msra.mxu0 %v3134_v22  ;;  %v3225_v22 = vld [vmem:[%s4038_s1 + $0x4f8] sm:$0xff] }
  0x4f   :  { %1826 = vmatpush.bf16.msra.mxu2 %v3150_v23  ;;  %v3200_v23 = vld [vmem:[%s4038_s1 + $0x430] sm:$0xff] }
  0x50   :  { %1813 = vmatpush.bf16.msra.mxu1 %v3142_v24  ;;  %v3216_v24 = vld [vmem:[%s4038_s1 + $0x4b0] sm:$0xff] }
  0x51   :  { %1839 = vmatpush.bf16.msra.mxu3 %v3158_v25  ;;  %v3208_v25 = vld [vmem:[%s4038_s1 + $0x470] sm:$0xff] }
  0x52   :  { %1801 = vmatpush.bf16.msra.mxu0 %v3133_v26  ;;  %v3224_v26 = vld [vmem:[%s4038_s1 + $0x4f0] sm:$0xff] }
  0x53   :  { %1827 = vmatpush.bf16.msra.mxu2 %v3149_v27  ;;  %v3199_v27 = vld [vmem:[%s4038_s1 + $0x428] sm:$0xff] }
  0x54   :  { %1814 = vmatpush.bf16.msra.mxu1 %v3141_v28  ;;  %v3215_v28 = vld [vmem:[%s4038_s1 + $0x4a8] sm:$0xff] }
  0x55   :  { %1840 = vmatpush.bf16.msra.mxu3 %v3157_v29  ;;  %v3207_v29 = vld [vmem:[%s4038_s1 + $0x468] sm:$0xff] }
  0x56   :  { %1802 = vmatpush.bf16.msra.mxu0 %v3132_v30  ;;  %v3223_v30 = vld [vmem:[%s4038_s1 + $0x4e8] sm:$0xff] }
  0x57   :  { %1828 = vmatpush.bf16.msra.mxu2 %v3148_v31  ;;  %v3198_v31 = vld [vmem:[%s4038_s1 + $0x420] sm:$0xff] }
  0x58   :  { %1815 = vmatpush.bf16.msra.mxu1 %v3140_v32  ;;  %v3214_v32 = vld [vmem:[%s4038_s1 + $0x4a0] sm:$0xff] }
  0x59   :  { %1841 = vmatpush.bf16.msra.mxu3 %v3156_v33  ;;  %v3206_v33 = vld [vmem:[%s4038_s1 + $0x460] sm:$0xff] }
  0x5a   :  { %1803 = vmatpush.bf16.msra.mxu0 %v3131_v34  ;;  %v3222_v34 = vld [vmem:[%s4038_s1 + $0x4e0] sm:$0xff] }
  0x5b   :  { %1829 = vmatpush.bf16.msra.mxu2 %v3147_v35  ;;  %v3197_v35 = vld [vmem:[%s4038_s1 + $0x418] sm:$0xff] }
  0x5c   :  { %1816 = vmatpush.bf16.msra.mxu1 %v3139_v36  ;;  %v3213_v36 = vld [vmem:[%s4038_s1 + $0x498] sm:$0xff] }
  0x5d   :  { %1842 = vmatpush.bf16.msra.mxu3 %v3155_v37  ;;  %v3205_v37 = vld [vmem:[%s4038_s1 + $0x458] sm:$0xff] }
  0x5e   :  { %1804 = vmatpush.bf16.msra.mxu0 %v3130_v38  ;;  %v3221_v38 = vld [vmem:[%s4038_s1 + $0x4d8] sm:$0xff] }
  0x5f   :  { %1830 = vmatpush.bf16.msra.mxu2 %v3146_v39  ;;  %v3196_v39 = vld [vmem:[%s4038_s1 + $0x410] sm:$0xff] }
  0x60   :  { %1817 = vmatpush.bf16.msra.mxu1 %v3138_v42  ;;  %v3220_v42 = vld [vmem:[%s4038_s1 + $0x4d0] sm:$0xff] }
  0x61   :  { %1843 = vmatpush.bf16.msra.mxu3 %v3154_v43  ;;  %1805 = vmatmul.bf16.vlgmr.msra.gmra.mxu0 %v447_v45  ;;  %v3195_v43 = vld [vmem:[%s4038_s1 + $0x408] sm:$0xff] }
  0x62   :  { %1849 = vmatpush.bf16.msrb.mxu0 %v3169_v40  ;;  %1831 = vmatmul.bf16.vlgmr.msra.gmra.mxu2 %v449_v46  ;;  %v3212_v40 = vld [vmem:[%s4038_s1 + $0x490] sm:$0xff]  ;;  %v3203_v45 = vld [vmem:[%s4038_s1 + $0x448] sm:$0xff] }
  0x63   :  { %1875 = vmatpush.bf16.msrb.mxu2 %v3185_v41  ;;  %1818 = vmatmul.bf16.vlgmr.msra.gmra.mxu1 %v448_v48  ;;  %v3204_v41 = vld [vmem:[%s4038_s1 + $0x450] sm:$0xff]  ;;  %v3219_v46 = vld [vmem:[%s4038_s1 + $0x4c8] sm:$0xff]  ;;  %v3210_v48 = vld [vmem:[%s4038_s1 + $0x480] sm:$0xff] }
  0x64   :  { %1862 = vmatpush.bf16.msrb.mxu1 %v3177_v44  ;;  %1844 = vmatmul.bf16.vlgmr.msra.gmra.mxu3 %v450_v49  ;;  %v3211_v44 = vld [vmem:[%s4038_s1 + $0x488] sm:$0xff]  ;;  %v3233_v49 = vld [vmem:[%s4038_s1 + $0x538] sm:$0xff] }
  0x65   :  { %1888 = vmatpush.bf16.msrb.mxu3 %v3193_v47  ;;  %v3194_v47 = vld [vmem:[%s4038_s1 + $0x400] sm:$0xff] }
  0x66   :  { %1850 = vmatpush.bf16.msrb.mxu0 %v3168_v50  ;;  %v3249_v50 = vld [vmem:[%s4038_s1 + $0x5b8] sm:$0xff] }
  0x67   :  { %1876 = vmatpush.bf16.msrb.mxu2 %v3184_v51  ;;  %v3202_v51 = vld [vmem:[%s4038_s1 + $0x440] sm:$0xff] }
  0x68   :  { %1863 = vmatpush.bf16.msrb.mxu1 %v3176_v52  ;;  %v3218_v52 = vld [vmem:[%s4038_s1 + $0x4c0] sm:$0xff] }
  0x69   :  { %1889 = vmatpush.bf16.msrb.mxu3 %v3192_v53  ;;  %v3241_v53 = vld [vmem:[%s4038_s1 + $0x578] sm:$0xff] }
  0x6a   :  { %1851 = vmatpush.bf16.msrb.mxu0 %v3167_v54  ;;  %v457_v54 = vld [vmem:[#allocation1] sm:$0xff] }
  0x6b   :  { %1877 = vmatpush.bf16.msrb.mxu2 %v3183_v55  ;;  %v459_v55 = vld [vmem:[#allocation1 + $0x12] sm:$0xff] }
  0x6c   :  { %1864 = vmatpush.bf16.msrb.mxu1 %v3175_v56  ;;  %v3257_v56 = vld [vmem:[%s4038_s1 + $0x5f8] sm:$0xff] }
  0x6d   :  { %1890 = vmatpush.bf16.msrb.mxu3 %v3191_v57  ;;  %v458_v57 = vld [vmem:[#allocation1 + $0x9] sm:$0xff] }
  0x6e   :  { %1852 = vmatpush.bf16.msrb.mxu0 %v3166_v58  ;;  %v460_v58 = vld [vmem:[#allocation1 + $0x1b] sm:$0xff] }
  0x6f   :  { %1878 = vmatpush.bf16.msrb.mxu2 %v3182_v59  ;;  %v3232_v59 = vld [vmem:[%s4038_s1 + $0x530] sm:$0xff] }
  0x70   :  { %1865 = vmatpush.bf16.msrb.mxu1 %v3174_v60  ;;  %v3248_v60 = vld [vmem:[%s4038_s1 + $0x5b0] sm:$0xff] }
  0x71   :  { %1891 = vmatpush.bf16.msrb.mxu3 %v3190_v61  ;;  %v3240_v61 = vld [vmem:[%s4038_s1 + $0x570] sm:$0xff] }
  0x72   :  { %1853 = vmatpush.bf16.msrb.mxu0 %v3165_v62  ;;  %v3256_v62 = vld [vmem:[%s4038_s1 + $0x5f0] sm:$0xff] }
  0x73   :  { %1879 = vmatpush.bf16.msrb.mxu2 %v3181_v63  ;;  %v3231_v63 = vld [vmem:[%s4038_s1 + $0x528] sm:$0xff] }
  0x74   :  { %1866 = vmatpush.bf16.msrb.mxu1 %v3173_v0  ;;  %v3247_v0 = vld [vmem:[%s4038_s1 + $0x5a8] sm:$0xff] }
  0x75   :  { %1892 = vmatpush.bf16.msrb.mxu3 %v3189_v1  ;;  %v3239_v1 = vld [vmem:[%s4038_s1 + $0x568] sm:$0xff] }
  0x76   :  { %1854 = vmatpush.bf16.msrb.mxu0 %v3164_v2  ;;  %v3255_v2 = vld [vmem:[%s4038_s1 + $0x5e8] sm:$0xff] }
  0x77   :  { %1880 = vmatpush.bf16.msrb.mxu2 %v3180_v3  ;;  %v3283_v3 = vld [vmem:[%s4039_s2] ss:$0 sm:$0xff] }
  0x78   :  { %1867 = vmatpush.bf16.msrb.mxu1 %v3172_v4  ;;  %v3230_v4 = vld [vmem:[%s4038_s1 + $0x520] sm:$0xff] }
  0x79   :  { %1893 = vmatpush.bf16.msrb.mxu3 %v3188_v5  ;;  %v3246_v5 = vld [vmem:[%s4038_s1 + $0x5a0] sm:$0xff] }
  0x7a   :  { %1855 = vmatpush.bf16.msrb.mxu0 %v3163_v6 }
  0x7b   :  { %1881 = vmatpush.bf16.msrb.mxu2 %v3179_v7  ;;  %v3238_v7 = vld [vmem:[%s4038_s1 + $0x560] sm:$0xff] }
  0x7c   :  { %1868 = vmatpush.bf16.msrb.mxu1 %v3171_v13 }
  0x7d   :  { %1894 = vmatpush.bf16.msrb.mxu3 %v3187_v14  ;;  %v3237_v14 = vld [vmem:[%s4038_s1 + $0x558] sm:$0xff] }
  0x7e   :  { %1856 = vmatpush.bf16.msrb.mxu0 %v3162_v15  ;;  %v3253_v15 = vld [vmem:[%s4038_s1 + $0x5d8] sm:$0xff] }
  0x7f   :  { %1882 = vmatpush.bf16.msrb.mxu2 %v3178_v16 }
  0x80   :  { %1869 = vmatpush.bf16.msrb.mxu1 %v3170_v19 }
  0x81   :  { %1895 = vmatpush.bf16.msrb.mxu3 %v3186_v20  ;;  %1857 = vmatmul.bf16.vlgmr.msrb.gmra.mxu0 %v451_v8  ;;  %v3254_v8 = vld [vmem:[%s4038_s1 + $0x5e0] sm:$0xff] }
  0x82   :  { %1901 = vmatpush.bf16.msra.mxu0 %v3201_v17  ;;  %1883 = vmatmul.bf16.vlgmr.msrb.gmra.mxu2 %v453_v9  ;;  %v3228_v17 = vld [vmem:[%s4038_s1 + $0x510] sm:$0xff] }
  0x83   :  { %1927 = vmatpush.bf16.msra.mxu2 %v3217_v18  ;;  %1870 = vmatmul.bf16.vlgmr.msrb.gmra.mxu1 %v452_v10  ;;  %v3244_v18 = vld [vmem:[%s4038_s1 + $0x590] sm:$0xff] }
  0x84   :  { %1914 = vmatpush.bf16.msra.mxu1 %v3209_v21  ;;  %1896 = vmatmul.bf16.vlgmr.msrb.gmra.mxu3 %v454_v11  ;;  %v3229_v11 = vld [vmem:[%s4038_s1 + $0x518] sm:$0xff] }
  0x85   :  { %1940 = vmatpush.bf16.msra.mxu3 %v3225_v22  ;;  %v3236_v22 = vld [vmem:[%s4038_s1 + $0x550] sm:$0xff] }
  0x86   :  { %1902 = vmatpush.bf16.msra.mxu0 %v3200_v23  ;;  %v3252_v23 = vld [vmem:[%s4038_s1 + $0x5d0] sm:$0xff] }
  0x87   :  { %1928 = vmatpush.bf16.msra.mxu2 %v3216_v24  ;;  %v3227_v24 = vld [vmem:[%s4038_s1 + $0x508] sm:$0xff] }
  0x88   :  { %1915 = vmatpush.bf16.msra.mxu1 %v3208_v25 }
  0x89   :  { %1941 = vmatpush.bf16.msra.mxu3 %v3224_v26  ;;  %v3243_v26 = vld [vmem:[%s4038_s1 + $0x588] sm:$0xff] }
  0x8a   :  { %1903 = vmatpush.bf16.msra.mxu0 %v3199_v27  ;;  %v461_v27 = vld [vmem:[#allocation1 + $0x24] sm:$0xff] }
  0x8b   :  { %1929 = vmatpush.bf16.msra.mxu2 %v3215_v28  ;;  %v463_v28 = vld [vmem:[#allocation1 + $0x36] sm:$0xff] }
  0x8c   :  { %1916 = vmatpush.bf16.msra.mxu1 %v3207_v29 }
  0x8d   :  { %1942 = vmatpush.bf16.msra.mxu3 %v3223_v30  ;;  %v462_v30 = vld [vmem:[#allocation1 + $0x2d] sm:$0xff] }
  0x8e   :  { %1904 = vmatpush.bf16.msra.mxu0 %v3198_v31  ;;  %v464_v31 = vld [vmem:[#allocation1 + $0x3f] sm:$0xff] }
  0x8f   :  { %1930 = vmatpush.bf16.msra.mxu2 %v3214_v32  ;;  %v30_v32 = vld [vmem:[%s4037_s0 + $0x18] sm:$0x1] }
  0x90   :  { %1917 = vmatpush.bf16.msra.mxu1 %v3206_v33  ;;  %466 = vst [vmem:[#allocation1] ss:$9 sm:$0xff] %v30_v32  ;;  %v3235_v33 = vld [vmem:[%s4038_s1 + $0x548] sm:$0xff] }
  0x91   :  { %1943 = vmatpush.bf16.msra.mxu3 %v3222_v34  ;;  %v3251_v34 = vld [vmem:[%s4038_s1 + $0x5c8] sm:$0xff] }
  0x92   :  { %1905 = vmatpush.bf16.msra.mxu0 %v3197_v35 }
  0x93   :  { %1931 = vmatpush.bf16.msra.mxu2 %v3213_v36  ;;  %v3226_v36 = vld [vmem:[%s4038_s1 + $0x500] sm:$0xff] }
  0x94   :  { %1918 = vmatpush.bf16.msra.mxu1 %v3205_v37  ;;  %v3242_v37 = vld [vmem:[%s4038_s1 + $0x580] sm:$0xff] }
  0x95   :  { %1944 = vmatpush.bf16.msra.mxu3 %v3221_v38  ;;  %v3265_v38 = vld [vmem:[%s4038_s1 + $0x638] sm:$0xff] }
  0x96   :  { %1906 = vmatpush.bf16.msra.mxu0 %v3196_v39 }
  0x97   :  { %1932 = vmatpush.bf16.msra.mxu2 %v3212_v40  ;;  %v3234_v40 = vld [vmem:[%s4038_s1 + $0x540] sm:$0xff] }
  0x98   :  { %1919 = vmatpush.bf16.msra.mxu1 %v3204_v41  ;;  %v3250_v41 = vld [vmem:[%s4038_s1 + $0x5c0] sm:$0xff] }
  0x99   :  { %1945 = vmatpush.bf16.msra.mxu3 %v3220_v42  ;;  %v3264_v42 = vld [vmem:[%s4038_s1 + $0x630] sm:$0xff] }
  0x9a   :  { %1907 = vmatpush.bf16.msra.mxu0 %v3195_v43  ;;  %v3263_v43 = vld [vmem:[%s4038_s1 + $0x628] sm:$0xff] }
  0x9b   :  { %1933 = vmatpush.bf16.msra.mxu2 %v3211_v44  ;;  %v3262_v44 = vld [vmem:[%s4038_s1 + $0x620] sm:$0xff] }
  0x9c   :  { %1920 = vmatpush.bf16.msra.mxu1 %v3203_v45 }
  0x9d   :  { %1946 = vmatpush.bf16.msra.mxu3 %v3219_v46 }
  0x9e   :  { %1908 = vmatpush.bf16.msra.mxu0 %v3194_v47  ;;  %v1702_v6 = vpop.f32.mrf.mxu0 }
  0x9f   :  { %1934 = vmatpush.bf16.msra.mxu2 %v3210_v48  ;;  %v1703_v9 = vadd.f32 %v3283_v3, %v1702_v6 }
  0xa0   :  { %1921 = vmatpush.bf16.msra.mxu1 %v3202_v51  ;;  %v1715_v10 = vpop.f32.mrf.mxu1 }
  0xa1   :  { %1947 = vmatpush.bf16.msra.mxu3 %v3218_v52  ;;  %1909 = vmatmul.bf16.vlgmr.msra.gmra.mxu0 %v457_v54  ;;  %v1716_v13 = vadd.f32 %v1715_v10, %v1703_v9  ;;  %v3260_v52 = vld [vmem:[%s4038_s1 + $0x610] sm:$0xff] }
  0xa2   :  { %1953 = vmatpush.bf16.msrb.mxu0 %v3233_v49  ;;  %1935 = vmatmul.bf16.vlgmr.msra.gmra.mxu2 %v459_v55  ;;  %v3261_v49 = vld [vmem:[%s4038_s1 + $0x618] sm:$0xff] }
  0xa3   :  { %1979 = vmatpush.bf16.msrb.mxu2 %v3249_v50  ;;  %1922 = vmatmul.bf16.vlgmr.msra.gmra.mxu1 %v458_v57  ;;  %v3259_v57 = vld [vmem:[%s4038_s1 + $0x608] sm:$0xff] }
  0xa4   :  { %1966 = vmatpush.bf16.msrb.mxu1 %v3241_v53  ;;  %1948 = vmatmul.bf16.vlgmr.msra.gmra.mxu3 %v460_v58 }
  0xa5   :  { %1992 = vmatpush.bf16.msrb.mxu3 %v3257_v56  ;;  %v1728_v16 = vpop.f32.mrf.mxu2 }
  0xa6   :  { %1954 = vmatpush.bf16.msrb.mxu0 %v3232_v59  ;;  %v1729_v19 = vadd.f32 %v1728_v16, %v1716_v13  ;;  %v1704_v21 = vpop.f32.mrf.mxu0  ;;  %v3258_v59 = vld [vmem:[%s4038_s1 + $0x600] sm:$0xff] }
  0xa7   :  { %1980 = vmatpush.bf16.msrb.mxu2 %v3248_v60  ;;  %v1741_v20 = vpop.f32.mrf.mxu3 }
  0xa8   :  { %1967 = vmatpush.bf16.msrb.mxu1 %v3240_v61  ;;  %v1742_v25 = vadd.f32 %v1741_v20, %v1729_v19  ;;  %v1717_v29 = vpop.f32.mrf.mxu1  ;;  %v467_v61 = vld [vmem:[#allocation1] sm:$0xff] }
  0xa9   :  { %1993 = vmatpush.bf16.msrb.mxu3 %v3256_v62  ;;  %v3271_v29 = vld [vmem:[%s4040_s3 + $0x28] sm:$0xff] }
  0xaa   :  { %1955 = vmatpush.bf16.msrb.mxu0 %v3231_v63 }
  0xab   :  { %1981 = vmatpush.bf16.msrb.mxu2 %v3247_v0 }
  0xac   :  { %1968 = vmatpush.bf16.msrb.mxu1 %v3239_v1 }
  0xad   :  { %1994 = vmatpush.bf16.msrb.mxu3 %v3255_v2  ;;  %v1730_v35 = vpop.f32.mrf.mxu2 }
  0xae   :  { %1956 = vmatpush.bf16.msrb.mxu0 %v3230_v4  ;;  %v3268_v35 = vld [vmem:[%s4040_s3 + $0x10] sm:$0xff] }
  0xaf   :  { %1982 = vmatpush.bf16.msrb.mxu2 %v3246_v5  ;;  %v1743_v39 = vpop.f32.mrf.mxu3 }
  0xb0   :  { %1969 = vmatpush.bf16.msrb.mxu1 %v3238_v7 }
  0xb1   :  { %1995 = vmatpush.bf16.msrb.mxu3 %v3254_v8 }
  0xb2   :  { %1957 = vmatpush.bf16.msrb.mxu0 %v3229_v11 }
  0xb3   :  { %1983 = vmatpush.bf16.msrb.mxu2 %v3245_v12 }
  0xb4   :  { %1970 = vmatpush.bf16.msrb.mxu1 %v3237_v14 }
  0xb5   :  { %1996 = vmatpush.bf16.msrb.mxu3 %v3253_v15 }
  0xb6   :  { %1958 = vmatpush.bf16.msrb.mxu0 %v3228_v17 }
  0xb7   :  { %1984 = vmatpush.bf16.msrb.mxu2 %v3244_v18 }
  0xb8   :  { %1971 = vmatpush.bf16.msrb.mxu1 %v3236_v22 }
  0xb9   :  { %1997 = vmatpush.bf16.msrb.mxu3 %v3252_v23  ;;  %v3273_v23 = vld [vmem:[%s4040_s3 + $0x38] sm:$0xff] }
  0xba   :  { %1959 = vmatpush.bf16.msrb.mxu0 %v3227_v24 }
  0xbb   :  { %1985 = vmatpush.bf16.msrb.mxu2 %v3243_v26  ;;  %v3272_v26 = vld [vmem:[%s4040_s3 + $0x30] sm:$0xff] }
  0xbc   :  { %1972 = vmatpush.bf16.msrb.mxu1 %v3235_v33 }
  0xbd   :  { %1998 = vmatpush.bf16.msrb.mxu3 %v3251_v34  ;;  %v3269_v34 = vld [vmem:[%s4040_s3 + $0x18] sm:$0xff] }
  0xbe   :  { %1960 = vmatpush.bf16.msrb.mxu0 %v3226_v36  ;;  %v1754_v45 = vpop.f32.mrf.mxu0  ;;  %v3267_v36 = vld [vmem:[%s4040_s3 + $0x8] sm:$0xff] }
  0xbf   :  { %1986 = vmatpush.bf16.msrb.mxu2 %v3242_v37  ;;  %v1755_v46 = vadd.f32 %v1754_v45, %v1742_v25  ;;  %v3280_v45 = vld [vmem:[%s4042_s5 + $0x30] sm:$0xff] }
  0xc0   :  { %1973 = vmatpush.bf16.msrb.mxu1 %v3234_v40  ;;  %v1767_v47 = vpop.f32.mrf.mxu1 }
  0xc1   :  { %1999 = vmatpush.bf16.msrb.mxu3 %v3250_v41  ;;  %1961 = vmatmul.bf16.vlgmr.msrb.gmra.mxu0 %v461_v27  ;;  %v1768_v48 = vadd.f32 %v1767_v47, %v1755_v46  ;;  %v3281_v41 = vld [vmem:[%s4042_s5 + $0x38] sm:$0xff] }
  0xc2   :  { %2005 = vmatpush.bf16.msra.mxu0 %v3265_v38  ;;  %1987 = vmatmul.bf16.vlgmr.msrb.gmra.mxu2 %v463_v28  ;;  %v3266_v38 = vld [vmem:[%s4040_s3] sm:$0xff] }
  0xc3   :  { %1974 = vmatmul.bf16.vlgmr.msrb.gmra.mxu1 %v462_v30  ;;  %2171 = vmatpush.bf16.msra.mxu2 %v3281_v41 }
  0xc4   :  { %2000 = vmatmul.bf16.vlgmr.msrb.gmra.mxu3 %v464_v31  ;;  %2088 = vmatpush.bf16.msra.mxu1 %v3273_v23  ;;  %v3270_v31 = vld [vmem:[%s4040_s3 + $0x20] sm:$0xff] }
  0xc5   :  { %v1780_v50 = vpop.f32.mrf.mxu2 }
  0xc6   :  { %2006 = vmatpush.bf16.msra.mxu0 %v3264_v42  ;;  %v1781_v51 = vadd.f32 %v1780_v50, %v1768_v48  ;;  %v1756_v54 = vpop.f32.mrf.mxu0  ;;  %v3279_v48 = vld [vmem:[%s4042_s5 + $0x28] sm:$0xff] }
  0xc7   :  { %v1793_v53 = vpop.f32.mrf.mxu3  ;;  %2172 = vmatpush.bf16.msra.mxu2 %v3280_v45 }
  0xc8   :  { %v1794_v55 = vadd.f32 %v1793_v53, %v1781_v51  ;;  %v1769_v56 = vpop.f32.mrf.mxu1  ;;  %2089 = vmatpush.bf16.msra.mxu1 %v3272_v26 }
  0xca   :  { %2007 = vmatpush.bf16.msra.mxu0 %v3263_v43 }
  0xcb   :  { %2173 = vmatpush.bf16.msra.mxu2 %v3279_v48 }
  0xcc   :  { %2090 = vmatpush.bf16.msra.mxu1 %v3271_v29 }
  0xcd   :  { %v1782_v58 = vpop.f32.mrf.mxu2 }
  0xce   :  { %2008 = vmatpush.bf16.msra.mxu0 %v3262_v44 }
  0xcf   :  { %v1795_v60 = vpop.f32.mrf.mxu3 }
  0xd0   :  { %2091 = vmatpush.bf16.msra.mxu1 %v3270_v31 }
  0xd2   :  { %2009 = vmatpush.bf16.msra.mxu0 %v3261_v49 }
  0xd4   :  { %2092 = vmatpush.bf16.msra.mxu1 %v3269_v34 }
  0xd6   :  { %2010 = vmatpush.bf16.msra.mxu0 %v3260_v52  ;;  %v3278_v52 = vld [vmem:[%s4042_s5 + $0x20] sm:$0xff] }
  0xd7   :  { %2174 = vmatpush.bf16.msra.mxu2 %v3278_v52 }
  0xd8   :  { %2093 = vmatpush.bf16.msra.mxu1 %v3268_v35 }
  0xda   :  { %2011 = vmatpush.bf16.msra.mxu0 %v3259_v57  ;;  %v3276_v57 = vld [vmem:[%s4042_s5 + $0x10] sm:$0xff] }
  0xdc   :  { %2094 = vmatpush.bf16.msra.mxu1 %v3267_v36 }
  0xde   :  { %2012 = vmatpush.bf16.msra.mxu0 %v3258_v59  ;;  %v1806_v62 = vpop.f32.mrf.mxu0 }
  0xdf   :  { %v1807_v63 = vadd.f32 %v1806_v62, %v1794_v55  ;;  %v3277_v55 = vld [vmem:[%s4042_s5 + $0x18] sm:$0xff] }
  0xe0   :  { %v1819_v0 = vpop.f32.mrf.mxu1  ;;  %2095 = vmatpush.bf16.msra.mxu1 %v3266_v38  ;;  %2175 = vmatpush.bf16.msra.mxu2 %v3277_v55 }
  0xe1   :  { %2013 = vmatmul.bf16.vlgmr.msra.gmra.mxu0 %v467_v61  ;;  %v1820_v1 = vadd.f32 %v1819_v0, %v1807_v63 }
  0xe4   :  { %2176 = vmatpush.bf16.msra.mxu2 %v3276_v57 }
  0xe5   :  { %v1832_v2 = vpop.f32.mrf.mxu2 }
  0xe6   :  { %v1833_v3 = vadd.f32 %v1832_v2, %v1820_v1  ;;  %v1808_v5 = vpop.f32.mrf.mxu0  ;;  %v3275_v1 = vld [vmem:[%s4042_s5 + $0x8] sm:$0xff]  ;;  %v3274_v2 = vld [vmem:[%s4042_s5] sm:$0xff]  ;;  %s2193_s5 = sshll.u32 %s4044_s7, 4  ;;  %s2194_s5 = int_to_ptr.hbm [resolvable:$true] %s2193_s5 }
  0xe7   :  { %v1845_v4 = vpop.f32.mrf.mxu3 }
  0xe8   :  { %v1846_v6 = vadd.f32 %v1845_v4, %v1833_v3  ;;  %v1821_v7 = vpop.f32.mrf.mxu1  ;;  %2177 = vmatpush.bf16.msra.mxu2 %v3275_v1  ;;  %v3284_v3 = vld [vmem:[%s4041_s4] ss:$0 sm:$0xff] }
  0xec   :  { %2178 = vmatpush.bf16.msra.mxu2 %v3274_v2 }
  0xed   :  { %v1834_v8 = vpop.f32.mrf.mxu2 }
  0xef   :  { %v1847_v9 = vpop.f32.mrf.mxu3 }
  0xf0   :  { %v3285_v9 = vld [vmem:[%s4043_s6] ss:$0 sm:$0xff] }
  0xfe   :  { %v1858_v10 = vpop.f32.mrf.mxu0 }
  0xff   :  { %v1859_v11 = vadd.f32 %v1858_v10, %v1846_v6 }
 0x100   :  { %v1871_v12 = vpop.f32.mrf.mxu1 }
 0x101   :  { %v1872_v13 = vadd.f32 %v1871_v12, %v1859_v11 }
 0x105   :  { %v1884_v14 = vpop.f32.mrf.mxu2 }
 0x106   :  { %v1885_v15 = vadd.f32 %v1884_v14, %v1872_v13  ;;  %v1860_v17 = vpop.f32.mrf.mxu0 }
 0x107   :  { %v1897_v16 = vpop.f32.mrf.mxu3 }
 0x108   :  { %v1898_v18 = vadd.f32 %v1897_v16, %v1885_v15  ;;  %v1873_v19 = vpop.f32.mrf.mxu1 }
 0x10d   :  { %v1886_v20 = vpop.f32.mrf.mxu2 }
 0x10f   :  { %v1899_v21 = vpop.f32.mrf.mxu3 }
 0x11e   :  { %v1910_v22 = vpop.f32.mrf.mxu0 }
 0x11f   :  { %v1911_v42 = vadd.f32 %v1910_v22, %v1898_v18 }
 0x120   :  { %v1923_v24 = vpop.f32.mrf.mxu1 }
 0x121   :  { %v1924_v47 = vadd.f32 %v1923_v24, %v1911_v42 }
 0x125   :  { %v1936_v25 = vpop.f32.mrf.mxu2 }
 0x126   :  { %v1912_v28 = vpop.f32.mrf.mxu0  ;;  %v1937_v49 = vadd.f32 %v1936_v25, %v1924_v47 }
 0x127   :  { %v1949_v27 = vpop.f32.mrf.mxu3 }
 0x128   :  { %v1925_v30 = vpop.f32.mrf.mxu1  ;;  %v1950_v53 = vadd.f32 %v1949_v27, %v1937_v49 }
 0x12d   :  { %v1938_v32 = vpop.f32.mrf.mxu2 }
 0x12f   :  { %v1951_v33 = vpop.f32.mrf.mxu3 }
 0x13e   :  { %v1962_v37 = vpop.f32.mrf.mxu0 }
 0x13f   :  { %v1963_v54 = vadd.f32 %v1962_v37, %v1950_v53 }
 0x140   :  { %v1975_v39 = vpop.f32.mrf.mxu1 }
 0x141   :  { %v1976_v56 = vadd.f32 %v1975_v39, %v1963_v54 }
 0x145   :  { %v1988_v40 = vpop.f32.mrf.mxu2 }
 0x146   :  { %v1964_v44 = vpop.f32.mrf.mxu0  ;;  %v1989_v58 = vadd.f32 %v1988_v40, %v1976_v56 }
 0x147   :  { %v2001_v43 = vpop.f32.mrf.mxu3 }
 0x148   :  { %v1977_v46 = vpop.f32.mrf.mxu1  ;;  %v2002_v59 = vadd.f32 %v2001_v43, %v1989_v58 }
 0x14d   :  { %v1990_v50 = vpop.f32.mrf.mxu2 }
 0x14f   :  { %v2003_v51 = vpop.f32.mrf.mxu3 }
 0x15e   :  { %v2014_v60 = vpop.f32.mrf.mxu0 }
 0x15f   :  { %v2015_v61 = vadd.f32 %v2014_v60, %v2002_v59 }
 0x161   :  { %v2018_v62 = vmax.f32 %v2015_v61, 0.0 }
 0x163   :  { %v2019_v63 = vpack.c.bf16 %v2018_v62, %v2018_v62 }
 0x165   :  { %2096 = vmatmul.bf16.vlgmr.msra.gmra.mxu1 %v2019_v63 }
 0x166   :  { %v2016_v0 = vpop.f32.mrf.mxu0 }
 0x1e2   :  { %v2097_v4 = vpop.f32.mrf.mxu1 }
 0x1e3   :  { %v2098_v5 = vadd.f32 %v3284_v3, %v2097_v4 }
 0x1e5   :  { %v2101_v6 = vmax.f32 %v2098_v5, 0.0 }
 0x1e7   :  { %v2102_v7 = vpack.c.bf16 %v2101_v6, %v2101_v6 }
 0x1e9   :  { %2179 = vmatmul.bf16.vlgmr.msra.gmra.mxu2 %v2102_v7 }
 0x1ea   :  { %v2099_v8 = vpop.f32.mrf.mxu1 }
 0x26c   :  { %v2180_v10 = vpop.f32.mrf.mxu2 }
 0x26d   :  { %v2181_v11 = vadd.f32 %v3285_v9, %v2180_v10 }
 0x26f   :  { %2185 = vst.msk [vmem:[#allocation2] sm:$0x3] %vm2184_vm0, %v2181_v11 }
 0x270   :  { %2196 = dma.vmem_to_hbm [thread:$0]  %s2192_s24, 32, %s2194_s5, [#allocation3]  }
 0x274   :  { %v2182_v12 = vpop.f32.mrf.mxu2 }
 0x275   :  { %3310 = dma.done.wait [#allocation3], 32  }
 0x276   :  { %3311 = vsyncadd [#allocation3], 4294967264 }
 0x277   :  { %2201 = vsyncpa [#allocation3], 1 }

// kernel: simple_cnn_forward.4
= control target key start
LH: loop header
LB: loop body
LE: loop exit
PB: predicated region body
PF: predicated region fallthrough
CT: control target
= control target key end

     0   :  { %s15161_s1 = inlined_call_operand.vmem [shape: bf16[3200,128], index: 1, kind: input, shape index: {}]   ;;  %s15162_s2 = inlined_call_operand.vmem [shape: f32[1,128], index: 2, kind: input, shape index: {}]   ;;  %s15163_s0 = inlined_call_operand.vmem [shape: bf16[4,50,3200], index: 0, kind: input, shape index: {}]   ;;  %s15164_s3 = inlined_call_operand.vmem [shape: bf16[50,128], index: 3, kind: output, shape index: {}]  }
   0x1   :  { %v8996_v0 = vld [vmem:[%s15161_s1 + $0x38] sm:$0xff]  ;;  %v8995_v4 = vld [vmem:[%s15161_s1 + $0x30] sm:$0xff]  ;;  %v8994_v8 = vld [vmem:[%s15161_s1 + $0x28] sm:$0xff] }
   0x2   :  { %v9004_v1 = vld [vmem:[%s15161_s1 + $0x78] sm:$0xff]  ;;  %2175 = vmatpush.bf16.msra.mxu0 %v8996_v0  ;;  %v9003_v5 = vld [vmem:[%s15161_s1 + $0x70] sm:$0xff]  ;;  %v9002_v9 = vld [vmem:[%s15161_s1 + $0x68] sm:$0xff] }
   0x3   :  { %v9012_v2 = vld [vmem:[%s15161_s1 + $0xb8] sm:$0xff]  ;;  %2203 = vmatpush.bf16.msra.mxu1 %v9004_v1  ;;  %v9011_v6 = vld [vmem:[%s15161_s1 + $0xb0] sm:$0xff]  ;;  %v9010_v10 = vld [vmem:[%s15161_s1 + $0xa8] sm:$0xff] }
   0x4   :  { %v9020_v3 = vld [vmem:[%s15161_s1 + $0xf8] sm:$0xff]  ;;  %2231 = vmatpush.bf16.msra.mxu2 %v9012_v2  ;;  %v9019_v7 = vld [vmem:[%s15161_s1 + $0xf0] sm:$0xff]  ;;  %v9018_v11 = vld [vmem:[%s15161_s1 + $0xe8] sm:$0xff] }
   0x5   :  { %2259 = vmatpush.bf16.msra.mxu3 %v9020_v3  ;;  %v8993_v12 = vld [vmem:[%s15161_s1 + $0x20] sm:$0xff]  ;;  %v8992_v16 = vld [vmem:[%s15161_s1 + $0x18] sm:$0xff]  ;;  %v8991_v20 = vld [vmem:[%s15161_s1 + $0x10] sm:$0xff] }
   0x6   :  { %2176 = vmatpush.bf16.msra.mxu0 %v8995_v4  ;;  %v9001_v13 = vld [vmem:[%s15161_s1 + $0x60] sm:$0xff]  ;;  %v9000_v17 = vld [vmem:[%s15161_s1 + $0x58] sm:$0xff]  ;;  %v8999_v21 = vld [vmem:[%s15161_s1 + $0x50] sm:$0xff] }
   0x7   :  { %2204 = vmatpush.bf16.msra.mxu1 %v9003_v5  ;;  %v9009_v14 = vld [vmem:[%s15161_s1 + $0xa0] sm:$0xff]  ;;  %v9008_v18 = vld [vmem:[%s15161_s1 + $0x98] sm:$0xff]  ;;  %v9007_v22 = vld [vmem:[%s15161_s1 + $0x90] sm:$0xff] }
   0x8   :  { %2232 = vmatpush.bf16.msra.mxu2 %v9011_v6  ;;  %v9017_v15 = vld [vmem:[%s15161_s1 + $0xe0] sm:$0xff]  ;;  %v9016_v19 = vld [vmem:[%s15161_s1 + $0xd8] sm:$0xff]  ;;  %v9015_v23 = vld [vmem:[%s15161_s1 + $0xd0] sm:$0xff] }
   0x9   :  { %2260 = vmatpush.bf16.msra.mxu3 %v9019_v7  ;;  %v8990_v24 = vld [vmem:[%s15161_s1 + $0x8] sm:$0xff]  ;;  %v8989_v28 = vld [vmem:[%s15161_s1] sm:$0xff]  ;;  %v6728_v39 = vld [vmem:[%s15163_s0 + $0x6c] sm:$0xf0] }
   0xa   :  { %2177 = vmatpush.bf16.msra.mxu0 %v8994_v8  ;;  %v8998_v25 = vld [vmem:[%s15161_s1 + $0x48] sm:$0xff]  ;;  %v8997_v29 = vld [vmem:[%s15161_s1 + $0x40] sm:$0xff]  ;;  %v9044_v40 = vld [vmem:[%s15161_s1 + $0x1b8] sm:$0xff] }
   0xb   :  { %2205 = vmatpush.bf16.msra.mxu1 %v9002_v9  ;;  %v9006_v26 = vld [vmem:[%s15161_s1 + $0x88] sm:$0xff]  ;;  %v9005_v30 = vld [vmem:[%s15161_s1 + $0x80] sm:$0xff]  ;;  %v9028_v41 = vld [vmem:[%s15161_s1 + $0x138] sm:$0xff] }
   0xc   :  { %2233 = vmatpush.bf16.msra.mxu2 %v9010_v10  ;;  %v9014_v27 = vld [vmem:[%s15161_s1 + $0xc8] sm:$0xff]  ;;  %v9013_v31 = vld [vmem:[%s15161_s1 + $0xc0] sm:$0xff]  ;;  %v9052_v46 = vld [vmem:[%s15161_s1 + $0x1f8] sm:$0xff] }
   0xd   :  { %2261 = vmatpush.bf16.msra.mxu3 %v9018_v11  ;;  %v6718_v32 = vld [vmem:[%s15163_s0] sm:$0xf]  ;;  %v9201_v33 = vld [vmem:[%s15163_s0 + $0x60] sm:$0xf0]  ;;  %v6720_v35 = vld [vmem:[%s15163_s0 + $0x64] sm:$0xf0] }
   0xe   :  { %2178 = vmatpush.bf16.msra.mxu0 %v8993_v12  ;;  %v9189_v34 = vld [vmem:[%s15163_s0 + $0x4] sm:$0xf]  ;;  %v6726_v36 = vld [vmem:[%s15163_s0 + $0x8] sm:$0xf]  ;;  %v9202_v37 = vld [vmem:[%s15163_s0 + $0x68] sm:$0xf0]  ;;  %v6719_v42 = vor.u32 %v9201_v33, %v6718_v32 }
   0xf   :  { %2206 = vmatpush.bf16.msra.mxu1 %v9001_v13  ;;  %v9190_v38 = vld [vmem:[%s15163_s0 + $0xc] sm:$0xf]  ;;  %v6723_v43 = vor.u32 %v9189_v34, %v6720_v35  ;;  %v6727_v44 = vor.u32 %v9202_v37, %v6726_v36  ;;  %v9036_v47 = vld [vmem:[%s15161_s1 + $0x178] sm:$0xff]  ;;  %v9043_v48 = vld [vmem:[%s15161_s1 + $0x1b0] sm:$0xff] }
  0x10   :  { %2234 = vmatpush.bf16.msra.mxu2 %v9009_v14  ;;  %v6731_v45 = vor.u32 %v9190_v38, %v6728_v39  ;;  %v9027_v49 = vld [vmem:[%s15161_s1 + $0x130] sm:$0xff]  ;;  %v9042_v52 = vld [vmem:[%s15161_s1 + $0x1a8] sm:$0xff]  ;;  %v9041_v57 = vld [vmem:[%s15161_s1 + $0x1a0] sm:$0xff] }
  0x11   :  { %2262 = vmatpush.bf16.msra.mxu3 %v9017_v15  ;;  %v9051_v50 = vld [vmem:[%s15161_s1 + $0x1f0] sm:$0xff]  ;;  %v9026_v53 = vld [vmem:[%s15161_s1 + $0x128] sm:$0xff]  ;;  %v9025_v58 = vld [vmem:[%s15161_s1 + $0x120] sm:$0xff] }
  0x12   :  { %2179 = vmatpush.bf16.msra.mxu0 %v8992_v16  ;;  %v9035_v51 = vld [vmem:[%s15161_s1 + $0x170] sm:$0xff]  ;;  %v9050_v54 = vld [vmem:[%s15161_s1 + $0x1e8] sm:$0xff]  ;;  %v6828_v1 = vld [vmem:[%s15163_s0 + $0x134] sm:$0xf0] }
  0x13   :  { %2207 = vmatpush.bf16.msra.mxu1 %v9000_v17  ;;  %v9034_v55 = vld [vmem:[%s15161_s1 + $0x168] sm:$0xff]  ;;  %v6820_v61 = vld [vmem:[%s15163_s0 + $0x12c] sm:$0xf0]  ;;  %v9227_v63 = vld [vmem:[%s15163_s0 + $0x130] sm:$0xf0] }
  0x14   :  { %2235 = vmatpush.bf16.msra.mxu2 %v9008_v18  ;;  %v6818_v56 = vld [vmem:[%s15163_s0 + $0xc8] sm:$0xf]  ;;  %v9226_v59 = vld [vmem:[%s15163_s0 + $0x128] sm:$0xf0]  ;;  %v6826_v62 = vld [vmem:[%s15163_s0 + $0xd0] sm:$0xf] }
  0x15   :  { %2263 = vmatpush.bf16.msra.mxu3 %v9016_v19  ;;  %v9214_v60 = vld [vmem:[%s15163_s0 + $0xcc] sm:$0xf]  ;;  %v9215_v0 = vld [vmem:[%s15163_s0 + $0xd4] sm:$0xf]  ;;  %v9049_v2 = vld [vmem:[%s15161_s1 + $0x1e0] sm:$0xff]  ;;  %v6819_v6 = vor.u32 %v9226_v59, %v6818_v56  ;;  %v6827_v8 = vor.u32 %v9227_v63, %v6826_v62 }
  0x16   :  { %2180 = vmatpush.bf16.msra.mxu0 %v8991_v20  ;;  %v9033_v3 = vld [vmem:[%s15161_s1 + $0x160] sm:$0xff]  ;;  %v9040_v4 = vld [vmem:[%s15161_s1 + $0x198] sm:$0xff]  ;;  %v6823_v7 = vor.u32 %v9214_v60, %v6820_v61  ;;  %v6831_v9 = vor.u32 %v9215_v0, %v6828_v1  ;;  %v9039_v12 = vld [vmem:[%s15161_s1 + $0x190] sm:$0xff] }
  0x17   :  { %2208 = vmatpush.bf16.msra.mxu1 %v8999_v21  ;;  %v9024_v5 = vld [vmem:[%s15161_s1 + $0x118] sm:$0xff]  ;;  %v9023_v13 = vld [vmem:[%s15161_s1 + $0x110] sm:$0xff]  ;;  %v9038_v16 = vld [vmem:[%s15161_s1 + $0x188] sm:$0xff] }
  0x18   :  { %2236 = vmatpush.bf16.msra.mxu2 %v9007_v22  ;;  %v9048_v10 = vld [vmem:[%s15161_s1 + $0x1d8] sm:$0xff]  ;;  %v9047_v14 = vld [vmem:[%s15161_s1 + $0x1d0] sm:$0xff]  ;;  %v9022_v17 = vld [vmem:[%s15161_s1 + $0x108] sm:$0xff] }
  0x19   :  { %2264 = vmatpush.bf16.msra.mxu3 %v9015_v23  ;;  %v9032_v11 = vld [vmem:[%s15161_s1 + $0x158] sm:$0xff]  ;;  %v9031_v15 = vld [vmem:[%s15161_s1 + $0x150] sm:$0xff]  ;;  %v9046_v18 = vld [vmem:[%s15161_s1 + $0x1c8] sm:$0xff] }
  0x1a   :  { %2181 = vmatpush.bf16.msra.mxu0 %v8990_v24  ;;  %v9030_v19 = vld [vmem:[%s15161_s1 + $0x148] sm:$0xff]  ;;  %v6918_v20 = vld [vmem:[%s15163_s0 + $0x190] sm:$0xf]  ;;  %v9037_v21 = vld [vmem:[%s15161_s1 + $0x180] sm:$0xff] }
  0x1b   :  { %2209 = vmatpush.bf16.msra.mxu1 %v8998_v25  ;;  %v9021_v22 = vld [vmem:[%s15161_s1 + $0x100] sm:$0xff]  ;;  %v9251_v23 = vld [vmem:[%s15163_s0 + $0x1f0] sm:$0xf0]  ;;  %v6920_v25 = vld [vmem:[%s15163_s0 + $0x1f4] sm:$0xf0] }
  0x1c   :  { %2237 = vmatpush.bf16.msra.mxu2 %v9006_v26  ;;  %v9239_v24 = vld [vmem:[%s15163_s0 + $0x194] sm:$0xf]  ;;  %v6926_v26 = vld [vmem:[%s15163_s0 + $0x198] sm:$0xf]  ;;  %v6919_v32 = vor.u32 %v9251_v23, %v6918_v20  ;;  %v9082_v56 = vld [vmem:[%s15161_s1 + $0x2e8] sm:$0xff] }
  0x1d   :  { %2265 = vmatpush.bf16.msra.mxu3 %v9014_v27  ;;  %v9252_v27 = vld [vmem:[%s15163_s0 + $0x1f8] sm:$0xf0]  ;;  %v6923_v33 = vor.u32 %v9239_v24, %v6920_v25  ;;  %v9057_v59 = vld [vmem:[%s15161_s1 + $0x220] sm:$0xff]  ;;  %v6734_v62 = vld [vmem:[%s15163_s0 + $0x10] sm:$0xf] }
  0x1e   :  { %2182 = vmatpush.bf16.msra.mxu0 %v8989_v28  ;;  %v9240_v28 = vld [vmem:[%s15163_s0 + $0x19c] sm:$0xf]  ;;  %v6927_v34 = vor.u32 %v9252_v27, %v6926_v26  ;;  %v9081_v60 = vld [vmem:[%s15161_s1 + $0x2e0] sm:$0xff]  ;;  %v9203_v63 = vld [vmem:[%s15163_s0 + $0x70] sm:$0xf0] }
  0x1f   :  { %2210 = vmatpush.bf16.msra.mxu1 %v8997_v29  ;;  %v6928_v29 = vld [vmem:[%s15163_s0 + $0x1fc] sm:$0xf0]  ;;  %v9076_v36 = vld [vmem:[%s15161_s1 + $0x2b8] sm:$0xff]  ;;  %v9191_v0 = vld [vmem:[%s15163_s0 + $0x14] sm:$0xf] }
  0x20   :  { %2238 = vmatpush.bf16.msra.mxu2 %v9005_v30  ;;  %v9045_v30 = vld [vmem:[%s15161_s1 + $0x1c0] sm:$0xff]  ;;  %v6931_v35 = vor.u32 %v9240_v28, %v6928_v29  ;;  %v9060_v37 = vld [vmem:[%s15161_s1 + $0x238] sm:$0xff]  ;;  %v6844_v25 = vld [vmem:[%s15163_s0 + $0x144] sm:$0xf0] }
  0x21   :  { %2266 = vmatpush.bf16.msra.mxu3 %v9013_v31  ;;  %2183 = vmatmul.bf16.vlgmr.msra.gmra.mxu0 %v6719_v42  ;;  %v9029_v31 = vld [vmem:[%s15161_s1 + $0x140] sm:$0xff]  ;;  %v9084_v38 = vld [vmem:[%s15161_s1 + $0x2f8] sm:$0xff]  ;;  %v9083_v42 = vld [vmem:[%s15161_s1 + $0x2f0] sm:$0xff] }
  0x22   :  { %2287 = vmatpush.bf16.msrb.mxu0 %v9028_v41  ;;  %2211 = vmatmul.bf16.vlgmr.msra.gmra.mxu1 %v6723_v43  ;;  %v9068_v39 = vld [vmem:[%s15161_s1 + $0x278] sm:$0xff]  ;;  %v9059_v41 = vld [vmem:[%s15161_s1 + $0x230] sm:$0xff]  ;;  %v9065_v61 = vld [vmem:[%s15161_s1 + $0x260] sm:$0xff] }
  0x23   :  { %2239 = vmatmul.bf16.vlgmr.msra.gmra.mxu2 %v6727_v44  ;;  %2315 = vmatpush.bf16.msrb.mxu1 %v9036_v47  ;;  %v9067_v43 = vld [vmem:[%s15161_s1 + $0x270] sm:$0xff]  ;;  %v493_v44 = vld [vmem:[%s15163_s0 + $0x258] sm:$0x11]  ;;  %v9229_v23 = vld [vmem:[%s15163_s0 + $0x140] sm:$0xf0] }
  0x24   :  { %2343 = vmatpush.bf16.msrb.mxu2 %v9044_v40  ;;  %2267 = vmatmul.bf16.vlgmr.msra.gmra.mxu3 %v6731_v45  ;;  %v9075_v40 = vld [vmem:[%s15161_s1 + $0x2b0] sm:$0xff]  ;;  %v494_v45 = vld [vmem:[%s15163_s0 + $0x260] sm:$0x11]  ;;  %v751_v47 = vunpack.c.h.b16 %v493_v44  ;;  %v6736_v1 = vld [vmem:[%s15163_s0 + $0x74] sm:$0xf0] }
  0x25   :  { %2371 = vmatpush.bf16.msrb.mxu3 %v9052_v46  ;;  %v750_v46 = vunpack.c.l.b16 %v493_v44  ;;  %v9216_v20 = vld [vmem:[%s15163_s0 + $0xdc] sm:$0xf]  ;;  %v9217_v24 = vld [vmem:[%s15163_s0 + $0xe4] sm:$0xf]  ;;  %v9242_v44 = vld [vmem:[%s15163_s0 + $0x1ac] sm:$0xf] }
  0x26   :  { %2288 = vmatpush.bf16.msrb.mxu0 %v9027_v49  ;;  %v753_v49 = vunpack.c.h.b16 %v494_v45  ;;  %v6847_v29 = vor.u32 %v9217_v24, %v6844_v25 }
  0x27   :  { %2316 = vmatpush.bf16.msrb.mxu1 %v9035_v51  ;;  %v851_v51 = vpack.c.b16 %v751_v47, %v751_v47 }
  0x28   :  { %2344 = vmatpush.bf16.msrb.mxu2 %v9043_v48  ;;  %v752_v48 = vunpack.c.l.b16 %v494_v45  ;;  %v6944_v45 = vld [vmem:[%s15163_s0 + $0x20c] sm:$0xf0] }
  0x29   :  { %2372 = vmatpush.bf16.msrb.mxu3 %v9051_v50  ;;  %v850_v50 = vpack.c.b16 %v750_v46, %v750_v46 }
  0x2a   :  { %2289 = vmatpush.bf16.msrb.mxu0 %v9026_v53  ;;  %v853_v53 = vpack.c.b16 %v753_v49, %v753_v49  ;;  %v6947_v49 = vor.u32 %v9242_v44, %v6944_v45  ;;  %v9087_v44 = vld [vmem:[%s15161_s1 + $0x310] sm:$0xff] }
  0x2b   :  { %2317 = vmatpush.bf16.msrb.mxu1 %v9034_v55  ;;  %v9058_v55 = vld [vmem:[%s15161_s1 + $0x228] sm:$0xff]  ;;  %v9111_v45 = vld [vmem:[%s15161_s1 + $0x3d0] sm:$0xff] }
  0x2c   :  { %2345 = vmatpush.bf16.msrb.mxu2 %v9042_v52  ;;  %v852_v52 = vpack.c.b16 %v752_v48, %v752_v48 }
  0x2d   :  { %2373 = vmatpush.bf16.msrb.mxu3 %v9050_v54  ;;  %v9074_v54 = vld [vmem:[%s15161_s1 + $0x2a8] sm:$0xff] }
  0x2e   :  { %2290 = vmatpush.bf16.msrb.mxu0 %v9025_v58  ;;  %v9073_v58 = vld [vmem:[%s15161_s1 + $0x2a0] sm:$0xff] }
  0x2f   :  { %2318 = vmatpush.bf16.msrb.mxu1 %v9033_v3  ;;  %v9204_v3 = vld [vmem:[%s15163_s0 + $0x78] sm:$0xf0] }
  0x30   :  { %2346 = vmatpush.bf16.msrb.mxu2 %v9041_v57  ;;  %v9066_v57 = vld [vmem:[%s15161_s1 + $0x268] sm:$0xff] }
  0x31   :  { %2374 = vmatpush.bf16.msrb.mxu3 %v9049_v2  ;;  %2188 = vmatmul.bf16.gmra.mxu0 %v6819_v6  ;;  %v6742_v2 = vld [vmem:[%s15163_s0 + $0x18] sm:$0xf]  ;;  %v6735_v6 = vor.u32 %v9203_v63, %v6734_v62 }
  0x32   :  { %2291 = vmatpush.bf16.msrb.mxu0 %v9024_v5  ;;  %2216 = vmatmul.bf16.gmra.mxu1 %v6823_v7  ;;  %v6744_v5 = vld [vmem:[%s15163_s0 + $0x7c] sm:$0xf0]  ;;  %v6739_v7 = vor.u32 %v9191_v0, %v6736_v1 }
  0x33   :  { %2244 = vmatmul.bf16.gmra.mxu2 %v6827_v8  ;;  %2319 = vmatpush.bf16.msrb.mxu1 %v9032_v11  ;;  %v6743_v8 = vor.u32 %v9204_v3, %v6742_v2  ;;  %v9056_v11 = vld [vmem:[%s15161_s1 + $0x218] sm:$0xff]  ;;  %v9099_v3 = vld [vmem:[%s15161_s1 + $0x370] sm:$0xff] }
  0x34   :  { %2347 = vmatpush.bf16.msrb.mxu2 %v9040_v4  ;;  %2272 = vmatmul.bf16.gmra.mxu3 %v6831_v9  ;;  %v9192_v4 = vld [vmem:[%s15163_s0 + $0x1c] sm:$0xf] }
  0x35   :  { %2375 = vmatpush.bf16.msrb.mxu3 %v9048_v10  ;;  %v6747_v9 = vor.u32 %v9192_v4, %v6744_v5  ;;  %v9072_v10 = vld [vmem:[%s15161_s1 + $0x298] sm:$0xff]  ;;  %v9106_v4 = vld [vmem:[%s15161_s1 + $0x3a8] sm:$0xff] }
  0x36   :  { %2292 = vmatpush.bf16.msrb.mxu0 %v9023_v13  ;;  %v9064_v13 = vld [vmem:[%s15161_s1 + $0x258] sm:$0xff]  ;;  %v9090_v5 = vld [vmem:[%s15161_s1 + $0x328] sm:$0xff] }
  0x37   :  { %2320 = vmatpush.bf16.msrb.mxu1 %v9031_v15  ;;  %v9055_v15 = vld [vmem:[%s15161_s1 + $0x210] sm:$0xff] }
  0x38   :  { %2348 = vmatpush.bf16.msrb.mxu2 %v9039_v12  ;;  %v9080_v12 = vld [vmem:[%s15161_s1 + $0x2d8] sm:$0xff] }
  0x39   :  { %2376 = vmatpush.bf16.msrb.mxu3 %v9047_v14  ;;  %v9071_v14 = vld [vmem:[%s15161_s1 + $0x290] sm:$0xff] }
  0x3a   :  { %2293 = vmatpush.bf16.msrb.mxu0 %v9022_v17  ;;  %v9063_v17 = vld [vmem:[%s15161_s1 + $0x250] sm:$0xff] }
  0x3b   :  { %2321 = vmatpush.bf16.msrb.mxu1 %v9030_v19  ;;  %v9228_v19 = vld [vmem:[%s15163_s0 + $0x138] sm:$0xf0] }
  0x3c   :  { %2349 = vmatpush.bf16.msrb.mxu2 %v9038_v16  ;;  %v9079_v16 = vld [vmem:[%s15161_s1 + $0x2d0] sm:$0xff] }
  0x3d   :  { %2377 = vmatpush.bf16.msrb.mxu3 %v9046_v18  ;;  %v6834_v18 = vld [vmem:[%s15163_s0 + $0xd8] sm:$0xf] }
  0x3e   :  { %2294 = vmatpush.bf16.msrb.mxu0 %v9021_v22  ;;  %v6842_v22 = vld [vmem:[%s15163_s0 + $0xe0] sm:$0xf]  ;;  %v6835_v26 = vor.u32 %v9228_v19, %v6834_v18  ;;  %v9194_v18 = vld [vmem:[%s15163_s0 + $0x2c] sm:$0xf]  ;;  %v6760_v19 = vld [vmem:[%s15163_s0 + $0x8c] sm:$0xf0] }
  0x3f   :  { %2322 = vmatpush.bf16.msrb.mxu1 %v9029_v31  ;;  %v6843_v28 = vor.u32 %v9229_v23, %v6842_v22  ;;  %v9054_v31 = vld [vmem:[%s15161_s1 + $0x208] sm:$0xff]  ;;  %v6763_v25 = vor.u32 %v9194_v18, %v6760_v19  ;;  %v9109_v18 = vld [vmem:[%s15161_s1 + $0x3c0] sm:$0xff]  ;;  %v9243_v19 = vld [vmem:[%s15163_s0 + $0x1b4] sm:$0xf] }
  0x40   :  { %2350 = vmatpush.bf16.msrb.mxu2 %v9037_v21  ;;  %v6836_v21 = vld [vmem:[%s15163_s0 + $0x13c] sm:$0xf0] }
  0x41   :  { %2378 = vmatpush.bf16.msrb.mxu3 %v9045_v30  ;;  %2193 = vmatmul.bf16.gmra.mxu0 %v6919_v32  ;;  %v6839_v27 = vor.u32 %v9216_v20, %v6836_v21  ;;  %v9070_v30 = vld [vmem:[%s15161_s1 + $0x288] sm:$0xff] }
  0x42   :  { %2221 = vmatmul.bf16.gmra.mxu1 %v6923_v33  ;;  %2399 = vmatpush.bf16.msra.mxu0 %v9060_v37  ;;  %v9078_v32 = vld [vmem:[%s15161_s1 + $0x2c8] sm:$0xff]  ;;  %v9061_v37 = vld [vmem:[%s15161_s1 + $0x240] sm:$0xff] }
  0x43   :  { %2249 = vmatmul.bf16.gmra.mxu2 %v6927_v34  ;;  %2427 = vmatpush.bf16.msra.mxu1 %v9068_v39  ;;  %v9062_v33 = vld [vmem:[%s15161_s1 + $0x248] sm:$0xff]  ;;  %v9069_v34 = vld [vmem:[%s15161_s1 + $0x280] sm:$0xff] }
  0x44   :  { %2277 = vmatmul.bf16.gmra.mxu3 %v6931_v35  ;;  %2455 = vmatpush.bf16.msra.mxu2 %v9076_v36  ;;  %v9053_v35 = vld [vmem:[%s15161_s1 + $0x200] sm:$0xff] }
  0x45   :  { %2483 = vmatpush.bf16.msra.mxu3 %v9084_v38  ;;  %v9077_v36 = vld [vmem:[%s15161_s1 + $0x2c0] sm:$0xff] }
  0x46   :  { %2400 = vmatpush.bf16.msra.mxu0 %v9059_v41  ;;  %v6934_v38 = vld [vmem:[%s15163_s0 + $0x1a0] sm:$0xf]  ;;  %v9253_v39 = vld [vmem:[%s15163_s0 + $0x200] sm:$0xf0]  ;;  %v6936_v41 = vld [vmem:[%s15163_s0 + $0x204] sm:$0xf0] }
  0x47   :  { %2428 = vmatpush.bf16.msra.mxu1 %v9067_v43  ;;  %v9254_v43 = vld [vmem:[%s15163_s0 + $0x208] sm:$0xf0]  ;;  %v6935_v46 = vor.u32 %v9253_v39, %v6934_v38  ;;  %v6850_v39 = vld [vmem:[%s15163_s0 + $0xe8] sm:$0xf] }
  0x48   :  { %2456 = vmatpush.bf16.msra.mxu2 %v9075_v40  ;;  %v9241_v40 = vld [vmem:[%s15163_s0 + $0x1a4] sm:$0xf] }
  0x49   :  { %2484 = vmatpush.bf16.msra.mxu3 %v9083_v42  ;;  %v6942_v42 = vld [vmem:[%s15163_s0 + $0x1a8] sm:$0xf]  ;;  %v6939_v47 = vor.u32 %v9241_v40, %v6936_v41  ;;  %v9230_v40 = vld [vmem:[%s15163_s0 + $0x148] sm:$0xf0]  ;;  %v9096_v41 = vld [vmem:[%s15161_s1 + $0x358] sm:$0xff] }
  0x4a   :  { %2401 = vmatpush.bf16.msra.mxu0 %v9058_v55  ;;  %v6943_v48 = vor.u32 %v9254_v43, %v6942_v42  ;;  %v9100_v55 = vld [vmem:[%s15161_s1 + $0x378] sm:$0xff]  ;;  %v9103_v43 = vld [vmem:[%s15161_s1 + $0x390] sm:$0xff] }
  0x4b   :  { %2429 = vmatpush.bf16.msra.mxu1 %v9066_v57 }
  0x4c   :  { %2457 = vmatpush.bf16.msra.mxu2 %v9074_v54  ;;  %v496_v54 = vld [vmem:[%s15163_s0 + $0x270] sm:$0x11] }
  0x4d   :  { %2485 = vmatpush.bf16.msra.mxu3 %v9082_v56  ;;  %v757_v62 = vunpack.c.h.b16 %v496_v54 }
  0x4e   :  { %2402 = vmatpush.bf16.msra.mxu0 %v9057_v59  ;;  %v9091_v59 = vld [vmem:[%s15161_s1 + $0x330] sm:$0xff] }
  0x4f   :  { %2430 = vmatpush.bf16.msra.mxu1 %v9065_v61  ;;  %v756_v61 = vunpack.c.l.b16 %v496_v54  ;;  %v857_v2 = vpack.c.b16 %v757_v62, %v757_v62  ;;  %v6851_v54 = vor.u32 %v9230_v40, %v6850_v39  ;;  %v9140_v39 = vld [vmem:[%s15161_s1 + $0x4b8] sm:$0xff] }
  0x50   :  { %2458 = vmatpush.bf16.msra.mxu2 %v9073_v58  ;;  %v9107_v58 = vld [vmem:[%s15161_s1 + $0x3b0] sm:$0xff]  ;;  %v9124_v40 = vld [vmem:[%s15161_s1 + $0x438] sm:$0xff] }
  0x51   :  { %2198 = vmatmul.bf16.gmra.mxu0 %v850_v50  ;;  %2486 = vmatpush.bf16.msra.mxu3 %v9081_v60  ;;  %v9108_v50 = vld [vmem:[%s15161_s1 + $0x3b8] sm:$0xff]  ;;  %v9115_v60 = vld [vmem:[%s15161_s1 + $0x3f0] sm:$0xff]  ;;  %v856_v1 = vpack.c.b16 %v756_v61, %v756_v61 }
  0x52   :  { %2226 = vmatmul.bf16.gmra.mxu1 %v851_v51  ;;  %2403 = vmatpush.bf16.msra.mxu0 %v9056_v11  ;;  %v9092_v51 = vld [vmem:[%s15161_s1 + $0x338] sm:$0xff]  ;;  %v9105_v11 = vld [vmem:[%s15161_s1 + $0x3a0] sm:$0xff] }
  0x53   :  { %2254 = vmatmul.bf16.gmra.mxu2 %v852_v52  ;;  %2431 = vmatpush.bf16.msra.mxu1 %v9064_v13  ;;  %v9116_v52 = vld [vmem:[%s15161_s1 + $0x3f8] sm:$0xff]  ;;  %v9113_v13 = vld [vmem:[%s15161_s1 + $0x3e0] sm:$0xff] }
  0x54   :  { %2282 = vmatmul.bf16.gmra.mxu3 %v853_v53  ;;  %2459 = vmatpush.bf16.msra.mxu2 %v9072_v10  ;;  %v495_v53 = vld [vmem:[%s15163_s0 + $0x268] sm:$0x11]  ;;  %v10619_v10 = vld [vmem:[%s15162_s2] ss:$0 sm:$0xff] }
  0x55   :  { %2487 = vmatpush.bf16.msra.mxu3 %v9080_v12  ;;  %v754_v56 = vunpack.c.l.b16 %v495_v53  ;;  %v755_v57 = vunpack.c.h.b16 %v495_v53  ;;  %v9089_v12 = vld [vmem:[%s15161_s1 + $0x320] sm:$0xff] }
  0x56   :  { %2404 = vmatpush.bf16.msra.mxu0 %v9055_v15  ;;  %v6752_v15 = vld [vmem:[%s15163_s0 + $0x84] sm:$0xf0] }
  0x57   :  { %2432 = vmatpush.bf16.msra.mxu1 %v9063_v17  ;;  %v854_v63 = vpack.c.b16 %v754_v56, %v754_v56  ;;  %v855_v0 = vpack.c.b16 %v755_v57, %v755_v57  ;;  %v9206_v17 = vld [vmem:[%s15163_s0 + $0x88] sm:$0xf0] }
  0x58   :  { %2460 = vmatpush.bf16.msra.mxu2 %v9071_v14  ;;  %v9193_v14 = vld [vmem:[%s15163_s0 + $0x24] sm:$0xf] }
  0x59   :  { %2488 = vmatpush.bf16.msra.mxu3 %v9079_v16  ;;  %v6758_v16 = vld [vmem:[%s15163_s0 + $0x28] sm:$0xf]  ;;  %v6755_v21 = vor.u32 %v9193_v14, %v6752_v15  ;;  %v9085_v14 = vld [vmem:[%s15161_s1 + $0x300] sm:$0xff] }
  0x5a   :  { %2405 = vmatpush.bf16.msra.mxu0 %v9054_v31  ;;  %v6759_v24 = vor.u32 %v9206_v17, %v6758_v16  ;;  %v9112_v31 = vld [vmem:[%s15161_s1 + $0x3d8] sm:$0xff]  ;;  %v6950_v16 = vld [vmem:[%s15163_s0 + $0x1b0] sm:$0xf]  ;;  %v9255_v17 = vld [vmem:[%s15163_s0 + $0x210] sm:$0xf0] }
  0x5b   :  { %2433 = vmatpush.bf16.msra.mxu1 %v9062_v33 }
  0x5c   :  { %2461 = vmatpush.bf16.msra.mxu2 %v9070_v30  ;;  %v9088_v30 = vld [vmem:[%s15161_s1 + $0x318] sm:$0xff] }
  0x5d   :  { %2489 = vmatpush.bf16.msra.mxu3 %v9078_v32 }
  0x5e   :  { %2406 = vmatpush.bf16.msra.mxu0 %v9053_v35 }
  0x5f   :  { %2434 = vmatpush.bf16.msra.mxu1 %v9061_v37 }
  0x60   :  { %2462 = vmatpush.bf16.msra.mxu2 %v9069_v34 }
  0x61   :  { %2295 = vmatmul.bf16.vlgmr.msrb.gmra.mxu0 %v6735_v6  ;;  %2490 = vmatpush.bf16.msra.mxu3 %v9077_v36  ;;  %v9114_v6 = vld [vmem:[%s15161_s1 + $0x3e8] sm:$0xff] }
  0x62   :  { %2323 = vmatmul.bf16.vlgmr.msrb.gmra.mxu1 %v6739_v7  ;;  %2511 = vmatpush.bf16.msrb.mxu0 %v9092_v51  ;;  %v6750_v7 = vld [vmem:[%s15163_s0 + $0x20] sm:$0xf]  ;;  %v6860_v51 = vld [vmem:[%s15163_s0 + $0x154] sm:$0xf0] }
  0x63   :  { %2351 = vmatmul.bf16.vlgmr.msrb.gmra.mxu2 %v6743_v8  ;;  %2539 = vmatpush.bf16.msrb.mxu1 %v9100_v55  ;;  %v9205_v8 = vld [vmem:[%s15163_s0 + $0x80] sm:$0xf0] }
  0x64   :  { %2379 = vmatmul.bf16.vlgmr.msrb.gmra.mxu3 %v6747_v9  ;;  %2567 = vmatpush.bf16.msrb.mxu2 %v9108_v50  ;;  %v9098_v9 = vld [vmem:[%s15161_s1 + $0x368] sm:$0xff]  ;;  %v6751_v20 = vor.u32 %v9205_v8, %v6750_v7  ;;  %v9219_v50 = vld [vmem:[%s15163_s0 + $0xf4] sm:$0xf] }
  0x65   :  { %2595 = vmatpush.bf16.msrb.mxu3 %v9116_v52 }
  0x66   :  { %2512 = vmatpush.bf16.msrb.mxu0 %v9091_v59 }
  0x67   :  { %2540 = vmatpush.bf16.msrb.mxu1 %v9099_v3  ;;  %v9110_v3 = vld [vmem:[%s15161_s1 + $0x3c8] sm:$0xff] }
  0x68   :  { %2568 = vmatpush.bf16.msrb.mxu2 %v9107_v58 }
  0x69   :  { %2596 = vmatpush.bf16.msrb.mxu3 %v9115_v60  ;;  %v6863_v60 = vor.u32 %v9219_v50, %v6860_v51  ;;  %v9132_v51 = vld [vmem:[%s15161_s1 + $0x478] sm:$0xff] }
  0x6a   :  { %2513 = vmatpush.bf16.msrb.mxu0 %v9090_v5 }
  0x6b   :  { %2541 = vmatpush.bf16.msrb.mxu1 %v9098_v9 }
  0x6c   :  { %2569 = vmatpush.bf16.msrb.mxu2 %v9106_v4 }
  0x6d   :  { %2597 = vmatpush.bf16.msrb.mxu3 %v9114_v6 }
  0x6e   :  { %2514 = vmatpush.bf16.msrb.mxu0 %v9089_v12  ;;  %v9094_v12 = vld [vmem:[%s15161_s1 + $0x348] sm:$0xff] }
  0x70   :  { %2570 = vmatpush.bf16.msrb.mxu2 %v9105_v11 }
  0x71   :  { %2300 = vmatmul.bf16.gmra.mxu0 %v6835_v26  ;;  %2598 = vmatpush.bf16.msrb.mxu3 %v9113_v13  ;;  %v9101_v13 = vld [vmem:[%s15161_s1 + $0x380] sm:$0xff] }
  0x72   :  { %2328 = vmatmul.bf16.gmra.mxu1 %v6839_v27  ;;  %v9097_v27 = vld [vmem:[%s15161_s1 + $0x360] sm:$0xff]  ;;  %2515 = vmatpush.bf16.msrb.mxu0 %v9088_v30 }
  0x73   :  { %2356 = vmatmul.bf16.gmra.mxu2 %v6843_v28  ;;  %2542 = vmatpush.bf16.msrb.mxu1 %v9097_v27  ;;  %v6951_v27 = vor.u32 %v9255_v17, %v6950_v16 }
  0x74   :  { %2384 = vmatmul.bf16.gmra.mxu3 %v6847_v29  ;;  %v9104_v29 = vld [vmem:[%s15161_s1 + $0x398] sm:$0xff] }
  0x75   :  { %2571 = vmatpush.bf16.msrb.mxu2 %v9104_v29  ;;  %2599 = vmatpush.bf16.msrb.mxu3 %v9112_v31  ;;  %v9093_v29 = vld [vmem:[%s15161_s1 + $0x340] sm:$0xff] }
  0x76   :  { %2516 = vmatpush.bf16.msrb.mxu0 %v9087_v44 }
  0x77   :  { %2543 = vmatpush.bf16.msrb.mxu1 %v9096_v41  ;;  %v9148_v41 = vld [vmem:[%s15161_s1 + $0x4f8] sm:$0xff] }
  0x79   :  { %2572 = vmatpush.bf16.msrb.mxu2 %v9103_v43  ;;  %2600 = vmatpush.bf16.msrb.mxu3 %v9111_v45 }
  0x7d   :  { %2601 = vmatpush.bf16.msrb.mxu3 %v9110_v3 }
  0x81   :  { %2305 = vmatmul.bf16.gmra.mxu0 %v6935_v46  ;;  %v9218_v46 = vld [vmem:[%s15163_s0 + $0xec] sm:$0xf]  ;;  %2602 = vmatpush.bf16.msrb.mxu3 %v9109_v18 }
  0x82   :  { %2333 = vmatmul.bf16.gmra.mxu1 %v6939_v47  ;;  %v6852_v47 = vld [vmem:[%s15163_s0 + $0x14c] sm:$0xf0] }
  0x83   :  { %2361 = vmatmul.bf16.gmra.mxu2 %v6943_v48  ;;  %v6858_v48 = vld [vmem:[%s15163_s0 + $0xf0] sm:$0xf]  ;;  %v6855_v55 = vor.u32 %v9218_v46, %v6852_v47  ;;  %v497_v47 = vld [vmem:[%s15163_s0 + $0x278] sm:$0x11] }
  0x84   :  { %2389 = vmatmul.bf16.gmra.mxu3 %v6947_v49  ;;  %v9231_v49 = vld [vmem:[%s15163_s0 + $0x150] sm:$0xf0] }
  0x85   :  { %v6859_v59 = vor.u32 %v9231_v49, %v6858_v48  ;;  %v498_v49 = vld [vmem:[%s15163_s0 + $0x280] sm:$0x11] }
  0x91   :  { %2310 = vmatmul.bf16.gmra.mxu0 %v854_v63  ;;  %v9095_v63 = vld [vmem:[%s15161_s1 + $0x350] sm:$0xff] }
  0x92   :  { %2338 = vmatmul.bf16.gmra.mxu1 %v855_v0 }
  0x93   :  { %2366 = vmatmul.bf16.gmra.mxu2 %v856_v1  ;;  %v9102_v1 = vld [vmem:[%s15161_s1 + $0x388] sm:$0xff]  ;;  %2544 = vmatpush.bf16.msrb.mxu1 %v9095_v63 }
  0x94   :  { %2394 = vmatmul.bf16.gmra.mxu3 %v857_v2  ;;  %v9086_v2 = vld [vmem:[%s15161_s1 + $0x308] sm:$0xff]  ;;  %2573 = vmatpush.bf16.msrb.mxu2 %v9102_v1 }
  0x95   :  { %2517 = vmatpush.bf16.msrb.mxu0 %v9086_v2 }
  0x97   :  { %2545 = vmatpush.bf16.msrb.mxu1 %v9094_v12  ;;  %v9138_v12 = vld [vmem:[%s15161_s1 + $0x4a8] sm:$0xff] }
  0x98   :  { %2574 = vmatpush.bf16.msrb.mxu2 %v9101_v13  ;;  %v9122_v13 = vld [vmem:[%s15161_s1 + $0x428] sm:$0xff] }
  0x99   :  { %2518 = vmatpush.bf16.msrb.mxu0 %v9085_v14 }
  0x9b   :  { %2546 = vmatpush.bf16.msrb.mxu1 %v9093_v29  ;;  %v9208_v29 = vld [vmem:[%s15163_s0 + $0x98] sm:$0xf0] }
  0x9e   :  { %v2184_v22 = vpop.f32.mrf.mxu0 }
  0x9f   :  { %v2212_v23 = vpop.f32.mrf.mxu1  ;;  %v2185_v26 = vadd.f32 %v10619_v10, %v2184_v22  ;;  %v9256_v22 = vld [vmem:[%s15163_s0 + $0x218] sm:$0xf0] }
  0xa1   :  { %v2213_v28 = vadd.f32 %v2212_v23, %v2185_v26  ;;  %2407 = vmatmul.bf16.vlgmr.msra.gmra.mxu0 %v6751_v20  ;;  %v6952_v20 = vld [vmem:[%s15163_s0 + $0x214] sm:$0xf0]  ;;  %v9244_v23 = vld [vmem:[%s15163_s0 + $0x1bc] sm:$0xf] }
  0xa2   :  { %2435 = vmatmul.bf16.vlgmr.msra.gmra.mxu1 %v6755_v21  ;;  %v6958_v21 = vld [vmem:[%s15163_s0 + $0x1b8] sm:$0xf]  ;;  %2623 = vmatpush.bf16.msra.mxu0 %v9124_v40 }
  0xa3   :  { %2463 = vmatmul.bf16.vlgmr.msra.gmra.mxu2 %v6759_v24  ;;  %v6960_v24 = vld [vmem:[%s15163_s0 + $0x21c] sm:$0xf0]  ;;  %2651 = vmatpush.bf16.msra.mxu1 %v9132_v51 }
  0xa4   :  { %2491 = vmatmul.bf16.vlgmr.msra.gmra.mxu3 %v6763_v25  ;;  %2679 = vmatpush.bf16.msra.mxu2 %v9140_v39 }
  0xa5   :  { %2707 = vmatpush.bf16.msra.mxu3 %v9148_v41 }
  0xa6   :  { %v2240_v32 = vpop.f32.mrf.mxu2  ;;  %v2186_v35 = vpop.f32.mrf.mxu0 }
  0xa7   :  { %v2268_v33 = vpop.f32.mrf.mxu3  ;;  %v2241_v34 = vadd.f32 %v2240_v32, %v2213_v28  ;;  %v2214_v36 = vpop.f32.mrf.mxu1  ;;  %v2187_v37 = vadd.f32 %v10619_v10, %v2186_v35  ;;  %v6955_v28 = vor.u32 %v9243_v19, %v6952_v20  ;;  %v6766_v20 = vld [vmem:[%s15163_s0 + $0x30] sm:$0xf] }
  0xa9   :  { %v10662_v38 = vadd.f32 %v2268_v33, %v2241_v34  ;;  %v2215_v42 = vadd.f32 %v2214_v36, %v2187_v37  ;;  %v6959_v33 = vor.u32 %v9256_v22, %v6958_v21  ;;  %v6963_v34 = vor.u32 %v9244_v23, %v6960_v24  ;;  %v9207_v21 = vld [vmem:[%s15163_s0 + $0x90] sm:$0xf0]  ;;  %v9130_v22 = vld [vmem:[%s15161_s1 + $0x468] sm:$0xff]  ;;  %v9137_v23 = vld [vmem:[%s15161_s1 + $0x4a0] sm:$0xff] }
  0xaa   :  { %v9121_v24 = vld [vmem:[%s15161_s1 + $0x420] sm:$0xff] }
  0xae   :  { %v2242_v52 = vpop.f32.mrf.mxu2  ;;  %v2189_v57 = vpop.f32.mrf.mxu0 }
  0xaf   :  { %v2270_v53 = vpop.f32.mrf.mxu3  ;;  %v2243_v56 = vadd.f32 %v2242_v52, %v2215_v42  ;;  %v2217_v58 = vpop.f32.mrf.mxu1  ;;  %v2190_v61 = vadd.f32 %v10619_v10, %v2189_v57  ;;  %v9147_v57 = vld [vmem:[%s15161_s1 + $0x4f0] sm:$0xff] }
  0xb0   :  { %2708 = vmatpush.bf16.msra.mxu3 %v9147_v57  ;;  %v9128_v57 = vld [vmem:[%s15161_s1 + $0x458] sm:$0xff] }
  0xb1   :  { %v10701_v62 = vadd.f32 %v2270_v53, %v2243_v56  ;;  %v2218_v0 = vadd.f32 %v2217_v58, %v2190_v61  ;;  %2412 = vmatmul.bf16.gmra.mxu0 %v6851_v54  ;;  %v758_v53 = vunpack.c.l.b16 %v497_v47  ;;  %v759_v54 = vunpack.c.h.b16 %v497_v47  ;;  %v9123_v56 = vld [vmem:[%s15161_s1 + $0x430] sm:$0xff] }
  0xb2   :  { %2440 = vmatmul.bf16.gmra.mxu1 %v6855_v55  ;;  %v9139_v55 = vld [vmem:[%s15161_s1 + $0x4b0] sm:$0xff]  ;;  %v760_v58 = vunpack.c.l.b16 %v498_v49  ;;  %2624 = vmatpush.bf16.msra.mxu0 %v9123_v56  ;;  %v9232_v56 = vld [vmem:[%s15163_s0 + $0x158] sm:$0xf0] }
  0xb3   :  { %2468 = vmatmul.bf16.gmra.mxu2 %v6859_v59  ;;  %v761_v59 = vunpack.c.h.b16 %v498_v49  ;;  %v858_v63 = vpack.c.b16 %v758_v53, %v758_v53 }
  0xb4   :  { %2496 = vmatmul.bf16.gmra.mxu3 %v6863_v60  ;;  %2680 = vmatpush.bf16.msra.mxu2 %v9139_v55  ;;  %v6866_v55 = vld [vmem:[%s15163_s0 + $0xf8] sm:$0xf] }
  0xb6   :  { %v2245_v4 = vpop.f32.mrf.mxu2  ;;  %v2191_v7 = vpop.f32.mrf.mxu0  ;;  %2625 = vmatpush.bf16.msra.mxu0 %v9122_v13 }
  0xb7   :  { %v2273_v5 = vpop.f32.mrf.mxu3  ;;  %v2246_v6 = vadd.f32 %v2245_v4, %v2218_v0  ;;  %v2219_v8 = vpop.f32.mrf.mxu1  ;;  %v2192_v9 = vadd.f32 %v10619_v10, %v2191_v7  ;;  %v859_v0 = vpack.c.b16 %v759_v54, %v759_v54  ;;  %v860_v4 = vpack.c.b16 %v760_v58, %v760_v58 }
  0xb8   :  { %2681 = vmatpush.bf16.msra.mxu2 %v9138_v12 }
  0xb9   :  { %v10716_v11 = vadd.f32 %v2273_v5, %v2246_v6  ;;  %v2220_v15 = vadd.f32 %v2219_v8, %v2192_v9  ;;  %v861_v5 = vpack.c.b16 %v761_v59, %v761_v59  ;;  %v9131_v8 = vld [vmem:[%s15161_s1 + $0x470] sm:$0xff] }
  0xba   :  { %2652 = vmatpush.bf16.msra.mxu1 %v9131_v8  ;;  %2626 = vmatpush.bf16.msra.mxu0 %v9121_v24  ;;  %v9135_v59 = vld [vmem:[%s15161_s1 + $0x490] sm:$0xff] }
  0xbc   :  { %2682 = vmatpush.bf16.msra.mxu2 %v9137_v23 }
  0xbe   :  { %v2247_v25 = vpop.f32.mrf.mxu2  ;;  %v2194_v31 = vpop.f32.mrf.mxu0  ;;  %2653 = vmatpush.bf16.msra.mxu1 %v9130_v22 }
  0xbf   :  { %v2275_v26 = vpop.f32.mrf.mxu3  ;;  %v2248_v30 = vadd.f32 %v2247_v25, %v2220_v15  ;;  %v2222_v32 = vpop.f32.mrf.mxu1  ;;  %v2195_v35 = vadd.f32 %v10619_v10, %v2194_v31  ;;  %v9145_v25 = vld [vmem:[%s15161_s1 + $0x4e0] sm:$0xff] }
  0xc0   :  { %v6776_v31 = vld [vmem:[%s15163_s0 + $0x9c] sm:$0xf0] }
  0xc1   :  { %v10758_v36 = vadd.f32 %v2275_v26, %v2248_v30  ;;  %v2223_v37 = vadd.f32 %v2222_v32, %v2195_v35  ;;  %2417 = vmatmul.bf16.gmra.mxu0 %v6951_v27  ;;  %v9195_v26 = vld [vmem:[%s15163_s0 + $0x34] sm:$0xf]  ;;  %v6768_v27 = vld [vmem:[%s15163_s0 + $0x94] sm:$0xf0]  ;;  %v9196_v30 = vld [vmem:[%s15163_s0 + $0x3c] sm:$0xf] }
  0xc2   :  { %2445 = vmatmul.bf16.gmra.mxu1 %v6955_v28  ;;  %v6774_v28 = vld [vmem:[%s15163_s0 + $0x38] sm:$0xf]  ;;  %v6771_v35 = vor.u32 %v9195_v26, %v6768_v27  ;;  %v6779_v41 = vor.u32 %v9196_v30, %v6776_v31  ;;  %v9133_v30 = vld [vmem:[%s15161_s1 + $0x480] sm:$0xff] }
  0xc3   :  { %2473 = vmatmul.bf16.gmra.mxu2 %v6959_v33  ;;  %v6775_v40 = vor.u32 %v9208_v29, %v6774_v28  ;;  %v9126_v29 = vld [vmem:[%s15161_s1 + $0x448] sm:$0xff]  ;;  %v9117_v31 = vld [vmem:[%s15161_s1 + $0x400] sm:$0xff] }
  0xc4   :  { %2501 = vmatmul.bf16.gmra.mxu3 %v6963_v34  ;;  %v6767_v34 = vor.u32 %v9207_v21, %v6766_v20  ;;  %v9134_v20 = vld [vmem:[%s15161_s1 + $0x488] sm:$0xff] }
  0xc5   :  { %v9118_v21 = vld [vmem:[%s15161_s1 + $0x408] sm:$0xff] }
  0xc6   :  { %v2250_v42 = vpop.f32.mrf.mxu2  ;;  %v2196_v45 = vpop.f32.mrf.mxu0 }
  0xc7   :  { %v2278_v43 = vpop.f32.mrf.mxu3  ;;  %v2251_v44 = vadd.f32 %v2250_v42, %v2223_v37  ;;  %v2224_v46 = vpop.f32.mrf.mxu1  ;;  %v2197_v48 = vadd.f32 %v10619_v10, %v2196_v45  ;;  %v9136_v45 = vld [vmem:[%s15161_s1 + $0x498] sm:$0xff] }
  0xc8   :  { %2683 = vmatpush.bf16.msra.mxu2 %v9136_v45 }
  0xc9   :  { %v10776_v50 = vadd.f32 %v2278_v43, %v2251_v44  ;;  %v2225_v52 = vadd.f32 %v2224_v46, %v2197_v48  ;;  %v9129_v43 = vld [vmem:[%s15161_s1 + $0x460] sm:$0xff]  ;;  %v9120_v46 = vld [vmem:[%s15161_s1 + $0x418] sm:$0xff] }
  0xca   :  { %2654 = vmatpush.bf16.msra.mxu1 %v9129_v43  ;;  %2627 = vmatpush.bf16.msra.mxu0 %v9120_v46 }
  0xcc   :  { %2684 = vmatpush.bf16.msra.mxu2 %v9135_v59 }
  0xce   :  { %v2252_v60 = vpop.f32.mrf.mxu2  ;;  %v2199_v2 = vpop.f32.mrf.mxu0  ;;  %2655 = vmatpush.bf16.msra.mxu1 %v9128_v57  ;;  %v9172_v57 = vld [vmem:[%s15161_s1 + $0x5b8] sm:$0xff] }
  0xcf   :  { %v2280_v61 = vpop.f32.mrf.mxu3  ;;  %v2253_v1 = vadd.f32 %v2252_v60, %v2225_v52  ;;  %v2227_v3 = vpop.f32.mrf.mxu1  ;;  %v2200_v6 = vadd.f32 %v10619_v10, %v2199_v2  ;;  %v9146_v10 = vld [vmem:[%s15161_s1 + $0x4e8] sm:$0xff]  ;;  %v9143_v60 = vld [vmem:[%s15161_s1 + $0x4d0] sm:$0xff]  ;;  %v9221_v2 = vld [vmem:[%s15163_s0 + $0x104] sm:$0xf] }
  0xd0   :  { %2709 = vmatpush.bf16.msra.mxu3 %v9146_v10  ;;  %2685 = vmatpush.bf16.msra.mxu2 %v9134_v20 }
  0xd1   :  { %v10791_v7 = vadd.f32 %v2280_v61, %v2253_v1  ;;  %v2228_v9 = vadd.f32 %v2227_v3, %v2200_v6  ;;  %2422 = vmatmul.bf16.gmra.mxu0 %v858_v63  ;;  %v9220_v61 = vld [vmem:[%s15163_s0 + $0xfc] sm:$0xf]  ;;  %v6868_v63 = vld [vmem:[%s15163_s0 + $0x15c] sm:$0xf0]  ;;  %v9233_v1 = vld [vmem:[%s15163_s0 + $0x160] sm:$0xf0]  ;;  %v6867_v6 = vor.u32 %v9232_v56, %v6866_v55 }
  0xd2   :  { %2450 = vmatmul.bf16.gmra.mxu1 %v859_v0  ;;  %v6874_v0 = vld [vmem:[%s15163_s0 + $0x100] sm:$0xf]  ;;  %v6876_v3 = vld [vmem:[%s15163_s0 + $0x164] sm:$0xf0]  ;;  %v6871_v8 = vor.u32 %v9220_v61, %v6868_v63 }
  0xd3   :  { %2478 = vmatmul.bf16.gmra.mxu2 %v860_v4  ;;  %v6875_v10 = vor.u32 %v9233_v1, %v6874_v0  ;;  %v499_v0 = vld [vmem:[%s15163_s0 + $0x288] sm:$0x11] }
  0xd4   :  { %2506 = vmatmul.bf16.gmra.mxu3 %v861_v5  ;;  %2686 = vmatpush.bf16.msra.mxu2 %v9133_v30  ;;  %v9154_v30 = vld [vmem:[%s15161_s1 + $0x528] sm:$0xff] }
  0xd5   :  { %2710 = vmatpush.bf16.msra.mxu3 %v9145_v25 }
  0xd6   :  { %v2255_v14 = vpop.f32.mrf.mxu2  ;;  %v2201_v17 = vpop.f32.mrf.mxu0 }
  0xd7   :  { %v2283_v15 = vpop.f32.mrf.mxu3  ;;  %v2256_v16 = vadd.f32 %v2255_v14, %v2228_v9  ;;  %v2229_v18 = vpop.f32.mrf.mxu1  ;;  %v6879_v14 = vor.u32 %v9221_v2, %v6876_v3  ;;  %v9127_v17 = vld [vmem:[%s15161_s1 + $0x450] sm:$0xff] }
  0xd8   :  { %2656 = vmatpush.bf16.msra.mxu1 %v9127_v17  ;;  %v500_v2 = vld [vmem:[%s15163_s0 + $0x290] sm:$0x11] }
  0xd9   :  { %v10805_v19 = vadd.f32 %v2283_v15, %v2256_v16 }
  0xdc   :  { %2657 = vmatpush.bf16.msra.mxu1 %v9126_v29  ;;  %v9170_v29 = vld [vmem:[%s15161_s1 + $0x5a8] sm:$0xff] }
  0xde   :  { %v2257_v32 = vpop.f32.mrf.mxu2  ;;  %v2296_v37 = vpop.f32.mrf.mxu0 }
  0xdf   :  { %v2285_v33 = vpop.f32.mrf.mxu3  ;;  %v2324_v39 = vpop.f32.mrf.mxu1  ;;  %v2297_v42 = vadd.f32 %v2296_v37, %v10662_v38  ;;  %v9144_v38 = vld [vmem:[%s15161_s1 + $0x4d8] sm:$0xff]  ;;  %v6968_v37 = vld [vmem:[%s15163_s0 + $0x224] sm:$0xf0] }
  0xe0   :  { %2711 = vmatpush.bf16.msra.mxu3 %v9144_v38  ;;  %v6966_v33 = vld [vmem:[%s15163_s0 + $0x1c0] sm:$0xf] }
  0xe1   :  { %v2325_v44 = vadd.f32 %v2324_v39, %v2297_v42  ;;  %2519 = vmatmul.bf16.vlgmr.msrb.gmra.mxu0 %v6767_v34  ;;  %v9141_v34 = vld [vmem:[%s15161_s1 + $0x4c0] sm:$0xff]  ;;  %v6974_v39 = vld [vmem:[%s15163_s0 + $0x1c8] sm:$0xf]  ;;  %v6976_v42 = vld [vmem:[%s15163_s0 + $0x22c] sm:$0xf0] }
  0xe2   :  { %2547 = vmatmul.bf16.vlgmr.msrb.gmra.mxu1 %v6771_v35  ;;  %v9245_v35 = vld [vmem:[%s15163_s0 + $0x1c4] sm:$0xf] }
  0xe3   :  { %2575 = vmatmul.bf16.vlgmr.msrb.gmra.mxu2 %v6775_v40  ;;  %v9258_v40 = vld [vmem:[%s15163_s0 + $0x228] sm:$0xf0]  ;;  %v6971_v46 = vor.u32 %v9245_v35, %v6968_v37  ;;  %v9125_v38 = vld [vmem:[%s15161_s1 + $0x440] sm:$0xff] }
  0xe4   :  { %2603 = vmatmul.bf16.vlgmr.msrb.gmra.mxu3 %v6779_v41  ;;  %v9246_v41 = vld [vmem:[%s15163_s0 + $0x1cc] sm:$0xf]  ;;  %2658 = vmatpush.bf16.msra.mxu1 %v9125_v38  ;;  %v6782_v37 = vld [vmem:[%s15163_s0 + $0x40] sm:$0xf] }
  0xe5   :  { %2712 = vmatpush.bf16.msra.mxu3 %v9143_v60  ;;  %2791 = vmatpush.bf16.msrb.mxu2 %v9172_v57  ;;  %v9210_v38 = vld [vmem:[%s15163_s0 + $0xa8] sm:$0xf0] }
  0xe6   :  { %v2352_v47 = vpop.f32.mrf.mxu2  ;;  %v2298_v51 = vpop.f32.mrf.mxu0 }
  0xe7   :  { %v2380_v48 = vpop.f32.mrf.mxu3  ;;  %v2353_v49 = vadd.f32 %v2352_v47, %v2325_v44  ;;  %v2326_v52 = vpop.f32.mrf.mxu1  ;;  %v2299_v53 = vadd.f32 %v2298_v51, %v10701_v62  ;;  %v9119_v62 = vld [vmem:[%s15161_s1 + $0x410] sm:$0xff]  ;;  %v6975_v51 = vor.u32 %v9258_v40, %v6974_v39  ;;  %v9209_v39 = vld [vmem:[%s15163_s0 + $0xa0] sm:$0xf0]  ;;  %v9162_v40 = vld [vmem:[%s15161_s1 + $0x568] sm:$0xff] }
  0xe8   :  { %2628 = vmatpush.bf16.msra.mxu0 %v9119_v62 }
  0xe9   :  { %v10857_v54 = vadd.f32 %v2380_v48, %v2353_v49  ;;  %v2327_v58 = vadd.f32 %v2326_v52, %v2299_v53  ;;  %v6979_v52 = vor.u32 %v9246_v41, %v6976_v42  ;;  %v9169_v41 = vld [vmem:[%s15161_s1 + $0x5a0] sm:$0xff] }
  0xea   :  { %v9153_v42 = vld [vmem:[%s15161_s1 + $0x520] sm:$0xff] }
  0xec   :  { %2629 = vmatpush.bf16.msra.mxu0 %v9118_v21 }
  0xee   :  { %v2354_v4 = vpop.f32.mrf.mxu2  ;;  %v2301_v12 = vpop.f32.mrf.mxu0 }
  0xef   :  { %v2382_v5 = vpop.f32.mrf.mxu3  ;;  %v2355_v9 = vadd.f32 %v2354_v4, %v2327_v58  ;;  %v2329_v13 = vpop.f32.mrf.mxu1  ;;  %v2302_v15 = vadd.f32 %v2301_v12, %v10716_v11  ;;  %v9142_v11 = vld [vmem:[%s15161_s1 + $0x4c8] sm:$0xff]  ;;  %v9156_v58 = vld [vmem:[%s15161_s1 + $0x538] sm:$0xff]  ;;  %v9179_v12 = vld [vmem:[%s15161_s1 + $0x5f0] sm:$0xff] }
  0xf0   :  { %2713 = vmatpush.bf16.msra.mxu3 %v9142_v11  ;;  %2630 = vmatpush.bf16.msra.mxu0 %v9117_v31  ;;  %v9164_v4 = vld [vmem:[%s15161_s1 + $0x578] sm:$0xff] }
  0xf1   :  { %v10896_v16 = vadd.f32 %v2382_v5, %v2355_v9  ;;  %v2330_v18 = vadd.f32 %v2329_v13, %v2302_v15  ;;  %2524 = vmatmul.bf16.gmra.mxu0 %v6867_v6  ;;  %v762_v6 = vunpack.c.l.b16 %v499_v0  ;;  %v9171_v9 = vld [vmem:[%s15161_s1 + $0x5b0] sm:$0xff]  ;;  %v764_v13 = vunpack.c.l.b16 %v500_v2  ;;  %2763 = vmatpush.bf16.msrb.mxu1 %v9164_v4 }
  0xf2   :  { %2552 = vmatmul.bf16.gmra.mxu1 %v6871_v8  ;;  %v763_v8 = vunpack.c.h.b16 %v499_v0  ;;  %2792 = vmatpush.bf16.msrb.mxu2 %v9171_v9  ;;  %v6882_v9 = vld [vmem:[%s15163_s0 + $0x108] sm:$0xf] }
  0xf3   :  { %2580 = vmatmul.bf16.gmra.mxu2 %v6875_v10  ;;  %v765_v10 = vunpack.c.h.b16 %v500_v2  ;;  %v862_v17 = vpack.c.b16 %v762_v6, %v762_v6 }
  0xf4   :  { %2608 = vmatmul.bf16.gmra.mxu3 %v6879_v14  ;;  %2735 = vmatpush.bf16.msrb.mxu0 %v9156_v58 }
  0xf5   :  { %2714 = vmatpush.bf16.msra.mxu3 %v9141_v34 }
  0xf6   :  { %v2357_v22 = vpop.f32.mrf.mxu2  ;;  %v2303_v25 = vpop.f32.mrf.mxu0  ;;  %2793 = vmatpush.bf16.msrb.mxu2 %v9170_v29 }
  0xf7   :  { %v2385_v23 = vpop.f32.mrf.mxu3  ;;  %v2358_v24 = vadd.f32 %v2357_v22, %v2330_v18  ;;  %v2331_v26 = vpop.f32.mrf.mxu1  ;;  %v2304_v27 = vadd.f32 %v2303_v25, %v10758_v36  ;;  %v9257_v36 = vld [vmem:[%s15163_s0 + $0x220] sm:$0xf0]  ;;  %v863_v18 = vpack.c.b16 %v763_v8, %v763_v8  ;;  %v864_v22 = vpack.c.b16 %v764_v13, %v764_v13 }
  0xf8   :  { %v6967_v45 = vor.u32 %v9257_v36, %v6966_v33 }
  0xf9   :  { %v10911_v28 = vadd.f32 %v2385_v23, %v2358_v24  ;;  %v2332_v32 = vadd.f32 %v2331_v26, %v2304_v27  ;;  %v865_v23 = vpack.c.b16 %v765_v10, %v765_v10  ;;  %v9163_v26 = vld [vmem:[%s15161_s1 + $0x570] sm:$0xff] }
  0xfa   :  { %2764 = vmatpush.bf16.msrb.mxu1 %v9163_v26  ;;  %2794 = vmatpush.bf16.msrb.mxu2 %v9169_v41  ;;  %v9167_v10 = vld [vmem:[%s15161_s1 + $0x590] sm:$0xff] }
  0xfe   :  { %v2359_v43 = vpop.f32.mrf.mxu2  ;;  %v2306_v48 = vpop.f32.mrf.mxu0  ;;  %2765 = vmatpush.bf16.msrb.mxu1 %v9162_v40 }
  0xff   :  { %v2387_v44 = vpop.f32.mrf.mxu3  ;;  %v2360_v47 = vadd.f32 %v2359_v43, %v2332_v32  ;;  %v2334_v49 = vpop.f32.mrf.mxu1  ;;  %v2307_v53 = vadd.f32 %v2306_v48, %v10776_v50  ;;  %v9180_v50 = vld [vmem:[%s15161_s1 + $0x5f8] sm:$0xff]  ;;  %v9177_v43 = vld [vmem:[%s15161_s1 + $0x5e0] sm:$0xff]  ;;  %v6792_v48 = vld [vmem:[%s15163_s0 + $0xac] sm:$0xf0] }
 0x100   :  { %2819 = vmatpush.bf16.msrb.mxu3 %v9180_v50 }
 0x101   :  { %v10953_v55 = vadd.f32 %v2387_v44, %v2360_v47  ;;  %v2335_v56 = vadd.f32 %v2334_v49, %v2307_v53  ;;  %2529 = vmatmul.bf16.gmra.mxu0 %v6967_v45  ;;  %v9197_v44 = vld [vmem:[%s15163_s0 + $0x44] sm:$0xf]  ;;  %v6784_v45 = vld [vmem:[%s15163_s0 + $0xa4] sm:$0xf0]  ;;  %v9198_v47 = vld [vmem:[%s15163_s0 + $0x4c] sm:$0xf] }
 0x102   :  { %2557 = vmatmul.bf16.gmra.mxu1 %v6971_v46  ;;  %v6790_v46 = vld [vmem:[%s15163_s0 + $0x48] sm:$0xf]  ;;  %v6787_v53 = vor.u32 %v9197_v44, %v6784_v45  ;;  %v6795_v50 = vor.u32 %v9198_v47, %v6792_v48  ;;  %v9165_v47 = vld [vmem:[%s15161_s1 + $0x580] sm:$0xff] }
 0x103   :  { %2585 = vmatmul.bf16.gmra.mxu2 %v6975_v51  ;;  %v6791_v58 = vor.u32 %v9210_v38, %v6790_v46  ;;  %v9158_v38 = vld [vmem:[%s15161_s1 + $0x548] sm:$0xff]  ;;  %v9149_v48 = vld [vmem:[%s15161_s1 + $0x500] sm:$0xff] }
 0x104   :  { %2613 = vmatmul.bf16.gmra.mxu3 %v6979_v52  ;;  %v6783_v52 = vor.u32 %v9209_v39, %v6782_v37  ;;  %v9166_v37 = vld [vmem:[%s15161_s1 + $0x588] sm:$0xff] }
 0x105   :  { %2820 = vmatpush.bf16.msrb.mxu3 %v9179_v12  ;;  %v9160_v12 = vld [vmem:[%s15161_s1 + $0x558] sm:$0xff]  ;;  %v9150_v39 = vld [vmem:[%s15161_s1 + $0x508] sm:$0xff] }
 0x106   :  { %v2362_v59 = vpop.f32.mrf.mxu2  ;;  %v2308_v61 = vpop.f32.mrf.mxu0 }
 0x107   :  { %v2390_v62 = vpop.f32.mrf.mxu3  ;;  %v2363_v60 = vadd.f32 %v2362_v59, %v2335_v56  ;;  %v2336_v63 = vpop.f32.mrf.mxu1  ;;  %v2309_v1 = vadd.f32 %v2308_v61, %v10791_v7  ;;  %v9155_v7 = vld [vmem:[%s15161_s1 + $0x530] sm:$0xff]  ;;  %v9168_v61 = vld [vmem:[%s15161_s1 + $0x598] sm:$0xff] }
 0x108   :  { %2736 = vmatpush.bf16.msrb.mxu0 %v9155_v7  ;;  %2795 = vmatpush.bf16.msrb.mxu2 %v9168_v61  ;;  %v9234_v7 = vld [vmem:[%s15163_s0 + $0x168] sm:$0xf0] }
 0x109   :  { %v10971_v3 = vadd.f32 %v2390_v62, %v2363_v60  ;;  %v2337_v5 = vadd.f32 %v2336_v63, %v2309_v1  ;;  %v9161_v62 = vld [vmem:[%s15161_s1 + $0x560] sm:$0xff]  ;;  %v9152_v63 = vld [vmem:[%s15161_s1 + $0x518] sm:$0xff] }
 0x10a   :  { %2766 = vmatpush.bf16.msrb.mxu1 %v9161_v62  ;;  %v9507_v62 = vld [vmem:[%s15161_s1 + $0x78] sm:$0xff] }
 0x10c   :  { %2737 = vmatpush.bf16.msrb.mxu0 %v9154_v30  ;;  %2796 = vmatpush.bf16.msrb.mxu2 %v9167_v10  ;;  %v9510_v10 = vld [vmem:[%s15161_s1 + $0x70] sm:$0xff] }
 0x10e   :  { %v2364_v14 = vpop.f32.mrf.mxu2  ;;  %v2311_v21 = vpop.f32.mrf.mxu0  ;;  %2767 = vmatpush.bf16.msrb.mxu1 %v9160_v12 }
 0x10f   :  { %v2392_v15 = vpop.f32.mrf.mxu3  ;;  %v2365_v20 = vadd.f32 %v2364_v14, %v2337_v5  ;;  %v2339_v11 = vpop.f32.mrf.mxu1  ;;  %v2312_v24 = vadd.f32 %v2311_v21, %v10805_v19  ;;  %v9178_v19 = vld [vmem:[%s15161_s1 + $0x5e8] sm:$0xff]  ;;  %v9175_v14 = vld [vmem:[%s15161_s1 + $0x5d0] sm:$0xff] }
 0x110   :  { %2821 = vmatpush.bf16.msrb.mxu3 %v9178_v19  ;;  %2738 = vmatpush.bf16.msrb.mxu0 %v9153_v42  ;;  %v9223_v21 = vld [vmem:[%s15163_s0 + $0x114] sm:$0xf] }
 0x111   :  { %v10986_v25 = vadd.f32 %v2392_v15, %v2365_v20  ;;  %v2340_v27 = vadd.f32 %v2339_v11, %v2312_v24  ;;  %2534 = vmatmul.bf16.gmra.mxu0 %v862_v17  ;;  %v9222_v15 = vld [vmem:[%s15163_s0 + $0x10c] sm:$0xf]  ;;  %v6884_v17 = vld [vmem:[%s15163_s0 + $0x16c] sm:$0xf0]  ;;  %v9235_v20 = vld [vmem:[%s15163_s0 + $0x170] sm:$0xf0]  ;;  %v6883_v24 = vor.u32 %v9234_v7, %v6882_v9  ;;  %2797 = vmatpush.bf16.msrb.mxu2 %v9166_v37 }
 0x112   :  { %2562 = vmatmul.bf16.gmra.mxu1 %v863_v18  ;;  %v6890_v18 = vld [vmem:[%s15163_s0 + $0x110] sm:$0xf]  ;;  %v6892_v11 = vld [vmem:[%s15163_s0 + $0x174] sm:$0xf0]  ;;  %v6887_v26 = vor.u32 %v9222_v15, %v6884_v17 }
 0x113   :  { %2590 = vmatmul.bf16.gmra.mxu2 %v864_v22  ;;  %v6891_v19 = vor.u32 %v9235_v20, %v6890_v18  ;;  %v9512_v15 = vld [vmem:[%s15161_s1 + $0x30] sm:$0xff]  ;;  %v9513_v20 = vld [vmem:[%s15161_s1 + $0x68] sm:$0xff] }
 0x114   :  { %2618 = vmatmul.bf16.gmra.mxu3 %v865_v23  ;;  %2739 = vmatpush.bf16.msrb.mxu0 %v9152_v63 }
 0x115   :  { %2822 = vmatpush.bf16.msrb.mxu3 %v9177_v43  ;;  %2798 = vmatpush.bf16.msrb.mxu2 %v9165_v47 }
 0x116   :  { %v2367_v31 = vpop.f32.mrf.mxu2  ;;  %v2313_v36 = vpop.f32.mrf.mxu0 }
 0x117   :  { %v2395_v32 = vpop.f32.mrf.mxu3  ;;  %v2368_v33 = vadd.f32 %v2367_v31, %v2340_v27  ;;  %v2341_v34 = vpop.f32.mrf.mxu1  ;;  %v6895_v31 = vor.u32 %v9223_v21, %v6892_v11  ;;  %v9159_v36 = vld [vmem:[%s15161_s1 + $0x550] sm:$0xff] }
 0x118   :  { %2768 = vmatpush.bf16.msrb.mxu1 %v9159_v36  ;;  %v9516_v36 = vld [vmem:[%s15161_s1 + $0x60] sm:$0xff] }
 0x119   :  { %v11000_v35 = vadd.f32 %v2395_v32, %v2368_v33 }
 0x11c   :  { %2769 = vmatpush.bf16.msrb.mxu1 %v9158_v38 }
 0x11e   :  { %v2369_v49 = vpop.f32.mrf.mxu2  ;;  %v2408_v56 = vpop.f32.mrf.mxu0 }
 0x11f   :  { %v2397_v51 = vpop.f32.mrf.mxu3  ;;  %v2436_v57 = vpop.f32.mrf.mxu1  ;;  %v2409_v59 = vadd.f32 %v2408_v56, %v10857_v54  ;;  %v9176_v54 = vld [vmem:[%s15161_s1 + $0x5d8] sm:$0xff] }
 0x120   :  { %2823 = vmatpush.bf16.msrb.mxu3 %v9176_v54  ;;  %v6982_v51 = vld [vmem:[%s15163_s0 + $0x1d0] sm:$0xf]  ;;  %v6984_v56 = vld [vmem:[%s15163_s0 + $0x234] sm:$0xf0] }
 0x121   :  { %v2437_v60 = vadd.f32 %v2436_v57, %v2409_v59  ;;  %2631 = vmatmul.bf16.vlgmr.msra.gmra.mxu0 %v6783_v52  ;;  %v9173_v52 = vld [vmem:[%s15161_s1 + $0x5c0] sm:$0xff]  ;;  %v6990_v57 = vld [vmem:[%s15163_s0 + $0x1d8] sm:$0xf] }
 0x122   :  { %2659 = vmatmul.bf16.vlgmr.msra.gmra.mxu1 %v6787_v53  ;;  %v9247_v53 = vld [vmem:[%s15163_s0 + $0x1d4] sm:$0xf]  ;;  %v6992_v59 = vld [vmem:[%s15163_s0 + $0x23c] sm:$0xf0] }
 0x123   :  { %2687 = vmatmul.bf16.vlgmr.msra.gmra.mxu2 %v6791_v58  ;;  %v9260_v58 = vld [vmem:[%s15163_s0 + $0x238] sm:$0xf0] }
 0x124   :  { %2715 = vmatmul.bf16.vlgmr.msra.gmra.mxu3 %v6795_v50  ;;  %v9248_v50 = vld [vmem:[%s15163_s0 + $0x1dc] sm:$0xf]  ;;  %3468 = vmatpush.bf16.msra.mxu2 %v9507_v62 }
 0x125   :  { %2824 = vmatpush.bf16.msrb.mxu3 %v9175_v14  ;;  %v6995_v9 = vor.u32 %v9248_v50, %v6992_v59  ;;  %v9511_v14 = vld [vmem:[%s15161_s1 + $0xb0] sm:$0xff] }
 0x126   :  { %v2464_v0 = vpop.f32.mrf.mxu2  ;;  %v2410_v4 = vpop.f32.mrf.mxu0  ;;  %v9524_v50 = vld [vmem:[%s15161_s1 + $0x10] sm:$0xff] }
 0x127   :  { %v2492_v1 = vpop.f32.mrf.mxu3  ;;  %v2465_v2 = vadd.f32 %v2464_v0, %v2437_v60  ;;  %v2438_v5 = vpop.f32.mrf.mxu1  ;;  %v2411_v6 = vadd.f32 %v2410_v4, %v10896_v16  ;;  %v9151_v16 = vld [vmem:[%s15161_s1 + $0x510] sm:$0xff]  ;;  %v9508_v60 = vld [vmem:[%s15161_s1 + $0xb8] sm:$0xff]  ;;  %v6987_v0 = vor.u32 %v9247_v53, %v6984_v56 }
 0x128   :  { %2740 = vmatpush.bf16.msrb.mxu0 %v9151_v16  ;;  %3469 = vmatpush.bf16.msra.mxu2 %v9510_v10  ;;  %v9521_v53 = vld [vmem:[%s15161_s1 + $0x18] sm:$0xff] }
 0x129   :  { %v11052_v8 = vadd.f32 %v2492_v1, %v2465_v2  ;;  %v2439_v13 = vadd.f32 %v2438_v5, %v2411_v6  ;;  %v9157_v1 = vld [vmem:[%s15161_s1 + $0x540] sm:$0xff]  ;;  %v6991_v6 = vor.u32 %v9260_v58, %v6990_v57  ;;  %v9522_v57 = vld [vmem:[%s15161_s1 + $0x50] sm:$0xff]  ;;  %v9212_v10 = vld [vmem:[%s15163_s0 + $0xb8] sm:$0xf0] }
 0x12a   :  { %2770 = vmatpush.bf16.msrb.mxu1 %v9157_v1  ;;  %v9523_v58 = vld [vmem:[%s15161_s1 + $0x90] sm:$0xff] }
 0x12c   :  { %2741 = vmatpush.bf16.msrb.mxu0 %v9150_v39  ;;  %3470 = vmatpush.bf16.msra.mxu2 %v9513_v20  ;;  %v9517_v39 = vld [vmem:[%s15161_s1 + $0xa0] sm:$0xff] }
 0x12e   :  { %v2466_v22 = vpop.f32.mrf.mxu2  ;;  %v2413_v29 = vpop.f32.mrf.mxu0 }
 0x12f   :  { %v2494_v23 = vpop.f32.mrf.mxu3  ;;  %v2467_v27 = vadd.f32 %v2466_v22, %v2439_v13  ;;  %v2441_v30 = vpop.f32.mrf.mxu1  ;;  %v2414_v32 = vadd.f32 %v2413_v29, %v10911_v28  ;;  %v9174_v28 = vld [vmem:[%s15161_s1 + $0x5c8] sm:$0xff]  ;;  %v9509_v13 = vld [vmem:[%s15161_s1 + $0x38] sm:$0xff] }
 0x130   :  { %2825 = vmatpush.bf16.msrb.mxu3 %v9174_v28  ;;  %2742 = vmatpush.bf16.msrb.mxu0 %v9149_v48  ;;  %v9518_v28 = vld [vmem:[%s15161_s1 + $0x20] sm:$0xff] }
 0x131   :  { %v11091_v33 = vadd.f32 %v2494_v23, %v2467_v27  ;;  %v2442_v34 = vadd.f32 %v2441_v30, %v2414_v32  ;;  %2636 = vmatmul.bf16.gmra.mxu0 %v6883_v24  ;;  %3440 = vmatpush.bf16.msra.mxu1 %v9509_v13  ;;  %v501_v23 = vld [vmem:[%s15163_s0 + $0x298] sm:$0x11]  ;;  %v9514_v27 = vld [vmem:[%s15161_s1 + $0xa8] sm:$0xff] }
 0x132   :  { %2664 = vmatmul.bf16.gmra.mxu1 %v6887_v26  ;;  %v502_v26 = vld [vmem:[%s15163_s0 + $0x2a0] sm:$0x11]  ;;  %v9515_v30 = vld [vmem:[%s15161_s1 + $0x28] sm:$0xff]  ;;  %v767_v32 = vunpack.c.h.b16 %v501_v23  ;;  %3471 = vmatpush.bf16.msra.mxu2 %v9516_v36  ;;  %v6806_v13 = vld [vmem:[%s15163_s0 + $0x58] sm:$0xf] }
 0x133   :  { %2692 = vmatmul.bf16.gmra.mxu2 %v6891_v19  ;;  %v769_v37 = vunpack.c.h.b16 %v502_v26 }
 0x134   :  { %2720 = vmatmul.bf16.gmra.mxu3 %v6895_v31  ;;  %v766_v31 = vunpack.c.l.b16 %v501_v23 }
 0x135   :  { %2826 = vmatpush.bf16.msrb.mxu3 %v9173_v52  ;;  %3441 = vmatpush.bf16.msra.mxu1 %v9512_v15  ;;  %v9529_v15 = vld [vmem:[%s15161_s1 + $0x80] sm:$0xff] }
 0x136   :  { %v2469_v40 = vpop.f32.mrf.mxu2  ;;  %v2415_v43 = vpop.f32.mrf.mxu0 }
 0x137   :  { %v2497_v41 = vpop.f32.mrf.mxu3  ;;  %v2470_v42 = vadd.f32 %v2469_v40, %v2442_v34  ;;  %v2443_v44 = vpop.f32.mrf.mxu1  ;;  %v2416_v45 = vadd.f32 %v2415_v43, %v10953_v55  ;;  %v9259_v55 = vld [vmem:[%s15163_s0 + $0x230] sm:$0xf0]  ;;  %v768_v34 = vunpack.c.l.b16 %v502_v26  ;;  %v867_v43 = vpack.c.b16 %v767_v32, %v767_v32  ;;  %v9532_v32 = vld [vmem:[%s15161_s1 + $0x1b8] sm:$0xff] }
 0x138   :  { %v6983_v54 = vor.u32 %v9259_v55, %v6982_v51  ;;  %v9520_v55 = vld [vmem:[%s15161_s1 + $0x98] sm:$0xff] }
 0x139   :  { %v11106_v46 = vadd.f32 %v2497_v41, %v2470_v42  ;;  %v2444_v49 = vadd.f32 %v2443_v44, %v2416_v45  ;;  %3496 = vmatpush.bf16.msra.mxu3 %v9508_v60  ;;  %3442 = vmatpush.bf16.msra.mxu1 %v9515_v30  ;;  %v866_v42 = vpack.c.b16 %v766_v31, %v766_v31  ;;  %v9519_v44 = vld [vmem:[%s15161_s1 + $0x58] sm:$0xff] }
 0x13a   :  { %3472 = vmatpush.bf16.msra.mxu2 %v9519_v44  ;;  %v868_v48 = vpack.c.b16 %v768_v34, %v768_v34  ;;  %v9531_v31 = vld [vmem:[%s15161_s1 + $0x178] sm:$0xff] }
 0x13d   :  { %3497 = vmatpush.bf16.msra.mxu3 %v9511_v14  ;;  %3443 = vmatpush.bf16.msra.mxu1 %v9518_v28  ;;  %v9528_v14 = vld [vmem:[%s15161_s1 + $0x40] sm:$0xff] }
 0x13e   :  { %v2471_v61 = vpop.f32.mrf.mxu2  ;;  %v2418_v4 = vpop.f32.mrf.mxu0  ;;  %3473 = vmatpush.bf16.msra.mxu2 %v9522_v57  ;;  %v9539_v57 = vld [vmem:[%s15161_s1 + $0x128] sm:$0xff] }
 0x13f   :  { %v2499_v63 = vpop.f32.mrf.mxu3  ;;  %v2472_v2 = vadd.f32 %v2471_v61, %v2444_v49  ;;  %v2446_v5 = vpop.f32.mrf.mxu1  ;;  %v2419_v7 = vadd.f32 %v2418_v4, %v10971_v3  ;;  %v9188_v3 = vld [vmem:[%s15161_s1 + $0x638] sm:$0xff]  ;;  %v869_v49 = vpack.c.b16 %v769_v37, %v769_v37  ;;  %v6798_v4 = vld [vmem:[%s15163_s0 + $0x50] sm:$0xf] }
 0x140   :  { %2847 = vmatpush.bf16.msra.mxu0 %v9188_v3  ;;  %v6808_v3 = vld [vmem:[%s15163_s0 + $0xbc] sm:$0xf0] }
 0x141   :  { %v11154_v12 = vadd.f32 %v2499_v63, %v2472_v2  ;;  %v2447_v16 = vadd.f32 %v2446_v5, %v2419_v7  ;;  %2641 = vmatmul.bf16.gmra.mxu0 %v6983_v54  ;;  %3498 = vmatpush.bf16.msra.mxu3 %v9514_v27  ;;  %v9525_v54 = vld [vmem:[%s15161_s1 + $0x48] sm:$0xff]  ;;  %v9211_v5 = vld [vmem:[%s15163_s0 + $0xb0] sm:$0xf0]  ;;  %v6800_v7 = vld [vmem:[%s15163_s0 + $0xb4] sm:$0xf0] }
 0x142   :  { %2669 = vmatmul.bf16.gmra.mxu1 %v6987_v0  ;;  %3474 = vmatpush.bf16.msra.mxu2 %v9525_v54  ;;  %v9526_v0 = vld [vmem:[%s15161_s1 + $0x88] sm:$0xff] }
 0x143   :  { %2697 = vmatmul.bf16.gmra.mxu2 %v6991_v6  ;;  %3444 = vmatpush.bf16.msra.mxu1 %v9521_v53  ;;  %v9527_v2 = vld [vmem:[%s15161_s1 + $0x8] sm:$0xff]  ;;  %v9185_v6 = vld [vmem:[%s15161_s1 + $0x620] sm:$0xff] }
 0x144   :  { %2725 = vmatmul.bf16.gmra.mxu3 %v6995_v9  ;;  %v9199_v9 = vld [vmem:[%s15163_s0 + $0x54] sm:$0xf]  ;;  %v6908_v53 = vld [vmem:[%s15163_s0 + $0x184] sm:$0xf0] }
 0x145   :  { %3499 = vmatpush.bf16.msra.mxu3 %v9517_v39 }
 0x146   :  { %v2474_v17 = vpop.f32.mrf.mxu2  ;;  %v2420_v11 = vpop.f32.mrf.mxu0  ;;  %3475 = vmatpush.bf16.msra.mxu2 %v9528_v14 }
 0x147   :  { %v2502_v18 = vpop.f32.mrf.mxu3  ;;  %v2475_v21 = vadd.f32 %v2474_v17, %v2447_v16  ;;  %v2448_v22 = vpop.f32.mrf.mxu1  ;;  %v2421_v24 = vadd.f32 %v2420_v11, %v10986_v25  ;;  %v9187_v25 = vld [vmem:[%s15161_s1 + $0x630] sm:$0xff]  ;;  %3445 = vmatpush.bf16.msra.mxu1 %v9524_v50  ;;  %v9200_v16 = vld [vmem:[%s15163_s0 + $0x5c] sm:$0xf]  ;;  %v9530_v17 = vld [vmem:[%s15161_s1] sm:$0xff]  ;;  %v6803_v11 = vor.u32 %v9199_v9, %v6800_v7 }
 0x148   :  { %2848 = vmatpush.bf16.msra.mxu0 %v9187_v25  ;;  %v6811_v26 = vor.u32 %v9200_v16, %v6808_v3  ;;  %v9542_v7 = vld [vmem:[%s15161_s1 + $0x120] sm:$0xff] }
 0x149   :  { %v11184_v29 = vadd.f32 %v2502_v18, %v2475_v21  ;;  %v2449_v19 = vadd.f32 %v2448_v22, %v2421_v24  ;;  %3500 = vmatpush.bf16.msra.mxu3 %v9520_v55  ;;  %v6799_v21 = vor.u32 %v9211_v5, %v6798_v4  ;;  %v6807_v24 = vor.u32 %v9212_v10, %v6806_v13  ;;  %v9225_v55 = vld [vmem:[%s15163_s0 + $0x124] sm:$0xf]  ;;  %v9543_v13 = vld [vmem:[%s15161_s1 + $0x158] sm:$0xff] }
 0x14a   :  { %v9540_v4 = vld [vmem:[%s15161_s1 + $0x160] sm:$0xff]  ;;  %v9544_v10 = vld [vmem:[%s15161_s1 + $0x198] sm:$0xff] }
 0x14b   :  { %3446 = vmatpush.bf16.msra.mxu1 %v9527_v2 }
 0x14d   :  { %3501 = vmatpush.bf16.msra.mxu3 %v9523_v58 }
 0x14e   :  { %v2476_v40 = vpop.f32.mrf.mxu2  ;;  %v2423_v38 = vpop.f32.mrf.mxu0 }
 0x14f   :  { %v2504_v41 = vpop.f32.mrf.mxu3  ;;  %v2477_v45 = vadd.f32 %v2476_v40, %v2449_v19  ;;  %v2451_v47 = vpop.f32.mrf.mxu1  ;;  %v2424_v51 = vadd.f32 %v2423_v38, %v11000_v35  ;;  %v9186_v35 = vld [vmem:[%s15161_s1 + $0x628] sm:$0xff]  ;;  %3447 = vmatpush.bf16.msra.mxu1 %v9530_v17  ;;  %v9184_v19 = vld [vmem:[%s15161_s1 + $0x618] sm:$0xff]  ;;  %v9534_v40 = vld [vmem:[%s15161_s1 + $0x170] sm:$0xff] }
 0x150   :  { %2849 = vmatpush.bf16.msra.mxu0 %v9186_v35  ;;  %v9183_v38 = vld [vmem:[%s15161_s1 + $0x610] sm:$0xff]  ;;  %v9538_v35 = vld [vmem:[%s15161_s1 + $0x1a8] sm:$0xff] }
 0x151   :  { %v11208_v52 = vadd.f32 %v2504_v41, %v2477_v45  ;;  %v2452_v56 = vadd.f32 %v2451_v47, %v2424_v51  ;;  %2646 = vmatmul.bf16.gmra.mxu0 %v866_v42  ;;  %3502 = vmatpush.bf16.msra.mxu3 %v9526_v0  ;;  %v9535_v41 = vld [vmem:[%s15161_s1 + $0x1b0] sm:$0xff]  ;;  %v9236_v45 = vld [vmem:[%s15163_s0 + $0x178] sm:$0xf0]  ;;  %v9237_v51 = vld [vmem:[%s15163_s0 + $0x180] sm:$0xf0]  ;;  %v6911_v0 = vor.u32 %v9225_v55, %v6908_v53 }
 0x152   :  { %2674 = vmatmul.bf16.gmra.mxu1 %v867_v43  ;;  %v9536_v43 = vld [vmem:[%s15161_s1 + $0x130] sm:$0xff]  ;;  %v9224_v47 = vld [vmem:[%s15163_s0 + $0x11c] sm:$0xf]  ;;  %v9554_v55 = vld [vmem:[%s15161_s1 + $0x140] sm:$0xff] }
 0x153   :  { %2702 = vmatmul.bf16.gmra.mxu2 %v868_v48  ;;  %v6900_v48 = vld [vmem:[%s15163_s0 + $0x17c] sm:$0xf0] }
 0x154   :  { %2730 = vmatmul.bf16.gmra.mxu3 %v869_v49  ;;  %2850 = vmatpush.bf16.msra.mxu0 %v9185_v6  ;;  %v6906_v49 = vld [vmem:[%s15163_s0 + $0x120] sm:$0xf] }
 0x155   :  { %3503 = vmatpush.bf16.msra.mxu3 %v9529_v15  ;;  %v6907_v54 = vor.u32 %v9237_v51, %v6906_v49  ;;  %v9541_v6 = vld [vmem:[%s15161_s1 + $0x1a0] sm:$0xff]  ;;  %v9553_v49 = vld [vmem:[%s15161_s1 + $0x108] sm:$0xff] }
 0x156   :  { %v2479_v59 = vpop.f32.mrf.mxu2  ;;  %v2425_v61 = vpop.f32.mrf.mxu0 }
 0x157   :  { %v2507_v62 = vpop.f32.mrf.mxu3  ;;  %v2480_v60 = vadd.f32 %v2479_v59, %v2452_v56  ;;  %v2453_v63 = vpop.f32.mrf.mxu1  ;;  %v9537_v56 = vld [vmem:[%s15161_s1 + $0x168] sm:$0xff] }
 0x158   :  { %2851 = vmatpush.bf16.msra.mxu0 %v9184_v19  ;;  %v7006_v19 = vld [vmem:[%s15163_s0 + $0x1e8] sm:$0xf] }
 0x159   :  { %v11231_v1 = vadd.f32 %v2507_v62, %v2480_v60  ;;  %v6903_v62 = vor.u32 %v9224_v47, %v6900_v48  ;;  %v9552_v48 = vld [vmem:[%s15161_s1 + $0xf0] sm:$0xff] }
 0x15c   :  { %2852 = vmatpush.bf16.msra.mxu0 %v9183_v38 }
 0x15e   :  { %v2481_v18 = vpop.f32.mrf.mxu2  ;;  %v2520_v22 = vpop.f32.mrf.mxu0 }
 0x15f   :  { %v2509_v20 = vpop.f32.mrf.mxu3  ;;  %v2548_v23 = vpop.f32.mrf.mxu1  ;;  %v2521_v27 = vadd.f32 %v2520_v22, %v11052_v8  ;;  %v9533_v8 = vld [vmem:[%s15161_s1 + $0x138] sm:$0xff]  ;;  %v9181_v22 = vld [vmem:[%s15161_s1 + $0x600] sm:$0xff] }
 0x160   :  { %v9545_v20 = vld [vmem:[%s15161_s1 + $0x118] sm:$0xff] }
 0x161   :  { %v2549_v30 = vadd.f32 %v2548_v23, %v2521_v27  ;;  %2743 = vmatmul.bf16.vlgmr.msrb.gmra.mxu0 %v6799_v21  ;;  %v9546_v21 = vld [vmem:[%s15161_s1 + $0x150] sm:$0xff]  ;;  %v9249_v27 = vld [vmem:[%s15163_s0 + $0x1e4] sm:$0xf] }
 0x162   :  { %2771 = vmatmul.bf16.vlgmr.msrb.gmra.mxu1 %v6803_v11 }
 0x163   :  { %2799 = vmatmul.bf16.vlgmr.msrb.gmra.mxu2 %v6807_v24  ;;  %3552 = vmatpush.bf16.msrb.mxu1 %v9533_v8  ;;  %v6998_v24 = vld [vmem:[%s15163_s0 + $0x1e0] sm:$0xf]  ;;  %v7008_v8 = vld [vmem:[%s15163_s0 + $0x24c] sm:$0xf0] }
 0x164   :  { %2827 = vmatmul.bf16.vlgmr.msrb.gmra.mxu3 %v6811_v26  ;;  %3580 = vmatpush.bf16.msrb.mxu2 %v9531_v31  ;;  %v9261_v26 = vld [vmem:[%s15163_s0 + $0x240] sm:$0xf0]  ;;  %v9262_v31 = vld [vmem:[%s15163_s0 + $0x248] sm:$0xf0] }
 0x165   :  { %3608 = vmatpush.bf16.msrb.mxu3 %v9532_v32  ;;  %v9250_v32 = vld [vmem:[%s15163_s0 + $0x1ec] sm:$0xf] }
 0x166   :  { %v2576_v25 = vpop.f32.mrf.mxu2  ;;  %v2522_v37 = vpop.f32.mrf.mxu0  ;;  %v7011_v38 = vor.u32 %v9250_v32, %v7008_v8  ;;  %v6814_v32 = vld [vmem:[%s15163_s0 + $0x60] sm:$0xf]  ;;  %v9213_v8 = vld [vmem:[%s15163_s0 + $0xc0] sm:$0xf0] }
 0x167   :  { %v2604_v36 = vpop.f32.mrf.mxu3  ;;  %v2577_v34 = vadd.f32 %v2576_v25, %v2549_v30  ;;  %v2550_v39 = vpop.f32.mrf.mxu1  ;;  %v2523_v28 = vadd.f32 %v2522_v37, %v11091_v33  ;;  %3553 = vmatpush.bf16.msrb.mxu1 %v9536_v43  ;;  %v6898_v33 = vld [vmem:[%s15163_s0 + $0x118] sm:$0xf]  ;;  %v7000_v30 = vld [vmem:[%s15163_s0 + $0x244] sm:$0xf0] }
 0x168   :  { %3581 = vmatpush.bf16.msrb.mxu2 %v9534_v40  ;;  %v6899_v59 = vor.u32 %v9236_v45, %v6898_v33  ;;  %v9548_v25 = vld [vmem:[%s15161_s1 + $0xf8] sm:$0xff]  ;;  %v9551_v37 = vld [vmem:[%s15161_s1 + $0x188] sm:$0xff]  ;;  %v6999_v40 = vor.u32 %v9261_v26, %v6998_v24  ;;  %v7007_v45 = vor.u32 %v9262_v31, %v7006_v19  ;;  %v9562_v19 = vld [vmem:[%s15161_s1 + $0xc0] sm:$0xff] }
 0x169   :  { %3609 = vmatpush.bf16.msrb.mxu3 %v9535_v41  ;;  %v11292_v42 = vadd.f32 %v2604_v36, %v2577_v34  ;;  %v2551_v44 = vadd.f32 %v2550_v39, %v2523_v28  ;;  %v9549_v36 = vld [vmem:[%s15161_s1 + $0x110] sm:$0xff]  ;;  %v9550_v34 = vld [vmem:[%s15161_s1 + $0x148] sm:$0xff]  ;;  %v7003_v41 = vor.u32 %v9249_v27, %v7000_v30 }
 0x16b   :  { %3554 = vmatpush.bf16.msrb.mxu1 %v9539_v57 }
 0x16c   :  { %3582 = vmatpush.bf16.msrb.mxu2 %v9537_v56  ;;  %v9556_v56 = vld [vmem:[%s15161_s1 + $0xe8] sm:$0xff] }
 0x16d   :  { %3610 = vmatpush.bf16.msrb.mxu3 %v9538_v35  ;;  %v9557_v35 = vld [vmem:[%s15161_s1 + $0x100] sm:$0xff] }
 0x16e   :  { %v2578_v58 = vpop.f32.mrf.mxu2  ;;  %v2525_v61 = vpop.f32.mrf.mxu0 }
 0x16f   :  { %v2606_v50 = vpop.f32.mrf.mxu3  ;;  %v2579_v60 = vadd.f32 %v2578_v58, %v2551_v44  ;;  %v2553_v63 = vpop.f32.mrf.mxu1  ;;  %v2526_v2 = vadd.f32 %v2525_v61, %v11106_v46  ;;  %v9182_v46 = vld [vmem:[%s15161_s1 + $0x608] sm:$0xff]  ;;  %3555 = vmatpush.bf16.msrb.mxu1 %v9542_v7 }
 0x170   :  { %3583 = vmatpush.bf16.msrb.mxu2 %v9540_v4  ;;  %2853 = vmatpush.bf16.msra.mxu0 %v9182_v46 }
 0x171   :  { %v11337_v5 = vadd.f32 %v2606_v50, %v2579_v60  ;;  %3611 = vmatpush.bf16.msrb.mxu3 %v9541_v6  ;;  %v2554_v9 = vadd.f32 %v2553_v63, %v2526_v2  ;;  %2748 = vmatmul.bf16.gmra.mxu0 %v6899_v59  ;;  %v503_v60 = vld [vmem:[%s15163_s0 + $0x2a8] sm:$0x11]  ;;  %v504_v63 = vld [vmem:[%s15163_s0 + $0x2b0] sm:$0x11] }
 0x172   :  { %2776 = vmatmul.bf16.gmra.mxu1 %v6903_v62  ;;  %v770_v4 = vunpack.c.l.b16 %v503_v60  ;;  %v771_v6 = vunpack.c.h.b16 %v503_v60  ;;  %v773_v46 = vunpack.c.h.b16 %v504_v63  ;;  %v9568_v60 = vld [vmem:[%s15161_s1 + $0x1f0] sm:$0xff] }
 0x173   :  { %2804 = vmatmul.bf16.gmra.mxu2 %v6907_v54  ;;  %3556 = vmatpush.bf16.msrb.mxu1 %v9545_v20  ;;  %v9558_v54 = vld [vmem:[%s15161_s1 + $0xe0] sm:$0xff] }
 0x174   :  { %2832 = vmatmul.bf16.gmra.mxu3 %v6911_v0  ;;  %3584 = vmatpush.bf16.msrb.mxu2 %v9543_v13 }
 0x175   :  { %3612 = vmatpush.bf16.msrb.mxu3 %v9544_v10  ;;  %2854 = vmatpush.bf16.msra.mxu0 %v9181_v22  ;;  %v870_v10 = vpack.c.b16 %v770_v4, %v770_v4  ;;  %v9238_v4 = vld [vmem:[%s15163_s0 + $0x188] sm:$0xf0] }
 0x176   :  { %v2581_v16 = vpop.f32.mrf.mxu2  ;;  %v2527_v15 = vpop.f32.mrf.mxu0 }
 0x177   :  { %v2609_v3 = vpop.f32.mrf.mxu3  ;;  %v2582_v14 = vadd.f32 %v2581_v16, %v2554_v9  ;;  %v2555_v17 = vpop.f32.mrf.mxu1  ;;  %v2528_v18 = vadd.f32 %v2527_v15, %v11154_v12  ;;  %v9547_v12 = vld [vmem:[%s15161_s1 + $0x190] sm:$0xff]  ;;  %3557 = vmatpush.bf16.msrb.mxu1 %v9549_v36  ;;  %v772_v9 = vunpack.c.l.b16 %v504_v63  ;;  %v871_v16 = vpack.c.b16 %v771_v6, %v771_v6  ;;  %v9276_v36 = vld [vmem:[%s15163_s0 + $0x31c] sm:$0xf0]  ;;  %v8009_v6 = vld [vmem:[%s15163_s0 + $0x384] sm:$0xf] }
 0x178   :  { %3585 = vmatpush.bf16.msrb.mxu2 %v9546_v21  ;;  %v9560_v21 = vld [vmem:[%s15161_s1 + $0xd0] sm:$0xff] }
 0x179   :  { %v11361_v11 = vadd.f32 %v2609_v3, %v2582_v14  ;;  %3613 = vmatpush.bf16.msrb.mxu3 %v9547_v12  ;;  %v2556_v23 = vadd.f32 %v2555_v17, %v2528_v18  ;;  %3524 = vmatpush.bf16.msrb.mxu0 %v9548_v25  ;;  %v872_v17 = vpack.c.b16 %v772_v9, %v772_v9  ;;  %v7909_v25 = vld [vmem:[%s15163_s0 + $0x2bc] sm:$0xf]  ;;  %v9569_v63 = vld [vmem:[%s15161_s1 + $0x2b0] sm:$0xff]  ;;  %v9301_v9 = vld [vmem:[%s15163_s0 + $0x3e4] sm:$0xf0] }
 0x17a   :  { %v873_v18 = vpack.c.b16 %v773_v46, %v773_v46  ;;  %v9289_v46 = vld [vmem:[%s15163_s0 + $0x388] sm:$0xf] }
 0x17b   :  { %3558 = vmatpush.bf16.msrb.mxu1 %v9553_v49 }
 0x17c   :  { %3586 = vmatpush.bf16.msrb.mxu2 %v9550_v34  ;;  %v9264_v34 = vld [vmem:[%s15163_s0 + $0x2c0] sm:$0xf] }
 0x17d   :  { %3614 = vmatpush.bf16.msrb.mxu3 %v9551_v37  ;;  %3525 = vmatpush.bf16.msrb.mxu0 %v9552_v48  ;;  %v7911_v37 = vld [vmem:[%s15163_s0 + $0x320] sm:$0xf0] }
 0x17e   :  { %v2583_v39 = vpop.f32.mrf.mxu2  ;;  %v2530_v44 = vpop.f32.mrf.mxu0 }
 0x17f   :  { %v2611_v28 = vpop.f32.mrf.mxu3  ;;  %v2584_v43 = vadd.f32 %v2583_v39, %v2556_v23  ;;  %v2558_v33 = vpop.f32.mrf.mxu1  ;;  %v2531_v47 = vadd.f32 %v2530_v44, %v11184_v29  ;;  %v9555_v29 = vld [vmem:[%s15161_s1 + $0x180] sm:$0xff]  ;;  %3559 = vmatpush.bf16.msrb.mxu1 %v9557_v35  ;;  %v9561_v23 = vld [vmem:[%s15161_s1 + $0xc8] sm:$0xff]  ;;  %v7910_v44 = vor.u32 %v9276_v36, %v7909_v25  ;;  %v9579_v25 = vld [vmem:[%s15161_s1 + $0x258] sm:$0xff] }
 0x180   :  { %3587 = vmatpush.bf16.msrb.mxu2 %v9554_v55  ;;  %v7917_v39 = vld [vmem:[%s15163_s0 + $0x2c4] sm:$0xf]  ;;  %v9563_v55 = vld [vmem:[%s15161_s1 + $0x278] sm:$0xff] }
 0x181   :  { %v11412_v51 = vadd.f32 %v2611_v28, %v2584_v43  ;;  %3615 = vmatpush.bf16.msrb.mxu3 %v9555_v29  ;;  %v2559_v53 = vadd.f32 %v2558_v33, %v2531_v47  ;;  %2753 = vmatmul.bf16.gmra.mxu0 %v6999_v40  ;;  %v9277_v28 = vld [vmem:[%s15163_s0 + $0x324] sm:$0xf0]  ;;  %v6815_v43 = vor.u32 %v9213_v8, %v6814_v32  ;;  %v9564_v29 = vld [vmem:[%s15161_s1 + $0x1f8] sm:$0xff]  ;;  %v9577_v32 = vld [vmem:[%s15161_s1 + $0x2a0] sm:$0xff] }
 0x182   :  { %2781 = vmatmul.bf16.gmra.mxu1 %v7003_v41  ;;  %3526 = vmatpush.bf16.msrb.mxu0 %v9556_v56  ;;  %v7918_v47 = vor.u32 %v9277_v28, %v7917_v39  ;;  %v9580_v36 = vld [vmem:[%s15161_s1 + $0x1d8] sm:$0xff] }
 0x183   :  { %2809 = vmatmul.bf16.gmra.mxu2 %v7007_v45 }
 0x184   :  { %2837 = vmatmul.bf16.gmra.mxu3 %v7011_v38  ;;  %v7914_v38 = vor.u32 %v9264_v34, %v7911_v37  ;;  %v9581_v34 = vld [vmem:[%s15161_s1 + $0x298] sm:$0xff] }
 0x186   :  { %v2586_v57 = vpop.f32.mrf.mxu2  ;;  %v2532_v59 = vpop.f32.mrf.mxu0  ;;  %3527 = vmatpush.bf16.msrb.mxu0 %v9558_v54 }
 0x187   :  { %v2614_v58 = vpop.f32.mrf.mxu3  ;;  %v2587_v50 = vadd.f32 %v2586_v57, %v2559_v53  ;;  %v2560_v62 = vpop.f32.mrf.mxu1  ;;  %v2533_v61 = vadd.f32 %v2532_v59, %v11208_v52  ;;  %v9559_v52 = vld [vmem:[%s15161_s1 + $0xd8] sm:$0xff] }
 0x188   :  { %v9565_v53 = vld [vmem:[%s15161_s1 + $0x2b8] sm:$0xff] }
 0x189   :  { %v11436_v0 = vadd.f32 %v2614_v58, %v2587_v50  ;;  %v2561_v2 = vadd.f32 %v2560_v62, %v2533_v61  ;;  %v9567_v62 = vld [vmem:[%s15161_s1 + $0x270] sm:$0xff] }
 0x18a   :  { %3528 = vmatpush.bf16.msrb.mxu0 %v9559_v52  ;;  %v8011_v52 = vld [vmem:[%s15163_s0 + $0x3e8] sm:$0xf0] }
 0x18e   :  { %v2588_v7 = vpop.f32.mrf.mxu2  ;;  %v2535_v14 = vpop.f32.mrf.mxu0  ;;  %3529 = vmatpush.bf16.msrb.mxu0 %v9560_v21 }
 0x18f   :  { %v2616_v13 = vpop.f32.mrf.mxu3  ;;  %v2589_v3 = vadd.f32 %v2588_v7, %v2561_v2  ;;  %v2563_v15 = vpop.f32.mrf.mxu1  ;;  %v2536_v20 = vadd.f32 %v2535_v14, %v11231_v1  ;;  %v6914_v2 = vld [vmem:[%s15163_s0 + $0x128] sm:$0xf]  ;;  %v8017_v7 = vld [vmem:[%s15163_s0 + $0x38c] sm:$0xf] }
 0x190   :  { %v9574_v14 = vld [vmem:[%s15161_s1 + $0x228] sm:$0xff] }
 0x191   :  { %v11445_v22 = vadd.f32 %v2616_v13, %v2589_v3  ;;  %v2564_v12 = vadd.f32 %v2563_v15, %v2536_v20  ;;  %2758 = vmatmul.bf16.gmra.mxu0 %v870_v10  ;;  %v9302_v13 = vld [vmem:[%s15163_s0 + $0x3ec] sm:$0xf0]  ;;  %v9571_v10 = vld [vmem:[%s15161_s1 + $0x268] sm:$0xff]  ;;  %v8010_v20 = vor.u32 %v9301_v9, %v8009_v6 }
 0x192   :  { %2786 = vmatmul.bf16.gmra.mxu1 %v871_v16  ;;  %3530 = vmatpush.bf16.msrb.mxu0 %v9561_v23  ;;  %v9572_v16 = vld [vmem:[%s15161_s1 + $0x1e8] sm:$0xff] }
 0x193   :  { %2814 = vmatmul.bf16.gmra.mxu2 %v872_v17  ;;  %v9573_v3 = vld [vmem:[%s15161_s1 + $0x2a8] sm:$0xff] }
 0x194   :  { %2842 = vmatmul.bf16.gmra.mxu3 %v873_v18  ;;  %v6915_v18 = vor.u32 %v9238_v4, %v6914_v2 }
 0x196   :  { %v2591_v24 = vpop.f32.mrf.mxu2  ;;  %v2537_v27 = vpop.f32.mrf.mxu0  ;;  %3531 = vmatpush.bf16.msrb.mxu0 %v9562_v19 }
 0x197   :  { %v2619_v26 = vpop.f32.mrf.mxu3  ;;  %v2592_v1 = vadd.f32 %v2591_v24, %v2564_v12  ;;  %v2565_v30 = vpop.f32.mrf.mxu1  ;;  %v8014_v24 = vor.u32 %v9289_v46, %v8011_v52  ;;  %v9575_v27 = vld [vmem:[%s15161_s1 + $0x260] sm:$0xff]  ;;  %v9590_v52 = vld [vmem:[%s15161_s1 + $0x208] sm:$0xff] }
 0x198   :  { %v9576_v30 = vld [vmem:[%s15161_s1 + $0x1e0] sm:$0xff] }
 0x199   :  { %v11453_v31 = vadd.f32 %v2619_v26, %v2592_v1  ;;  %v8018_v26 = vor.u32 %v9302_v13, %v8017_v7  ;;  %v9591_v7 = vld [vmem:[%s15161_s1 + $0x240] sm:$0xff] }
 0x19e   :  { %v2593_v40 = vpop.f32.mrf.mxu2  ;;  %v2632_v33 = vpop.f32.mrf.mxu0 }
 0x19f   :  { %v2621_v41 = vpop.f32.mrf.mxu3  ;;  %v2660_v45 = vpop.f32.mrf.mxu1  ;;  %v2633_v48 = vadd.f32 %v2632_v33, %v11292_v42  ;;  %v9566_v42 = vld [vmem:[%s15161_s1 + $0x238] sm:$0xff]  ;;  %v9583_v33 = vld [vmem:[%s15161_s1 + $0x250] sm:$0xff] }
 0x1a1   :  { %v2661_v49 = vadd.f32 %v2660_v45, %v2633_v48  ;;  %2855 = vmatmul.bf16.vlgmr.msra.gmra.mxu0 %v6815_v43  ;;  %v7014_v48 = vld [vmem:[%s15163_s0 + $0x1f0] sm:$0xf] }
 0x1a2   :  { %3448 = vmatmul.bf16.vlgmr.msra.gmra.mxu1 %v7910_v44  ;;  %3636 = vmatpush.bf16.msra.mxu0 %v9564_v29  ;;  %v9582_v44 = vld [vmem:[%s15161_s1 + $0x218] sm:$0xff]  ;;  %v9326_v29 = vld [vmem:[%s15163_s0 + $0x4ac] sm:$0xf0] }
 0x1a3   :  { %3476 = vmatmul.bf16.vlgmr.msra.gmra.mxu2 %v7914_v38  ;;  %3664 = vmatpush.bf16.msra.mxu1 %v9566_v42  ;;  %v9584_v38 = vld [vmem:[%s15161_s1 + $0x1d0] sm:$0xff] }
 0x1a4   :  { %3504 = vmatmul.bf16.vlgmr.msra.gmra.mxu3 %v7918_v47  ;;  %3692 = vmatpush.bf16.msra.mxu2 %v9563_v55  ;;  %v8109_v55 = vld [vmem:[%s15163_s0 + $0x44c] sm:$0xf]  ;;  %v8111_v42 = vld [vmem:[%s15163_s0 + $0x4b0] sm:$0xf0] }
 0x1a5   :  { %3720 = vmatpush.bf16.msra.mxu3 %v9565_v53  ;;  %v9314_v53 = vld [vmem:[%s15163_s0 + $0x450] sm:$0xf] }
 0x1a6   :  { %v2688_v56 = vpop.f32.mrf.mxu2  ;;  %v2634_v58 = vpop.f32.mrf.mxu0  ;;  %3637 = vmatpush.bf16.msra.mxu0 %v9568_v60  ;;  %v8114_v6 = vor.u32 %v9314_v53, %v8111_v42  ;;  %v9278_v53 = vld [vmem:[%s15163_s0 + $0x32c] sm:$0xf0] }
 0x1a7   :  { %v2716_v35 = vpop.f32.mrf.mxu3  ;;  %v2689_v57 = vadd.f32 %v2688_v56, %v2661_v49  ;;  %v2662_v50 = vpop.f32.mrf.mxu1  ;;  %v2635_v59 = vadd.f32 %v2634_v58, %v11337_v5  ;;  %v9570_v5 = vld [vmem:[%s15161_s1 + $0x230] sm:$0xff]  ;;  %v9587_v58 = vld [vmem:[%s15161_s1 + $0x248] sm:$0xff] }
 0x1a8   :  { %3693 = vmatpush.bf16.msra.mxu2 %v9567_v62  ;;  %3665 = vmatpush.bf16.msra.mxu1 %v9570_v5  ;;  %v9263_v49 = vld [vmem:[%s15163_s0 + $0x250] sm:$0xf0]  ;;  %v8110_v5 = vor.u32 %v9326_v29, %v8109_v55  ;;  %v9265_v55 = vld [vmem:[%s15163_s0 + $0x2c8] sm:$0xf]  ;;  %v7925_v29 = vld [vmem:[%s15163_s0 + $0x2cc] sm:$0xf] }
 0x1a9   :  { %v11499_v61 = vadd.f32 %v2716_v35, %v2689_v57  ;;  %3721 = vmatpush.bf16.msra.mxu3 %v9569_v63  ;;  %v2663_v54 = vadd.f32 %v2662_v50, %v2635_v59  ;;  %v8117_v56 = vld [vmem:[%s15163_s0 + $0x454] sm:$0xf]  ;;  %v9327_v35 = vld [vmem:[%s15163_s0 + $0x4b4] sm:$0xf0]  ;;  %v9588_v50 = vld [vmem:[%s15161_s1 + $0x1c8] sm:$0xff]  ;;  %v7015_v63 = vor.u32 %v9263_v49, %v7014_v48 }
 0x1aa   :  { %3638 = vmatpush.bf16.msra.mxu0 %v9572_v16  ;;  %v9586_v57 = vld [vmem:[%s15161_s1 + $0x210] sm:$0xff]  ;;  %v9589_v59 = vld [vmem:[%s15161_s1 + $0x288] sm:$0xff]  ;;  %v8118_v9 = vor.u32 %v9327_v35, %v8117_v56 }
 0x1ab   :  { %v9266_v42 = vld [vmem:[%s15163_s0 + $0x2d0] sm:$0xf]  ;;  %v7927_v56 = vld [vmem:[%s15163_s0 + $0x330] sm:$0xf0] }
 0x1ac   :  { %3694 = vmatpush.bf16.msra.mxu2 %v9571_v10  ;;  %3666 = vmatpush.bf16.msra.mxu1 %v9574_v14  ;;  %v9592_v10 = vld [vmem:[%s15161_s1 + $0x1c0] sm:$0xff]  ;;  %v7933_v35 = vld [vmem:[%s15163_s0 + $0x2d4] sm:$0xf] }
 0x1ad   :  { %3722 = vmatpush.bf16.msra.mxu3 %v9573_v3  ;;  %v9594_v3 = vld [vmem:[%s15161_s1 + $0x200] sm:$0xff] }
 0x1ae   :  { %v2690_v15 = vpop.f32.mrf.mxu2  ;;  %v2637_v12 = vpop.f32.mrf.mxu0  ;;  %3639 = vmatpush.bf16.msra.mxu0 %v9576_v30 }
 0x1af   :  { %v2718_v17 = vpop.f32.mrf.mxu3  ;;  %v2691_v21 = vadd.f32 %v2690_v15, %v2663_v54  ;;  %v2665_v23 = vpop.f32.mrf.mxu1  ;;  %v2638_v1 = vadd.f32 %v2637_v12, %v11361_v11  ;;  %v9578_v11 = vld [vmem:[%s15161_s1 + $0x220] sm:$0xff]  ;;  %v7894_v12 = vld [vmem:[%s15163_s0 + $0x514] sm:$0x11] }
 0x1b0   :  { %3695 = vmatpush.bf16.msra.mxu2 %v9575_v27  ;;  %3667 = vmatpush.bf16.msra.mxu1 %v9578_v11  ;;  %v3215_v30 = vunpack.c.l.b16 %v7894_v12 }
 0x1b1   :  { %v11550_v19 = vadd.f32 %v2718_v17, %v2691_v21  ;;  %3723 = vmatpush.bf16.msra.mxu3 %v9577_v32  ;;  %v2666_v8 = vadd.f32 %v2665_v23, %v2638_v1  ;;  %2860 = vmatmul.bf16.gmra.mxu0 %v6915_v18  ;;  %v505_v21 = vld [vmem:[%s15163_s0 + $0x2b8] sm:$0x1]  ;;  %v3216_v32 = vunpack.c.h.b16 %v7894_v12  ;;  %v8019_v12 = vld [vmem:[%s15163_s0 + $0x3f0] sm:$0xf0] }
 0x1b2   :  { %3453 = vmatmul.bf16.gmra.mxu1 %v8010_v20  ;;  %3640 = vmatpush.bf16.msra.mxu0 %v9580_v36  ;;  %v774_v27 = vunpack.c.l.b16 %v505_v21  ;;  %v9290_v21 = vld [vmem:[%s15163_s0 + $0x390] sm:$0xf] }
 0x1b3   :  { %3481 = vmatmul.bf16.gmra.mxu2 %v8014_v24  ;;  %v11646_v24 = vld [vmem:[%s15163_s0 + $0x51c] sm:$0x11] }
 0x1b4   :  { %3509 = vmatmul.bf16.gmra.mxu3 %v8018_v26  ;;  %3696 = vmatpush.bf16.msra.mxu2 %v9579_v25  ;;  %v874_v36 = vpack.c.b16 %v774_v27, %v774_v27  ;;  %v9291_v27 = vld [vmem:[%s15163_s0 + $0x398] sm:$0xf] }
 0x1b5   :  { %3724 = vmatpush.bf16.msra.mxu3 %v9581_v34  ;;  %3668 = vmatpush.bf16.msra.mxu1 %v9582_v44  ;;  %v3315_v34 = vpack.c.b16 %v3215_v30, %v3215_v30  ;;  %v8027_v30 = vld [vmem:[%s15163_s0 + $0x3f8] sm:$0xf0] }
 0x1b6   :  { %v2693_v37 = vpop.f32.mrf.mxu2  ;;  %v2639_v40 = vpop.f32.mrf.mxu0  ;;  %3641 = vmatpush.bf16.msra.mxu0 %v9584_v38 }
 0x1b7   :  { %v2721_v39 = vpop.f32.mrf.mxu3  ;;  %v2694_v28 = vadd.f32 %v2693_v37, %v2666_v8  ;;  %v2667_v41 = vpop.f32.mrf.mxu1  ;;  %v2640_v43 = vadd.f32 %v2639_v40, %v11412_v51  ;;  %v9585_v51 = vld [vmem:[%s15161_s1 + $0x290] sm:$0xff]  ;;  %v3217_v8 = vunpack.c.l.b16 %v11646_v24 }
 0x1b8   :  { %3697 = vmatpush.bf16.msra.mxu2 %v9583_v33 }
 0x1b9   :  { %v11574_v45 = vadd.f32 %v2721_v39, %v2694_v28  ;;  %3725 = vmatpush.bf16.msra.mxu3 %v9585_v51  ;;  %v2668_v47 = vadd.f32 %v2667_v41, %v2640_v43  ;;  %3669 = vmatpush.bf16.msra.mxu1 %v9586_v57  ;;  %v3316_v28 = vpack.c.b16 %v3216_v32, %v3216_v32  ;;  %v9279_v57 = vld [vmem:[%s15163_s0 + $0x334] sm:$0xf0]  ;;  %v8033_v32 = vld [vmem:[%s15163_s0 + $0x39c] sm:$0xf] }
 0x1ba   :  { %3642 = vmatpush.bf16.msra.mxu0 %v9588_v50  ;;  %v3317_v40 = vpack.c.b16 %v3217_v8, %v3217_v8  ;;  %v9304_v8 = vld [vmem:[%s15163_s0 + $0x3fc] sm:$0xf0] }
 0x1bc   :  { %3698 = vmatpush.bf16.msra.mxu2 %v9587_v58 }
 0x1bd   :  { %3726 = vmatpush.bf16.msra.mxu3 %v9589_v59  ;;  %3670 = vmatpush.bf16.msra.mxu1 %v9590_v52 }
 0x1be   :  { %v2695_v62 = vpop.f32.mrf.mxu2  ;;  %v2642_v2 = vpop.f32.mrf.mxu0  ;;  %3643 = vmatpush.bf16.msra.mxu0 %v9592_v10 }
 0x1bf   :  { %v2723_v60 = vpop.f32.mrf.mxu3  ;;  %v2696_v54 = vadd.f32 %v2695_v62, %v2668_v47  ;;  %v2670_v4 = vpop.f32.mrf.mxu1  ;;  %v2643_v46 = vadd.f32 %v2642_v2, %v11436_v0  ;;  %v9593_v0 = vld [vmem:[%s15161_s1 + $0x280] sm:$0xff]  ;;  %v7926_v62 = vor.u32 %v9278_v53, %v7925_v29  ;;  %v9611_v53 = vld [vmem:[%s15161_s1 + $0x358] sm:$0xff] }
 0x1c0   :  { %3699 = vmatpush.bf16.msra.mxu2 %v9591_v7 }
 0x1c1   :  { %v11625_v13 = vadd.f32 %v2723_v60, %v2696_v54  ;;  %3727 = vmatpush.bf16.msra.mxu3 %v9593_v0  ;;  %v2671_v16 = vadd.f32 %v2670_v4, %v2643_v46  ;;  %2865 = vmatmul.bf16.gmra.mxu0 %v7015_v63  ;;  %v7934_v54 = vor.u32 %v9279_v57, %v7933_v35  ;;  %v9597_v46 = vld [vmem:[%s15161_s1 + $0x3b8] sm:$0xff] }
 0x1c2   :  { %3458 = vmatmul.bf16.gmra.mxu1 %v8110_v5  ;;  %v7930_v5 = vor.u32 %v9266_v42, %v7927_v56  ;;  %v9612_v42 = vld [vmem:[%s15161_s1 + $0x2d8] sm:$0xff] }
 0x1c3   :  { %3486 = vmatmul.bf16.gmra.mxu2 %v8114_v6  ;;  %3671 = vmatpush.bf16.msra.mxu1 %v9594_v3  ;;  %v9595_v6 = vld [vmem:[%s15161_s1 + $0x378] sm:$0xff] }
 0x1c4   :  { %3514 = vmatmul.bf16.gmra.mxu3 %v8118_v9  ;;  %v9596_v9 = vld [vmem:[%s15161_s1 + $0x2f8] sm:$0xff] }
 0x1c5   :  { %v9613_v56 = vld [vmem:[%s15161_s1 + $0x398] sm:$0xff] }
 0x1c6   :  { %v2698_v14 = vpop.f32.mrf.mxu2  ;;  %v2644_v18 = vpop.f32.mrf.mxu0 }
 0x1c7   :  { %v2726_v15 = vpop.f32.mrf.mxu3  ;;  %v2699_v17 = vadd.f32 %v2698_v14, %v2671_v16  ;;  %v2672_v20 = vpop.f32.mrf.mxu1  ;;  %v2645_v23 = vadd.f32 %v2644_v18, %v11445_v22  ;;  %v9599_v14 = vld [vmem:[%s15161_s1 + $0x370] sm:$0xff] }
 0x1c8   :  { %v9601_v18 = vld [vmem:[%s15161_s1 + $0x3b0] sm:$0xff] }
 0x1c9   :  { %v11648_v26 = vadd.f32 %v2726_v15, %v2699_v17  ;;  %v2673_v1 = vadd.f32 %v2672_v20, %v2645_v23  ;;  %v9600_v15 = vld [vmem:[%s15161_s1 + $0x2f0] sm:$0xff] }
 0x1ca   :  { %v8025_v23 = vld [vmem:[%s15163_s0 + $0x394] sm:$0xf] }
 0x1ce   :  { %v2700_v11 = vpop.f32.mrf.mxu2  ;;  %v2647_v39 = vpop.f32.mrf.mxu0 }
 0x1cf   :  { %v2728_v25 = vpop.f32.mrf.mxu3  ;;  %v2701_v37 = vadd.f32 %v2700_v11, %v2673_v1  ;;  %v2675_v22 = vpop.f32.mrf.mxu1  ;;  %v2648_v41 = vadd.f32 %v2647_v39, %v11453_v31  ;;  %v7919_v31 = vld [vmem:[%s15163_s0 + $0x328] sm:$0xf0]  ;;  %v9303_v1 = vld [vmem:[%s15163_s0 + $0x3f4] sm:$0xf0] }
 0x1d0   :  { %v7922_v59 = vor.u32 %v9265_v55, %v7919_v31  ;;  %v9603_v11 = vld [vmem:[%s15161_s1 + $0x368] sm:$0xff]  ;;  %v9609_v31 = vld [vmem:[%s15161_s1 + $0x3a0] sm:$0xff] }
 0x1d1   :  { %v11652_v43 = vadd.f32 %v2728_v25, %v2701_v37  ;;  %v2676_v44 = vadd.f32 %v2675_v22, %v2648_v41  ;;  %2870 = vmatmul.bf16.gmra.mxu0 %v874_v36  ;;  %v9604_v25 = vld [vmem:[%s15161_s1 + $0x2e8] sm:$0xff]  ;;  %v8022_v22 = vor.u32 %v9290_v21, %v8019_v12 }
 0x1d2   :  { %3463 = vmatmul.bf16.gmra.mxu1 %v3315_v34  ;;  %v9605_v36 = vld [vmem:[%s15161_s1 + $0x3a8] sm:$0xff] }
 0x1d3   :  { %3491 = vmatmul.bf16.gmra.mxu2 %v3316_v28  ;;  %v9606_v34 = vld [vmem:[%s15161_s1 + $0x328] sm:$0xff]  ;;  %v8026_v28 = vor.u32 %v9303_v1, %v8025_v23 }
 0x1d4   :  { %3519 = vmatmul.bf16.gmra.mxu3 %v3317_v40 }
 0x1d6   :  { %v2703_v33 = vpop.f32.mrf.mxu2  ;;  %v2649_v47 = vpop.f32.mrf.mxu0 }
 0x1d7   :  { %v2731_v38 = vpop.f32.mrf.mxu3  ;;  %v2704_v51 = vadd.f32 %v2703_v33, %v2676_v44  ;;  %v2677_v48 = vpop.f32.mrf.mxu1  ;;  %v8030_v33 = vor.u32 %v9291_v27, %v8027_v30  ;;  %v9607_v47 = vld [vmem:[%s15161_s1 + $0x360] sm:$0xff] }
 0x1d8   :  { %v9608_v48 = vld [vmem:[%s15161_s1 + $0x2e0] sm:$0xff] }
 0x1d9   :  { %v11654_v49 = vadd.f32 %v2731_v38, %v2704_v51  ;;  %v8034_v38 = vor.u32 %v9304_v8, %v8033_v32  ;;  %v9622_v32 = vld [vmem:[%s15161_s1 + $0x308] sm:$0xff]  ;;  %v9623_v8 = vld [vmem:[%s15161_s1 + $0x340] sm:$0xff] }
 0x1de   :  { %v2705_v58 = vpop.f32.mrf.mxu2  ;;  %v2744_v60 = vpop.f32.mrf.mxu0 }
 0x1df   :  { %v2733_v50 = vpop.f32.mrf.mxu3  ;;  %v2772_v63 = vpop.f32.mrf.mxu1  ;;  %v2745_v2 = vadd.f32 %v2744_v60, %v11499_v61  ;;  %v9598_v61 = vld [vmem:[%s15161_s1 + $0x338] sm:$0xff] }
 0x1e0   :  { %v9614_v60 = vld [vmem:[%s15161_s1 + $0x318] sm:$0xff] }
 0x1e1   :  { %v2773_v4 = vadd.f32 %v2772_v63, %v2745_v2  ;;  %3532 = vmatmul.bf16.vlgmr.msrb.gmra.mxu0 %v7922_v59  ;;  %v9615_v63 = vld [vmem:[%s15161_s1 + $0x350] sm:$0xff] }
 0x1e2   :  { %3560 = vmatmul.bf16.vlgmr.msrb.gmra.mxu1 %v7926_v62  ;;  %3748 = vmatpush.bf16.msrb.mxu0 %v9596_v9  ;;  %v8125_v9 = vld [vmem:[%s15163_s0 + $0x45c] sm:$0xf] }
 0x1e3   :  { %3588 = vmatmul.bf16.vlgmr.msrb.gmra.mxu2 %v7930_v5  ;;  %3776 = vmatpush.bf16.msrb.mxu1 %v9598_v61  ;;  %v9316_v61 = vld [vmem:[%s15163_s0 + $0x460] sm:$0xf] }
 0x1e4   :  { %3616 = vmatmul.bf16.vlgmr.msrb.gmra.mxu3 %v7934_v54  ;;  %3804 = vmatpush.bf16.msrb.mxu2 %v9595_v6  ;;  %v9616_v54 = vld [vmem:[%s15161_s1 + $0x2d0] sm:$0xff]  ;;  %v8119_v6 = vld [vmem:[%s15163_s0 + $0x4b8] sm:$0xf0] }
 0x1e5   :  { %3832 = vmatpush.bf16.msrb.mxu3 %v9597_v46  ;;  %v9328_v46 = vld [vmem:[%s15163_s0 + $0x4bc] sm:$0xf0] }
 0x1e6   :  { %v2800_v52 = vpop.f32.mrf.mxu2  ;;  %v2746_v0 = vpop.f32.mrf.mxu0  ;;  %3749 = vmatpush.bf16.msrb.mxu0 %v9600_v15 }
 0x1e7   :  { %v2828_v7 = vpop.f32.mrf.mxu3  ;;  %v2801_v10 = vadd.f32 %v2800_v52, %v2773_v4  ;;  %v2774_v16 = vpop.f32.mrf.mxu1  ;;  %v2747_v3 = vadd.f32 %v2746_v0, %v11550_v19  ;;  %v9602_v19 = vld [vmem:[%s15161_s1 + $0x330] sm:$0xff]  ;;  %v9315_v4 = vld [vmem:[%s15163_s0 + $0x458] sm:$0xf]  ;;  %v8127_v52 = vld [vmem:[%s15163_s0 + $0x4c0] sm:$0xf0] }
 0x1e8   :  { %3805 = vmatpush.bf16.msrb.mxu2 %v9599_v14  ;;  %3777 = vmatpush.bf16.msrb.mxu1 %v9602_v19  ;;  %v9618_v0 = vld [vmem:[%s15161_s1 + $0x310] sm:$0xff]  ;;  %v9621_v14 = vld [vmem:[%s15161_s1 + $0x388] sm:$0xff]  ;;  %v8122_v19 = vor.u32 %v9315_v4, %v8119_v6  ;;  %v8130_v1 = vor.u32 %v9316_v61, %v8127_v52  ;;  %v9267_v6 = vld [vmem:[%s15163_s0 + $0x2d8] sm:$0xf] }
 0x1e9   :  { %v11700_v17 = vadd.f32 %v2828_v7, %v2801_v10  ;;  %3833 = vmatpush.bf16.msrb.mxu3 %v9601_v18  ;;  %v2775_v20 = vadd.f32 %v2774_v16, %v2747_v3  ;;  %v8133_v7 = vld [vmem:[%s15163_s0 + $0x464] sm:$0xf]  ;;  %v9329_v10 = vld [vmem:[%s15163_s0 + $0x4c4] sm:$0xf0]  ;;  %v9268_v61 = vld [vmem:[%s15163_s0 + $0x2e0] sm:$0xf] }
 0x1ea   :  { %3750 = vmatpush.bf16.msrb.mxu0 %v9604_v25  ;;  %v9619_v16 = vld [vmem:[%s15161_s1 + $0x348] sm:$0xff]  ;;  %v8134_v27 = vor.u32 %v9329_v10, %v8133_v7  ;;  %v9624_v25 = vld [vmem:[%s15161_s1 + $0x2c0] sm:$0xff] }
 0x1eb   :  { %v9620_v3 = vld [vmem:[%s15161_s1 + $0x2c8] sm:$0xff]  ;;  %v7943_v52 = vld [vmem:[%s15163_s0 + $0x340] sm:$0xf0] }
 0x1ec   :  { %3806 = vmatpush.bf16.msrb.mxu2 %v9603_v11  ;;  %3778 = vmatpush.bf16.msrb.mxu1 %v9606_v34  ;;  %v9626_v34 = vld [vmem:[%s15161_s1 + $0x300] sm:$0xff]  ;;  %v9281_v10 = vld [vmem:[%s15163_s0 + $0x344] sm:$0xf0] }
 0x1ed   :  { %3834 = vmatpush.bf16.msrb.mxu3 %v9605_v36  ;;  %v7949_v7 = vld [vmem:[%s15163_s0 + $0x2e4] sm:$0xf] }
 0x1ee   :  { %v2802_v37 = vpop.f32.mrf.mxu2  ;;  %v2749_v41 = vpop.f32.mrf.mxu0  ;;  %3751 = vmatpush.bf16.msrb.mxu0 %v9608_v48 }
 0x1ef   :  { %v2830_v39 = vpop.f32.mrf.mxu3  ;;  %v2803_v40 = vadd.f32 %v2802_v37, %v2775_v20  ;;  %v2777_v44 = vpop.f32.mrf.mxu1  ;;  %v2750_v51 = vadd.f32 %v2749_v41, %v11574_v45  ;;  %v9610_v45 = vld [vmem:[%s15161_s1 + $0x320] sm:$0xff]  ;;  %v8126_v20 = vor.u32 %v9328_v46, %v8125_v9  ;;  %v7941_v9 = vld [vmem:[%s15163_s0 + $0x2dc] sm:$0xf] }
 0x1f0   :  { %3807 = vmatpush.bf16.msrb.mxu2 %v9607_v47  ;;  %3779 = vmatpush.bf16.msrb.mxu1 %v9610_v45  ;;  %v7896_v41 = vld [vmem:[%s15163_s0 + $0x524] sm:$0x11]  ;;  %v3218_v47 = vunpack.c.h.b16 %v11646_v24  ;;  %v9280_v46 = vld [vmem:[%s15163_s0 + $0x33c] sm:$0xf0] }
 0x1f1   :  { %v11751_v55 = vadd.f32 %v2830_v39, %v2803_v40  ;;  %3835 = vmatpush.bf16.msrb.mxu3 %v9609_v31  ;;  %v2778_v29 = vadd.f32 %v2777_v44, %v2750_v51  ;;  %3537 = vmatmul.bf16.gmra.mxu0 %v8022_v22  ;;  %v3219_v48 = vunpack.c.l.b16 %v7896_v41  ;;  %v3220_v31 = vunpack.c.h.b16 %v7896_v41  ;;  %v8035_v41 = vld [vmem:[%s15163_s0 + $0x400] sm:$0xf0] }
 0x1f2   :  { %3565 = vmatmul.bf16.gmra.mxu1 %v8026_v28  ;;  %3752 = vmatpush.bf16.msrb.mxu0 %v9612_v42  ;;  %v3318_v42 = vpack.c.b16 %v3218_v47, %v3218_v47  ;;  %v9293_v47 = vld [vmem:[%s15163_s0 + $0x3a8] sm:$0xf] }
 0x1f3   :  { %3593 = vmatmul.bf16.gmra.mxu2 %v8030_v33  ;;  %v11844_v33 = vld [vmem:[%s15163_s0 + $0x52c] sm:$0x11] }
 0x1f4   :  { %3621 = vmatmul.bf16.gmra.mxu3 %v8034_v38  ;;  %3808 = vmatpush.bf16.msrb.mxu2 %v9611_v53 }
 0x1f5   :  { %3836 = vmatpush.bf16.msrb.mxu3 %v9613_v56  ;;  %3780 = vmatpush.bf16.msrb.mxu1 %v9614_v60  ;;  %v3319_v56 = vpack.c.b16 %v3219_v48, %v3219_v48  ;;  %v8043_v48 = vld [vmem:[%s15163_s0 + $0x408] sm:$0xf0] }
 0x1f6   :  { %v2805_v35 = vpop.f32.mrf.mxu2  ;;  %v2751_v50 = vpop.f32.mrf.mxu0  ;;  %3753 = vmatpush.bf16.msrb.mxu0 %v9616_v54 }
 0x1f7   :  { %v2833_v57 = vpop.f32.mrf.mxu3  ;;  %v2806_v58 = vadd.f32 %v2805_v35, %v2778_v29  ;;  %v2779_v59 = vpop.f32.mrf.mxu1  ;;  %v2752_v62 = vadd.f32 %v2751_v50, %v11625_v13  ;;  %v9617_v13 = vld [vmem:[%s15161_s1 + $0x390] sm:$0xff]  ;;  %v3221_v29 = vunpack.c.l.b16 %v11844_v33 }
 0x1f8   :  { %3809 = vmatpush.bf16.msrb.mxu2 %v9615_v63 }
 0x1f9   :  { %v11775_v5 = vadd.f32 %v2833_v57, %v2806_v58  ;;  %3837 = vmatpush.bf16.msrb.mxu3 %v9617_v13  ;;  %v2780_v2 = vadd.f32 %v2779_v59, %v2752_v62  ;;  %3781 = vmatpush.bf16.msrb.mxu1 %v9618_v0  ;;  %v3320_v58 = vpack.c.b16 %v3220_v31, %v3220_v31  ;;  %v8049_v31 = vld [vmem:[%s15163_s0 + $0x3ac] sm:$0xf] }
 0x1fa   :  { %3754 = vmatpush.bf16.msrb.mxu0 %v9620_v3  ;;  %v3321_v50 = vpack.c.b16 %v3221_v29, %v3221_v29  ;;  %v9306_v29 = vld [vmem:[%s15163_s0 + $0x40c] sm:$0xf0] }
 0x1fc   :  { %3810 = vmatpush.bf16.msrb.mxu2 %v9619_v16 }
 0x1fd   :  { %3838 = vmatpush.bf16.msrb.mxu3 %v9621_v14  ;;  %3782 = vmatpush.bf16.msrb.mxu1 %v9622_v32  ;;  %v7942_v14 = vor.u32 %v9280_v46, %v7941_v9  ;;  %v9642_v9 = vld [vmem:[%s15161_s1 + $0x4a0] sm:$0xff] }
 0x1fe   :  { %v2807_v15 = vpop.f32.mrf.mxu2  ;;  %v2754_v12 = vpop.f32.mrf.mxu0  ;;  %3755 = vmatpush.bf16.msrb.mxu0 %v9624_v25  ;;  %v9643_v46 = vld [vmem:[%s15161_s1 + $0x420] sm:$0xff] }
 0x1ff   :  { %v2835_v18 = vpop.f32.mrf.mxu3  ;;  %v2808_v21 = vadd.f32 %v2807_v15, %v2780_v2  ;;  %v2782_v23 = vpop.f32.mrf.mxu1  ;;  %v2755_v30 = vadd.f32 %v2754_v12, %v11648_v26  ;;  %v9625_v26 = vld [vmem:[%s15161_s1 + $0x380] sm:$0xff] }
 0x200   :  { %3811 = vmatpush.bf16.msrb.mxu2 %v9623_v8  ;;  %v11885_v12 = vld [vmem:[%s15162_s2] ss:$0 sm:$0xff] }
 0x201   :  { %v11826_v11 = vadd.f32 %v2835_v18, %v2808_v21  ;;  %3839 = vmatpush.bf16.msrb.mxu3 %v9625_v26  ;;  %v2783_v36 = vadd.f32 %v2782_v23, %v2755_v30  ;;  %3542 = vmatmul.bf16.gmra.mxu0 %v8122_v19  ;;  %v7946_v19 = vor.u32 %v9268_v61, %v7943_v52  ;;  %v9631_v30 = vld [vmem:[%s15161_s1 + $0x438] sm:$0xff] }
 0x202   :  { %3570 = vmatmul.bf16.gmra.mxu1 %v8126_v20  ;;  %v7950_v20 = vor.u32 %v9281_v10, %v7949_v7  ;;  %v9644_v61 = vld [vmem:[%s15161_s1 + $0x458] sm:$0xff] }
 0x203   :  { %3598 = vmatmul.bf16.gmra.mxu2 %v8130_v1  ;;  %3783 = vmatpush.bf16.msrb.mxu1 %v9626_v34  ;;  %v9628_v1 = vld [vmem:[%s15161_s1 + $0x478] sm:$0xff] }
 0x204   :  { %3626 = vmatmul.bf16.gmra.mxu3 %v8134_v27  ;;  %v9630_v27 = vld [vmem:[%s15161_s1 + $0x4b8] sm:$0xff] }
 0x205   :  { %v9645_v52 = vld [vmem:[%s15161_s1 + $0x3d8] sm:$0xff] }
 0x206   :  { %v2810_v37 = vpop.f32.mrf.mxu2  ;;  %v2756_v28 = vpop.f32.mrf.mxu0  ;;  %v9646_v7 = vld [vmem:[%s15161_s1 + $0x498] sm:$0xff] }
 0x207   :  { %v2838_v39 = vpop.f32.mrf.mxu3  ;;  %v2811_v22 = vadd.f32 %v2810_v37, %v2783_v36  ;;  %v2784_v40 = vpop.f32.mrf.mxu1  ;;  %v2757_v44 = vadd.f32 %v2756_v28, %v11652_v43  ;;  %v9632_v37 = vld [vmem:[%s15161_s1 + $0x470] sm:$0xff] }
 0x208   :  { %v9634_v28 = vld [vmem:[%s15161_s1 + $0x4b0] sm:$0xff] }
 0x209   :  { %v11846_v38 = vadd.f32 %v2838_v39, %v2811_v22  ;;  %v2785_v51 = vadd.f32 %v2784_v40, %v2757_v44  ;;  %v9633_v39 = vld [vmem:[%s15161_s1 + $0x3f0] sm:$0xff]  ;;  %v9292_v40 = vld [vmem:[%s15163_s0 + $0x3a0] sm:$0xf]  ;;  %v8041_v44 = vld [vmem:[%s15163_s0 + $0x3a4] sm:$0xf] }
 0x20e   :  { %v2812_v45 = vpop.f32.mrf.mxu2  ;;  %v2759_v43 = vpop.f32.mrf.mxu0 }
 0x20f   :  { %v2840_v53 = vpop.f32.mrf.mxu3  ;;  %v2813_v35 = vadd.f32 %v2812_v45, %v2785_v51  ;;  %v2787_v57 = vpop.f32.mrf.mxu1  ;;  %v2760_v59 = vadd.f32 %v2759_v43, %v11654_v49  ;;  %v7935_v49 = vld [vmem:[%s15163_s0 + $0x338] sm:$0xf0]  ;;  %v9305_v51 = vld [vmem:[%s15163_s0 + $0x404] sm:$0xf0] }
 0x210   :  { %v7938_v3 = vor.u32 %v9267_v6, %v7935_v49  ;;  %v9636_v45 = vld [vmem:[%s15161_s1 + $0x468] sm:$0xff]  ;;  %v9641_v6 = vld [vmem:[%s15161_s1 + $0x3e0] sm:$0xff] }
 0x211   :  { %v11851_v62 = vadd.f32 %v2840_v53, %v2813_v35  ;;  %v2788_v60 = vadd.f32 %v2787_v57, %v2760_v59  ;;  %3547 = vmatmul.bf16.gmra.mxu0 %v3318_v42  ;;  %v9637_v53 = vld [vmem:[%s15161_s1 + $0x3e8] sm:$0xff] }
 0x212   :  { %3575 = vmatmul.bf16.gmra.mxu1 %v3319_v56  ;;  %v9638_v56 = vld [vmem:[%s15161_s1 + $0x4a8] sm:$0xff] }
 0x213   :  { %3603 = vmatmul.bf16.gmra.mxu2 %v3320_v58  ;;  %v9639_v35 = vld [vmem:[%s15161_s1 + $0x428] sm:$0xff]  ;;  %v8038_v58 = vor.u32 %v9292_v40, %v8035_v41 }
 0x214   :  { %3631 = vmatmul.bf16.gmra.mxu3 %v3321_v50  ;;  %v8042_v50 = vor.u32 %v9305_v51, %v8041_v44 }
 0x216   :  { %v2815_v24 = vpop.f32.mrf.mxu2  ;;  %v2761_v13 = vpop.f32.mrf.mxu0 }
 0x217   :  { %v2843_v63 = vpop.f32.mrf.mxu3  ;;  %v2816_v54 = vadd.f32 %v2815_v24, %v2788_v60  ;;  %v2789_v2 = vpop.f32.mrf.mxu1 }
 0x218   :  { %v9640_v2 = vld [vmem:[%s15161_s1 + $0x460] sm:$0xff] }
 0x219   :  { %v11853_v4 = vadd.f32 %v2843_v63, %v2816_v54  ;;  %v8046_v63 = vor.u32 %v9293_v47, %v8043_v48  ;;  %v8050_v54 = vor.u32 %v9306_v29, %v8049_v31 }
 0x21e   :  { %v2817_v0 = vpop.f32.mrf.mxu2  ;;  %v2856_v15 = vpop.f32.mrf.mxu0 }
 0x21f   :  { %v2845_v16 = vpop.f32.mrf.mxu3  ;;  %v3449_v18 = vpop.f32.mrf.mxu1  ;;  %v11880_v21 = vadd.f32 %v2856_v15, %v11700_v17  ;;  %v9629_v17 = vld [vmem:[%s15161_s1 + $0x3f8] sm:$0xff] }
 0x220   :  { %v3450_v23 = vadd.f32 %v11885_v12, %v3449_v18  ;;  %v9647_v18 = vld [vmem:[%s15161_s1 + $0x418] sm:$0xff] }
 0x221   :  { %3644 = vmatmul.bf16.vlgmr.msra.gmra.mxu0 %v7938_v3 }
 0x222   :  { %3672 = vmatmul.bf16.vlgmr.msra.gmra.mxu1 %v7942_v14  ;;  %3860 = vmatpush.bf16.msra.mxu0 %v9629_v17  ;;  %v8135_v17 = vld [vmem:[%s15163_s0 + $0x4c8] sm:$0xf0] }
 0x223   :  { %3700 = vmatmul.bf16.vlgmr.msra.gmra.mxu2 %v7946_v19  ;;  %3888 = vmatpush.bf16.msra.mxu1 %v9631_v30  ;;  %v9648_v19 = vld [vmem:[%s15161_s1 + $0x450] sm:$0xff] }
 0x224   :  { %3728 = vmatmul.bf16.vlgmr.msra.gmra.mxu3 %v7950_v20  ;;  %3916 = vmatpush.bf16.msra.mxu2 %v9628_v1  ;;  %v9317_v1 = vld [vmem:[%s15163_s0 + $0x468] sm:$0xf]  ;;  %v9330_v30 = vld [vmem:[%s15163_s0 + $0x4cc] sm:$0xf0] }
 0x225   :  { %3944 = vmatpush.bf16.msra.mxu3 %v9630_v27  ;;  %v8141_v27 = vld [vmem:[%s15163_s0 + $0x46c] sm:$0xf]  ;;  %v8138_v44 = vor.u32 %v9317_v1, %v8135_v17 }
 0x226   :  { %v3477_v32 = vpop.f32.mrf.mxu2  ;;  %v2858_v26 = vpop.f32.mrf.mxu0  ;;  %3861 = vmatpush.bf16.msra.mxu0 %v9633_v39  ;;  %v8142_v51 = vor.u32 %v9330_v30, %v8141_v27 }
 0x227   :  { %v3505_v8 = vpop.f32.mrf.mxu3  ;;  %v3478_v25 = vadd.f32 %v3477_v32, %v3450_v23  ;;  %v3451_v36 = vpop.f32.mrf.mxu1  ;;  %v11901_v34 = vadd.f32 %v2858_v26, %v11751_v55  ;;  %v9635_v55 = vld [vmem:[%s15161_s1 + $0x430] sm:$0xff]  ;;  %v9331_v26 = vld [vmem:[%s15163_s0 + $0x4d4] sm:$0xf0] }
 0x228   :  { %3917 = vmatpush.bf16.msra.mxu2 %v9632_v37  ;;  %3889 = vmatpush.bf16.msra.mxu1 %v9635_v55  ;;  %v3452_v42 = vadd.f32 %v11885_v12, %v3451_v36  ;;  %v9649_v23 = vld [vmem:[%s15161_s1 + $0x3d0] sm:$0xff]  ;;  %v9652_v37 = vld [vmem:[%s15161_s1 + $0x448] sm:$0xff] }
 0x229   :  { %v11909_v22 = vadd.f32 %v3505_v8, %v3478_v25  ;;  %3945 = vmatpush.bf16.msra.mxu3 %v9634_v28  ;;  %v9318_v32 = vld [vmem:[%s15163_s0 + $0x470] sm:$0xf]  ;;  %v8143_v8 = vld [vmem:[%s15163_s0 + $0x4d0] sm:$0xf0]  ;;  %v9653_v28 = vld [vmem:[%s15161_s1 + $0x3c8] sm:$0xff] }
 0x22a   :  { %3862 = vmatpush.bf16.msra.mxu0 %v9637_v53  ;;  %v8149_v25 = vld [vmem:[%s15163_s0 + $0x474] sm:$0xf]  ;;  %v9654_v55 = vld [vmem:[%s15161_s1 + $0x488] sm:$0xff]  ;;  %v8146_v29 = vor.u32 %v9318_v32, %v8143_v8 }
 0x22b   :  { %v9651_v36 = vld [vmem:[%s15161_s1 + $0x410] sm:$0xff] }
 0x22c   :  { %3918 = vmatpush.bf16.msra.mxu2 %v9636_v45  ;;  %3890 = vmatpush.bf16.msra.mxu1 %v9639_v35  ;;  %v8150_v45 = vor.u32 %v9331_v26, %v8149_v25  ;;  %v7951_v26 = vld [vmem:[%s15163_s0 + $0x348] sm:$0xf0] }
 0x22d   :  { %3946 = vmatpush.bf16.msra.mxu3 %v9638_v56  ;;  %v9656_v56 = vld [vmem:[%s15161_s1 + $0x440] sm:$0xff] }
 0x22e   :  { %v3479_v43 = vpop.f32.mrf.mxu2  ;;  %v2861_v60 = vpop.f32.mrf.mxu0  ;;  %3863 = vmatpush.bf16.msra.mxu0 %v9641_v6  ;;  %v12065_v6 = vld [vmem:[%s15163_s0 + $0x53c] sm:$0x11] }
 0x22f   :  { %v3507_v57 = vpop.f32.mrf.mxu3  ;;  %v3480_v59 = vadd.f32 %v3479_v43, %v3452_v42  ;;  %v3454_v24 = vpop.f32.mrf.mxu1  ;;  %v11955_v13 = vadd.f32 %v2861_v60, %v11775_v5  ;;  %v9655_v42 = vld [vmem:[%s15161_s1 + $0x408] sm:$0xff]  ;;  %v9657_v43 = vld [vmem:[%s15161_s1 + $0x3c0] sm:$0xff] }
 0x230   :  { %3919 = vmatpush.bf16.msra.mxu2 %v9640_v2  ;;  %v3455_v5 = vadd.f32 %v11885_v12, %v3454_v24  ;;  %3891 = vmatpush.bf16.msra.mxu1 %v9643_v46 }
 0x231   :  { %v11963_v49 = vadd.f32 %v3507_v57, %v3480_v59  ;;  %3947 = vmatpush.bf16.msra.mxu3 %v9642_v9  ;;  %3649 = vmatmul.bf16.gmra.mxu0 %v8038_v58  ;;  %v9659_v58 = vld [vmem:[%s15161_s1 + $0x400] sm:$0xff] }
 0x232   :  { %3677 = vmatmul.bf16.gmra.mxu1 %v8042_v50  ;;  %3864 = vmatpush.bf16.msra.mxu0 %v9645_v52  ;;  %v3225_v52 = vunpack.c.l.b16 %v12065_v6 }
 0x233   :  { %3705 = vmatmul.bf16.gmra.mxu2 %v8046_v63 }
 0x234   :  { %3733 = vmatmul.bf16.gmra.mxu3 %v8050_v54  ;;  %3920 = vmatpush.bf16.msra.mxu2 %v9644_v61  ;;  %v7898_v54 = vld [vmem:[%s15163_s0 + $0x534] sm:$0x11] }
 0x235   :  { %3948 = vmatpush.bf16.msra.mxu3 %v9646_v7  ;;  %3892 = vmatpush.bf16.msra.mxu1 %v9647_v18  ;;  %v3223_v46 = vunpack.c.l.b16 %v7898_v54  ;;  %v3224_v61 = vunpack.c.h.b16 %v7898_v54  ;;  %v9665_v54 = vld [vmem:[%s15161_s1 + $0x4f0] sm:$0xff] }
 0x236   :  { %v3482_v10 = vpop.f32.mrf.mxu2  ;;  %v2863_v3 = vpop.f32.mrf.mxu0  ;;  %3865 = vmatpush.bf16.msra.mxu0 %v9649_v23  ;;  %v3325_v23 = vpack.c.b16 %v3225_v52, %v3225_v52  ;;  %v9294_v52 = vld [vmem:[%s15163_s0 + $0x3b0] sm:$0xf] }
 0x237   :  { %v3510_v0 = vpop.f32.mrf.mxu3  ;;  %v3483_v16 = vadd.f32 %v3482_v10, %v3455_v5  ;;  %v3456_v14 = vpop.f32.mrf.mxu1  ;;  %v11982_v15 = vadd.f32 %v2863_v3, %v11826_v11  ;;  %v9650_v11 = vld [vmem:[%s15161_s1 + $0x490] sm:$0xff]  ;;  %v3222_v5 = vunpack.c.h.b16 %v11844_v33 }
 0x238   :  { %3921 = vmatpush.bf16.msra.mxu2 %v9648_v19  ;;  %v3457_v39 = vadd.f32 %v11885_v12, %v3456_v14  ;;  %v3324_v19 = vpack.c.b16 %v3224_v61, %v3224_v61 }
 0x239   :  { %v11990_v20 = vadd.f32 %v3510_v0, %v3483_v16  ;;  %3949 = vmatpush.bf16.msra.mxu3 %v9650_v11  ;;  %3893 = vmatpush.bf16.msra.mxu1 %v9651_v36  ;;  %v3322_v16 = vpack.c.b16 %v3222_v5, %v3222_v5  ;;  %v9282_v36 = vld [vmem:[%s15163_s0 + $0x34c] sm:$0xf0] }
 0x23a   :  { %3866 = vmatpush.bf16.msra.mxu0 %v9653_v28  ;;  %v7965_v28 = vld [vmem:[%s15163_s0 + $0x2f4] sm:$0xf] }
 0x23c   :  { %3922 = vmatpush.bf16.msra.mxu2 %v9652_v37  ;;  %v9270_v37 = vld [vmem:[%s15163_s0 + $0x2f0] sm:$0xf] }
 0x23d   :  { %3950 = vmatpush.bf16.msra.mxu3 %v9654_v55  ;;  %3894 = vmatpush.bf16.msra.mxu1 %v9655_v42  ;;  %v9283_v55 = vld [vmem:[%s15163_s0 + $0x354] sm:$0xf0] }
 0x23e   :  { %v3484_v40 = vpop.f32.mrf.mxu2  ;;  %v2866_v48 = vpop.f32.mrf.mxu0  ;;  %3867 = vmatpush.bf16.msra.mxu0 %v9657_v43  ;;  %v9661_v43 = vld [vmem:[%s15161_s1 + $0x4f8] sm:$0xff] }
 0x23f   :  { %v3512_v41 = vpop.f32.mrf.mxu3  ;;  %v3485_v47 = vadd.f32 %v3484_v40, %v3457_v39  ;;  %v3459_v31 = vpop.f32.mrf.mxu1  ;;  %v12036_v53 = vadd.f32 %v2866_v48, %v11846_v38  ;;  %v9658_v38 = vld [vmem:[%s15161_s1 + $0x480] sm:$0xff]  ;;  %v7959_v39 = vld [vmem:[%s15163_s0 + $0x350] sm:$0xf0] }
 0x240   :  { %3923 = vmatpush.bf16.msra.mxu2 %v9656_v56  ;;  %v3460_v57 = vadd.f32 %v11885_v12, %v3459_v31  ;;  %v7962_v31 = vor.u32 %v9270_v37, %v7959_v39  ;;  %v9660_v56 = vld [vmem:[%s15161_s1 + $0x578] sm:$0xff]  ;;  %v9672_v39 = vld [vmem:[%s15161_s1 + $0x560] sm:$0xff] }
 0x241   :  { %v12044_v35 = vadd.f32 %v3512_v41, %v3485_v47  ;;  %3951 = vmatpush.bf16.msra.mxu3 %v9658_v38  ;;  %3654 = vmatmul.bf16.gmra.mxu0 %v8138_v44  ;;  %v9662_v38 = vld [vmem:[%s15161_s1 + $0x5b8] sm:$0xff] }
 0x242   :  { %3682 = vmatmul.bf16.gmra.mxu1 %v8142_v51 }
 0x243   :  { %3710 = vmatmul.bf16.gmra.mxu2 %v8146_v29  ;;  %3895 = vmatpush.bf16.msra.mxu1 %v9659_v58  ;;  %v7966_v29 = vor.u32 %v9283_v55, %v7965_v28  ;;  %v9673_v28 = vld [vmem:[%s15161_s1 + $0x4e0] sm:$0xff] }
 0x244   :  { %3738 = vmatmul.bf16.gmra.mxu3 %v8150_v45 }
 0x246   :  { %v3487_v50 = vpop.f32.mrf.mxu2  ;;  %v2868_v24 = vpop.f32.mrf.mxu0 }
 0x247   :  { %v3515_v59 = vpop.f32.mrf.mxu3  ;;  %v3488_v60 = vadd.f32 %v3487_v50, %v3460_v57  ;;  %v3461_v63 = vpop.f32.mrf.mxu1  ;;  %v12060_v2 = vadd.f32 %v2868_v24, %v11851_v62  ;;  %v3323_v62 = vpack.c.b16 %v3223_v46, %v3223_v46  ;;  %v9666_v46 = vld [vmem:[%s15161_s1 + $0x5b0] sm:$0xff] }
 0x248   :  { %v3462_v7 = vadd.f32 %v11885_v12, %v3461_v63  ;;  %v9664_v63 = vld [vmem:[%s15161_s1 + $0x570] sm:$0xff] }
 0x249   :  { %v12067_v9 = vadd.f32 %v3515_v59, %v3488_v60 }
 0x24e   :  { %v3489_v10 = vpop.f32.mrf.mxu2  ;;  %v2871_v14 = vpop.f32.mrf.mxu0 }
 0x24f   :  { %v3517_v0 = vpop.f32.mrf.mxu3  ;;  %v3490_v3 = vadd.f32 %v3489_v10, %v3462_v7  ;;  %v3464_v18 = vpop.f32.mrf.mxu1  ;;  %v12073_v11 = vadd.f32 %v2871_v14, %v11853_v4  ;;  %v9269_v4 = vld [vmem:[%s15163_s0 + $0x2e8] sm:$0xf]  ;;  %v8051_v7 = vld [vmem:[%s15163_s0 + $0x410] sm:$0xf0]  ;;  %v9308_v14 = vld [vmem:[%s15163_s0 + $0x41c] sm:$0xf0] }
 0x250   :  { %v3465_v33 = vadd.f32 %v11885_v12, %v3464_v18  ;;  %v7957_v12 = vld [vmem:[%s15163_s0 + $0x2ec] sm:$0xf]  ;;  %v7954_v44 = vor.u32 %v9269_v4, %v7951_v26  ;;  %v8057_v10 = vld [vmem:[%s15163_s0 + $0x3b4] sm:$0xf] }
 0x251   :  { %v12075_v1 = vadd.f32 %v3517_v0, %v3490_v3  ;;  %3659 = vmatmul.bf16.gmra.mxu0 %v3322_v16  ;;  %v7958_v51 = vor.u32 %v9282_v36, %v7957_v12  ;;  %v9307_v0 = vld [vmem:[%s15163_s0 + $0x414] sm:$0xf0]  ;;  %v8065_v3 = vld [vmem:[%s15163_s0 + $0x3bc] sm:$0xf]  ;;  %v9668_v18 = vld [vmem:[%s15161_s1 + $0x568] sm:$0xff] }
 0x252   :  { %3687 = vmatmul.bf16.gmra.mxu1 %v3323_v62  ;;  %v9295_v16 = vld [vmem:[%s15163_s0 + $0x3b8] sm:$0xf]  ;;  %v8059_v62 = vld [vmem:[%s15163_s0 + $0x418] sm:$0xf0]  ;;  %v8066_v36 = vor.u32 %v9308_v14, %v8065_v3 }
 0x253   :  { %3715 = vmatmul.bf16.gmra.mxu2 %v3324_v19  ;;  %v9669_v19 = vld [vmem:[%s15161_s1 + $0x4e8] sm:$0xff]  ;;  %v8062_v12 = vor.u32 %v9295_v16, %v8059_v62 }
 0x254   :  { %3743 = vmatmul.bf16.gmra.mxu3 %v3325_v23  ;;  %v9670_v23 = vld [vmem:[%s15161_s1 + $0x5a8] sm:$0xff] }
 0x256   :  { %v3492_v17 = vpop.f32.mrf.mxu2  ;;  %v2873_v32 = vpop.f32.mrf.mxu0 }
 0x257   :  { %v3520_v27 = vpop.f32.mrf.mxu3  ;;  %v3493_v30 = vadd.f32 %v3492_v17, %v3465_v33  ;;  %v3466_v8 = vpop.f32.mrf.mxu1  ;;  %v9671_v33 = vld [vmem:[%s15161_s1 + $0x528] sm:$0xff]  ;;  %v8058_v32 = vor.u32 %v9307_v0, %v8057_v10 }
 0x258   :  { %v9686_v10 = vld [vmem:[%s15161_s1 + $0x588] sm:$0xff] }
 0x259   :  { %v12078_v25 = vadd.f32 %v3520_v27, %v3493_v30  ;;  %v8054_v30 = vor.u32 %v9294_v52, %v8051_v7  ;;  %v9684_v52 = vld [vmem:[%s15161_s1 + $0x548] sm:$0xff] }
 0x25a   :  { %v9685_v7 = vld [vmem:[%s15161_s1 + $0x4c8] sm:$0xff] }
 0x25e   :  { %v3494_v40 = vpop.f32.mrf.mxu2  ;;  %v3533_v47 = vpop.f32.mrf.mxu0 }
 0x25f   :  { %v3522_v41 = vpop.f32.mrf.mxu3  ;;  %v3561_v48 = vpop.f32.mrf.mxu1  ;;  %v3534_v45 = vadd.f32 %v3533_v47, %v11909_v22  ;;  %v9663_v22 = vld [vmem:[%s15161_s1 + $0x538] sm:$0xff]  ;;  %v9674_v40 = vld [vmem:[%s15161_s1 + $0x5a0] sm:$0xff] }
 0x260   :  { %v9678_v47 = vld [vmem:[%s15161_s1 + $0x598] sm:$0xff] }
 0x261   :  { %v3562_v42 = vadd.f32 %v3561_v48, %v3534_v45  ;;  %3756 = vmatmul.bf16.vlgmr.msrb.gmra.mxu0 %v7954_v44  ;;  %v9676_v44 = vld [vmem:[%s15161_s1 + $0x558] sm:$0xff] }
 0x262   :  { %3784 = vmatmul.bf16.vlgmr.msrb.gmra.mxu1 %v7958_v51  ;;  %3972 = vmatpush.bf16.msrb.mxu0 %v9661_v43  ;;  %v9677_v51 = vld [vmem:[%s15161_s1 + $0x4d8] sm:$0xff] }
 0x263   :  { %3812 = vmatmul.bf16.vlgmr.msrb.gmra.mxu2 %v7962_v31  ;;  %4000 = vmatpush.bf16.msrb.mxu1 %v9663_v22  ;;  %v9679_v43 = vld [vmem:[%s15161_s1 + $0x518] sm:$0xff] }
 0x264   :  { %3840 = vmatmul.bf16.vlgmr.msrb.gmra.mxu3 %v7966_v29  ;;  %4028 = vmatpush.bf16.msrb.mxu2 %v9660_v56 }
 0x265   :  { %4056 = vmatpush.bf16.msrb.mxu3 %v9662_v38  ;;  %v9680_v38 = vld [vmem:[%s15161_s1 + $0x550] sm:$0xff] }
 0x266   :  { %v3589_v57 = vpop.f32.mrf.mxu2  ;;  %v3535_v59 = vpop.f32.mrf.mxu0  ;;  %3973 = vmatpush.bf16.msrb.mxu0 %v9665_v54  ;;  %v8159_v54 = vld [vmem:[%s15163_s0 + $0x4e0] sm:$0xf0] }
 0x267   :  { %v3617_v58 = vpop.f32.mrf.mxu3  ;;  %v3590_v50 = vadd.f32 %v3589_v57, %v3562_v42  ;;  %v3563_v60 = vpop.f32.mrf.mxu1  ;;  %v3536_v24 = vadd.f32 %v3535_v59, %v11963_v49  ;;  %v9667_v49 = vld [vmem:[%s15161_s1 + $0x530] sm:$0xff]  ;;  %v8151_v59 = vld [vmem:[%s15163_s0 + $0x4d8] sm:$0xf0] }
 0x268   :  { %4029 = vmatpush.bf16.msrb.mxu2 %v9664_v63  ;;  %4001 = vmatpush.bf16.msrb.mxu1 %v9667_v49  ;;  %v9681_v57 = vld [vmem:[%s15161_s1 + $0x4d0] sm:$0xff]  ;;  %v9320_v63 = vld [vmem:[%s15163_s0 + $0x480] sm:$0xf]  ;;  %v9333_v49 = vld [vmem:[%s15163_s0 + $0x4e4] sm:$0xf0] }
 0x269   :  { %v12124_v5 = vadd.f32 %v3617_v58, %v3590_v50  ;;  %4057 = vmatpush.bf16.msrb.mxu3 %v9666_v46  ;;  %v3564_v61 = vadd.f32 %v3563_v60, %v3536_v24  ;;  %v9319_v50 = vld [vmem:[%s15163_s0 + $0x478] sm:$0xf]  ;;  %v8157_v60 = vld [vmem:[%s15163_s0 + $0x47c] sm:$0xf]  ;;  %v9332_v24 = vld [vmem:[%s15163_s0 + $0x4dc] sm:$0xf0] }
 0x26a   :  { %3974 = vmatpush.bf16.msrb.mxu0 %v9669_v19  ;;  %v8165_v46 = vld [vmem:[%s15163_s0 + $0x484] sm:$0xf]  ;;  %v8154_v62 = vor.u32 %v9319_v50, %v8151_v59  ;;  %v8158_v3 = vor.u32 %v9332_v24, %v8157_v60 }
 0x26c   :  { %4030 = vmatpush.bf16.msrb.mxu2 %v9668_v18  ;;  %4002 = vmatpush.bf16.msrb.mxu1 %v9671_v33  ;;  %v8166_v33 = vor.u32 %v9333_v49, %v8165_v46 }
 0x26d   :  { %4058 = vmatpush.bf16.msrb.mxu3 %v9670_v23  ;;  %v8162_v23 = vor.u32 %v9320_v63, %v8159_v54 }
 0x26e   :  { %v3591_v17 = vpop.f32.mrf.mxu2  ;;  %v3538_v4 = vpop.f32.mrf.mxu0  ;;  %3975 = vmatpush.bf16.msrb.mxu0 %v9673_v28 }
 0x26f   :  { %v3619_v27 = vpop.f32.mrf.mxu3  ;;  %v3592_v8 = vadd.f32 %v3591_v17, %v3564_v61  ;;  %v3566_v26 = vpop.f32.mrf.mxu1  ;;  %v3539_v37 = vadd.f32 %v3538_v4, %v11990_v20  ;;  %v9675_v20 = vld [vmem:[%s15161_s1 + $0x520] sm:$0xff]  ;;  %v9683_v61 = vld [vmem:[%s15161_s1 + $0x510] sm:$0xff] }
 0x270   :  { %4031 = vmatpush.bf16.msrb.mxu2 %v9672_v39  ;;  %4003 = vmatpush.bf16.msrb.mxu1 %v9675_v20  ;;  %v12268_v20 = vld [vmem:[%s15163_s0 + $0x54c] sm:$0x11] }
 0x271   :  { %v12175_v55 = vadd.f32 %v3619_v27, %v3592_v8  ;;  %4059 = vmatpush.bf16.msrb.mxu3 %v9674_v40  ;;  %v3567_v41 = vadd.f32 %v3566_v26, %v3539_v37  ;;  %3761 = vmatmul.bf16.gmra.mxu0 %v8054_v30  ;;  %v9687_v27 = vld [vmem:[%s15161_s1 + $0x508] sm:$0xff]  ;;  %v9688_v30 = vld [vmem:[%s15161_s1 + $0x540] sm:$0xff] }
 0x272   :  { %3789 = vmatmul.bf16.gmra.mxu1 %v8058_v32  ;;  %3976 = vmatpush.bf16.msrb.mxu0 %v9677_v51  ;;  %v9689_v8 = vld [vmem:[%s15161_s1 + $0x4c0] sm:$0xff] }
 0x273   :  { %3817 = vmatmul.bf16.gmra.mxu2 %v8062_v12  ;;  %v9691_v26 = vld [vmem:[%s15161_s1 + $0x500] sm:$0xff] }
 0x274   :  { %3845 = vmatmul.bf16.gmra.mxu3 %v8066_v36  ;;  %4032 = vmatpush.bf16.msrb.mxu2 %v9676_v44  ;;  %v7900_v40 = vld [vmem:[%s15163_s0 + $0x544] sm:$0x11] }
 0x275   :  { %4060 = vmatpush.bf16.msrb.mxu3 %v9678_v47  ;;  %4004 = vmatpush.bf16.msrb.mxu1 %v9679_v43  ;;  %v3226_v47 = vunpack.c.h.b16 %v12065_v6 }
 0x276   :  { %v3594_v48 = vpop.f32.mrf.mxu2  ;;  %v3540_v45 = vpop.f32.mrf.mxu0  ;;  %3977 = vmatpush.bf16.msrb.mxu0 %v9681_v57 }
 0x277   :  { %v3622_v31 = vpop.f32.mrf.mxu3  ;;  %v3595_v29 = vadd.f32 %v3594_v48, %v3567_v41  ;;  %v3568_v42 = vpop.f32.mrf.mxu1  ;;  %v3541_v56 = vadd.f32 %v3540_v45, %v12044_v35  ;;  %v9682_v35 = vld [vmem:[%s15161_s1 + $0x590] sm:$0xff]  ;;  %v3227_v48 = vunpack.c.l.b16 %v7900_v40 }
 0x278   :  { %4033 = vmatpush.bf16.msrb.mxu2 %v9680_v38 }
 0x279   :  { %v12199_v22 = vadd.f32 %v3622_v31, %v3595_v29  ;;  %4061 = vmatpush.bf16.msrb.mxu3 %v9682_v35  ;;  %v3569_v58 = vadd.f32 %v3568_v42, %v3541_v56  ;;  %4005 = vmatpush.bf16.msrb.mxu1 %v9683_v61  ;;  %v3228_v31 = vunpack.c.h.b16 %v7900_v40  ;;  %v3229_v29 = vunpack.c.l.b16 %v12268_v20  ;;  %v9271_v61 = vld [vmem:[%s15163_s0 + $0x2f8] sm:$0xf] }
 0x27a   :  { %3978 = vmatpush.bf16.msrb.mxu0 %v9685_v7  ;;  %v3326_v56 = vpack.c.b16 %v3226_v47, %v3226_v47  ;;  %v3327_v43 = vpack.c.b16 %v3227_v48, %v3227_v48  ;;  %v9284_v7 = vld [vmem:[%s15163_s0 + $0x35c] sm:$0xf0]  ;;  %v9698_v48 = vld [vmem:[%s15161_s1 + $0x70] sm:$0xff] }
 0x27b   :  { %v3328_v35 = vpack.c.b16 %v3228_v31, %v3228_v31 }
 0x27c   :  { %4034 = vmatpush.bf16.msrb.mxu2 %v9684_v52  ;;  %v7973_v52 = vld [vmem:[%s15163_s0 + $0x2fc] sm:$0xf] }
 0x27d   :  { %4062 = vmatpush.bf16.msrb.mxu3 %v9686_v10  ;;  %4006 = vmatpush.bf16.msrb.mxu1 %v9687_v27  ;;  %v9272_v10 = vld [vmem:[%s15163_s0 + $0x300] sm:$0xf] }
 0x27e   :  { %v3596_v0 = vpop.f32.mrf.mxu2  ;;  %v3543_v18 = vpop.f32.mrf.mxu0  ;;  %3979 = vmatpush.bf16.msrb.mxu0 %v9689_v8 }
 0x27f   :  { %v3624_v16 = vpop.f32.mrf.mxu3  ;;  %v3597_v14 = vadd.f32 %v3596_v0, %v3569_v58  ;;  %v3571_v19 = vpop.f32.mrf.mxu1  ;;  %v3544_v17 = vadd.f32 %v3543_v18, %v12067_v9  ;;  %v9690_v9 = vld [vmem:[%s15161_s1 + $0x580] sm:$0xff]  ;;  %v3329_v58 = vpack.c.b16 %v3229_v29, %v3229_v29 }
 0x280   :  { %4035 = vmatpush.bf16.msrb.mxu2 %v9688_v30  ;;  %v7975_v0 = vld [vmem:[%s15163_s0 + $0x360] sm:$0xf0]  ;;  %v9296_v29 = vld [vmem:[%s15163_s0 + $0x3c0] sm:$0xf] }
 0x281   :  { %v12250_v32 = vadd.f32 %v3624_v16, %v3597_v14  ;;  %4063 = vmatpush.bf16.msrb.mxu3 %v9690_v9  ;;  %v3572_v4 = vadd.f32 %v3571_v19, %v3544_v17  ;;  %3766 = vmatmul.bf16.gmra.mxu0 %v8154_v62  ;;  %v7981_v16 = vld [vmem:[%s15163_s0 + $0x304] sm:$0xf]  ;;  %v9285_v62 = vld [vmem:[%s15163_s0 + $0x364] sm:$0xf0]  ;;  %v7974_v19 = vor.u32 %v9284_v7, %v7973_v52  ;;  %v9692_v9 = vld [vmem:[%s15161_s1 + $0x38] sm:$0xff] }
 0x282   :  { %3794 = vmatmul.bf16.gmra.mxu1 %v8158_v3  ;;  %v7978_v17 = vor.u32 %v9272_v10, %v7975_v0  ;;  %v7982_v27 = vor.u32 %v9285_v62, %v7981_v16  ;;  %v9704_v0 = vld [vmem:[%s15161_s1 + $0x20] sm:$0xff] }
 0x283   :  { %3822 = vmatmul.bf16.gmra.mxu2 %v8162_v23  ;;  %4007 = vmatpush.bf16.msrb.mxu1 %v9691_v26  ;;  %v9694_v26 = vld [vmem:[%s15161_s1 + $0x78] sm:$0xff]  ;;  %v9705_v16 = vld [vmem:[%s15161_s1 + $0x5e0] sm:$0xff] }
 0x284   :  { %3850 = vmatmul.bf16.gmra.mxu3 %v8166_v33 }
 0x286   :  { %v3599_v12 = vpop.f32.mrf.mxu2  ;;  %v3545_v39 = vpop.f32.mrf.mxu0 }
 0x287   :  { %v3627_v36 = vpop.f32.mrf.mxu3  ;;  %v3600_v37 = vadd.f32 %v3599_v12, %v3572_v4  ;;  %v3573_v28 = vpop.f32.mrf.mxu1  ;;  %v3546_v41 = vadd.f32 %v3545_v39, %v12075_v1  ;;  %v9693_v4 = vld [vmem:[%s15161_s1 + $0x5f8] sm:$0xff] }
 0x289   :  { %v12270_v44 = vadd.f32 %v3627_v36, %v3600_v37  ;;  %v3574_v51 = vadd.f32 %v3573_v28, %v3546_v41  ;;  %v9696_v41 = vld [vmem:[%s15161_s1 + $0x30] sm:$0xff] }
 0x28e   :  { %v3601_v45 = vpop.f32.mrf.mxu2  ;;  %v3548_v1 = vpop.f32.mrf.mxu0 }
 0x28f   :  { %v3629_v42 = vpop.f32.mrf.mxu3  ;;  %v3602_v38 = vadd.f32 %v3601_v45, %v3574_v51  ;;  %v3576_v57 = vpop.f32.mrf.mxu1  ;;  %v3549_v50 = vadd.f32 %v3548_v1, %v12078_v25  ;;  %v7967_v25 = vld [vmem:[%s15163_s0 + $0x358] sm:$0xf0]  ;;  %v9697_v51 = vld [vmem:[%s15161_s1 + $0x5f0] sm:$0xff]  ;;  %v8067_v45 = vld [vmem:[%s15163_s0 + $0x420] sm:$0xf0] }
 0x290   :  { %v7970_v18 = vor.u32 %v9271_v61, %v7967_v25  ;;  %v8081_v1 = vld [vmem:[%s15163_s0 + $0x3cc] sm:$0xf] }
 0x291   :  { %v12275_v59 = vadd.f32 %v3629_v42, %v3602_v38  ;;  %v3577_v60 = vadd.f32 %v3576_v57, %v3549_v50  ;;  %3771 = vmatmul.bf16.gmra.mxu0 %v3326_v56  ;;  %v8073_v42 = vld [vmem:[%s15163_s0 + $0x3c4] sm:$0xf]  ;;  %v9309_v56 = vld [vmem:[%s15163_s0 + $0x424] sm:$0xf0]  ;;  %v8075_v38 = vld [vmem:[%s15163_s0 + $0x428] sm:$0xf0] }
 0x292   :  { %3799 = vmatmul.bf16.gmra.mxu1 %v3327_v43  ;;  %v9297_v43 = vld [vmem:[%s15163_s0 + $0x3c8] sm:$0xf]  ;;  %v9310_v57 = vld [vmem:[%s15163_s0 + $0x42c] sm:$0xf0] }
 0x293   :  { %3827 = vmatmul.bf16.gmra.mxu2 %v3328_v35  ;;  %v9700_v35 = vld [vmem:[%s15161_s1 + $0x28] sm:$0xff]  ;;  %v8078_v52 = vor.u32 %v9297_v43, %v8075_v38  ;;  %v8082_v7 = vor.u32 %v9310_v57, %v8081_v1 }
 0x294   :  { %3855 = vmatmul.bf16.gmra.mxu3 %v3329_v58  ;;  %v9701_v58 = vld [vmem:[%s15161_s1 + $0x5e8] sm:$0xff] }
 0x295   :  { %v9702_v50 = vld [vmem:[%s15161_s1 + $0x68] sm:$0xff] }
 0x296   :  { %v3604_v6 = vpop.f32.mrf.mxu2  ;;  %v3550_v54 = vpop.f32.mrf.mxu0 }
 0x297   :  { %v3632_v24 = vpop.f32.mrf.mxu3  ;;  %v3605_v63 = vadd.f32 %v3604_v6, %v3577_v60  ;;  %v3578_v46 = vpop.f32.mrf.mxu1  ;;  %v9703_v60 = vld [vmem:[%s15161_s1 + $0x628] sm:$0xff]  ;;  %v8074_v54 = vor.u32 %v9309_v56, %v8073_v42 }
 0x298   :  { %v9718_v42 = vld [vmem:[%s15161_s1 + $0x48] sm:$0xff] }
 0x299   :  { %v12277_v49 = vadd.f32 %v3632_v24, %v3605_v63  ;;  %v8070_v63 = vor.u32 %v9296_v29, %v8067_v45  ;;  %v9716_v29 = vld [vmem:[%s15161_s1 + $0x8] sm:$0xff] }
 0x29a   :  { %v9717_v45 = vld [vmem:[%s15161_s1 + $0x5c8] sm:$0xff] }
 0x29e   :  { %v3606_v3 = vpop.f32.mrf.mxu2  ;;  %v3645_v23 = vpop.f32.mrf.mxu0 }
 0x29f   :  { %v3634_v14 = vpop.f32.mrf.mxu3  ;;  %v3673_v33 = vpop.f32.mrf.mxu1  ;;  %v3646_v30 = vadd.f32 %v3645_v23, %v12124_v5  ;;  %v9695_v5 = vld [vmem:[%s15161_s1 + $0x638] sm:$0xff]  ;;  %v9706_v3 = vld [vmem:[%s15161_s1 + $0x60] sm:$0xff] }
 0x2a0   :  { %v9710_v23 = vld [vmem:[%s15161_s1 + $0x58] sm:$0xff] }
 0x2a1   :  { %v3674_v8 = vadd.f32 %v3673_v33, %v3646_v30  ;;  %3868 = vmatmul.bf16.vlgmr.msra.gmra.mxu0 %v7970_v18  ;;  %v9708_v18 = vld [vmem:[%s15161_s1 + $0x18] sm:$0xff] }
 0x2a2   :  { %3896 = vmatmul.bf16.vlgmr.msra.gmra.mxu1 %v7974_v19  ;;  %4084 = vmatpush.bf16.msra.mxu0 %v9693_v4  ;;  %v9709_v19 = vld [vmem:[%s15161_s1 + $0x5d8] sm:$0xff] }
 0x2a3   :  { %3924 = vmatmul.bf16.vlgmr.msra.gmra.mxu2 %v7978_v17  ;;  %4112 = vmatpush.bf16.msra.mxu1 %v9695_v5  ;;  %v9711_v4 = vld [vmem:[%s15161_s1 + $0x618] sm:$0xff] }
 0x2a4   :  { %3952 = vmatmul.bf16.vlgmr.msra.gmra.mxu3 %v7982_v27  ;;  %4712 = vmatpush.bf16.msra.mxu2 %v9692_v9 }
 0x2a5   :  { %4740 = vmatpush.bf16.msra.mxu3 %v9694_v26  ;;  %v9712_v26 = vld [vmem:[%s15161_s1 + $0x10] sm:$0xff] }
 0x2a6   :  { %v3701_v12 = vpop.f32.mrf.mxu2  ;;  %v3647_v39 = vpop.f32.mrf.mxu0  ;;  %4085 = vmatpush.bf16.msra.mxu0 %v9697_v51  ;;  %v8175_v51 = vld [vmem:[%s15163_s0 + $0x4f0] sm:$0xf0] }
 0x2a7   :  { %v3729_v36 = vpop.f32.mrf.mxu3  ;;  %v3702_v37 = vadd.f32 %v3701_v12, %v3674_v8  ;;  %v3675_v28 = vpop.f32.mrf.mxu1  ;;  %v3648_v40 = vadd.f32 %v3647_v39, %v12175_v55  ;;  %v9699_v55 = vld [vmem:[%s15161_s1 + $0x630] sm:$0xff]  ;;  %v8167_v39 = vld [vmem:[%s15163_s0 + $0x4e8] sm:$0xf0] }
 0x2a8   :  { %4713 = vmatpush.bf16.msra.mxu2 %v9696_v41  ;;  %4113 = vmatpush.bf16.msra.mxu1 %v9699_v55  ;;  %v9713_v12 = vld [vmem:[%s15161_s1 + $0x5d0] sm:$0xff]  ;;  %v9335_v55 = vld [vmem:[%s15163_s0 + $0x4f4] sm:$0xf0] }
 0x2a9   :  { %v12323_v47 = vadd.f32 %v3729_v36, %v3702_v37  ;;  %4741 = vmatpush.bf16.msra.mxu3 %v9698_v48  ;;  %v3676_v31 = vadd.f32 %v3675_v28, %v3648_v40  ;;  %v9321_v37 = vld [vmem:[%s15163_s0 + $0x488] sm:$0xf]  ;;  %v8173_v28 = vld [vmem:[%s15163_s0 + $0x48c] sm:$0xf]  ;;  %v9334_v40 = vld [vmem:[%s15163_s0 + $0x4ec] sm:$0xf0] }
 0x2aa   :  { %4086 = vmatpush.bf16.msra.mxu0 %v9701_v58  ;;  %v9322_v41 = vld [vmem:[%s15163_s0 + $0x490] sm:$0xf]  ;;  %v8181_v48 = vld [vmem:[%s15163_s0 + $0x494] sm:$0xf]  ;;  %v8170_v38 = vor.u32 %v9321_v37, %v8167_v39  ;;  %v8174_v1 = vor.u32 %v9334_v40, %v8173_v28 }
 0x2ac   :  { %4714 = vmatpush.bf16.msra.mxu2 %v9700_v35  ;;  %4114 = vmatpush.bf16.msra.mxu1 %v9703_v60  ;;  %v8182_v60 = vor.u32 %v9335_v55, %v8181_v48 }
 0x2ad   :  { %4742 = vmatpush.bf16.msra.mxu3 %v9702_v50  ;;  %v8178_v50 = vor.u32 %v9322_v41, %v8175_v51 }
 0x2ae   :  { %v3703_v6 = vpop.f32.mrf.mxu2  ;;  %v3650_v61 = vpop.f32.mrf.mxu0  ;;  %4087 = vmatpush.bf16.msra.mxu0 %v9705_v16 }
 0x2af   :  { %v3731_v24 = vpop.f32.mrf.mxu3  ;;  %v3704_v46 = vadd.f32 %v3703_v6, %v3676_v31  ;;  %v3678_v25 = vpop.f32.mrf.mxu1  ;;  %v3651_v10 = vadd.f32 %v3650_v61, %v12199_v22  ;;  %v9707_v22 = vld [vmem:[%s15161_s1 + $0x620] sm:$0xff]  ;;  %v9715_v31 = vld [vmem:[%s15161_s1 + $0x610] sm:$0xff] }
 0x2b0   :  { %4715 = vmatpush.bf16.msra.mxu2 %v9704_v0  ;;  %4115 = vmatpush.bf16.msra.mxu1 %v9707_v22  ;;  %v12467_v22 = vld [vmem:[%s15163_s0 + $0x55c] sm:$0x11] }
 0x2b1   :  { %v12374_v62 = vadd.f32 %v3731_v24, %v3704_v46  ;;  %4743 = vmatpush.bf16.msra.mxu3 %v9706_v3  ;;  %v3679_v14 = vadd.f32 %v3678_v25, %v3651_v10  ;;  %3873 = vmatmul.bf16.gmra.mxu0 %v8070_v63  ;;  %v9719_v24 = vld [vmem:[%s15161_s1 + $0x608] sm:$0xff]  ;;  %v9720_v63 = vld [vmem:[%s15161_s1] sm:$0xff]  ;;  %v7902_v3 = vld [vmem:[%s15163_s0 + $0x554] sm:$0x11] }
 0x2b2   :  { %3901 = vmatmul.bf16.gmra.mxu1 %v8074_v54  ;;  %4088 = vmatpush.bf16.msra.mxu0 %v9709_v19  ;;  %v9721_v46 = vld [vmem:[%s15161_s1 + $0x5c0] sm:$0xff] }
 0x2b3   :  { %3929 = vmatmul.bf16.gmra.mxu2 %v8078_v52  ;;  %v9723_v25 = vld [vmem:[%s15161_s1 + $0x600] sm:$0xff] }
 0x2b4   :  { %3957 = vmatmul.bf16.gmra.mxu3 %v8082_v7  ;;  %4716 = vmatpush.bf16.msra.mxu2 %v9708_v18 }
 0x2b5   :  { %4744 = vmatpush.bf16.msra.mxu3 %v9710_v23  ;;  %4116 = vmatpush.bf16.msra.mxu1 %v9711_v4  ;;  %v3230_v23 = vunpack.c.h.b16 %v12268_v20 }
 0x2b6   :  { %v3706_v33 = vpop.f32.mrf.mxu2  ;;  %v3652_v30 = vpop.f32.mrf.mxu0  ;;  %4089 = vmatpush.bf16.msra.mxu0 %v9713_v12 }
 0x2b7   :  { %v3734_v17 = vpop.f32.mrf.mxu3  ;;  %v3707_v27 = vadd.f32 %v3706_v33, %v3679_v14  ;;  %v3680_v8 = vpop.f32.mrf.mxu1  ;;  %v3653_v9 = vadd.f32 %v3652_v30, %v12250_v32  ;;  %v9714_v32 = vld [vmem:[%s15161_s1 + $0x50] sm:$0xff]  ;;  %v3231_v33 = vunpack.c.l.b16 %v7902_v3 }
 0x2b8   :  { %4717 = vmatpush.bf16.msra.mxu2 %v9712_v26 }
 0x2b9   :  { %v12398_v5 = vadd.f32 %v3734_v17, %v3707_v27  ;;  %4745 = vmatpush.bf16.msra.mxu3 %v9714_v32  ;;  %v3681_v36 = vadd.f32 %v3680_v8, %v3653_v9  ;;  %4117 = vmatpush.bf16.msra.mxu1 %v9715_v31  ;;  %v3232_v17 = vunpack.c.h.b16 %v7902_v3  ;;  %v3233_v27 = vunpack.c.l.b16 %v12467_v22  ;;  %v9273_v31 = vld [vmem:[%s15163_s0 + $0x308] sm:$0xf] }
 0x2ba   :  { %4090 = vmatpush.bf16.msra.mxu0 %v9717_v45  ;;  %v3330_v9 = vpack.c.b16 %v3230_v23, %v3230_v23  ;;  %v3331_v4 = vpack.c.b16 %v3231_v33, %v3231_v33  ;;  %v9286_v45 = vld [vmem:[%s15163_s0 + $0x36c] sm:$0xf0] }
 0x2bb   :  { %v3332_v32 = vpack.c.b16 %v3232_v17, %v3232_v17  ;;  %v9730_v33 = vld [vmem:[%s15161_s1 + $0x170] sm:$0xff] }
 0x2bc   :  { %4718 = vmatpush.bf16.msra.mxu2 %v9716_v29  ;;  %v7989_v29 = vld [vmem:[%s15163_s0 + $0x30c] sm:$0xf] }
 0x2bd   :  { %4746 = vmatpush.bf16.msra.mxu3 %v9718_v42  ;;  %4118 = vmatpush.bf16.msra.mxu1 %v9719_v24  ;;  %v9274_v42 = vld [vmem:[%s15163_s0 + $0x310] sm:$0xf] }
 0x2be   :  { %v3708_v56 = vpop.f32.mrf.mxu2  ;;  %v3655_v35 = vpop.f32.mrf.mxu0  ;;  %4091 = vmatpush.bf16.msra.mxu0 %v9721_v46 }
 0x2bf   :  { %v3736_v43 = vpop.f32.mrf.mxu3  ;;  %v3709_v57 = vadd.f32 %v3708_v56, %v3681_v36  ;;  %v3683_v58 = vpop.f32.mrf.mxu1  ;;  %v3656_v6 = vadd.f32 %v3655_v35, %v12270_v44  ;;  %v9722_v44 = vld [vmem:[%s15161_s1 + $0x40] sm:$0xff]  ;;  %v3333_v36 = vpack.c.b16 %v3233_v27, %v3233_v27  ;;  %v7991_v56 = vld [vmem:[%s15163_s0 + $0x370] sm:$0xf0]  ;;  %v9298_v27 = vld [vmem:[%s15163_s0 + $0x3d0] sm:$0xf] }
 0x2c0   :  { %4719 = vmatpush.bf16.msra.mxu2 %v9720_v63 }
 0x2c1   :  { %v12449_v54 = vadd.f32 %v3736_v43, %v3709_v57  ;;  %4747 = vmatpush.bf16.msra.mxu3 %v9722_v44  ;;  %v3684_v61 = vadd.f32 %v3683_v58, %v3656_v6  ;;  %3878 = vmatmul.bf16.gmra.mxu0 %v8170_v38  ;;  %v7997_v43 = vld [vmem:[%s15163_s0 + $0x314] sm:$0xf]  ;;  %v9287_v38 = vld [vmem:[%s15163_s0 + $0x374] sm:$0xf0]  ;;  %v7990_v58 = vor.u32 %v9286_v45, %v7989_v29 }
 0x2c2   :  { %3906 = vmatmul.bf16.gmra.mxu1 %v8174_v1  ;;  %v7994_v6 = vor.u32 %v9274_v42, %v7991_v56  ;;  %v7998_v24 = vor.u32 %v9287_v38, %v7997_v43  ;;  %v9724_v44 = vld [vmem:[%s15161_s1 + $0x138] sm:$0xff]  ;;  %v9736_v56 = vld [vmem:[%s15161_s1 + $0x120] sm:$0xff] }
 0x2c3   :  { %3934 = vmatmul.bf16.gmra.mxu2 %v8178_v50  ;;  %4119 = vmatpush.bf16.msra.mxu1 %v9723_v25  ;;  %v9726_v25 = vld [vmem:[%s15161_s1 + $0x178] sm:$0xff]  ;;  %v9737_v43 = vld [vmem:[%s15161_s1 + $0xa0] sm:$0xff] }
 0x2c4   :  { %3962 = vmatmul.bf16.gmra.mxu3 %v8182_v60 }
 0x2c6   :  { %v3711_v52 = vpop.f32.mrf.mxu2  ;;  %v3657_v0 = vpop.f32.mrf.mxu0 }
 0x2c7   :  { %v3739_v7 = vpop.f32.mrf.mxu3  ;;  %v3712_v10 = vadd.f32 %v3711_v52, %v3684_v61  ;;  %v3685_v16 = vpop.f32.mrf.mxu1  ;;  %v3658_v14 = vadd.f32 %v3657_v0, %v12275_v59  ;;  %v9725_v61 = vld [vmem:[%s15161_s1 + $0xb8] sm:$0xff] }
 0x2c9   :  { %v12469_v18 = vadd.f32 %v3739_v7, %v3712_v10  ;;  %v3686_v19 = vadd.f32 %v3685_v16, %v3658_v14  ;;  %v9728_v14 = vld [vmem:[%s15161_s1 + $0x130] sm:$0xff] }
 0x2ce   :  { %v3713_v30 = vpop.f32.mrf.mxu2  ;;  %v3660_v59 = vpop.f32.mrf.mxu0 }
 0x2cf   :  { %v3741_v8 = vpop.f32.mrf.mxu3  ;;  %v3714_v26 = vadd.f32 %v3713_v30, %v3686_v19  ;;  %v3688_v12 = vpop.f32.mrf.mxu1  ;;  %v3661_v37 = vadd.f32 %v3660_v59, %v12277_v49  ;;  %v7983_v49 = vld [vmem:[%s15163_s0 + $0x368] sm:$0xf0]  ;;  %v9729_v19 = vld [vmem:[%s15161_s1 + $0xb0] sm:$0xff]  ;;  %v8097_v59 = vld [vmem:[%s15163_s0 + $0x3dc] sm:$0xf] }
 0x2d0   :  { %v7986_v35 = vor.u32 %v9273_v31, %v7983_v49  ;;  %v8083_v30 = vld [vmem:[%s15163_s0 + $0x430] sm:$0xf0] }
 0x2d1   :  { %v12474_v39 = vadd.f32 %v3741_v8, %v3714_v26  ;;  %v3689_v28 = vadd.f32 %v3688_v12, %v3661_v37  ;;  %3883 = vmatmul.bf16.gmra.mxu0 %v3330_v9  ;;  %v8089_v8 = vld [vmem:[%s15163_s0 + $0x3d4] sm:$0xf]  ;;  %v9311_v9 = vld [vmem:[%s15163_s0 + $0x434] sm:$0xf0]  ;;  %v8091_v26 = vld [vmem:[%s15163_s0 + $0x438] sm:$0xf0] }
 0x2d2   :  { %3911 = vmatmul.bf16.gmra.mxu1 %v3331_v4  ;;  %v9299_v4 = vld [vmem:[%s15163_s0 + $0x3d8] sm:$0xf]  ;;  %v9312_v12 = vld [vmem:[%s15163_s0 + $0x43c] sm:$0xf0]  ;;  %v9734_v37 = vld [vmem:[%s15161_s1 + $0x168] sm:$0xff] }
 0x2d3   :  { %3939 = vmatmul.bf16.gmra.mxu2 %v3332_v32  ;;  %v9732_v32 = vld [vmem:[%s15161_s1 + $0x128] sm:$0xff]  ;;  %v8094_v29 = vor.u32 %v9299_v4, %v8091_v26  ;;  %v8098_v45 = vor.u32 %v9312_v12, %v8097_v59 }
 0x2d4   :  { %3967 = vmatmul.bf16.gmra.mxu3 %v3333_v36  ;;  %v9733_v36 = vld [vmem:[%s15161_s1 + $0xa8] sm:$0xff] }
 0x2d6   :  { %v3716_v20 = vpop.f32.mrf.mxu2  ;;  %v3662_v51 = vpop.f32.mrf.mxu0 }
 0x2d7   :  { %v3744_v40 = vpop.f32.mrf.mxu3  ;;  %v3717_v41 = vadd.f32 %v3716_v20, %v3689_v28  ;;  %v3690_v48 = vpop.f32.mrf.mxu1  ;;  %v9735_v28 = vld [vmem:[%s15161_s1 + $0xe8] sm:$0xff]  ;;  %v8090_v51 = vor.u32 %v9311_v9, %v8089_v8 }
 0x2d8   :  { %v9750_v8 = vld [vmem:[%s15161_s1 + $0x148] sm:$0xff] }
 0x2d9   :  { %v12476_v55 = vadd.f32 %v3744_v40, %v3717_v41  ;;  %v8086_v41 = vor.u32 %v9298_v27, %v8083_v30  ;;  %v9748_v27 = vld [vmem:[%s15161_s1 + $0x108] sm:$0xff] }
 0x2da   :  { %v9749_v30 = vld [vmem:[%s15161_s1 + $0x88] sm:$0xff] }
 0x2de   :  { %v3718_v1 = vpop.f32.mrf.mxu2  ;;  %v3757_v50 = vpop.f32.mrf.mxu0 }
 0x2df   :  { %v3746_v57 = vpop.f32.mrf.mxu3  ;;  %v3785_v60 = vpop.f32.mrf.mxu1  ;;  %v3758_v63 = vadd.f32 %v3757_v50, %v12323_v47  ;;  %v9727_v47 = vld [vmem:[%s15161_s1 + $0xf8] sm:$0xff]  ;;  %v9738_v1 = vld [vmem:[%s15161_s1 + $0x160] sm:$0xff] }
 0x2e0   :  { %v9742_v50 = vld [vmem:[%s15161_s1 + $0x158] sm:$0xff] }
 0x2e1   :  { %v3786_v46 = vadd.f32 %v3785_v60, %v3758_v63  ;;  %3980 = vmatmul.bf16.vlgmr.msrb.gmra.mxu0 %v7986_v35  ;;  %v9740_v35 = vld [vmem:[%s15161_s1 + $0x118] sm:$0xff] }
 0x2e2   :  { %4008 = vmatmul.bf16.vlgmr.msrb.gmra.mxu1 %v7990_v58  ;;  %4768 = vmatpush.bf16.msrb.mxu0 %v9725_v61  ;;  %v9741_v58 = vld [vmem:[%s15161_s1 + $0x98] sm:$0xff] }
 0x2e3   :  { %4036 = vmatmul.bf16.vlgmr.msrb.gmra.mxu2 %v7994_v6  ;;  %4796 = vmatpush.bf16.msrb.mxu1 %v9727_v47  ;;  %v9743_v61 = vld [vmem:[%s15161_s1 + $0xd8] sm:$0xff] }
 0x2e4   :  { %4064 = vmatmul.bf16.vlgmr.msrb.gmra.mxu3 %v7998_v24  ;;  %4824 = vmatpush.bf16.msrb.mxu2 %v9724_v44 }
 0x2e5   :  { %4852 = vmatpush.bf16.msrb.mxu3 %v9726_v25  ;;  %v9744_v25 = vld [vmem:[%s15161_s1 + $0x110] sm:$0xff] }
 0x2e6   :  { %v3813_v52 = vpop.f32.mrf.mxu2  ;;  %v3759_v0 = vpop.f32.mrf.mxu0  ;;  %4769 = vmatpush.bf16.msrb.mxu0 %v9729_v19  ;;  %v8191_v19 = vld [vmem:[%s15163_s0 + $0x500] sm:$0xf0] }
 0x2e7   :  { %v3841_v7 = vpop.f32.mrf.mxu3  ;;  %v3814_v10 = vadd.f32 %v3813_v52, %v3786_v46  ;;  %v3787_v16 = vpop.f32.mrf.mxu1  ;;  %v3760_v3 = vadd.f32 %v3759_v0, %v12374_v62  ;;  %v9731_v62 = vld [vmem:[%s15161_s1 + $0xf0] sm:$0xff]  ;;  %v8183_v0 = vld [vmem:[%s15163_s0 + $0x4f8] sm:$0xf0] }
 0x2e8   :  { %4825 = vmatpush.bf16.msrb.mxu2 %v9728_v14  ;;  %4797 = vmatpush.bf16.msrb.mxu1 %v9731_v62  ;;  %v9745_v52 = vld [vmem:[%s15161_s1 + $0x90] sm:$0xff]  ;;  %v9324_v14 = vld [vmem:[%s15163_s0 + $0x4a0] sm:$0xf]  ;;  %v9337_v62 = vld [vmem:[%s15163_s0 + $0x504] sm:$0xf0] }
 0x2e9   :  { %v12522_v23 = vadd.f32 %v3841_v7, %v3814_v10  ;;  %4853 = vmatpush.bf16.msrb.mxu3 %v9730_v33  ;;  %v3788_v17 = vadd.f32 %v3787_v16, %v3760_v3  ;;  %v9323_v10 = vld [vmem:[%s15163_s0 + $0x498] sm:$0xf]  ;;  %v8189_v16 = vld [vmem:[%s15163_s0 + $0x49c] sm:$0xf]  ;;  %v9336_v3 = vld [vmem:[%s15163_s0 + $0x4fc] sm:$0xf0] }
 0x2ea   :  { %4770 = vmatpush.bf16.msrb.mxu0 %v9733_v36  ;;  %v8197_v33 = vld [vmem:[%s15163_s0 + $0x4a4] sm:$0xf]  ;;  %v8186_v26 = vor.u32 %v9323_v10, %v8183_v0  ;;  %v8190_v59 = vor.u32 %v9336_v3, %v8189_v16 }
 0x2ec   :  { %4826 = vmatpush.bf16.msrb.mxu2 %v9732_v32  ;;  %4798 = vmatpush.bf16.msrb.mxu1 %v9735_v28  ;;  %v8198_v28 = vor.u32 %v9337_v62, %v8197_v33 }
 0x2ed   :  { %4854 = vmatpush.bf16.msrb.mxu3 %v9734_v37  ;;  %v8194_v37 = vor.u32 %v9324_v14, %v8191_v19 }
 0x2ee   :  { %v3815_v20 = vpop.f32.mrf.mxu2  ;;  %v3762_v31 = vpop.f32.mrf.mxu0  ;;  %4771 = vmatpush.bf16.msrb.mxu0 %v9737_v43 }
 0x2ef   :  { %v3843_v40 = vpop.f32.mrf.mxu3  ;;  %v3816_v48 = vadd.f32 %v3815_v20, %v3788_v17  ;;  %v3790_v49 = vpop.f32.mrf.mxu1  ;;  %v3763_v42 = vadd.f32 %v3762_v31, %v12398_v5  ;;  %v9739_v5 = vld [vmem:[%s15161_s1 + $0xe0] sm:$0xff]  ;;  %v9747_v17 = vld [vmem:[%s15161_s1 + $0xd0] sm:$0xff] }
 0x2f0   :  { %4827 = vmatpush.bf16.msrb.mxu2 %v9736_v56  ;;  %4799 = vmatpush.bf16.msrb.mxu1 %v9739_v5  ;;  %v12666_v5 = vld [vmem:[%s15163_s0 + $0x56c] sm:$0x11] }
 0x2f1   :  { %v12573_v38 = vadd.f32 %v3843_v40, %v3816_v48  ;;  %4855 = vmatpush.bf16.msrb.mxu3 %v9738_v1  ;;  %v3791_v57 = vadd.f32 %v3790_v49, %v3763_v42  ;;  %3985 = vmatmul.bf16.gmra.mxu0 %v8086_v41  ;;  %v9751_v40 = vld [vmem:[%s15161_s1 + $0xc8] sm:$0xff]  ;;  %v9752_v41 = vld [vmem:[%s15161_s1 + $0x100] sm:$0xff] }
 0x2f2   :  { %4013 = vmatmul.bf16.gmra.mxu1 %v8090_v51  ;;  %4772 = vmatpush.bf16.msrb.mxu0 %v9741_v58  ;;  %v9753_v48 = vld [vmem:[%s15161_s1 + $0x80] sm:$0xff] }
 0x2f3   :  { %4041 = vmatmul.bf16.gmra.mxu2 %v8094_v29  ;;  %v9755_v49 = vld [vmem:[%s15161_s1 + $0xc0] sm:$0xff] }
 0x2f4   :  { %4069 = vmatmul.bf16.gmra.mxu3 %v8098_v45  ;;  %4828 = vmatpush.bf16.msrb.mxu2 %v9740_v35  ;;  %v7904_v1 = vld [vmem:[%s15163_s0 + $0x564] sm:$0x11] }
 0x2f5   :  { %4856 = vmatpush.bf16.msrb.mxu3 %v9742_v50  ;;  %4800 = vmatpush.bf16.msrb.mxu1 %v9743_v61  ;;  %v3234_v50 = vunpack.c.h.b16 %v12467_v22 }
 0x2f6   :  { %v3818_v60 = vpop.f32.mrf.mxu2  ;;  %v3764_v63 = vpop.f32.mrf.mxu0  ;;  %4773 = vmatpush.bf16.msrb.mxu0 %v9745_v52 }
 0x2f7   :  { %v3846_v6 = vpop.f32.mrf.mxu3  ;;  %v3819_v24 = vadd.f32 %v3818_v60, %v3791_v57  ;;  %v3792_v46 = vpop.f32.mrf.mxu1  ;;  %v3765_v44 = vadd.f32 %v3764_v63, %v12449_v54  ;;  %v9746_v54 = vld [vmem:[%s15161_s1 + $0x150] sm:$0xff]  ;;  %v3235_v60 = vunpack.c.l.b16 %v7904_v1 }
 0x2f8   :  { %4829 = vmatpush.bf16.msrb.mxu2 %v9744_v25 }
 0x2f9   :  { %v12597_v47 = vadd.f32 %v3846_v6, %v3819_v24  ;;  %4857 = vmatpush.bf16.msrb.mxu3 %v9746_v54  ;;  %v3793_v7 = vadd.f32 %v3792_v46, %v3765_v44  ;;  %4801 = vmatpush.bf16.msrb.mxu1 %v9747_v17  ;;  %v3236_v6 = vunpack.c.h.b16 %v7904_v1  ;;  %v3237_v24 = vunpack.c.l.b16 %v12666_v5  ;;  %v9275_v17 = vld [vmem:[%s15163_s0 + $0x318] sm:$0xf] }
 0x2fa   :  { %4774 = vmatpush.bf16.msrb.mxu0 %v9749_v30  ;;  %v3334_v44 = vpack.c.b16 %v3234_v50, %v3234_v50  ;;  %v3335_v61 = vpack.c.b16 %v3235_v60, %v3235_v60  ;;  %v9288_v30 = vld [vmem:[%s15163_s0 + $0x37c] sm:$0xf0]  ;;  %v9762_v60 = vld [vmem:[%s15161_s1 + $0x270] sm:$0xff] }
 0x2fb   :  { %v3336_v54 = vpack.c.b16 %v3236_v6, %v3236_v6 }
 0x2fc   :  { %4830 = vmatpush.bf16.msrb.mxu2 %v9748_v27  ;;  %v8005_v27 = vld [vmem:[%s15163_s0 + $0x31c] sm:$0xf] }
 0x2fd   :  { %4858 = vmatpush.bf16.msrb.mxu3 %v9750_v8  ;;  %4802 = vmatpush.bf16.msrb.mxu1 %v9751_v40  ;;  %v8300_v8 = vld [vmem:[%s15163_s0 + $0x578] sm:$0xf] }
 0x2fe   :  { %v3820_v9 = vpop.f32.mrf.mxu2  ;;  %v3767_v32 = vpop.f32.mrf.mxu0  ;;  %4775 = vmatpush.bf16.msrb.mxu0 %v9753_v48 }
 0x2ff   :  { %v3848_v4 = vpop.f32.mrf.mxu3  ;;  %v3821_v12 = vadd.f32 %v3820_v9, %v3793_v7  ;;  %v3795_v36 = vpop.f32.mrf.mxu1  ;;  %v3768_v20 = vadd.f32 %v3767_v32, %v12469_v18  ;;  %v9754_v18 = vld [vmem:[%s15161_s1 + $0x140] sm:$0xff]  ;;  %v3337_v7 = vpack.c.b16 %v3237_v24, %v3237_v24  ;;  %v9351_v9 = vld [vmem:[%s15163_s0 + $0x5d8] sm:$0xf0] }
 0x300   :  { %4831 = vmatpush.bf16.msrb.mxu2 %v9752_v41  ;;  %v9300_v24 = vld [vmem:[%s15163_s0 + $0x3e0] sm:$0xf] }
 0x301   :  { %v12648_v51 = vadd.f32 %v3848_v4, %v3821_v12  ;;  %4859 = vmatpush.bf16.msrb.mxu3 %v9754_v18  ;;  %v3796_v31 = vadd.f32 %v3795_v36, %v3768_v20  ;;  %3990 = vmatmul.bf16.gmra.mxu0 %v8186_v26  ;;  %v9339_v4 = vld [vmem:[%s15163_s0 + $0x57c] sm:$0xf]  ;;  %v8302_v26 = vld [vmem:[%s15163_s0 + $0x5dc] sm:$0xf0]  ;;  %v8006_v36 = vor.u32 %v9288_v30, %v8005_v27 }
 0x302   :  { %4018 = vmatmul.bf16.gmra.mxu1 %v8190_v59  ;;  %v8301_v20 = vor.u32 %v9351_v9, %v8300_v8  ;;  %v8305_v40 = vor.u32 %v9339_v4, %v8302_v26  ;;  %v9756_v18 = vld [vmem:[%s15161_s1 + $0x238] sm:$0xff]  ;;  %v9768_v9 = vld [vmem:[%s15161_s1 + $0x220] sm:$0xff] }
 0x303   :  { %4046 = vmatmul.bf16.gmra.mxu2 %v8194_v37  ;;  %4803 = vmatpush.bf16.msrb.mxu1 %v9755_v49  ;;  %v9758_v49 = vld [vmem:[%s15161_s1 + $0x278] sm:$0xff]  ;;  %v9769_v4 = vld [vmem:[%s15161_s1 + $0x1a0] sm:$0xff] }
 0x304   :  { %4074 = vmatmul.bf16.gmra.mxu3 %v8198_v28 }
 0x306   :  { %v3823_v29 = vpop.f32.mrf.mxu2  ;;  %v3769_v56 = vpop.f32.mrf.mxu0 }
 0x307   :  { %v3851_v45 = vpop.f32.mrf.mxu3  ;;  %v3824_v42 = vadd.f32 %v3823_v29, %v3796_v31  ;;  %v3797_v43 = vpop.f32.mrf.mxu1  ;;  %v3770_v57 = vadd.f32 %v3769_v56, %v12474_v39  ;;  %v9757_v31 = vld [vmem:[%s15161_s1 + $0x1b8] sm:$0xff] }
 0x309   :  { %v12668_v35 = vadd.f32 %v3851_v45, %v3824_v42  ;;  %v3798_v58 = vadd.f32 %v3797_v43, %v3770_v57  ;;  %v9760_v57 = vld [vmem:[%s15161_s1 + $0x230] sm:$0xff] }
 0x30e   :  { %v3825_v63 = vpop.f32.mrf.mxu2  ;;  %v3772_v39 = vpop.f32.mrf.mxu0 }
 0x30f   :  { %v3853_v46 = vpop.f32.mrf.mxu3  ;;  %v3826_v25 = vadd.f32 %v3825_v63, %v3798_v58  ;;  %v3800_v52 = vpop.f32.mrf.mxu1  ;;  %v3773_v10 = vadd.f32 %v3772_v39, %v12476_v55  ;;  %v7999_v55 = vld [vmem:[%s15163_s0 + $0x378] sm:$0xf0]  ;;  %v9761_v58 = vld [vmem:[%s15161_s1 + $0x1b0] sm:$0xff]  ;;  %v8099_v63 = vld [vmem:[%s15163_s0 + $0x440] sm:$0xf0] }
 0x310   :  { %v8002_v32 = vor.u32 %v9275_v17, %v7999_v55  ;;  %v9364_v39 = vld [vmem:[%s15163_s0 + $0x644] sm:$0xf] }
 0x311   :  { %v12673_v0 = vadd.f32 %v3853_v46, %v3826_v25  ;;  %v3801_v16 = vadd.f32 %v3800_v52, %v3773_v10  ;;  %3995 = vmatmul.bf16.gmra.mxu0 %v3334_v44  ;;  %v8105_v46 = vld [vmem:[%s15163_s0 + $0x3e4] sm:$0xf]  ;;  %v9313_v44 = vld [vmem:[%s15163_s0 + $0x444] sm:$0xf0] }
 0x312   :  { %4023 = vmatmul.bf16.gmra.mxu1 %v3335_v61  ;;  %v8400_v61 = vld [vmem:[%s15163_s0 + $0x640] sm:$0xf]  ;;  %v9376_v25 = vld [vmem:[%s15163_s0 + $0x6a0] sm:$0xf0]  ;;  %v8402_v52 = vld [vmem:[%s15163_s0 + $0x6a4] sm:$0xf0] }
 0x313   :  { %4051 = vmatmul.bf16.gmra.mxu2 %v3336_v54  ;;  %v9764_v54 = vld [vmem:[%s15161_s1 + $0x228] sm:$0xff]  ;;  %v8401_v27 = vor.u32 %v9376_v25, %v8400_v61  ;;  %v8405_v30 = vor.u32 %v9364_v39, %v8402_v52 }
 0x314   :  { %4079 = vmatmul.bf16.gmra.mxu3 %v3337_v7  ;;  %v9765_v7 = vld [vmem:[%s15161_s1 + $0x1a8] sm:$0xff] }
 0x315   :  { %v9766_v10 = vld [vmem:[%s15161_s1 + $0x268] sm:$0xff] }
 0x316   :  { %v3828_v22 = vpop.f32.mrf.mxu2  ;;  %v3774_v19 = vpop.f32.mrf.mxu0 }
 0x317   :  { %v3856_v3 = vpop.f32.mrf.mxu3  ;;  %v3829_v14 = vadd.f32 %v3828_v22, %v3801_v16  ;;  %v3802_v33 = vpop.f32.mrf.mxu1  ;;  %v9767_v16 = vld [vmem:[%s15161_s1 + $0x1e8] sm:$0xff]  ;;  %v8106_v19 = vor.u32 %v9313_v44, %v8105_v46 }
 0x318   :  { %v9782_v46 = vld [vmem:[%s15161_s1 + $0x248] sm:$0xff] }
 0x319   :  { %v12675_v62 = vadd.f32 %v3856_v3, %v3829_v14  ;;  %v8102_v14 = vor.u32 %v9300_v24, %v8099_v63  ;;  %v9780_v24 = vld [vmem:[%s15161_s1 + $0x208] sm:$0xff] }
 0x31a   :  { %v9781_v63 = vld [vmem:[%s15161_s1 + $0x188] sm:$0xff] }
 0x31e   :  { %v3830_v59 = vpop.f32.mrf.mxu2  ;;  %v3869_v37 = vpop.f32.mrf.mxu0 }
 0x31f   :  { %v3858_v12 = vpop.f32.mrf.mxu3  ;;  %v3897_v28 = vpop.f32.mrf.mxu1  ;;  %v3870_v41 = vadd.f32 %v3869_v37, %v12522_v23  ;;  %v9759_v23 = vld [vmem:[%s15161_s1 + $0x1f8] sm:$0xff]  ;;  %v9770_v59 = vld [vmem:[%s15161_s1 + $0x260] sm:$0xff] }
 0x320   :  { %v9774_v37 = vld [vmem:[%s15161_s1 + $0x258] sm:$0xff] }
 0x321   :  { %v3898_v48 = vadd.f32 %v3897_v28, %v3870_v41  ;;  %4092 = vmatmul.bf16.vlgmr.msra.gmra.mxu0 %v8002_v32  ;;  %v9772_v32 = vld [vmem:[%s15161_s1 + $0x218] sm:$0xff] }
 0x322   :  { %4120 = vmatmul.bf16.vlgmr.msra.gmra.mxu1 %v8006_v36  ;;  %4880 = vmatpush.bf16.msra.mxu0 %v9757_v31  ;;  %v9773_v36 = vld [vmem:[%s15161_s1 + $0x198] sm:$0xff] }
 0x323   :  { %4720 = vmatmul.bf16.vlgmr.msra.gmra.mxu2 %v8301_v20  ;;  %4908 = vmatpush.bf16.msra.mxu1 %v9759_v23  ;;  %v9775_v31 = vld [vmem:[%s15161_s1 + $0x1d8] sm:$0xff] }
 0x324   :  { %4748 = vmatmul.bf16.vlgmr.msra.gmra.mxu3 %v8305_v40  ;;  %4936 = vmatpush.bf16.msra.mxu2 %v9756_v18 }
 0x325   :  { %4964 = vmatpush.bf16.msra.mxu3 %v9758_v49  ;;  %v9776_v49 = vld [vmem:[%s15161_s1 + $0x210] sm:$0xff] }
 0x326   :  { %v3925_v29 = vpop.f32.mrf.mxu2  ;;  %v3871_v56 = vpop.f32.mrf.mxu0  ;;  %4881 = vmatpush.bf16.msra.mxu0 %v9761_v58  ;;  %v9401_v58 = vld [vmem:[%s15163_s0 + $0x768] sm:$0xf0] }
 0x327   :  { %v3953_v45 = vpop.f32.mrf.mxu3  ;;  %v3926_v42 = vadd.f32 %v3925_v29, %v3898_v48  ;;  %v3899_v43 = vpop.f32.mrf.mxu1  ;;  %v3872_v1 = vadd.f32 %v3871_v56, %v12573_v38  ;;  %v9763_v38 = vld [vmem:[%s15161_s1 + $0x1f0] sm:$0xff]  ;;  %v8199_v56 = vld [vmem:[%s15163_s0 + $0x508] sm:$0xf0] }
 0x328   :  { %4937 = vmatpush.bf16.msra.mxu2 %v9760_v57  ;;  %4909 = vmatpush.bf16.msra.mxu1 %v9763_v38  ;;  %v9777_v29 = vld [vmem:[%s15161_s1 + $0x190] sm:$0xff]  ;;  %v8500_v57 = vld [vmem:[%s15163_s0 + $0x708] sm:$0xf] }
 0x329   :  { %v12721_v50 = vadd.f32 %v3953_v45, %v3926_v42  ;;  %4965 = vmatpush.bf16.msra.mxu3 %v9762_v60  ;;  %v3900_v6 = vadd.f32 %v3899_v43, %v3872_v1  ;;  %v9325_v42 = vld [vmem:[%s15163_s0 + $0x4a8] sm:$0xf]  ;;  %v8205_v43 = vld [vmem:[%s15163_s0 + $0x4ac] sm:$0xf]  ;;  %v9338_v1 = vld [vmem:[%s15163_s0 + $0x50c] sm:$0xf0] }
 0x32a   :  { %4882 = vmatpush.bf16.msra.mxu0 %v9765_v7  ;;  %v9389_v60 = vld [vmem:[%s15163_s0 + $0x70c] sm:$0xf]  ;;  %v8502_v38 = vld [vmem:[%s15163_s0 + $0x76c] sm:$0xf0]  ;;  %v8202_v25 = vor.u32 %v9325_v42, %v8199_v56  ;;  %v8206_v39 = vor.u32 %v9338_v1, %v8205_v43 }
 0x32c   :  { %4938 = vmatpush.bf16.msra.mxu2 %v9764_v54  ;;  %4910 = vmatpush.bf16.msra.mxu1 %v9767_v16  ;;  %v8505_v16 = vor.u32 %v9389_v60, %v8502_v38 }
 0x32d   :  { %4966 = vmatpush.bf16.msra.mxu3 %v9766_v10  ;;  %v8501_v10 = vor.u32 %v9401_v58, %v8500_v57 }
 0x32e   :  { %v3927_v22 = vpop.f32.mrf.mxu2  ;;  %v3874_v17 = vpop.f32.mrf.mxu0  ;;  %4883 = vmatpush.bf16.msra.mxu0 %v9769_v4 }
 0x32f   :  { %v3955_v3 = vpop.f32.mrf.mxu3  ;;  %v3928_v33 = vadd.f32 %v3927_v22, %v3900_v6  ;;  %v3902_v55 = vpop.f32.mrf.mxu1  ;;  %v3875_v8 = vadd.f32 %v3874_v17, %v12597_v47  ;;  %v9771_v47 = vld [vmem:[%s15161_s1 + $0x1e0] sm:$0xff]  ;;  %v9779_v6 = vld [vmem:[%s15161_s1 + $0x1d0] sm:$0xff] }
 0x330   :  { %4939 = vmatpush.bf16.msra.mxu2 %v9768_v9  ;;  %4911 = vmatpush.bf16.msra.mxu1 %v9771_v47  ;;  %v8285_v47 = vld [vmem:[%s15163_s0 + $0x7d0] sm:$0x11] }
 0x331   :  { %v12772_v26 = vadd.f32 %v3955_v3, %v3928_v33  ;;  %4967 = vmatpush.bf16.msra.mxu3 %v9770_v59  ;;  %v3903_v12 = vadd.f32 %v3902_v55, %v3875_v8  ;;  %4097 = vmatmul.bf16.gmra.mxu0 %v8102_v14  ;;  %v9783_v3 = vld [vmem:[%s15161_s1 + $0x1c8] sm:$0xff]  ;;  %v9784_v14 = vld [vmem:[%s15161_s1 + $0x200] sm:$0xff]  ;;  %v7906_v59 = vld [vmem:[%s15163_s0 + $0x574] sm:$0x1] }
 0x332   :  { %4125 = vmatmul.bf16.gmra.mxu1 %v8106_v19  ;;  %4884 = vmatpush.bf16.msra.mxu0 %v9773_v36  ;;  %v9785_v33 = vld [vmem:[%s15161_s1 + $0x180] sm:$0xff] }
 0x333   :  { %4725 = vmatmul.bf16.gmra.mxu2 %v8401_v27  ;;  %v9787_v55 = vld [vmem:[%s15161_s1 + $0x1c0] sm:$0xff] }
 0x334   :  { %4753 = vmatmul.bf16.gmra.mxu3 %v8405_v30  ;;  %4940 = vmatpush.bf16.msra.mxu2 %v9772_v32 }
 0x335   :  { %4968 = vmatpush.bf16.msra.mxu3 %v9774_v37  ;;  %4912 = vmatpush.bf16.msra.mxu1 %v9775_v31  ;;  %v3238_v37 = vunpack.c.h.b16 %v12666_v5 }
 0x336   :  { %v3930_v28 = vpop.f32.mrf.mxu2  ;;  %v3876_v41 = vpop.f32.mrf.mxu0  ;;  %4885 = vmatpush.bf16.msra.mxu0 %v9777_v29 }
 0x337   :  { %v3958_v20 = vpop.f32.mrf.mxu3  ;;  %v3931_v40 = vadd.f32 %v3930_v28, %v3903_v12  ;;  %v3904_v48 = vpop.f32.mrf.mxu1  ;;  %v3877_v18 = vadd.f32 %v3876_v41, %v12648_v51  ;;  %v9778_v51 = vld [vmem:[%s15161_s1 + $0x250] sm:$0xff]  ;;  %v3239_v28 = vunpack.c.l.b16 %v7906_v59 }
 0x338   :  { %4941 = vmatpush.bf16.msra.mxu2 %v9776_v49 }
 0x339   :  { %v12796_v23 = vadd.f32 %v3958_v20, %v3931_v40  ;;  %4969 = vmatpush.bf16.msra.mxu3 %v9778_v51  ;;  %v3905_v45 = vadd.f32 %v3904_v48, %v3877_v18  ;;  %4913 = vmatpush.bf16.msra.mxu1 %v9779_v6  ;;  %v4487_v20 = vunpack.c.l.b16 %v8285_v47  ;;  %v4488_v40 = vunpack.c.h.b16 %v8285_v47  ;;  %v8308_v6 = vld [vmem:[%s15163_s0 + $0x580] sm:$0xf]  ;;  %v9793_v47 = vld [vmem:[%s15161_s1 + $0x2b0] sm:$0xff] }
 0x33a   :  { %4886 = vmatpush.bf16.msra.mxu0 %v9781_v63  ;;  %v3338_v18 = vpack.c.b16 %v3238_v37, %v3238_v37  ;;  %v3339_v31 = vpack.c.b16 %v3239_v28, %v3239_v28  ;;  %v8310_v63 = vld [vmem:[%s15163_s0 + $0x5e4] sm:$0xf0]  ;;  %v9794_v37 = vld [vmem:[%s15161_s1 + $0x370] sm:$0xff] }
 0x33c   :  { %4942 = vmatpush.bf16.msra.mxu2 %v9780_v24  ;;  %v9340_v24 = vld [vmem:[%s15163_s0 + $0x584] sm:$0xf] }
 0x33d   :  { %4970 = vmatpush.bf16.msra.mxu3 %v9782_v46  ;;  %4914 = vmatpush.bf16.msra.mxu1 %v9783_v3  ;;  %v8316_v46 = vld [vmem:[%s15163_s0 + $0x588] sm:$0xf] }
 0x33e   :  { %v3932_v44 = vpop.f32.mrf.mxu2  ;;  %v3879_v54 = vpop.f32.mrf.mxu0  ;;  %4887 = vmatpush.bf16.msra.mxu0 %v9785_v33 }
 0x33f   :  { %v3960_v61 = vpop.f32.mrf.mxu3  ;;  %v3933_v52 = vadd.f32 %v3932_v44, %v3905_v45  ;;  %v3907_v7 = vpop.f32.mrf.mxu1  ;;  %v3880_v22 = vadd.f32 %v3879_v54, %v12668_v35  ;;  %v9786_v35 = vld [vmem:[%s15161_s1 + $0x240] sm:$0xff]  ;;  %v4588_v45 = vpack.c.b16 %v4488_v40, %v4488_v40  ;;  %v9353_v44 = vld [vmem:[%s15163_s0 + $0x5e8] sm:$0xf0] }
 0x340   :  { %4943 = vmatpush.bf16.msra.mxu2 %v9784_v14  ;;  %v9377_v40 = vld [vmem:[%s15163_s0 + $0x6a8] sm:$0xf0] }
 0x341   :  { %v12847_v19 = vadd.f32 %v3960_v61, %v3933_v52  ;;  %4971 = vmatpush.bf16.msra.mxu3 %v9786_v35  ;;  %v3908_v17 = vadd.f32 %v3907_v7, %v3880_v22  ;;  %4102 = vmatmul.bf16.gmra.mxu0 %v8202_v25  ;;  %v9341_v61 = vld [vmem:[%s15163_s0 + $0x58c] sm:$0xf]  ;;  %v8318_v25 = vld [vmem:[%s15163_s0 + $0x5ec] sm:$0xf0]  ;;  %v8313_v7 = vor.u32 %v9340_v24, %v8310_v63  ;;  %v9788_v35 = vld [vmem:[%s15161_s1 + $0x338] sm:$0xff] }
 0x342   :  { %4130 = vmatmul.bf16.gmra.mxu1 %v8206_v39  ;;  %v8317_v22 = vor.u32 %v9353_v44, %v8316_v46  ;;  %v8321_v3 = vor.u32 %v9341_v61, %v8318_v25  ;;  %v9800_v46 = vld [vmem:[%s15161_s1 + $0x320] sm:$0xff] }
 0x343   :  { %4730 = vmatmul.bf16.gmra.mxu2 %v8501_v10  ;;  %4915 = vmatpush.bf16.msra.mxu1 %v9787_v55  ;;  %v9790_v55 = vld [vmem:[%s15161_s1 + $0x378] sm:$0xff]  ;;  %v9801_v44 = vld [vmem:[%s15161_s1 + $0x2a0] sm:$0xff] }
 0x344   :  { %4758 = vmatmul.bf16.gmra.mxu3 %v8505_v16  ;;  %v9802_v25 = vld [vmem:[%s15161_s1 + $0x360] sm:$0xff] }
 0x346   :  { %v3935_v27 = vpop.f32.mrf.mxu2  ;;  %v3881_v9 = vpop.f32.mrf.mxu0 }
 0x347   :  { %v3963_v30 = vpop.f32.mrf.mxu3  ;;  %v3936_v8 = vadd.f32 %v3935_v27, %v3908_v17  ;;  %v3909_v4 = vpop.f32.mrf.mxu1  ;;  %v3882_v12 = vadd.f32 %v3881_v9, %v12673_v0  ;;  %v4587_v0 = vpack.c.b16 %v4487_v20, %v4487_v20  ;;  %v9789_v17 = vld [vmem:[%s15161_s1 + $0x2b8] sm:$0xff]  ;;  %v8408_v20 = vld [vmem:[%s15163_s0 + $0x648] sm:$0xf] }
 0x349   :  { %v12865_v32 = vadd.f32 %v3963_v30, %v3936_v8  ;;  %v3910_v36 = vadd.f32 %v3909_v4, %v3882_v12  ;;  %v9792_v12 = vld [vmem:[%s15161_s1 + $0x330] sm:$0xff] }
 0x34e   :  { %v3937_v41 = vpop.f32.mrf.mxu2  ;;  %v3884_v29 = vpop.f32.mrf.mxu0 }
 0x34f   :  { %v3965_v48 = vpop.f32.mrf.mxu3  ;;  %v3938_v49 = vadd.f32 %v3937_v41, %v3910_v36  ;;  %v3912_v51 = vpop.f32.mrf.mxu1  ;;  %v3885_v42 = vadd.f32 %v3884_v29, %v12675_v62  ;;  %v9352_v62 = vld [vmem:[%s15163_s0 + $0x5e0] sm:$0xf0]  ;;  %v9365_v41 = vld [vmem:[%s15163_s0 + $0x64c] sm:$0xf]  ;;  %v8418_v29 = vld [vmem:[%s15163_s0 + $0x6b4] sm:$0xf0] }
 0x350   :  { %v8309_v54 = vor.u32 %v9352_v62, %v8308_v6 }
 0x351   :  { %v12869_v56 = vadd.f32 %v3965_v48, %v3938_v49  ;;  %v3913_v43 = vadd.f32 %v3912_v51, %v3885_v42  ;;  %4107 = vmatmul.bf16.gmra.mxu0 %v3338_v18  ;;  %v8410_v48 = vld [vmem:[%s15163_s0 + $0x6ac] sm:$0xf0]  ;;  %v9366_v49 = vld [vmem:[%s15163_s0 + $0x654] sm:$0xf]  ;;  %v9796_v51 = vld [vmem:[%s15161_s1 + $0x328] sm:$0xff] }
 0x352   :  { %4135 = vmatmul.bf16.gmra.mxu1 %v3339_v31  ;;  %v8416_v18 = vld [vmem:[%s15163_s0 + $0x650] sm:$0xf]  ;;  %v9378_v31 = vld [vmem:[%s15163_s0 + $0x6b0] sm:$0xf0]  ;;  %v9799_v42 = vld [vmem:[%s15161_s1 + $0x2e8] sm:$0xff]  ;;  %v8421_v24 = vor.u32 %v9366_v49, %v8418_v29 }
 0x353   :  { %4735 = vmatmul.bf16.gmra.mxu2 %v4587_v0  ;;  %v9797_v0 = vld [vmem:[%s15161_s1 + $0x2a8] sm:$0xff]  ;;  %v8417_v62 = vor.u32 %v9378_v31, %v8416_v18 }
 0x354   :  { %4763 = vmatmul.bf16.gmra.mxu3 %v4588_v45  ;;  %v9798_v45 = vld [vmem:[%s15161_s1 + $0x368] sm:$0xff] }
 0x356   :  { %v3940_v5 = vpop.f32.mrf.mxu2  ;;  %v3886_v58 = vpop.f32.mrf.mxu0 }
 0x357   :  { %v3968_v1 = vpop.f32.mrf.mxu3  ;;  %v3941_v57 = vadd.f32 %v3940_v5, %v3913_v43  ;;  %v3914_v60 = vpop.f32.mrf.mxu1 }
 0x359   :  { %v12871_v38 = vadd.f32 %v3968_v1, %v3941_v57  ;;  %v8409_v1 = vor.u32 %v9377_v40, %v8408_v20  ;;  %v8413_v57 = vor.u32 %v9365_v41, %v8410_v48  ;;  %v9813_v20 = vld [vmem:[%s15161_s1 + $0x288] sm:$0xff] }
 0x35a   :  { %v9814_v40 = vld [vmem:[%s15161_s1 + $0x348] sm:$0xff] }
 0x35e   :  { %v3942_v39 = vpop.f32.mrf.mxu2  ;;  %v3981_v10 = vpop.f32.mrf.mxu0 }
 0x35f   :  { %v3970_v52 = vpop.f32.mrf.mxu3  ;;  %v4009_v16 = vpop.f32.mrf.mxu1  ;;  %v3982_v14 = vadd.f32 %v3981_v10, %v12721_v50  ;;  %v9791_v50 = vld [vmem:[%s15161_s1 + $0x2f8] sm:$0xff] }
 0x360   :  { %v9804_v52 = vld [vmem:[%s15161_s1 + $0x318] sm:$0xff] }
 0x361   :  { %v4010_v33 = vadd.f32 %v4009_v16, %v3982_v14  ;;  %4776 = vmatmul.bf16.vlgmr.msrb.gmra.mxu0 %v8309_v54  ;;  %v9805_v54 = vld [vmem:[%s15161_s1 + $0x298] sm:$0xff] }
 0x362   :  { %4804 = vmatmul.bf16.vlgmr.msrb.gmra.mxu1 %v8313_v7  ;;  %4992 = vmatpush.bf16.msrb.mxu0 %v9789_v17  ;;  %v9806_v7 = vld [vmem:[%s15161_s1 + $0x358] sm:$0xff]  ;;  %v9808_v17 = vld [vmem:[%s15161_s1 + $0x310] sm:$0xff] }
 0x363   :  { %4832 = vmatmul.bf16.vlgmr.msrb.gmra.mxu2 %v8317_v22  ;;  %5020 = vmatpush.bf16.msrb.mxu1 %v9791_v50  ;;  %v9809_v50 = vld [vmem:[%s15161_s1 + $0x290] sm:$0xff] }
 0x364   :  { %4860 = vmatmul.bf16.vlgmr.msrb.gmra.mxu3 %v8321_v3  ;;  %5048 = vmatpush.bf16.msrb.mxu2 %v9788_v35  ;;  %v9807_v35 = vld [vmem:[%s15161_s1 + $0x2d8] sm:$0xff] }
 0x365   :  { %5076 = vmatpush.bf16.msrb.mxu3 %v9790_v55 }
 0x366   :  { %v4037_v27 = vpop.f32.mrf.mxu2  ;;  %v3983_v9 = vpop.f32.mrf.mxu0  ;;  %4993 = vmatpush.bf16.msrb.mxu0 %v9793_v47  ;;  %v9391_v47 = vld [vmem:[%s15163_s0 + $0x71c] sm:$0xf] }
 0x367   :  { %v4065_v30 = vpop.f32.mrf.mxu3  ;;  %v4038_v8 = vadd.f32 %v4037_v27, %v4010_v33  ;;  %v4011_v4 = vpop.f32.mrf.mxu1  ;;  %v3984_v59 = vadd.f32 %v3983_v9, %v12772_v26  ;;  %v9795_v26 = vld [vmem:[%s15161_s1 + $0x2f0] sm:$0xff] }
 0x368   :  { %5049 = vmatpush.bf16.msrb.mxu2 %v9792_v12  ;;  %5021 = vmatpush.bf16.msrb.mxu1 %v9795_v26  ;;  %v9390_v9 = vld [vmem:[%s15163_s0 + $0x714] sm:$0xf]  ;;  %v9403_v12 = vld [vmem:[%s15163_s0 + $0x778] sm:$0xf0] }
 0x369   :  { %v12917_v36 = vadd.f32 %v4065_v30, %v4038_v8  ;;  %5077 = vmatpush.bf16.msrb.mxu3 %v9794_v37  ;;  %v4012_v28 = vadd.f32 %v4011_v4, %v3984_v59  ;;  %v8508_v30 = vld [vmem:[%s15163_s0 + $0x710] sm:$0xf]  ;;  %v9402_v8 = vld [vmem:[%s15163_s0 + $0x770] sm:$0xf0]  ;;  %v8510_v4 = vld [vmem:[%s15163_s0 + $0x774] sm:$0xf0] }
 0x36a   :  { %4994 = vmatpush.bf16.msrb.mxu0 %v9797_v0  ;;  %v8516_v59 = vld [vmem:[%s15163_s0 + $0x718] sm:$0xf]  ;;  %v8518_v37 = vld [vmem:[%s15163_s0 + $0x77c] sm:$0xf0]  ;;  %v9811_v26 = vld [vmem:[%s15161_s1 + $0x2d0] sm:$0xff]  ;;  %v8509_v18 = vor.u32 %v9402_v8, %v8508_v30  ;;  %v8513_v31 = vor.u32 %v9390_v9, %v8510_v4 }
 0x36b   :  { %v8517_v0 = vor.u32 %v9403_v12, %v8516_v59 }
 0x36c   :  { %5050 = vmatpush.bf16.msrb.mxu2 %v9796_v51  ;;  %5022 = vmatpush.bf16.msrb.mxu1 %v9799_v42 }
 0x36d   :  { %5078 = vmatpush.bf16.msrb.mxu3 %v9798_v45  ;;  %v8521_v45 = vor.u32 %v9391_v47, %v8518_v37 }
 0x36e   :  { %v4039_v43 = vpop.f32.mrf.mxu2  ;;  %v3986_v60 = vpop.f32.mrf.mxu0  ;;  %4995 = vmatpush.bf16.msrb.mxu0 %v9801_v44  ;;  %v8286_v44 = vld [vmem:[%s15163_s0 + $0x7d8] sm:$0x11] }
 0x36f   :  { %v4067_v5 = vpop.f32.mrf.mxu3  ;;  %v4040_v58 = vadd.f32 %v4039_v43, %v4012_v28  ;;  %v4014_v6 = vpop.f32.mrf.mxu1  ;;  %v3987_v63 = vadd.f32 %v3986_v60, %v12796_v23  ;;  %v9803_v23 = vld [vmem:[%s15161_s1 + $0x2e0] sm:$0xff]  ;;  %v9812_v28 = vld [vmem:[%s15161_s1 + $0x308] sm:$0xff] }
 0x370   :  { %5051 = vmatpush.bf16.msrb.mxu2 %v9800_v46  ;;  %5023 = vmatpush.bf16.msrb.mxu1 %v9803_v23  ;;  %v9815_v43 = vld [vmem:[%s15161_s1 + $0x2c8] sm:$0xff]  ;;  %v9819_v60 = vld [vmem:[%s15161_s1 + $0x2c0] sm:$0xff] }
 0x371   :  { %v12968_v61 = vadd.f32 %v4067_v5, %v4040_v58  ;;  %5079 = vmatpush.bf16.msrb.mxu3 %v9802_v25  ;;  %v4015_v39 = vadd.f32 %v4014_v6, %v3987_v63  ;;  %4781 = vmatmul.bf16.gmra.mxu0 %v8409_v1  ;;  %v9816_v5 = vld [vmem:[%s15161_s1 + $0x300] sm:$0xff] }
 0x372   :  { %4809 = vmatmul.bf16.gmra.mxu1 %v8413_v57  ;;  %4996 = vmatpush.bf16.msrb.mxu0 %v9805_v54  ;;  %v9817_v57 = vld [vmem:[%s15161_s1 + $0x280] sm:$0xff]  ;;  %v4489_v54 = vunpack.c.l.b16 %v8286_v44 }
 0x373   :  { %4837 = vmatmul.bf16.gmra.mxu2 %v8417_v62 }
 0x374   :  { %4865 = vmatmul.bf16.gmra.mxu3 %v8421_v24  ;;  %5052 = vmatpush.bf16.msrb.mxu2 %v9804_v52 }
 0x375   :  { %5080 = vmatpush.bf16.msrb.mxu3 %v9806_v7  ;;  %5024 = vmatpush.bf16.msrb.mxu1 %v9807_v35  ;;  %v4490_v7 = vunpack.c.h.b16 %v8286_v44 }
 0x376   :  { %v4042_v10 = vpop.f32.mrf.mxu2  ;;  %v3988_v3 = vpop.f32.mrf.mxu0  ;;  %4997 = vmatpush.bf16.msrb.mxu0 %v9809_v50 }
 0x377   :  { %v4070_v16 = vpop.f32.mrf.mxu3  ;;  %v4043_v22 = vadd.f32 %v4042_v10, %v4015_v39  ;;  %v4016_v14 = vpop.f32.mrf.mxu1  ;;  %v3989_v33 = vadd.f32 %v3988_v3, %v12847_v19  ;;  %v9810_v19 = vld [vmem:[%s15161_s1 + $0x350] sm:$0xff]  ;;  %v8287_v39 = vld [vmem:[%s15163_s0 + $0x7e0] sm:$0x11] }
 0x378   :  { %5053 = vmatpush.bf16.msrb.mxu2 %v9808_v17  ;;  %v4491_v10 = vunpack.c.l.b16 %v8287_v39 }
 0x379   :  { %v12992_v55 = vadd.f32 %v4070_v16, %v4043_v22  ;;  %5081 = vmatpush.bf16.msrb.mxu3 %v9810_v19  ;;  %v4017_v27 = vadd.f32 %v4016_v14, %v3989_v33  ;;  %5025 = vmatpush.bf16.msrb.mxu1 %v9811_v26  ;;  %v4492_v16 = vunpack.c.h.b16 %v8287_v39  ;;  %v4589_v14 = vpack.c.b16 %v4489_v54, %v4489_v54  ;;  %v8324_v26 = vld [vmem:[%s15163_s0 + $0x590] sm:$0xf] }
 0x37a   :  { %4998 = vmatpush.bf16.msrb.mxu0 %v9813_v20  ;;  %v4590_v33 = vpack.c.b16 %v4490_v7, %v4490_v7  ;;  %v4591_v19 = vpack.c.b16 %v4491_v10, %v4491_v10  ;;  %v8326_v20 = vld [vmem:[%s15163_s0 + $0x5f4] sm:$0xf0]  ;;  %v9825_v54 = vld [vmem:[%s15161_s1 + $0x430] sm:$0xff] }
 0x37b   :  { %v9826_v7 = vld [vmem:[%s15161_s1 + $0x3b0] sm:$0xff] }
 0x37c   :  { %5054 = vmatpush.bf16.msrb.mxu2 %v9812_v28  ;;  %v9342_v28 = vld [vmem:[%s15163_s0 + $0x594] sm:$0xf] }
 0x37d   :  { %5082 = vmatpush.bf16.msrb.mxu3 %v9814_v40  ;;  %5026 = vmatpush.bf16.msrb.mxu1 %v9815_v43  ;;  %v8332_v40 = vld [vmem:[%s15163_s0 + $0x598] sm:$0xf] }
 0x37e   :  { %v4044_v41 = vpop.f32.mrf.mxu2  ;;  %v3991_v29 = vpop.f32.mrf.mxu0  ;;  %4999 = vmatpush.bf16.msrb.mxu0 %v9817_v57 }
 0x37f   :  { %v4072_v48 = vpop.f32.mrf.mxu3  ;;  %v4045_v49 = vadd.f32 %v4044_v41, %v4017_v27  ;;  %v4019_v51 = vpop.f32.mrf.mxu1  ;;  %v3992_v42 = vadd.f32 %v3991_v29, %v12865_v32  ;;  %v9818_v32 = vld [vmem:[%s15161_s1 + $0x340] sm:$0xff]  ;;  %v9355_v41 = vld [vmem:[%s15163_s0 + $0x5f8] sm:$0xf0] }
 0x380   :  { %5055 = vmatpush.bf16.msrb.mxu2 %v9816_v5 }
 0x381   :  { %v13043_v1 = vadd.f32 %v4072_v48, %v4045_v49  ;;  %5083 = vmatpush.bf16.msrb.mxu3 %v9818_v32  ;;  %v4020_v58 = vadd.f32 %v4019_v51, %v3992_v42  ;;  %4786 = vmatmul.bf16.gmra.mxu0 %v8509_v18  ;;  %v9343_v48 = vld [vmem:[%s15163_s0 + $0x59c] sm:$0xf]  ;;  %v8334_v18 = vld [vmem:[%s15163_s0 + $0x5fc] sm:$0xf0]  ;;  %v8329_v51 = vor.u32 %v9342_v28, %v8326_v20  ;;  %v2875_v32 = vmax.f32 %v11880_v21, 0.0 }
 0x382   :  { %4814 = vmatmul.bf16.gmra.mxu1 %v8513_v31  ;;  %v8333_v42 = vor.u32 %v9355_v41, %v8332_v40  ;;  %v8337_v43 = vor.u32 %v9343_v48, %v8334_v18  ;;  %v9823_v21 = vld [vmem:[%s15161_s1 + $0x3f8] sm:$0xff] }
 0x383   :  { %4842 = vmatmul.bf16.gmra.mxu2 %v8517_v0  ;;  %5027 = vmatpush.bf16.msrb.mxu1 %v9819_v60  ;;  %v9820_v60 = vld [vmem:[%s15161_s1 + $0x438] sm:$0xff] }
 0x384   :  { %4870 = vmatmul.bf16.gmra.mxu3 %v8521_v45 }
 0x386   :  { %v4047_v6 = vpop.f32.mrf.mxu2  ;;  %v3993_v63 = vpop.f32.mrf.mxu0 }
 0x387   :  { %v4075_v62 = vpop.f32.mrf.mxu3  ;;  %v4048_v24 = vadd.f32 %v4047_v6, %v4020_v58  ;;  %v4021_v46 = vpop.f32.mrf.mxu1  ;;  %v3994_v25 = vadd.f32 %v3993_v63, %v12869_v56  ;;  %v4592_v56 = vpack.c.b16 %v4492_v16, %v4492_v16  ;;  %v9821_v6 = vld [vmem:[%s15161_s1 + $0x3b8] sm:$0xff]  ;;  %v9827_v16 = vld [vmem:[%s15161_s1 + $0x470] sm:$0xff] }
 0x389   :  { %v13061_v23 = vadd.f32 %v4075_v62, %v4048_v24  ;;  %v4022_v52 = vadd.f32 %v4021_v46, %v3994_v25  ;;  %v13111_v46 = vld [vmem:[%s15162_s2] ss:$0 sm:$0xff] }
 0x38e   :  { %v4049_v22 = vpop.f32.mrf.mxu2  ;;  %v3996_v17 = vpop.f32.mrf.mxu0 }
 0x38f   :  { %v4077_v3 = vpop.f32.mrf.mxu3  ;;  %v4050_v35 = vadd.f32 %v4049_v22, %v4022_v52  ;;  %v4024_v50 = vpop.f32.mrf.mxu1  ;;  %v3997_v27 = vadd.f32 %v3996_v17, %v12871_v38  ;;  %v9354_v38 = vld [vmem:[%s15163_s0 + $0x5f0] sm:$0xf0]  ;;  %v8432_v17 = vld [vmem:[%s15163_s0 + $0x660] sm:$0xf] }
 0x390   :  { %v8325_v29 = vor.u32 %v9354_v38, %v8324_v26 }
 0x391   :  { %v13064_v30 = vadd.f32 %v4077_v3, %v4050_v35  ;;  %v4025_v8 = vadd.f32 %v4024_v50, %v3997_v27  ;;  %4791 = vmatmul.bf16.gmra.mxu0 %v4589_v14  ;;  %v8424_v3 = vld [vmem:[%s15163_s0 + $0x658] sm:$0xf]  ;;  %v9379_v14 = vld [vmem:[%s15163_s0 + $0x6b8] sm:$0xf0]  ;;  %v8426_v35 = vld [vmem:[%s15163_s0 + $0x6bc] sm:$0xf0] }
 0x392   :  { %4819 = vmatmul.bf16.gmra.mxu1 %v4590_v33  ;;  %v9367_v33 = vld [vmem:[%s15163_s0 + $0x65c] sm:$0xf]  ;;  %v9380_v50 = vld [vmem:[%s15163_s0 + $0x6c0] sm:$0xf0]  ;;  %v8425_v38 = vor.u32 %v9379_v14, %v8424_v3  ;;  %v9405_v3 = vld [vmem:[%s15163_s0 + $0x788] sm:$0xf0] }
 0x393   :  { %4847 = vmatmul.bf16.gmra.mxu2 %v4591_v19  ;;  %v2876_v19 = vmax.f32 %v11901_v34, 0.0  ;;  %v9368_v27 = vld [vmem:[%s15163_s0 + $0x664] sm:$0xf]  ;;  %v9831_v34 = vld [vmem:[%s15161_s1 + $0x468] sm:$0xff]  ;;  %v8429_v28 = vor.u32 %v9367_v33, %v8426_v35  ;;  %v8433_v48 = vor.u32 %v9380_v50, %v8432_v17  ;;  %v2878_v14 = vmax.f32 %v11982_v15, 0.0  ;;  %v9844_v50 = vld [vmem:[%s15161_s1 + $0x3d0] sm:$0xff] }
 0x394   :  { %4875 = vmatmul.bf16.gmra.mxu3 %v4592_v56  ;;  %v9393_v35 = vld [vmem:[%s15163_s0 + $0x72c] sm:$0xf]  ;;  %v8534_v17 = vld [vmem:[%s15163_s0 + $0x78c] sm:$0xf0] }
 0x395   :  { %v9846_v15 = vld [vmem:[%s15161_s1 + $0x388] sm:$0xff] }
 0x396   :  { %v4052_v9 = vpop.f32.mrf.mxu2  ;;  %v3998_v12 = vpop.f32.mrf.mxu0 }
 0x397   :  { %v4080_v4 = vpop.f32.mrf.mxu3  ;;  %v4053_v59 = vadd.f32 %v4052_v9, %v4025_v8  ;;  %v4026_v47 = vpop.f32.mrf.mxu1  ;;  %v8434_v8 = vld [vmem:[%s15163_s0 + $0x6c4] sm:$0xf0] }
 0x398   :  { %v9829_v9 = vld [vmem:[%s15161_s1 + $0x428] sm:$0xff]  ;;  %v8437_v18 = vor.u32 %v9368_v27, %v8434_v8 }
 0x399   :  { %v13066_v37 = vadd.f32 %v4080_v4, %v4053_v59  ;;  %v9830_v4 = vld [vmem:[%s15161_s1 + $0x3a8] sm:$0xff] }
 0x39a   :  { %v9832_v59 = vld [vmem:[%s15161_s1 + $0x3e8] sm:$0xff] }
 0x39e   :  { %v4054_v31 = vpop.f32.mrf.mxu2  ;;  %v4093_v0 = vpop.f32.mrf.mxu0 }
 0x39f   :  { %v4082_v49 = vpop.f32.mrf.mxu3  ;;  %v4121_v45 = vpop.f32.mrf.mxu1  ;;  %v4094_v5 = vadd.f32 %v4093_v0, %v12917_v36  ;;  %v9822_v36 = vld [vmem:[%s15161_s1 + $0x478] sm:$0xff]  ;;  %v9835_v0 = vld [vmem:[%s15161_s1 + $0x460] sm:$0xff] }
 0x3a0   :  { %v9833_v49 = vld [vmem:[%s15161_s1 + $0x420] sm:$0xff] }
 0x3a1   :  { %v4122_v57 = vadd.f32 %v4121_v45, %v4094_v5  ;;  %4888 = vmatmul.bf16.vlgmr.msra.gmra.mxu0 %v8325_v29  ;;  %v9834_v29 = vld [vmem:[%s15161_s1 + $0x3a0] sm:$0xff]  ;;  %v9837_v5 = vld [vmem:[%s15161_s1 + $0x418] sm:$0xff] }
 0x3a2   :  { %4916 = vmatmul.bf16.vlgmr.msra.gmra.mxu1 %v8329_v51  ;;  %5104 = vmatpush.bf16.msra.mxu0 %v9821_v6 }
 0x3a3   :  { %4944 = vmatmul.bf16.vlgmr.msra.gmra.mxu2 %v8333_v42  ;;  %v4140_v58 = vmax.f32 %v4122_v57, 0.0  ;;  %5132 = vmatpush.bf16.msra.mxu1 %v9823_v21  ;;  %v9838_v57 = vld [vmem:[%s15161_s1 + $0x398] sm:$0xff] }
 0x3a4   :  { %4972 = vmatmul.bf16.vlgmr.msra.gmra.mxu3 %v8337_v43  ;;  %5160 = vmatpush.bf16.msra.mxu2 %v9820_v60  ;;  %v9836_v43 = vld [vmem:[%s15161_s1 + $0x3e0] sm:$0xff] }
 0x3a5   :  { %5188 = vmatpush.bf16.msra.mxu3 %v9822_v36  ;;  %v13106_v62 = vmax.f32 %v2875_v32, %v4140_v58 }
 0x3a6   :  { %v4721_v24 = vpop.f32.mrf.mxu2  ;;  %v4095_v25 = vpop.f32.mrf.mxu0  ;;  %5105 = vmatpush.bf16.msra.mxu0 %v9826_v7  ;;  %v9404_v7 = vld [vmem:[%s15163_s0 + $0x780] sm:$0xf0] }
 0x3a7   :  { %v4749_v63 = vpop.f32.mrf.mxu3  ;;  %v4722_v44 = vadd.f32 %v13111_v46, %v4721_v24  ;;  %v4123_v39 = vpop.f32.mrf.mxu1  ;;  %v4096_v52 = vadd.f32 %v4095_v25, %v12968_v61  ;;  %v9828_v61 = vld [vmem:[%s15161_s1 + $0x3f0] sm:$0xff] }
 0x3a8   :  { %5161 = vmatpush.bf16.msra.mxu2 %v9825_v54  ;;  %5133 = vmatpush.bf16.msra.mxu1 %v9828_v61  ;;  %v8524_v54 = vld [vmem:[%s15163_s0 + $0x720] sm:$0xf]  ;;  %v8526_v61 = vld [vmem:[%s15163_s0 + $0x784] sm:$0xf0] }
 0x3a9   :  { %v13121_v10 = vadd.f32 %v4749_v63, %v4722_v44  ;;  %5189 = vmatpush.bf16.msra.mxu3 %v9827_v16  ;;  %v4124_v22 = vadd.f32 %v4123_v39, %v4096_v52  ;;  %v9840_v63 = vld [vmem:[%s15161_s1 + $0x3d8] sm:$0xff]  ;;  %v9841_v44 = vld [vmem:[%s15161_s1 + $0x410] sm:$0xff]  ;;  %v9392_v16 = vld [vmem:[%s15163_s0 + $0x724] sm:$0xf] }
 0x3aa   :  { %5106 = vmatpush.bf16.msra.mxu0 %v9830_v4  ;;  %v9842_v39 = vld [vmem:[%s15161_s1 + $0x390] sm:$0xff]  ;;  %v8525_v4 = vor.u32 %v9404_v7, %v8524_v54 }
 0x3ab   :  { %v4141_v56 = vmax.f32 %v4124_v22, 0.0  ;;  %v8532_v22 = vld [vmem:[%s15163_s0 + $0x728] sm:$0xf] }
 0x3ac   :  { %5162 = vmatpush.bf16.msra.mxu2 %v9829_v9  ;;  %5134 = vmatpush.bf16.msra.mxu1 %v9832_v59 }
 0x3ad   :  { %5190 = vmatpush.bf16.msra.mxu3 %v9831_v34  ;;  %v13166_v12 = vmax.f32 %v2876_v19, %v4141_v56  ;;  %v9845_v19 = vld [vmem:[%s15161_s1 + $0x408] sm:$0xff]  ;;  %v8529_v34 = vor.u32 %v9392_v16, %v8526_v61 }
 0x3ae   :  { %v4723_v47 = vpop.f32.mrf.mxu2  ;;  %v4098_v40 = vpop.f32.mrf.mxu0  ;;  %5107 = vmatpush.bf16.msra.mxu0 %v9834_v29  ;;  %v9847_v56 = vld [vmem:[%s15161_s1 + $0x448] sm:$0xff] }
 0x3af   :  { %v4751_v26 = vpop.f32.mrf.mxu3  ;;  %v4724_v20 = vadd.f32 %v13111_v46, %v4723_v47  ;;  %v4126_v41 = vpop.f32.mrf.mxu1  ;;  %v4099_v31 = vadd.f32 %v4098_v40, %v12992_v55  ;;  %v2877_v55 = vmax.f32 %v11955_v13, 0.0  ;;  %v9839_v13 = vld [vmem:[%s15161_s1 + $0x458] sm:$0xff]  ;;  %v9848_v40 = vld [vmem:[%s15161_s1 + $0x3c8] sm:$0xff] }
 0x3b0   :  { %5163 = vmatpush.bf16.msra.mxu2 %v9833_v49  ;;  %5135 = vmatpush.bf16.msra.mxu1 %v9836_v43  ;;  %v2879_v49 = vmax.f32 %v12036_v53, 0.0 }
 0x3b1   :  { %v13176_v51 = vadd.f32 %v4751_v26, %v4724_v20  ;;  %5191 = vmatpush.bf16.msra.mxu3 %v9835_v0  ;;  %v4127_v45 = vadd.f32 %v4126_v41, %v4099_v31  ;;  %4893 = vmatmul.bf16.gmra.mxu0 %v8425_v38  ;;  %v8533_v38 = vor.u32 %v9405_v3, %v8532_v22  ;;  %v9849_v41 = vld [vmem:[%s15161_s1 + $0x400] sm:$0xff] }
 0x3b2   :  { %4921 = vmatmul.bf16.gmra.mxu1 %v8429_v28  ;;  %5108 = vmatpush.bf16.msra.mxu0 %v9838_v57  ;;  %v8537_v28 = vor.u32 %v9393_v35, %v8534_v17  ;;  %v9852_v0 = vld [vmem:[%s15161_s1 + $0x3c0] sm:$0xff] }
 0x3b3   :  { %4949 = vmatmul.bf16.gmra.mxu2 %v8433_v48  ;;  %v4142_v42 = vmax.f32 %v4127_v45, 0.0 }
 0x3b4   :  { %4977 = vmatmul.bf16.gmra.mxu3 %v8437_v18  ;;  %5164 = vmatpush.bf16.msra.mxu2 %v9837_v5  ;;  %v9850_v18 = vld [vmem:[%s15161_s1 + $0x380] sm:$0xff] }
 0x3b5   :  { %5192 = vmatpush.bf16.msra.mxu3 %v9839_v13  ;;  %v13194_v32 = vmax.f32 %v2877_v55, %v4142_v42  ;;  %5136 = vmatpush.bf16.msra.mxu1 %v9840_v63  ;;  %v8288_v13 = vld [vmem:[%s15163_s0 + $0x7e8] sm:$0x11] }
 0x3b6   :  { %v4726_v58 = vpop.f32.mrf.mxu2  ;;  %v4100_v36 = vpop.f32.mrf.mxu0  ;;  %5109 = vmatpush.bf16.msra.mxu0 %v9842_v39 }
 0x3b7   :  { %v4754_v60 = vpop.f32.mrf.mxu3  ;;  %v4727_v6 = vadd.f32 %v13111_v46, %v4726_v58  ;;  %v4128_v21 = vpop.f32.mrf.mxu1  ;;  %v4101_v24 = vadd.f32 %v4100_v36, %v13043_v1  ;;  %v9843_v1 = vld [vmem:[%s15161_s1 + $0x450] sm:$0xff]  ;;  %v4493_v36 = vunpack.c.l.b16 %v8288_v13 }
 0x3b8   :  { %5165 = vmatpush.bf16.msra.mxu2 %v9841_v44  ;;  %v8289_v58 = vld [vmem:[%s15163_s0 + $0x7f0] sm:$0x11]  ;;  %v2880_v44 = vmax.f32 %v12060_v2, 0.0  ;;  %v2881_v2 = vmax.f32 %v12073_v11, 0.0  ;;  %v9344_v11 = vld [vmem:[%s15163_s0 + $0x5a4] sm:$0xf] }
 0x3b9   :  { %v13204_v25 = vadd.f32 %v4754_v60, %v4727_v6  ;;  %5193 = vmatpush.bf16.msra.mxu3 %v9843_v1  ;;  %v4129_v52 = vadd.f32 %v4128_v21, %v4101_v24  ;;  %5137 = vmatpush.bf16.msra.mxu1 %v9844_v50  ;;  %v4494_v21 = vunpack.c.h.b16 %v8288_v13  ;;  %v4495_v24 = vunpack.c.l.b16 %v8289_v58 }
 0x3ba   :  { %5110 = vmatpush.bf16.msra.mxu0 %v9846_v15  ;;  %v4496_v63 = vunpack.c.h.b16 %v8289_v58  ;;  %v4593_v7 = vpack.c.b16 %v4493_v36, %v4493_v36 }
 0x3bb   :  { %v4143_v33 = vmax.f32 %v4129_v52, 0.0  ;;  %v4595_v3 = vpack.c.b16 %v4495_v24, %v4495_v24  ;;  %v9858_v24 = vld [vmem:[%s15161_s1 + $0x4b0] sm:$0xff] }
 0x3bc   :  { %5166 = vmatpush.bf16.msra.mxu2 %v9845_v19 }
 0x3bd   :  { %5194 = vmatpush.bf16.msra.mxu3 %v9847_v56  ;;  %v13249_v27 = vmax.f32 %v2878_v14, %v4143_v33  ;;  %5138 = vmatpush.bf16.msra.mxu1 %v9848_v40  ;;  %v4596_v14 = vpack.c.b16 %v4496_v63, %v4496_v63 }
 0x3be   :  { %v4728_v8 = vpop.f32.mrf.mxu2  ;;  %v4103_v47 = vpop.f32.mrf.mxu0  ;;  %5111 = vmatpush.bf16.msra.mxu0 %v9850_v18 }
 0x3bf   :  { %v4756_v9 = vpop.f32.mrf.mxu3  ;;  %v4729_v59 = vadd.f32 %v13111_v46, %v4728_v8  ;;  %v4131_v26 = vpop.f32.mrf.mxu1  ;;  %v4104_v20 = vadd.f32 %v4103_v47, %v13061_v23  ;;  %v9851_v23 = vld [vmem:[%s15161_s1 + $0x440] sm:$0xff]  ;;  %v8348_v47 = vld [vmem:[%s15163_s0 + $0x5a8] sm:$0xf] }
 0x3c0   :  { %5167 = vmatpush.bf16.msra.mxu2 %v9849_v41 }
 0x3c1   :  { %v13259_v48 = vadd.f32 %v4756_v9, %v4729_v59  ;;  %5195 = vmatpush.bf16.msra.mxu3 %v9851_v23  ;;  %v4132_v31 = vadd.f32 %v4131_v26, %v4104_v20  ;;  %4898 = vmatmul.bf16.gmra.mxu0 %v8525_v4  ;;  %v9356_v59 = vld [vmem:[%s15163_s0 + $0x600] sm:$0xf0]  ;;  %v9357_v26 = vld [vmem:[%s15163_s0 + $0x608] sm:$0xf0] }
 0x3c2   :  { %4926 = vmatmul.bf16.gmra.mxu1 %v8529_v34 }
 0x3c3   :  { %4954 = vmatmul.bf16.gmra.mxu2 %v8533_v38  ;;  %v4144_v29 = vmax.f32 %v4132_v31, 0.0  ;;  %5139 = vmatpush.bf16.msra.mxu1 %v9852_v0  ;;  %v9345_v38 = vld [vmem:[%s15163_s0 + $0x5ac] sm:$0xf] }
 0x3c4   :  { %4982 = vmatmul.bf16.gmra.mxu3 %v8537_v28  ;;  %v8350_v28 = vld [vmem:[%s15163_s0 + $0x60c] sm:$0xf0] }
 0x3c5   :  { %v13271_v45 = vmax.f32 %v2879_v49, %v4144_v29  ;;  %v8349_v49 = vor.u32 %v9357_v26, %v8348_v47  ;;  %v8353_v29 = vor.u32 %v9345_v38, %v8350_v28  ;;  %v9865_v47 = vld [vmem:[%s15161_s1 + $0x520] sm:$0xff] }
 0x3c6   :  { %v4731_v55 = vpop.f32.mrf.mxu2  ;;  %v4105_v5 = vpop.f32.mrf.mxu0  ;;  %v9866_v26 = vld [vmem:[%s15161_s1 + $0x4a0] sm:$0xff] }
 0x3c7   :  { %v4759_v42 = vpop.f32.mrf.mxu3  ;;  %v4732_v43 = vadd.f32 %v13111_v46, %v4731_v55  ;;  %v4133_v57 = vpop.f32.mrf.mxu1  ;;  %v4106_v53 = vadd.f32 %v4105_v5, %v13064_v30  ;;  %v4594_v30 = vpack.c.b16 %v4494_v21, %v4494_v21  ;;  %v9855_v5 = vld [vmem:[%s15161_s1 + $0x578] sm:$0xff]  ;;  %v9857_v21 = vld [vmem:[%s15161_s1 + $0x530] sm:$0xff]  ;;  %v9867_v28 = vld [vmem:[%s15161_s1 + $0x560] sm:$0xff] }
 0x3c9   :  { %v13281_v60 = vadd.f32 %v4759_v42, %v4732_v43  ;;  %v4134_v6 = vadd.f32 %v4133_v57, %v4106_v53  ;;  %v9853_v42 = vld [vmem:[%s15161_s1 + $0x538] sm:$0xff] }
 0x3ca   :  { %v9854_v43 = vld [vmem:[%s15161_s1 + $0x4b8] sm:$0xff] }
 0x3cb   :  { %v4145_v39 = vmax.f32 %v4134_v6, 0.0 }
 0x3cd   :  { %v13284_v1 = vmax.f32 %v2880_v44, %v4145_v39  ;;  %v9859_v44 = vld [vmem:[%s15161_s1 + $0x570] sm:$0xff] }
 0x3ce   :  { %v4733_v52 = vpop.f32.mrf.mxu2  ;;  %v4108_v61 = vpop.f32.mrf.mxu0 }
 0x3cf   :  { %v4761_v54 = vpop.f32.mrf.mxu3  ;;  %v4734_v16 = vadd.f32 %v13111_v46, %v4733_v52  ;;  %v4136_v22 = vpop.f32.mrf.mxu1  ;;  %v4109_v33 = vadd.f32 %v4108_v61, %v13066_v37  ;;  %v8340_v37 = vld [vmem:[%s15163_s0 + $0x5a0] sm:$0xf]  ;;  %v8440_v52 = vld [vmem:[%s15163_s0 + $0x668] sm:$0xf]  ;;  %v9382_v61 = vld [vmem:[%s15163_s0 + $0x6d0] sm:$0xf0] }
 0x3d0   :  { %v8341_v41 = vor.u32 %v9356_v59, %v8340_v37 }
 0x3d1   :  { %v13288_v35 = vadd.f32 %v4761_v54, %v4734_v16  ;;  %v4137_v17 = vadd.f32 %v4136_v22, %v4109_v33  ;;  %4903 = vmatmul.bf16.gmra.mxu0 %v4593_v7  ;;  %v9381_v54 = vld [vmem:[%s15163_s0 + $0x6c8] sm:$0xf0]  ;;  %v8448_v16 = vld [vmem:[%s15163_s0 + $0x670] sm:$0xf]  ;;  %v9370_v22 = vld [vmem:[%s15163_s0 + $0x674] sm:$0xf] }
 0x3d2   :  { %4931 = vmatmul.bf16.gmra.mxu1 %v4594_v30  ;;  %v9369_v7 = vld [vmem:[%s15163_s0 + $0x66c] sm:$0xf]  ;;  %v8442_v30 = vld [vmem:[%s15163_s0 + $0x6cc] sm:$0xf0]  ;;  %v8449_v59 = vor.u32 %v9382_v61, %v8448_v16 }
 0x3d3   :  { %4959 = vmatmul.bf16.gmra.mxu2 %v4595_v3  ;;  %v4146_v50 = vmax.f32 %v4137_v17, 0.0  ;;  %v8450_v3 = vld [vmem:[%s15163_s0 + $0x6d4] sm:$0xf0]  ;;  %v9862_v33 = vld [vmem:[%s15161_s1 + $0x4a8] sm:$0xff] }
 0x3d4   :  { %4987 = vmatmul.bf16.gmra.mxu3 %v4596_v14  ;;  %v9861_v14 = vld [vmem:[%s15161_s1 + $0x528] sm:$0xff] }
 0x3d5   :  { %v13291_v19 = vmax.f32 %v2881_v2, %v4146_v50  ;;  %v9863_v17 = vld [vmem:[%s15161_s1 + $0x568] sm:$0xff] }
 0x3d6   :  { %v4736_v15 = vpop.f32.mrf.mxu2  ;;  %v4110_v9 = vpop.f32.mrf.mxu0  ;;  %v9864_v2 = vld [vmem:[%s15161_s1 + $0x4e8] sm:$0xff] }
 0x3d7   :  { %v4764_v56 = vpop.f32.mrf.mxu3  ;;  %v4737_v8 = vadd.f32 %v13111_v46, %v4736_v15  ;;  %v4138_v4 = vpop.f32.mrf.mxu1  ;;  %v8342_v46 = vld [vmem:[%s15163_s0 + $0x604] sm:$0xf0] }
 0x3d8   :  { %v8345_v18 = vor.u32 %v9344_v11, %v8342_v46  ;;  %v8453_v11 = vor.u32 %v9370_v22, %v8450_v3 }
 0x3d9   :  { %v13294_v34 = vadd.f32 %v4764_v56, %v4737_v8  ;;  %v8441_v56 = vor.u32 %v9381_v54, %v8440_v52  ;;  %v8445_v8 = vor.u32 %v9369_v7, %v8442_v30  ;;  %v9878_v52 = vld [vmem:[%s15161_s1 + $0x488] sm:$0xff] }
 0x3da   :  { %v9879_v54 = vld [vmem:[%s15161_s1 + $0x548] sm:$0xff] }
 0x3de   :  { %v4738_v20 = vpop.f32.mrf.mxu2  ;;  %v4777_v23 = vpop.f32.mrf.mxu0 }
 0x3df   :  { %v4766_v40 = vpop.f32.mrf.mxu3  ;;  %v4805_v31 = vpop.f32.mrf.mxu1  ;;  %v4778_v0 = vadd.f32 %v4777_v23, %v13121_v10  ;;  %v9856_v10 = vld [vmem:[%s15161_s1 + $0x4f8] sm:$0xff] }
 0x3e0   :  { %v9869_v40 = vld [vmem:[%s15161_s1 + $0x518] sm:$0xff] }
 0x3e1   :  { %v4806_v55 = vadd.f32 %v4805_v31, %v4778_v0  ;;  %5000 = vmatmul.bf16.vlgmr.msrb.gmra.mxu0 %v8341_v41  ;;  %v9870_v41 = vld [vmem:[%s15161_s1 + $0x498] sm:$0xff] }
 0x3e2   :  { %5028 = vmatmul.bf16.vlgmr.msrb.gmra.mxu1 %v8345_v18  ;;  %5216 = vmatpush.bf16.msrb.mxu0 %v9854_v43  ;;  %v9871_v18 = vld [vmem:[%s15161_s1 + $0x558] sm:$0xff]  ;;  %v9873_v43 = vld [vmem:[%s15161_s1 + $0x510] sm:$0xff] }
 0x3e3   :  { %5056 = vmatmul.bf16.vlgmr.msrb.gmra.mxu2 %v8349_v49  ;;  %5244 = vmatpush.bf16.msrb.mxu1 %v9856_v10  ;;  %v9874_v10 = vld [vmem:[%s15161_s1 + $0x490] sm:$0xff] }
 0x3e4   :  { %5084 = vmatmul.bf16.vlgmr.msrb.gmra.mxu3 %v8353_v29  ;;  %5272 = vmatpush.bf16.msrb.mxu2 %v9853_v42  ;;  %v9872_v42 = vld [vmem:[%s15161_s1 + $0x4d8] sm:$0xff] }
 0x3e5   :  { %5300 = vmatpush.bf16.msrb.mxu3 %v9855_v5 }
 0x3e6   :  { %v4833_v57 = vpop.f32.mrf.mxu2  ;;  %v4779_v58 = vpop.f32.mrf.mxu0  ;;  %5217 = vmatpush.bf16.msrb.mxu0 %v9858_v24  ;;  %v9395_v24 = vld [vmem:[%s15163_s0 + $0x73c] sm:$0xf] }
 0x3e7   :  { %v4861_v13 = vpop.f32.mrf.mxu3  ;;  %v4834_v53 = vadd.f32 %v4833_v57, %v4806_v55  ;;  %v4807_v6 = vpop.f32.mrf.mxu1  ;;  %v4780_v36 = vadd.f32 %v4779_v58, %v13176_v51  ;;  %v9860_v51 = vld [vmem:[%s15161_s1 + $0x4f0] sm:$0xff] }
 0x3e8   :  { %5273 = vmatpush.bf16.msrb.mxu2 %v9857_v21  ;;  %5245 = vmatpush.bf16.msrb.mxu1 %v9860_v51  ;;  %v9394_v58 = vld [vmem:[%s15163_s0 + $0x734] sm:$0xf]  ;;  %v9407_v21 = vld [vmem:[%s15163_s0 + $0x798] sm:$0xf0] }
 0x3e9   :  { %v13340_v63 = vadd.f32 %v4861_v13, %v4834_v53  ;;  %5301 = vmatpush.bf16.msrb.mxu3 %v9859_v44  ;;  %v4808_v39 = vadd.f32 %v4807_v6, %v4780_v36  ;;  %v8540_v13 = vld [vmem:[%s15163_s0 + $0x730] sm:$0xf]  ;;  %v9406_v53 = vld [vmem:[%s15163_s0 + $0x790] sm:$0xf0]  ;;  %v8542_v6 = vld [vmem:[%s15163_s0 + $0x794] sm:$0xf0] }
 0x3ea   :  { %5218 = vmatpush.bf16.msrb.mxu0 %v9862_v33  ;;  %v8548_v36 = vld [vmem:[%s15163_s0 + $0x738] sm:$0xf]  ;;  %v8550_v44 = vld [vmem:[%s15163_s0 + $0x79c] sm:$0xf0]  ;;  %v9876_v51 = vld [vmem:[%s15161_s1 + $0x4d0] sm:$0xff]  ;;  %v8541_v16 = vor.u32 %v9406_v53, %v8540_v13  ;;  %v8545_v61 = vor.u32 %v9394_v58, %v8542_v6 }
 0x3eb   :  { %v8549_v33 = vor.u32 %v9407_v21, %v8548_v36 }
 0x3ec   :  { %5274 = vmatpush.bf16.msrb.mxu2 %v9861_v14  ;;  %5246 = vmatpush.bf16.msrb.mxu1 %v9864_v2 }
 0x3ed   :  { %5302 = vmatpush.bf16.msrb.mxu3 %v9863_v17  ;;  %v8553_v17 = vor.u32 %v9395_v24, %v8550_v44 }
 0x3ee   :  { %v4835_v50 = vpop.f32.mrf.mxu2  ;;  %v4782_v4 = vpop.f32.mrf.mxu0  ;;  %5219 = vmatpush.bf16.msrb.mxu0 %v9866_v26  ;;  %v8290_v26 = vld [vmem:[%s15163_s0 + $0x7f8] sm:$0x11] }
 0x3ef   :  { %v4863_v15 = vpop.f32.mrf.mxu3  ;;  %v4836_v9 = vadd.f32 %v4835_v50, %v4808_v39  ;;  %v4810_v37 = vpop.f32.mrf.mxu1  ;;  %v4783_v46 = vadd.f32 %v4782_v4, %v13204_v25  ;;  %v9868_v25 = vld [vmem:[%s15161_s1 + $0x4e0] sm:$0xff]  ;;  %v9877_v39 = vld [vmem:[%s15161_s1 + $0x508] sm:$0xff] }
 0x3f0   :  { %5275 = vmatpush.bf16.msrb.mxu2 %v9865_v47  ;;  %5247 = vmatpush.bf16.msrb.mxu1 %v9868_v25  ;;  %v9880_v50 = vld [vmem:[%s15161_s1 + $0x4c8] sm:$0xff]  ;;  %v9884_v4 = vld [vmem:[%s15161_s1 + $0x4c0] sm:$0xff] }
 0x3f1   :  { %v13391_v38 = vadd.f32 %v4863_v15, %v4836_v9  ;;  %5303 = vmatpush.bf16.msrb.mxu3 %v9867_v28  ;;  %v4811_v20 = vadd.f32 %v4810_v37, %v4783_v46  ;;  %5005 = vmatmul.bf16.gmra.mxu0 %v8441_v56  ;;  %v9881_v15 = vld [vmem:[%s15161_s1 + $0x500] sm:$0xff] }
 0x3f2   :  { %5033 = vmatmul.bf16.gmra.mxu1 %v8445_v8  ;;  %5220 = vmatpush.bf16.msrb.mxu0 %v9870_v41  ;;  %v9882_v8 = vld [vmem:[%s15161_s1 + $0x480] sm:$0xff]  ;;  %v4497_v41 = vunpack.c.l.b16 %v8290_v26 }
 0x3f3   :  { %5061 = vmatmul.bf16.gmra.mxu2 %v8449_v59 }
 0x3f4   :  { %5089 = vmatmul.bf16.gmra.mxu3 %v8453_v11  ;;  %5276 = vmatpush.bf16.msrb.mxu2 %v9869_v40 }
 0x3f5   :  { %5304 = vmatpush.bf16.msrb.mxu3 %v9871_v18  ;;  %5248 = vmatpush.bf16.msrb.mxu1 %v9872_v42  ;;  %v4498_v18 = vunpack.c.h.b16 %v8290_v26 }
 0x3f6   :  { %v4838_v23 = vpop.f32.mrf.mxu2  ;;  %v4784_v29 = vpop.f32.mrf.mxu0  ;;  %5221 = vmatpush.bf16.msrb.mxu0 %v9874_v10 }
 0x3f7   :  { %v4866_v31 = vpop.f32.mrf.mxu3  ;;  %v4839_v49 = vadd.f32 %v4838_v23, %v4811_v20  ;;  %v4812_v0 = vpop.f32.mrf.mxu1  ;;  %v4785_v55 = vadd.f32 %v4784_v29, %v13259_v48  ;;  %v9875_v48 = vld [vmem:[%s15161_s1 + $0x550] sm:$0xff]  ;;  %v8291_v20 = vld [vmem:[%s15163_s0 + $0x800] sm:$0x11] }
 0x3f8   :  { %5277 = vmatpush.bf16.msrb.mxu2 %v9873_v43  ;;  %v4499_v23 = vunpack.c.l.b16 %v8291_v20 }
 0x3f9   :  { %v13415_v5 = vadd.f32 %v4866_v31, %v4839_v49  ;;  %5305 = vmatpush.bf16.msrb.mxu3 %v9875_v48  ;;  %v4813_v57 = vadd.f32 %v4812_v0, %v4785_v55  ;;  %5249 = vmatpush.bf16.msrb.mxu1 %v9876_v51  ;;  %v4500_v31 = vunpack.c.h.b16 %v8291_v20  ;;  %v4597_v0 = vpack.c.b16 %v4497_v41, %v4497_v41  ;;  %v8356_v51 = vld [vmem:[%s15163_s0 + $0x5b0] sm:$0xf] }
 0x3fa   :  { %5222 = vmatpush.bf16.msrb.mxu0 %v9878_v52  ;;  %v4598_v55 = vpack.c.b16 %v4498_v18, %v4498_v18  ;;  %v4599_v48 = vpack.c.b16 %v4499_v23, %v4499_v23  ;;  %v8358_v52 = vld [vmem:[%s15163_s0 + $0x614] sm:$0xf0]  ;;  %v9890_v20 = vld [vmem:[%s15161_s1 + $0x5b0] sm:$0xff] }
 0x3fb   :  { %v9891_v41 = vld [vmem:[%s15161_s1 + $0x30] sm:$0xff]  ;;  %v8456_v23 = vld [vmem:[%s15163_s0 + $0x678] sm:$0xf] }
 0x3fc   :  { %5278 = vmatpush.bf16.msrb.mxu2 %v9877_v39  ;;  %v9346_v39 = vld [vmem:[%s15163_s0 + $0x5b4] sm:$0xf] }
 0x3fd   :  { %5306 = vmatpush.bf16.msrb.mxu3 %v9879_v54  ;;  %5250 = vmatpush.bf16.msrb.mxu1 %v9880_v50  ;;  %v8364_v54 = vld [vmem:[%s15163_s0 + $0x5b8] sm:$0xf] }
 0x3fe   :  { %v4840_v7 = vpop.f32.mrf.mxu2  ;;  %v4787_v3 = vpop.f32.mrf.mxu0  ;;  %5223 = vmatpush.bf16.msrb.mxu0 %v9882_v8 }
 0x3ff   :  { %v4868_v30 = vpop.f32.mrf.mxu3  ;;  %v4841_v22 = vadd.f32 %v4840_v7, %v4813_v57  ;;  %v4815_v14 = vpop.f32.mrf.mxu1  ;;  %v4788_v2 = vadd.f32 %v4787_v3, %v13281_v60  ;;  %v9883_v60 = vld [vmem:[%s15161_s1 + $0x540] sm:$0xff]  ;;  %v9359_v7 = vld [vmem:[%s15163_s0 + $0x618] sm:$0xf0] }
 0x400   :  { %5279 = vmatpush.bf16.msrb.mxu2 %v9881_v15 }
 0x401   :  { %v13466_v56 = vadd.f32 %v4868_v30, %v4841_v22  ;;  %5307 = vmatpush.bf16.msrb.mxu3 %v9883_v60  ;;  %v4816_v9 = vadd.f32 %v4815_v14, %v4788_v2  ;;  %5010 = vmatmul.bf16.gmra.mxu0 %v8541_v16  ;;  %v9347_v30 = vld [vmem:[%s15163_s0 + $0x5bc] sm:$0xf]  ;;  %v8366_v16 = vld [vmem:[%s15163_s0 + $0x61c] sm:$0xf0]  ;;  %v8361_v14 = vor.u32 %v9346_v39, %v8358_v52 }
 0x402   :  { %5038 = vmatmul.bf16.gmra.mxu1 %v8545_v61  ;;  %v8365_v2 = vor.u32 %v9359_v7, %v8364_v54  ;;  %v8369_v50 = vor.u32 %v9347_v30, %v8366_v16  ;;  %v9885_v60 = vld [vmem:[%s15161_s1 + $0x638] sm:$0xff]  ;;  %v9897_v54 = vld [vmem:[%s15161_s1 + $0x620] sm:$0xff] }
 0x403   :  { %5066 = vmatmul.bf16.gmra.mxu2 %v8549_v33  ;;  %5251 = vmatpush.bf16.msrb.mxu1 %v9884_v4  ;;  %v9887_v4 = vld [vmem:[%s15161_s1 + $0x38] sm:$0xff]  ;;  %v9898_v7 = vld [vmem:[%s15161_s1 + $0x5a0] sm:$0xff] }
 0x404   :  { %5094 = vmatmul.bf16.gmra.mxu3 %v8553_v17  ;;  %v9899_v16 = vld [vmem:[%s15161_s1 + $0x20] sm:$0xff] }
 0x406   :  { %v4843_v37 = vpop.f32.mrf.mxu2  ;;  %v4789_v46 = vpop.f32.mrf.mxu0 }
 0x407   :  { %v4871_v59 = vpop.f32.mrf.mxu3  ;;  %v4844_v11 = vadd.f32 %v4843_v37, %v4816_v9  ;;  %v4817_v47 = vpop.f32.mrf.mxu1  ;;  %v4790_v28 = vadd.f32 %v4789_v46, %v13288_v35  ;;  %v4600_v35 = vpack.c.b16 %v4500_v31, %v4500_v31  ;;  %v9886_v9 = vld [vmem:[%s15161_s1 + $0x5b8] sm:$0xff] }
 0x408   :  { %v9383_v31 = vld [vmem:[%s15163_s0 + $0x6d8] sm:$0xf0] }
 0x409   :  { %v13484_v25 = vadd.f32 %v4871_v59, %v4844_v11  ;;  %v4818_v40 = vadd.f32 %v4817_v47, %v4790_v28  ;;  %v9889_v28 = vld [vmem:[%s15161_s1 + $0x630] sm:$0xff] }
 0x40e   :  { %v4845_v49 = vpop.f32.mrf.mxu2  ;;  %v4792_v43 = vpop.f32.mrf.mxu0 }
 0x40f   :  { %v4873_v29 = vpop.f32.mrf.mxu3  ;;  %v4846_v42 = vadd.f32 %v4845_v49, %v4818_v40  ;;  %v4820_v10 = vpop.f32.mrf.mxu1  ;;  %v4793_v57 = vadd.f32 %v4792_v43, %v13294_v34  ;;  %v9358_v34 = vld [vmem:[%s15163_s0 + $0x610] sm:$0xf0]  ;;  %v9371_v49 = vld [vmem:[%s15163_s0 + $0x67c] sm:$0xf]  ;;  %v8466_v43 = vld [vmem:[%s15163_s0 + $0x6e4] sm:$0xf0] }
 0x410   :  { %v8357_v3 = vor.u32 %v9358_v34, %v8356_v51 }
 0x411   :  { %v13487_v13 = vadd.f32 %v4873_v29, %v4846_v42  ;;  %v4821_v53 = vadd.f32 %v4820_v10, %v4793_v57  ;;  %5015 = vmatmul.bf16.gmra.mxu0 %v4597_v0  ;;  %v8458_v29 = vld [vmem:[%s15163_s0 + $0x6dc] sm:$0xf0]  ;;  %v9372_v42 = vld [vmem:[%s15163_s0 + $0x684] sm:$0xf]  ;;  %v9893_v10 = vld [vmem:[%s15161_s1 + $0x628] sm:$0xff] }
 0x412   :  { %5043 = vmatmul.bf16.gmra.mxu1 %v4598_v55  ;;  %v8464_v0 = vld [vmem:[%s15163_s0 + $0x680] sm:$0xf]  ;;  %v9384_v55 = vld [vmem:[%s15163_s0 + $0x6e0] sm:$0xf0]  ;;  %v9896_v57 = vld [vmem:[%s15161_s1 + $0x5e8] sm:$0xff]  ;;  %v8469_v39 = vor.u32 %v9372_v42, %v8466_v43 }
 0x413   :  { %5071 = vmatmul.bf16.gmra.mxu2 %v4599_v48  ;;  %v9894_v48 = vld [vmem:[%s15161_s1 + $0x5a8] sm:$0xff]  ;;  %v8465_v34 = vor.u32 %v9384_v55, %v8464_v0 }
 0x414   :  { %5099 = vmatmul.bf16.gmra.mxu3 %v4600_v35  ;;  %v9895_v35 = vld [vmem:[%s15161_s1 + $0x28] sm:$0xff] }
 0x416   :  { %v4848_v58 = vpop.f32.mrf.mxu2  ;;  %v4794_v21 = vpop.f32.mrf.mxu0 }
 0x417   :  { %v4876_v6 = vpop.f32.mrf.mxu3  ;;  %v4849_v36 = vadd.f32 %v4848_v58, %v4821_v53  ;;  %v4822_v24 = vpop.f32.mrf.mxu1 }
 0x419   :  { %v13489_v44 = vadd.f32 %v4876_v6, %v4849_v36  ;;  %v8457_v6 = vor.u32 %v9383_v31, %v8456_v23  ;;  %v8461_v36 = vor.u32 %v9371_v49, %v8458_v29  ;;  %v9910_v23 = vld [vmem:[%s15161_s1 + $0x588] sm:$0xff] }
 0x41a   :  { %v9911_v31 = vld [vmem:[%s15161_s1 + $0x8] sm:$0xff] }
 0x41e   :  { %v4850_v61 = vpop.f32.mrf.mxu2  ;;  %v4889_v33 = vpop.f32.mrf.mxu0 }
 0x41f   :  { %v4878_v22 = vpop.f32.mrf.mxu3  ;;  %v4917_v17 = vpop.f32.mrf.mxu1  ;;  %v4890_v15 = vadd.f32 %v4889_v33, %v13340_v63  ;;  %v9888_v63 = vld [vmem:[%s15161_s1 + $0x5f8] sm:$0xff] }
 0x420   :  { %v9901_v22 = vld [vmem:[%s15161_s1 + $0x618] sm:$0xff] }
 0x421   :  { %v4918_v8 = vadd.f32 %v4917_v17, %v4890_v15  ;;  %5112 = vmatmul.bf16.vlgmr.msra.gmra.mxu0 %v8357_v3  ;;  %v9902_v3 = vld [vmem:[%s15161_s1 + $0x598] sm:$0xff] }
 0x422   :  { %5140 = vmatmul.bf16.vlgmr.msra.gmra.mxu1 %v8361_v14  ;;  %5328 = vmatpush.bf16.msra.mxu0 %v9886_v9  ;;  %v9903_v14 = vld [vmem:[%s15161_s1 + $0x18] sm:$0xff]  ;;  %v9905_v9 = vld [vmem:[%s15161_s1 + $0x610] sm:$0xff] }
 0x423   :  { %5168 = vmatmul.bf16.vlgmr.msra.gmra.mxu2 %v8365_v2  ;;  %5356 = vmatpush.bf16.msra.mxu1 %v9888_v63  ;;  %v9906_v63 = vld [vmem:[%s15161_s1 + $0x590] sm:$0xff] }
 0x424   :  { %5196 = vmatmul.bf16.vlgmr.msra.gmra.mxu3 %v8369_v50  ;;  %5384 = vmatpush.bf16.msra.mxu2 %v9885_v60  ;;  %v9904_v60 = vld [vmem:[%s15161_s1 + $0x5d8] sm:$0xff] }
 0x425   :  { %5984 = vmatpush.bf16.msra.mxu3 %v9887_v4 }
 0x426   :  { %v4945_v37 = vpop.f32.mrf.mxu2  ;;  %v4891_v46 = vpop.f32.mrf.mxu0  ;;  %5329 = vmatpush.bf16.msra.mxu0 %v9890_v20  ;;  %v9397_v20 = vld [vmem:[%s15163_s0 + $0x74c] sm:$0xf] }
 0x427   :  { %v4973_v59 = vpop.f32.mrf.mxu3  ;;  %v4946_v11 = vadd.f32 %v4945_v37, %v4918_v8  ;;  %v4919_v47 = vpop.f32.mrf.mxu1  ;;  %v4892_v26 = vadd.f32 %v4891_v46, %v13391_v38  ;;  %v9892_v38 = vld [vmem:[%s15161_s1 + $0x5f0] sm:$0xff]  ;;  %v9396_v46 = vld [vmem:[%s15163_s0 + $0x744] sm:$0xf] }
 0x428   :  { %5385 = vmatpush.bf16.msra.mxu2 %v9889_v28  ;;  %5357 = vmatpush.bf16.msra.mxu1 %v9892_v38  ;;  %v9409_v28 = vld [vmem:[%s15163_s0 + $0x7a8] sm:$0xf0]  ;;  %v9908_v38 = vld [vmem:[%s15161_s1 + $0x5d0] sm:$0xff] }
 0x429   :  { %v13535_v40 = vadd.f32 %v4973_v59, %v4946_v11  ;;  %5985 = vmatpush.bf16.msra.mxu3 %v9891_v41  ;;  %v4920_v18 = vadd.f32 %v4919_v47, %v4892_v26  ;;  %v8556_v59 = vld [vmem:[%s15163_s0 + $0x740] sm:$0xf]  ;;  %v9408_v11 = vld [vmem:[%s15163_s0 + $0x7a0] sm:$0xf0]  ;;  %v8558_v47 = vld [vmem:[%s15163_s0 + $0x7a4] sm:$0xf0] }
 0x42a   :  { %5330 = vmatpush.bf16.msra.mxu0 %v9894_v48  ;;  %v8564_v26 = vld [vmem:[%s15163_s0 + $0x748] sm:$0xf]  ;;  %v8566_v41 = vld [vmem:[%s15163_s0 + $0x7ac] sm:$0xf0]  ;;  %v8557_v0 = vor.u32 %v9408_v11, %v8556_v59  ;;  %v8561_v55 = vor.u32 %v9396_v46, %v8558_v47 }
 0x42b   :  { %v8565_v48 = vor.u32 %v9409_v28, %v8564_v26 }
 0x42c   :  { %5386 = vmatpush.bf16.msra.mxu2 %v9893_v10  ;;  %5358 = vmatpush.bf16.msra.mxu1 %v9896_v57 }
 0x42d   :  { %5986 = vmatpush.bf16.msra.mxu3 %v9895_v35  ;;  %v8569_v35 = vor.u32 %v9397_v20, %v8566_v41 }
 0x42e   :  { %v4947_v53 = vpop.f32.mrf.mxu2  ;;  %v4894_v24 = vpop.f32.mrf.mxu0  ;;  %5331 = vmatpush.bf16.msra.mxu0 %v9898_v7  ;;  %v8292_v7 = vld [vmem:[%s15163_s0 + $0x808] sm:$0x11] }
 0x42f   :  { %v4975_v58 = vpop.f32.mrf.mxu3  ;;  %v4948_v21 = vadd.f32 %v4947_v53, %v4920_v18  ;;  %v4922_v51 = vpop.f32.mrf.mxu1  ;;  %v4895_v52 = vadd.f32 %v4894_v24, %v13415_v5  ;;  %v9900_v5 = vld [vmem:[%s15161_s1 + $0x5e0] sm:$0xff]  ;;  %v9909_v18 = vld [vmem:[%s15161_s1 + $0x608] sm:$0xff] }
 0x430   :  { %5387 = vmatpush.bf16.msra.mxu2 %v9897_v54  ;;  %5359 = vmatpush.bf16.msra.mxu1 %v9900_v5  ;;  %v9912_v53 = vld [vmem:[%s15161_s1 + $0x5c8] sm:$0xff]  ;;  %v9916_v24 = vld [vmem:[%s15161_s1 + $0x5c0] sm:$0xff] }
 0x431   :  { %v13586_v30 = vadd.f32 %v4975_v58, %v4948_v21  ;;  %5987 = vmatpush.bf16.msra.mxu3 %v9899_v16  ;;  %v4923_v61 = vadd.f32 %v4922_v51, %v4895_v52  ;;  %5117 = vmatmul.bf16.gmra.mxu0 %v8457_v6  ;;  %v9913_v58 = vld [vmem:[%s15161_s1 + $0x600] sm:$0xff] }
 0x432   :  { %5145 = vmatmul.bf16.gmra.mxu1 %v8461_v36  ;;  %5332 = vmatpush.bf16.msra.mxu0 %v9902_v3  ;;  %v9914_v36 = vld [vmem:[%s15161_s1 + $0x580] sm:$0xff]  ;;  %v4501_v3 = vunpack.c.l.b16 %v8292_v7 }
 0x433   :  { %5173 = vmatmul.bf16.gmra.mxu2 %v8465_v34 }
 0x434   :  { %5201 = vmatmul.bf16.gmra.mxu3 %v8469_v39  ;;  %5388 = vmatpush.bf16.msra.mxu2 %v9901_v22 }
 0x435   :  { %5988 = vmatpush.bf16.msra.mxu3 %v9903_v14  ;;  %5360 = vmatpush.bf16.msra.mxu1 %v9904_v60  ;;  %v4502_v14 = vunpack.c.h.b16 %v8292_v7 }
 0x436   :  { %v4950_v33 = vpop.f32.mrf.mxu2  ;;  %v4896_v50 = vpop.f32.mrf.mxu0  ;;  %5333 = vmatpush.bf16.msra.mxu0 %v9906_v63 }
 0x437   :  { %v4978_v17 = vpop.f32.mrf.mxu3  ;;  %v4951_v2 = vadd.f32 %v4950_v33, %v4923_v61  ;;  %v4924_v15 = vpop.f32.mrf.mxu1  ;;  %v4897_v8 = vadd.f32 %v4896_v50, %v13466_v56  ;;  %v9907_v56 = vld [vmem:[%s15161_s1 + $0x10] sm:$0xff] }
 0x438   :  { %5389 = vmatpush.bf16.msra.mxu2 %v9905_v9  ;;  %v8293_v61 = vld [vmem:[%s15163_s0 + $0x810] sm:$0x11] }
 0x439   :  { %v13610_v4 = vadd.f32 %v4978_v17, %v4951_v2  ;;  %5989 = vmatpush.bf16.msra.mxu3 %v9907_v56  ;;  %v4925_v37 = vadd.f32 %v4924_v15, %v4897_v8  ;;  %5361 = vmatpush.bf16.msra.mxu1 %v9908_v38  ;;  %v4503_v33 = vunpack.c.l.b16 %v8293_v61  ;;  %v4504_v17 = vunpack.c.h.b16 %v8293_v61  ;;  %v8372_v38 = vld [vmem:[%s15163_s0 + $0x5c0] sm:$0xf]  ;;  %v9922_v61 = vld [vmem:[%s15161_s1 + $0x70] sm:$0xff] }
 0x43a   :  { %5334 = vmatpush.bf16.msra.mxu0 %v9910_v23  ;;  %v4601_v15 = vpack.c.b16 %v4501_v3, %v4501_v3  ;;  %v4602_v8 = vpack.c.b16 %v4502_v14, %v4502_v14  ;;  %v8374_v23 = vld [vmem:[%s15163_s0 + $0x624] sm:$0xf0]  ;;  %v9923_v3 = vld [vmem:[%s15161_s1 + $0x130] sm:$0xff] }
 0x43b   :  { %v4603_v56 = vpack.c.b16 %v4503_v33, %v4503_v33  ;;  %v8472_v33 = vld [vmem:[%s15163_s0 + $0x688] sm:$0xf] }
 0x43c   :  { %5390 = vmatpush.bf16.msra.mxu2 %v9909_v18  ;;  %v9348_v18 = vld [vmem:[%s15163_s0 + $0x5c4] sm:$0xf] }
 0x43d   :  { %5990 = vmatpush.bf16.msra.mxu3 %v9911_v31  ;;  %5362 = vmatpush.bf16.msra.mxu1 %v9912_v53  ;;  %v8380_v31 = vld [vmem:[%s15163_s0 + $0x5c8] sm:$0xf] }
 0x43e   :  { %v4952_v49 = vpop.f32.mrf.mxu2  ;;  %v4899_v43 = vpop.f32.mrf.mxu0  ;;  %5335 = vmatpush.bf16.msra.mxu0 %v9914_v36 }
 0x43f   :  { %v4980_v29 = vpop.f32.mrf.mxu3  ;;  %v4953_v42 = vadd.f32 %v4952_v49, %v4925_v37  ;;  %v4927_v10 = vpop.f32.mrf.mxu1  ;;  %v4900_v57 = vadd.f32 %v4899_v43, %v13484_v25  ;;  %v9915_v25 = vld [vmem:[%s15161_s1] sm:$0xff]  ;;  %v9361_v49 = vld [vmem:[%s15163_s0 + $0x628] sm:$0xf0] }
 0x440   :  { %5391 = vmatpush.bf16.msra.mxu2 %v9913_v58 }
 0x441   :  { %v13661_v6 = vadd.f32 %v4980_v29, %v4953_v42  ;;  %5991 = vmatpush.bf16.msra.mxu3 %v9915_v25  ;;  %v4928_v21 = vadd.f32 %v4927_v10, %v4900_v57  ;;  %5122 = vmatmul.bf16.gmra.mxu0 %v8557_v0  ;;  %v9349_v29 = vld [vmem:[%s15163_s0 + $0x5cc] sm:$0xf]  ;;  %v8382_v0 = vld [vmem:[%s15163_s0 + $0x62c] sm:$0xf0]  ;;  %v8377_v10 = vor.u32 %v9348_v18, %v8374_v23  ;;  %v9917_v25 = vld [vmem:[%s15161_s1 + $0xf8] sm:$0xff] }
 0x442   :  { %5150 = vmatmul.bf16.gmra.mxu1 %v8561_v55  ;;  %v8381_v57 = vor.u32 %v9361_v49, %v8380_v31  ;;  %v8385_v53 = vor.u32 %v9349_v29, %v8382_v0  ;;  %v9929_v31 = vld [vmem:[%s15161_s1 + $0xe0] sm:$0xff] }
 0x443   :  { %5178 = vmatmul.bf16.gmra.mxu2 %v8565_v48  ;;  %5363 = vmatpush.bf16.msra.mxu1 %v9916_v24  ;;  %v9919_v24 = vld [vmem:[%s15161_s1 + $0x138] sm:$0xff]  ;;  %v9930_v49 = vld [vmem:[%s15161_s1 + $0x60] sm:$0xff] }
 0x444   :  { %5206 = vmatmul.bf16.gmra.mxu3 %v8569_v35  ;;  %v9931_v0 = vld [vmem:[%s15161_s1 + $0x120] sm:$0xff] }
 0x446   :  { %v4955_v51 = vpop.f32.mrf.mxu2  ;;  %v4901_v52 = vpop.f32.mrf.mxu0 }
 0x447   :  { %v4983_v34 = vpop.f32.mrf.mxu3  ;;  %v4956_v39 = vadd.f32 %v4955_v51, %v4928_v21  ;;  %v4929_v54 = vpop.f32.mrf.mxu1  ;;  %v4902_v16 = vadd.f32 %v4901_v52, %v13487_v13  ;;  %v4604_v13 = vpack.c.b16 %v4504_v17, %v4504_v17  ;;  %v9918_v21 = vld [vmem:[%s15161_s1 + $0x78] sm:$0xff]  ;;  %v9385_v17 = vld [vmem:[%s15163_s0 + $0x6e8] sm:$0xf0] }
 0x449   :  { %v13679_v5 = vadd.f32 %v4983_v34, %v4956_v39  ;;  %v4930_v22 = vadd.f32 %v4929_v54, %v4902_v16  ;;  %v9921_v16 = vld [vmem:[%s15161_s1 + $0xf0] sm:$0xff] }
 0x44e   :  { %v4957_v2 = vpop.f32.mrf.mxu2  ;;  %v4904_v9 = vpop.f32.mrf.mxu0 }
 0x44f   :  { %v4985_v50 = vpop.f32.mrf.mxu3  ;;  %v4958_v60 = vadd.f32 %v4957_v2, %v4930_v22  ;;  %v4932_v63 = vpop.f32.mrf.mxu1  ;;  %v4905_v37 = vadd.f32 %v4904_v9, %v13489_v44  ;;  %v9360_v44 = vld [vmem:[%s15163_s0 + $0x620] sm:$0xf0]  ;;  %v9373_v2 = vld [vmem:[%s15163_s0 + $0x68c] sm:$0xf]  ;;  %v8482_v9 = vld [vmem:[%s15163_s0 + $0x6f4] sm:$0xf0] }
 0x450   :  { %v8373_v43 = vor.u32 %v9360_v44, %v8372_v38 }
 0x451   :  { %v13682_v59 = vadd.f32 %v4985_v50, %v4958_v60  ;;  %v4933_v11 = vadd.f32 %v4932_v63, %v4905_v37  ;;  %5127 = vmatmul.bf16.gmra.mxu0 %v4601_v15  ;;  %v8474_v50 = vld [vmem:[%s15163_s0 + $0x6ec] sm:$0xf0]  ;;  %v9374_v60 = vld [vmem:[%s15163_s0 + $0x694] sm:$0xf]  ;;  %v9925_v63 = vld [vmem:[%s15161_s1 + $0xe8] sm:$0xff] }
 0x452   :  { %5155 = vmatmul.bf16.gmra.mxu1 %v4602_v8  ;;  %v8480_v15 = vld [vmem:[%s15163_s0 + $0x690] sm:$0xf]  ;;  %v9386_v8 = vld [vmem:[%s15163_s0 + $0x6f0] sm:$0xf0]  ;;  %v9928_v37 = vld [vmem:[%s15161_s1 + $0xa8] sm:$0xff]  ;;  %v8485_v18 = vor.u32 %v9374_v60, %v8482_v9 }
 0x453   :  { %5183 = vmatmul.bf16.gmra.mxu2 %v4603_v56  ;;  %v9926_v56 = vld [vmem:[%s15161_s1 + $0x68] sm:$0xff]  ;;  %v8481_v44 = vor.u32 %v9386_v8, %v8480_v15 }
 0x454   :  { %5211 = vmatmul.bf16.gmra.mxu3 %v4604_v13  ;;  %v9927_v13 = vld [vmem:[%s15161_s1 + $0x128] sm:$0xff] }
 0x456   :  { %v4960_v46 = vpop.f32.mrf.mxu2  ;;  %v4906_v28 = vpop.f32.mrf.mxu0 }
 0x457   :  { %v4988_v47 = vpop.f32.mrf.mxu3  ;;  %v4961_v26 = vadd.f32 %v4960_v46, %v4933_v11  ;;  %v4934_v20 = vpop.f32.mrf.mxu1 }
 0x459   :  { %v13684_v41 = vadd.f32 %v4988_v47, %v4961_v26  ;;  %v8473_v47 = vor.u32 %v9385_v17, %v8472_v33  ;;  %v8477_v26 = vor.u32 %v9373_v2, %v8474_v50  ;;  %v9942_v33 = vld [vmem:[%s15161_s1 + $0x48] sm:$0xff] }
 0x45a   :  { %v9943_v17 = vld [vmem:[%s15161_s1 + $0x108] sm:$0xff] }
 0x45e   :  { %v4962_v55 = vpop.f32.mrf.mxu2  ;;  %v5001_v48 = vpop.f32.mrf.mxu0 }
 0x45f   :  { %v4990_v42 = vpop.f32.mrf.mxu3  ;;  %v5029_v35 = vpop.f32.mrf.mxu1  ;;  %v5002_v58 = vadd.f32 %v5001_v48, %v13535_v40  ;;  %v9920_v40 = vld [vmem:[%s15161_s1 + $0xb8] sm:$0xff] }
 0x460   :  { %v9933_v42 = vld [vmem:[%s15161_s1 + $0xd8] sm:$0xff] }
 0x461   :  { %v5030_v36 = vadd.f32 %v5029_v35, %v5002_v58  ;;  %5224 = vmatmul.bf16.vlgmr.msrb.gmra.mxu0 %v8373_v43  ;;  %v9934_v43 = vld [vmem:[%s15161_s1 + $0x58] sm:$0xff] }
 0x462   :  { %5252 = vmatmul.bf16.vlgmr.msrb.gmra.mxu1 %v8377_v10  ;;  %6012 = vmatpush.bf16.msrb.mxu0 %v9918_v21  ;;  %v9935_v10 = vld [vmem:[%s15161_s1 + $0x118] sm:$0xff]  ;;  %v9937_v21 = vld [vmem:[%s15161_s1 + $0xd0] sm:$0xff] }
 0x463   :  { %5280 = vmatmul.bf16.vlgmr.msrb.gmra.mxu2 %v8381_v57  ;;  %6040 = vmatpush.bf16.msrb.mxu1 %v9920_v40  ;;  %v9938_v40 = vld [vmem:[%s15161_s1 + $0x50] sm:$0xff] }
 0x464   :  { %5308 = vmatmul.bf16.vlgmr.msrb.gmra.mxu3 %v8385_v53  ;;  %6068 = vmatpush.bf16.msrb.mxu2 %v9917_v25  ;;  %v9936_v25 = vld [vmem:[%s15161_s1 + $0x98] sm:$0xff] }
 0x465   :  { %6096 = vmatpush.bf16.msrb.mxu3 %v9919_v24 }
 0x466   :  { %v5057_v51 = vpop.f32.mrf.mxu2  ;;  %v5003_v52 = vpop.f32.mrf.mxu0  ;;  %6013 = vmatpush.bf16.msrb.mxu0 %v9922_v61  ;;  %v9399_v61 = vld [vmem:[%s15163_s0 + $0x75c] sm:$0xf] }
 0x467   :  { %v5085_v34 = vpop.f32.mrf.mxu3  ;;  %v5058_v39 = vadd.f32 %v5057_v51, %v5030_v36  ;;  %v5031_v54 = vpop.f32.mrf.mxu1  ;;  %v5004_v7 = vadd.f32 %v5003_v52, %v13586_v30  ;;  %v9924_v30 = vld [vmem:[%s15161_s1 + $0xb0] sm:$0xff] }
 0x468   :  { %6069 = vmatpush.bf16.msrb.mxu2 %v9921_v16  ;;  %6041 = vmatpush.bf16.msrb.mxu1 %v9924_v30  ;;  %v9398_v52 = vld [vmem:[%s15163_s0 + $0x754] sm:$0xf]  ;;  %v9411_v16 = vld [vmem:[%s15163_s0 + $0x7b8] sm:$0xf0] }
 0x469   :  { %v13730_v22 = vadd.f32 %v5085_v34, %v5058_v39  ;;  %6097 = vmatpush.bf16.msrb.mxu3 %v9923_v3  ;;  %v5032_v14 = vadd.f32 %v5031_v54, %v5004_v7  ;;  %v8572_v34 = vld [vmem:[%s15163_s0 + $0x750] sm:$0xf]  ;;  %v9410_v39 = vld [vmem:[%s15163_s0 + $0x7b0] sm:$0xf0]  ;;  %v8574_v54 = vld [vmem:[%s15163_s0 + $0x7b4] sm:$0xf0] }
 0x46a   :  { %6014 = vmatpush.bf16.msrb.mxu0 %v9926_v56  ;;  %v8580_v7 = vld [vmem:[%s15163_s0 + $0x758] sm:$0xf]  ;;  %v8582_v3 = vld [vmem:[%s15163_s0 + $0x7bc] sm:$0xf0]  ;;  %v9940_v30 = vld [vmem:[%s15161_s1 + $0x90] sm:$0xff]  ;;  %v8573_v15 = vor.u32 %v9410_v39, %v8572_v34  ;;  %v8577_v8 = vor.u32 %v9398_v52, %v8574_v54 }
 0x46b   :  { %v8581_v56 = vor.u32 %v9411_v16, %v8580_v7 }
 0x46c   :  { %6070 = vmatpush.bf16.msrb.mxu2 %v9925_v63  ;;  %6042 = vmatpush.bf16.msrb.mxu1 %v9928_v37 }
 0x46d   :  { %6098 = vmatpush.bf16.msrb.mxu3 %v9927_v13  ;;  %v8585_v13 = vor.u32 %v9399_v61, %v8582_v3 }
 0x46e   :  { %v5059_v11 = vpop.f32.mrf.mxu2  ;;  %v5006_v20 = vpop.f32.mrf.mxu0  ;;  %6015 = vmatpush.bf16.msrb.mxu0 %v9930_v49  ;;  %v8294_v49 = vld [vmem:[%s15163_s0 + $0x818] sm:$0x11] }
 0x46f   :  { %v5087_v46 = vpop.f32.mrf.mxu3  ;;  %v5060_v28 = vadd.f32 %v5059_v11, %v5032_v14  ;;  %v5034_v38 = vpop.f32.mrf.mxu1  ;;  %v5007_v23 = vadd.f32 %v5006_v20, %v13610_v4  ;;  %v9932_v4 = vld [vmem:[%s15161_s1 + $0xa0] sm:$0xff]  ;;  %v9941_v14 = vld [vmem:[%s15161_s1 + $0xc8] sm:$0xff] }
 0x470   :  { %6071 = vmatpush.bf16.msrb.mxu2 %v9929_v31  ;;  %6043 = vmatpush.bf16.msrb.mxu1 %v9932_v4  ;;  %v9944_v11 = vld [vmem:[%s15161_s1 + $0x88] sm:$0xff]  ;;  %v9948_v20 = vld [vmem:[%s15161_s1 + $0x80] sm:$0xff] }
 0x471   :  { %v13781_v29 = vadd.f32 %v5087_v46, %v5060_v28  ;;  %6099 = vmatpush.bf16.msrb.mxu3 %v9931_v0  ;;  %v5035_v55 = vadd.f32 %v5034_v38, %v5007_v23  ;;  %5229 = vmatmul.bf16.gmra.mxu0 %v8473_v47  ;;  %v9945_v46 = vld [vmem:[%s15161_s1 + $0xc0] sm:$0xff] }
 0x472   :  { %5257 = vmatmul.bf16.gmra.mxu1 %v8477_v26  ;;  %6016 = vmatpush.bf16.msrb.mxu0 %v9934_v43  ;;  %v9946_v26 = vld [vmem:[%s15161_s1 + $0x40] sm:$0xff]  ;;  %v4505_v43 = vunpack.c.l.b16 %v8294_v49 }
 0x473   :  { %5285 = vmatmul.bf16.gmra.mxu2 %v8481_v44 }
 0x474   :  { %5313 = vmatmul.bf16.gmra.mxu3 %v8485_v18  ;;  %6072 = vmatpush.bf16.msrb.mxu2 %v9933_v42 }
 0x475   :  { %6100 = vmatpush.bf16.msrb.mxu3 %v9935_v10  ;;  %6044 = vmatpush.bf16.msrb.mxu1 %v9936_v25  ;;  %v4506_v10 = vunpack.c.h.b16 %v8294_v49 }
 0x476   :  { %v5062_v48 = vpop.f32.mrf.mxu2  ;;  %v5008_v53 = vpop.f32.mrf.mxu0  ;;  %6017 = vmatpush.bf16.msrb.mxu0 %v9938_v40 }
 0x477   :  { %v5090_v35 = vpop.f32.mrf.mxu3  ;;  %v5063_v57 = vadd.f32 %v5062_v48, %v5035_v55  ;;  %v5036_v58 = vpop.f32.mrf.mxu1  ;;  %v5009_v36 = vadd.f32 %v5008_v53, %v13661_v6  ;;  %v9939_v6 = vld [vmem:[%s15161_s1 + $0x110] sm:$0xff]  ;;  %v8295_v55 = vld [vmem:[%s15163_s0 + $0x820] sm:$0x11] }
 0x478   :  { %6073 = vmatpush.bf16.msrb.mxu2 %v9937_v21  ;;  %v4507_v48 = vunpack.c.l.b16 %v8295_v55 }
 0x479   :  { %v13805_v24 = vadd.f32 %v5090_v35, %v5063_v57  ;;  %6101 = vmatpush.bf16.msrb.mxu3 %v9939_v6  ;;  %v5037_v51 = vadd.f32 %v5036_v58, %v5009_v36  ;;  %6045 = vmatpush.bf16.msrb.mxu1 %v9940_v30  ;;  %v4508_v35 = vunpack.c.h.b16 %v8295_v55  ;;  %v4605_v58 = vpack.c.b16 %v4505_v43, %v4505_v43  ;;  %v8388_v30 = vld [vmem:[%s15163_s0 + $0x5d0] sm:$0xf] }
 0x47a   :  { %6018 = vmatpush.bf16.msrb.mxu0 %v9942_v33  ;;  %v4606_v36 = vpack.c.b16 %v4506_v10, %v4506_v10  ;;  %v4607_v6 = vpack.c.b16 %v4507_v48, %v4507_v48  ;;  %v8390_v33 = vld [vmem:[%s15163_s0 + $0x634] sm:$0xf0]  ;;  %v9954_v55 = vld [vmem:[%s15161_s1 + $0x170] sm:$0xff] }
 0x47b   :  { %v9955_v43 = vld [vmem:[%s15161_s1 + $0x230] sm:$0xff]  ;;  %v8488_v48 = vld [vmem:[%s15163_s0 + $0x698] sm:$0xf] }
 0x47c   :  { %6074 = vmatpush.bf16.msrb.mxu2 %v9941_v14  ;;  %v9350_v14 = vld [vmem:[%s15163_s0 + $0x5d4] sm:$0xf] }
 0x47d   :  { %6102 = vmatpush.bf16.msrb.mxu3 %v9943_v17  ;;  %6046 = vmatpush.bf16.msrb.mxu1 %v9944_v11  ;;  %v8396_v17 = vld [vmem:[%s15163_s0 + $0x5d8] sm:$0xf] }
 0x47e   :  { %v5064_v2 = vpop.f32.mrf.mxu2  ;;  %v5011_v9 = vpop.f32.mrf.mxu0  ;;  %6019 = vmatpush.bf16.msrb.mxu0 %v9946_v26 }
 0x47f   :  { %v5092_v50 = vpop.f32.mrf.mxu3  ;;  %v5065_v60 = vadd.f32 %v5064_v2, %v5037_v51  ;;  %v5039_v63 = vpop.f32.mrf.mxu1  ;;  %v5012_v37 = vadd.f32 %v5011_v9, %v13679_v5  ;;  %v9947_v5 = vld [vmem:[%s15161_s1 + $0x100] sm:$0xff]  ;;  %v9363_v2 = vld [vmem:[%s15163_s0 + $0x638] sm:$0xf0] }
 0x480   :  { %6075 = vmatpush.bf16.msrb.mxu2 %v9945_v46 }
 0x481   :  { %v13856_v47 = vadd.f32 %v5092_v50, %v5065_v60  ;;  %6103 = vmatpush.bf16.msrb.mxu3 %v9947_v5  ;;  %v5040_v28 = vadd.f32 %v5039_v63, %v5012_v37  ;;  %5234 = vmatmul.bf16.gmra.mxu0 %v8573_v15  ;;  %v8691_v50 = vld [vmem:[%s15163_s0 + $0x834] sm:$0xf]  ;;  %v9426_v15 = vld [vmem:[%s15163_s0 + $0x894] sm:$0xf0]  ;;  %v8393_v63 = vor.u32 %v9350_v14, %v8390_v33 }
 0x482   :  { %5262 = vmatmul.bf16.gmra.mxu1 %v8577_v8  ;;  %v8397_v37 = vor.u32 %v9363_v2, %v8396_v17  ;;  %v8692_v11 = vor.u32 %v9426_v15, %v8691_v50  ;;  %v9949_v5 = vld [vmem:[%s15161_s1 + $0x1f8] sm:$0xff]  ;;  %v9961_v17 = vld [vmem:[%s15161_s1 + $0x1e0] sm:$0xff] }
 0x483   :  { %5290 = vmatmul.bf16.gmra.mxu2 %v8581_v56  ;;  %6047 = vmatpush.bf16.msrb.mxu1 %v9948_v20  ;;  %v9951_v20 = vld [vmem:[%s15161_s1 + $0x238] sm:$0xff]  ;;  %v9962_v2 = vld [vmem:[%s15161_s1 + $0x160] sm:$0xff] }
 0x484   :  { %5318 = vmatmul.bf16.gmra.mxu3 %v8585_v13  ;;  %v9963_v15 = vld [vmem:[%s15161_s1 + $0x220] sm:$0xff] }
 0x486   :  { %v5067_v38 = vpop.f32.mrf.mxu2  ;;  %v5013_v23 = vpop.f32.mrf.mxu0 }
 0x487   :  { %v5095_v44 = vpop.f32.mrf.mxu3  ;;  %v5068_v18 = vadd.f32 %v5067_v38, %v5040_v28  ;;  %v5041_v31 = vpop.f32.mrf.mxu1  ;;  %v5014_v0 = vadd.f32 %v5013_v23, %v13682_v59  ;;  %v4608_v59 = vpack.c.b16 %v4508_v35, %v4508_v35  ;;  %v9950_v28 = vld [vmem:[%s15161_s1 + $0x178] sm:$0xff] }
 0x488   :  { %v9387_v35 = vld [vmem:[%s15163_s0 + $0x6f8] sm:$0xf0] }
 0x489   :  { %v13874_v4 = vadd.f32 %v5095_v44, %v5068_v18  ;;  %v5042_v42 = vadd.f32 %v5041_v31, %v5014_v0  ;;  %v9953_v0 = vld [vmem:[%s15161_s1 + $0x1f0] sm:$0xff] }
 0x48e   :  { %v5069_v57 = vpop.f32.mrf.mxu2  ;;  %v5016_v21 = vpop.f32.mrf.mxu0 }
 0x48f   :  { %v5097_v53 = vpop.f32.mrf.mxu3  ;;  %v5070_v25 = vadd.f32 %v5069_v57, %v5042_v42  ;;  %v5044_v40 = vpop.f32.mrf.mxu1  ;;  %v5017_v51 = vadd.f32 %v5016_v21, %v13684_v41  ;;  %v9362_v41 = vld [vmem:[%s15163_s0 + $0x630] sm:$0xf0]  ;;  %v9375_v57 = vld [vmem:[%s15163_s0 + $0x69c] sm:$0xf]  ;;  %v9451_v21 = vld [vmem:[%s15163_s0 + $0x95c] sm:$0xf0] }
 0x490   :  { %v8389_v9 = vor.u32 %v9362_v41, %v8388_v30 }
 0x491   :  { %v13877_v34 = vadd.f32 %v5097_v53, %v5070_v25  ;;  %v5045_v39 = vadd.f32 %v5044_v40, %v5017_v51  ;;  %5239 = vmatmul.bf16.gmra.mxu0 %v4605_v58  ;;  %v8490_v53 = vld [vmem:[%s15163_s0 + $0x6fc] sm:$0xf0]  ;;  %v8791_v25 = vld [vmem:[%s15163_s0 + $0x8fc] sm:$0xf]  ;;  %v9957_v40 = vld [vmem:[%s15161_s1 + $0x1e8] sm:$0xff] }
 0x492   :  { %5267 = vmatmul.bf16.gmra.mxu1 %v4606_v36  ;;  %v8496_v58 = vld [vmem:[%s15163_s0 + $0x6a0] sm:$0xf]  ;;  %v9388_v36 = vld [vmem:[%s15163_s0 + $0x700] sm:$0xf0]  ;;  %v9960_v51 = vld [vmem:[%s15161_s1 + $0x1a8] sm:$0xff]  ;;  %v8792_v14 = vor.u32 %v9451_v21, %v8791_v25 }
 0x493   :  { %5295 = vmatmul.bf16.gmra.mxu2 %v4607_v6  ;;  %v9958_v6 = vld [vmem:[%s15161_s1 + $0x168] sm:$0xff]  ;;  %v8497_v41 = vor.u32 %v9388_v36, %v8496_v58 }
 0x494   :  { %5323 = vmatmul.bf16.gmra.mxu3 %v4608_v59  ;;  %v9959_v59 = vld [vmem:[%s15161_s1 + $0x228] sm:$0xff] }
 0x496   :  { %v5072_v52 = vpop.f32.mrf.mxu2  ;;  %v5018_v16 = vpop.f32.mrf.mxu0 }
 0x497   :  { %v5100_v54 = vpop.f32.mrf.mxu3  ;;  %v5073_v7 = vadd.f32 %v5072_v52, %v5045_v39  ;;  %v5046_v61 = vpop.f32.mrf.mxu1 }
 0x499   :  { %v13879_v3 = vadd.f32 %v5100_v54, %v5073_v7  ;;  %v8489_v54 = vor.u32 %v9387_v35, %v8488_v48  ;;  %v8493_v7 = vor.u32 %v9375_v57, %v8490_v53  ;;  %v9974_v48 = vld [vmem:[%s15161_s1 + $0x148] sm:$0xff] }
 0x49a   :  { %v9975_v35 = vld [vmem:[%s15161_s1 + $0x208] sm:$0xff] }
 0x49e   :  { %v5074_v8 = vpop.f32.mrf.mxu2  ;;  %v5113_v56 = vpop.f32.mrf.mxu0 }
 0x49f   :  { %v5102_v60 = vpop.f32.mrf.mxu3  ;;  %v5141_v13 = vpop.f32.mrf.mxu1  ;;  %v5114_v46 = vadd.f32 %v5113_v56, %v13730_v22  ;;  %v9952_v22 = vld [vmem:[%s15161_s1 + $0x1b8] sm:$0xff] }
 0x4a0   :  { %v9965_v60 = vld [vmem:[%s15161_s1 + $0x1d8] sm:$0xff] }
 0x4a1   :  { %v5142_v26 = vadd.f32 %v5141_v13, %v5114_v46  ;;  %5336 = vmatmul.bf16.vlgmr.msra.gmra.mxu0 %v8389_v9  ;;  %v9966_v9 = vld [vmem:[%s15161_s1 + $0x158] sm:$0xff] }
 0x4a2   :  { %5364 = vmatmul.bf16.vlgmr.msra.gmra.mxu1 %v8393_v63  ;;  %6124 = vmatpush.bf16.msra.mxu0 %v9950_v28  ;;  %v9967_v63 = vld [vmem:[%s15161_s1 + $0x218] sm:$0xff]  ;;  %v9969_v28 = vld [vmem:[%s15161_s1 + $0x1d0] sm:$0xff] }
 0x4a3   :  { %5392 = vmatmul.bf16.vlgmr.msra.gmra.mxu2 %v8397_v37  ;;  %6152 = vmatpush.bf16.msra.mxu1 %v9952_v22  ;;  %v9970_v22 = vld [vmem:[%s15161_s1 + $0x150] sm:$0xff] }
 0x4a4   :  { %5992 = vmatmul.bf16.vlgmr.msra.gmra.mxu3 %v8692_v11  ;;  %6180 = vmatpush.bf16.msra.mxu2 %v9949_v5  ;;  %v9968_v5 = vld [vmem:[%s15161_s1 + $0x198] sm:$0xff] }
 0x4a5   :  { %6208 = vmatpush.bf16.msra.mxu3 %v9951_v20 }
 0x4a6   :  { %v5169_v38 = vpop.f32.mrf.mxu2  ;;  %v5115_v23 = vpop.f32.mrf.mxu0  ;;  %6125 = vmatpush.bf16.msra.mxu0 %v9954_v55  ;;  %v8891_v55 = vld [vmem:[%s15163_s0 + $0x9c4] sm:$0xf] }
 0x4a7   :  { %v5197_v44 = vpop.f32.mrf.mxu3  ;;  %v5170_v18 = vadd.f32 %v5169_v38, %v5142_v26  ;;  %v5143_v31 = vpop.f32.mrf.mxu1  ;;  %v5116_v49 = vadd.f32 %v5115_v23, %v13781_v29  ;;  %v9956_v29 = vld [vmem:[%s15161_s1 + $0x1b0] sm:$0xff]  ;;  %v9400_v23 = vld [vmem:[%s15163_s0 + $0x764] sm:$0xf] }
 0x4a8   :  { %6181 = vmatpush.bf16.msra.mxu2 %v9953_v0  ;;  %6153 = vmatpush.bf16.msra.mxu1 %v9956_v29  ;;  %v9413_v0 = vld [vmem:[%s15163_s0 + $0x7c8] sm:$0xf0]  ;;  %v9972_v29 = vld [vmem:[%s15161_s1 + $0x190] sm:$0xff] }
 0x4a9   :  { %v13925_v42 = vadd.f32 %v5197_v44, %v5170_v18  ;;  %6209 = vmatpush.bf16.msra.mxu3 %v9955_v43  ;;  %v5144_v10 = vadd.f32 %v5143_v31, %v5116_v49  ;;  %v8588_v44 = vld [vmem:[%s15163_s0 + $0x760] sm:$0xf]  ;;  %v9412_v18 = vld [vmem:[%s15163_s0 + $0x7c0] sm:$0xf0]  ;;  %v8590_v31 = vld [vmem:[%s15163_s0 + $0x7c4] sm:$0xf0] }
 0x4aa   :  { %6126 = vmatpush.bf16.msra.mxu0 %v9958_v6  ;;  %v8596_v49 = vld [vmem:[%s15163_s0 + $0x768] sm:$0xf]  ;;  %v8589_v58 = vor.u32 %v9412_v18, %v8588_v44  ;;  %v8593_v36 = vor.u32 %v9400_v23, %v8590_v31 }
 0x4ab   :  { %v9476_v43 = vld [vmem:[%s15163_s0 + $0xa24] sm:$0xf0]  ;;  %v8597_v6 = vor.u32 %v9413_v0, %v8596_v49 }
 0x4ac   :  { %6182 = vmatpush.bf16.msra.mxu2 %v9957_v40  ;;  %6154 = vmatpush.bf16.msra.mxu1 %v9960_v51 }
 0x4ad   :  { %6210 = vmatpush.bf16.msra.mxu3 %v9959_v59  ;;  %v8892_v59 = vor.u32 %v9476_v43, %v8891_v55 }
 0x4ae   :  { %v5171_v39 = vpop.f32.mrf.mxu2  ;;  %v5118_v61 = vpop.f32.mrf.mxu0  ;;  %6127 = vmatpush.bf16.msra.mxu0 %v9962_v2  ;;  %v8296_v2 = vld [vmem:[%s15163_s0 + $0x828] sm:$0x11] }
 0x4af   :  { %v5199_v52 = vpop.f32.mrf.mxu3  ;;  %v5172_v16 = vadd.f32 %v5171_v39, %v5144_v10  ;;  %v5146_v30 = vpop.f32.mrf.mxu1  ;;  %v5119_v33 = vadd.f32 %v5118_v61, %v13805_v24  ;;  %v9964_v24 = vld [vmem:[%s15161_s1 + $0x1a0] sm:$0xff]  ;;  %v9973_v10 = vld [vmem:[%s15161_s1 + $0x1c8] sm:$0xff] }
 0x4b0   :  { %6183 = vmatpush.bf16.msra.mxu2 %v9961_v17  ;;  %6155 = vmatpush.bf16.msra.mxu1 %v9964_v24  ;;  %v9976_v39 = vld [vmem:[%s15161_s1 + $0x188] sm:$0xff]  ;;  %v9980_v61 = vld [vmem:[%s15161_s1 + $0x180] sm:$0xff] }
 0x4b1   :  { %v13976_v50 = vadd.f32 %v5199_v52, %v5172_v16  ;;  %6211 = vmatpush.bf16.msra.mxu3 %v9963_v15  ;;  %v5147_v8 = vadd.f32 %v5146_v30, %v5119_v33  ;;  %5341 = vmatmul.bf16.gmra.mxu0 %v8489_v54  ;;  %v9977_v52 = vld [vmem:[%s15161_s1 + $0x1c0] sm:$0xff]  ;;  %v14072_v24 = vld [vmem:[%s15163_s0 + $0xa8c] sm:$0x11] }
 0x4b2   :  { %5369 = vmatmul.bf16.gmra.mxu1 %v8493_v7  ;;  %6128 = vmatpush.bf16.msra.mxu0 %v9966_v9  ;;  %v9978_v7 = vld [vmem:[%s15161_s1 + $0x140] sm:$0xff] }
 0x4b3   :  { %5397 = vmatmul.bf16.gmra.mxu2 %v8497_v41 }
 0x4b4   :  { %5997 = vmatmul.bf16.gmra.mxu3 %v8792_v14  ;;  %6184 = vmatpush.bf16.msra.mxu2 %v9965_v60 }
 0x4b5   :  { %6212 = vmatpush.bf16.msra.mxu3 %v9967_v63  ;;  %6156 = vmatpush.bf16.msra.mxu1 %v9968_v5  ;;  %v4509_v63 = vunpack.c.l.b16 %v8296_v2 }
 0x4b6   :  { %v5174_v56 = vpop.f32.mrf.mxu2  ;;  %v5120_v11 = vpop.f32.mrf.mxu0  ;;  %6129 = vmatpush.bf16.msra.mxu0 %v9970_v22 }
 0x4b7   :  { %v5202_v13 = vpop.f32.mrf.mxu3  ;;  %v5175_v37 = vadd.f32 %v5174_v56, %v5147_v8  ;;  %v5148_v46 = vpop.f32.mrf.mxu1  ;;  %v5121_v26 = vadd.f32 %v5120_v11, %v13856_v47  ;;  %v9971_v47 = vld [vmem:[%s15161_s1 + $0x210] sm:$0xff]  ;;  %v4510_v56 = vunpack.c.h.b16 %v8296_v2 }
 0x4b8   :  { %6185 = vmatpush.bf16.msra.mxu2 %v9969_v28  ;;  %v8297_v8 = vld [vmem:[%s15163_s0 + $0x830] sm:$0x1] }
 0x4b9   :  { %v14000_v20 = vadd.f32 %v5202_v13, %v5175_v37  ;;  %6213 = vmatpush.bf16.msra.mxu3 %v9971_v47  ;;  %v5149_v38 = vadd.f32 %v5148_v46, %v5121_v26  ;;  %6157 = vmatpush.bf16.msra.mxu1 %v9972_v29  ;;  %v4511_v13 = vunpack.c.l.b16 %v8297_v8  ;;  %v5759_v37 = vunpack.c.l.b16 %v14072_v24  ;;  %v9985_v8 = vld [vmem:[%s15161_s1 + $0x2f0] sm:$0xff] }
 0x4ba   :  { %6130 = vmatpush.bf16.msra.mxu0 %v9974_v48  ;;  %v4610_v26 = vpack.c.b16 %v4510_v56, %v4510_v56  ;;  %v8699_v48 = vld [vmem:[%s15163_s0 + $0x83c] sm:$0xf]  ;;  %v9987_v56 = vld [vmem:[%s15161_s1 + $0x330] sm:$0xff] }
 0x4bb   :  { %v4611_v47 = vpack.c.b16 %v4511_v13, %v4511_v13 }
 0x4bc   :  { %6186 = vmatpush.bf16.msra.mxu2 %v9973_v10  ;;  %v9414_v10 = vld [vmem:[%s15163_s0 + $0x838] sm:$0xf] }
 0x4bd   :  { %6214 = vmatpush.bf16.msra.mxu3 %v9975_v35  ;;  %6158 = vmatpush.bf16.msra.mxu1 %v9976_v39  ;;  %v9427_v35 = vld [vmem:[%s15163_s0 + $0x89c] sm:$0xf0] }
 0x4be   :  { %v5176_v57 = vpop.f32.mrf.mxu2  ;;  %v5123_v21 = vpop.f32.mrf.mxu0  ;;  %6131 = vmatpush.bf16.msra.mxu0 %v9978_v7 }
 0x4bf   :  { %v5204_v53 = vpop.f32.mrf.mxu3  ;;  %v5177_v25 = vadd.f32 %v5176_v57, %v5149_v38  ;;  %v5151_v40 = vpop.f32.mrf.mxu1  ;;  %v5124_v51 = vadd.f32 %v5123_v21, %v13874_v4  ;;  %v9979_v4 = vld [vmem:[%s15161_s1 + $0x200] sm:$0xff]  ;;  %v5859_v38 = vpack.c.b16 %v5759_v37, %v5759_v37 }
 0x4c0   :  { %6187 = vmatpush.bf16.msra.mxu2 %v9977_v52  ;;  %v9415_v57 = vld [vmem:[%s15163_s0 + $0x840] sm:$0xf] }
 0x4c1   :  { %v14051_v54 = vadd.f32 %v5204_v53, %v5177_v25  ;;  %6215 = vmatpush.bf16.msra.mxu3 %v9979_v4  ;;  %v5152_v16 = vadd.f32 %v5151_v40, %v5124_v51  ;;  %5346 = vmatmul.bf16.gmra.mxu0 %v8589_v58  ;;  %v8701_v53 = vld [vmem:[%s15163_s0 + $0x8a0] sm:$0xf0]  ;;  %v9439_v37 = vld [vmem:[%s15163_s0 + $0x900] sm:$0xf] }
 0x4c2   :  { %5374 = vmatmul.bf16.gmra.mxu1 %v8593_v36  ;;  %v8707_v58 = vld [vmem:[%s15163_s0 + $0x844] sm:$0xf]  ;;  %v9428_v36 = vld [vmem:[%s15163_s0 + $0x8a4] sm:$0xf0]  ;;  %v8704_v39 = vor.u32 %v9415_v57, %v8701_v53 }
 0x4c3   :  { %5402 = vmatmul.bf16.gmra.mxu2 %v8597_v6  ;;  %6159 = vmatpush.bf16.msra.mxu1 %v9980_v61  ;;  %v8700_v6 = vor.u32 %v9427_v35, %v8699_v48  ;;  %v8708_v52 = vor.u32 %v9428_v36, %v8707_v58  ;;  %v9982_v61 = vld [vmem:[%s15161_s1 + $0x278] sm:$0xff]  ;;  %v9993_v53 = vld [vmem:[%s15161_s1 + $0x2e0] sm:$0xff] }
 0x4c4   :  { %6002 = vmatmul.bf16.gmra.mxu3 %v8892_v59  ;;  %v9994_v58 = vld [vmem:[%s15161_s1 + $0x260] sm:$0xff] }
 0x4c6   :  { %v5179_v30 = vpop.f32.mrf.mxu2  ;;  %v5125_v33 = vpop.f32.mrf.mxu0 }
 0x4c7   :  { %v5207_v41 = vpop.f32.mrf.mxu3  ;;  %v5180_v14 = vadd.f32 %v5179_v30, %v5152_v16  ;;  %v5153_v17 = vpop.f32.mrf.mxu1  ;;  %v5126_v15 = vadd.f32 %v5125_v33, %v13877_v34  ;;  %v4609_v34 = vpack.c.b16 %v4509_v63, %v4509_v63  ;;  %v9981_v16 = vld [vmem:[%s15161_s1 + $0x2f8] sm:$0xff] }
 0x4c8   :  { %v9983_v30 = vld [vmem:[%s15161_s1 + $0x338] sm:$0xff] }
 0x4c9   :  { %v14074_v60 = vadd.f32 %v5207_v41, %v5180_v14  ;;  %v5154_v9 = vadd.f32 %v5153_v17, %v5126_v15 }
 0x4ce   :  { %v5181_v11 = vpop.f32.mrf.mxu2  ;;  %v5128_v28 = vpop.f32.mrf.mxu0 }
 0x4cf   :  { %v5209_v46 = vpop.f32.mrf.mxu3  ;;  %v5182_v5 = vadd.f32 %v5181_v11, %v5154_v9  ;;  %v5156_v22 = vpop.f32.mrf.mxu1  ;;  %v5129_v44 = vadd.f32 %v5128_v28, %v13879_v3  ;;  %v8693_v3 = vld [vmem:[%s15163_s0 + $0x898] sm:$0xf0]  ;;  %v9986_v9 = vld [vmem:[%s15161_s1 + $0x270] sm:$0xff]  ;;  %v8793_v11 = vld [vmem:[%s15163_s0 + $0x960] sm:$0xf0] }
 0x4d0   :  { %v8696_v40 = vor.u32 %v9414_v10, %v8693_v3  ;;  %v8807_v28 = vld [vmem:[%s15163_s0 + $0x90c] sm:$0xf] }
 0x4d1   :  { %v14078_v18 = vadd.f32 %v5209_v46, %v5182_v5  ;;  %v5157_v23 = vadd.f32 %v5156_v22, %v5129_v44  ;;  %5351 = vmatmul.bf16.gmra.mxu0 %v4609_v34  ;;  %v8799_v46 = vld [vmem:[%s15163_s0 + $0x904] sm:$0xf]  ;;  %v9452_v34 = vld [vmem:[%s15163_s0 + $0x964] sm:$0xf0]  ;;  %v8801_v5 = vld [vmem:[%s15163_s0 + $0x968] sm:$0xf0] }
 0x4d2   :  { %5379 = vmatmul.bf16.gmra.mxu1 %v4610_v26  ;;  %v9440_v26 = vld [vmem:[%s15163_s0 + $0x908] sm:$0xf]  ;;  %v9453_v22 = vld [vmem:[%s15163_s0 + $0x96c] sm:$0xf0] }
 0x4d3   :  { %5407 = vmatmul.bf16.gmra.mxu2 %v4611_v47  ;;  %v9989_v47 = vld [vmem:[%s15161_s1 + $0x2e8] sm:$0xff]  ;;  %v8804_v48 = vor.u32 %v9440_v26, %v8801_v5  ;;  %v8808_v35 = vor.u32 %v9453_v22, %v8807_v28 }
 0x4d4   :  { %6007 = vmatmul.bf16.gmra.mxu3 %v5859_v38  ;;  %v9990_v38 = vld [vmem:[%s15161_s1 + $0x268] sm:$0xff] }
 0x4d5   :  { %v9991_v44 = vld [vmem:[%s15161_s1 + $0x328] sm:$0xff] }
 0x4d6   :  { %v5184_v31 = vpop.f32.mrf.mxu2  ;;  %v5130_v55 = vpop.f32.mrf.mxu0 }
 0x4d7   :  { %v5212_v49 = vpop.f32.mrf.mxu3  ;;  %v5185_v0 = vadd.f32 %v5184_v31, %v5157_v23  ;;  %v5158_v43 = vpop.f32.mrf.mxu1  ;;  %v9992_v23 = vld [vmem:[%s15161_s1 + $0x2a8] sm:$0xff]  ;;  %v8800_v55 = vor.u32 %v9452_v34, %v8799_v46 }
 0x4d8   :  { %v10007_v46 = vld [vmem:[%s15161_s1 + $0x308] sm:$0xff] }
 0x4d9   :  { %v14080_v29 = vadd.f32 %v5212_v49, %v5185_v0  ;;  %v8796_v0 = vor.u32 %v9439_v37, %v8793_v11  ;;  %v10005_v37 = vld [vmem:[%s15161_s1 + $0x2c8] sm:$0xff] }
 0x4da   :  { %v10006_v11 = vld [vmem:[%s15161_s1 + $0x248] sm:$0xff] }
 0x4de   :  { %v5186_v25 = vpop.f32.mrf.mxu2  ;;  %v5225_v59 = vpop.f32.mrf.mxu0 }
 0x4df   :  { %v5214_v21 = vpop.f32.mrf.mxu3  ;;  %v5253_v51 = vpop.f32.mrf.mxu1  ;;  %v5226_v7 = vadd.f32 %v5225_v59, %v13925_v42  ;;  %v9984_v42 = vld [vmem:[%s15161_s1 + $0x2b8] sm:$0xff]  ;;  %v9995_v25 = vld [vmem:[%s15161_s1 + $0x320] sm:$0xff] }
 0x4e0   :  { %v9999_v59 = vld [vmem:[%s15161_s1 + $0x318] sm:$0xff] }
 0x4e1   :  { %v5254_v4 = vadd.f32 %v5253_v51, %v5226_v7  ;;  %6020 = vmatmul.bf16.vlgmr.msrb.gmra.mxu0 %v8696_v40  ;;  %v9997_v40 = vld [vmem:[%s15161_s1 + $0x2d8] sm:$0xff] }
 0x4e2   :  { %6048 = vmatmul.bf16.vlgmr.msrb.gmra.mxu1 %v8700_v6  ;;  %6236 = vmatpush.bf16.msrb.mxu0 %v9982_v61  ;;  %v9998_v6 = vld [vmem:[%s15161_s1 + $0x258] sm:$0xff] }
 0x4e3   :  { %6076 = vmatmul.bf16.vlgmr.msrb.gmra.mxu2 %v8704_v39  ;;  %6264 = vmatpush.bf16.msrb.mxu1 %v9984_v42  ;;  %v10000_v61 = vld [vmem:[%s15161_s1 + $0x298] sm:$0xff] }
 0x4e4   :  { %6104 = vmatmul.bf16.vlgmr.msrb.gmra.mxu3 %v8708_v52  ;;  %6292 = vmatpush.bf16.msrb.mxu2 %v9981_v16 }
 0x4e5   :  { %6320 = vmatpush.bf16.msrb.mxu3 %v9983_v30  ;;  %v10001_v30 = vld [vmem:[%s15161_s1 + $0x2d0] sm:$0xff] }
 0x4e6   :  { %v5281_v41 = vpop.f32.mrf.mxu2  ;;  %v5227_v17 = vpop.f32.mrf.mxu0  ;;  %6237 = vmatpush.bf16.msrb.mxu0 %v9986_v9  ;;  %v8901_v9 = vld [vmem:[%s15163_s0 + $0xa30] sm:$0xf0] }
 0x4e7   :  { %v5309_v14 = vpop.f32.mrf.mxu3  ;;  %v5282_v33 = vadd.f32 %v5281_v41, %v5254_v4  ;;  %v5255_v2 = vpop.f32.mrf.mxu1  ;;  %v5228_v15 = vadd.f32 %v5227_v17, %v13976_v50  ;;  %v9988_v50 = vld [vmem:[%s15161_s1 + $0x2b0] sm:$0xff]  ;;  %v8893_v17 = vld [vmem:[%s15163_s0 + $0xa28] sm:$0xf0] }
 0x4e8   :  { %6293 = vmatpush.bf16.msrb.mxu2 %v9985_v8  ;;  %6265 = vmatpush.bf16.msrb.mxu1 %v9988_v50  ;;  %v10002_v41 = vld [vmem:[%s15161_s1 + $0x250] sm:$0xff]  ;;  %v9478_v50 = vld [vmem:[%s15163_s0 + $0xa34] sm:$0xf0] }
 0x4e9   :  { %v14126_v63 = vadd.f32 %v5309_v14, %v5282_v33  ;;  %6321 = vmatpush.bf16.msrb.mxu3 %v9987_v56  ;;  %v5256_v13 = vadd.f32 %v5255_v2, %v5228_v15  ;;  %v9464_v33 = vld [vmem:[%s15163_s0 + $0x9c8] sm:$0xf]  ;;  %v8899_v2 = vld [vmem:[%s15163_s0 + $0x9cc] sm:$0xf]  ;;  %v9477_v15 = vld [vmem:[%s15163_s0 + $0xa2c] sm:$0xf0] }
 0x4ea   :  { %6238 = vmatpush.bf16.msrb.mxu0 %v9990_v38  ;;  %v9465_v8 = vld [vmem:[%s15163_s0 + $0x9d0] sm:$0xf]  ;;  %v8907_v56 = vld [vmem:[%s15163_s0 + $0x9d4] sm:$0xf]  ;;  %v8896_v5 = vor.u32 %v9464_v33, %v8893_v17  ;;  %v8900_v28 = vor.u32 %v9477_v15, %v8899_v2 }
 0x4ec   :  { %6294 = vmatpush.bf16.msrb.mxu2 %v9989_v47  ;;  %6266 = vmatpush.bf16.msrb.mxu1 %v9992_v23  ;;  %v8908_v23 = vor.u32 %v9478_v50, %v8907_v56 }
 0x4ed   :  { %6322 = vmatpush.bf16.msrb.mxu3 %v9991_v44  ;;  %v8904_v44 = vor.u32 %v9465_v8, %v8901_v9 }
 0x4ee   :  { %v5283_v31 = vpop.f32.mrf.mxu2  ;;  %v5230_v10 = vpop.f32.mrf.mxu0  ;;  %6239 = vmatpush.bf16.msrb.mxu0 %v9994_v58 }
 0x4ef   :  { %v5311_v49 = vpop.f32.mrf.mxu3  ;;  %v5284_v43 = vadd.f32 %v5283_v31, %v5256_v13  ;;  %v5258_v3 = vpop.f32.mrf.mxu1  ;;  %v5231_v57 = vadd.f32 %v5230_v10, %v14000_v20  ;;  %v9996_v20 = vld [vmem:[%s15161_s1 + $0x2a0] sm:$0xff]  ;;  %v10004_v13 = vld [vmem:[%s15161_s1 + $0x290] sm:$0xff] }
 0x4f0   :  { %6295 = vmatpush.bf16.msrb.mxu2 %v9993_v53  ;;  %6267 = vmatpush.bf16.msrb.mxu1 %v9996_v20  ;;  %v14270_v20 = vld [vmem:[%s15163_s0 + $0xa9c] sm:$0x11] }
 0x4f1   :  { %v14177_v36 = vadd.f32 %v5311_v49, %v5284_v43  ;;  %6323 = vmatpush.bf16.msrb.mxu3 %v9995_v25  ;;  %v5259_v21 = vadd.f32 %v5258_v3, %v5231_v57  ;;  %6025 = vmatmul.bf16.gmra.mxu0 %v8796_v0  ;;  %v10008_v49 = vld [vmem:[%s15161_s1 + $0x288] sm:$0xff]  ;;  %v10009_v0 = vld [vmem:[%s15161_s1 + $0x2c0] sm:$0xff]  ;;  %v8677_v25 = vld [vmem:[%s15163_s0 + $0xa94] sm:$0x11] }
 0x4f2   :  { %6053 = vmatmul.bf16.gmra.mxu1 %v8800_v55  ;;  %6240 = vmatpush.bf16.msrb.mxu0 %v9998_v6  ;;  %v10010_v43 = vld [vmem:[%s15161_s1 + $0x240] sm:$0xff] }
 0x4f3   :  { %6081 = vmatmul.bf16.gmra.mxu2 %v8804_v48  ;;  %v10012_v3 = vld [vmem:[%s15161_s1 + $0x280] sm:$0xff] }
 0x4f4   :  { %6109 = vmatmul.bf16.gmra.mxu3 %v8808_v35  ;;  %6296 = vmatpush.bf16.msrb.mxu2 %v9997_v40 }
 0x4f5   :  { %6324 = vmatpush.bf16.msrb.mxu3 %v9999_v59  ;;  %6268 = vmatpush.bf16.msrb.mxu1 %v10000_v61  ;;  %v5760_v59 = vunpack.c.h.b16 %v14072_v24 }
 0x4f6   :  { %v5286_v51 = vpop.f32.mrf.mxu2  ;;  %v5232_v7 = vpop.f32.mrf.mxu0  ;;  %6241 = vmatpush.bf16.msrb.mxu0 %v10002_v41 }
 0x4f7   :  { %v5314_v39 = vpop.f32.mrf.mxu3  ;;  %v5287_v52 = vadd.f32 %v5286_v51, %v5259_v21  ;;  %v5260_v4 = vpop.f32.mrf.mxu1  ;;  %v5233_v16 = vadd.f32 %v5232_v7, %v14051_v54  ;;  %v10003_v54 = vld [vmem:[%s15161_s1 + $0x310] sm:$0xff]  ;;  %v5761_v51 = vunpack.c.l.b16 %v8677_v25 }
 0x4f8   :  { %6297 = vmatpush.bf16.msrb.mxu2 %v10001_v30 }
 0x4f9   :  { %v14201_v42 = vadd.f32 %v5314_v39, %v5287_v52  ;;  %6325 = vmatpush.bf16.msrb.mxu3 %v10003_v54  ;;  %v5261_v14 = vadd.f32 %v5260_v4, %v5233_v16  ;;  %6269 = vmatpush.bf16.msrb.mxu1 %v10004_v13  ;;  %v5762_v39 = vunpack.c.h.b16 %v8677_v25  ;;  %v5763_v52 = vunpack.c.l.b16 %v14270_v20  ;;  %v9416_v13 = vld [vmem:[%s15163_s0 + $0x848] sm:$0xf] }
 0x4fa   :  { %6242 = vmatpush.bf16.msrb.mxu0 %v10006_v11  ;;  %v5860_v16 = vpack.c.b16 %v5760_v59, %v5760_v59  ;;  %v5861_v61 = vpack.c.b16 %v5761_v51, %v5761_v51  ;;  %v9429_v11 = vld [vmem:[%s15163_s0 + $0x8ac] sm:$0xf0] }
 0x4fb   :  { %v5862_v54 = vpack.c.b16 %v5762_v39, %v5762_v39  ;;  %v10019_v51 = vld [vmem:[%s15161_s1 + $0x430] sm:$0xff] }
 0x4fc   :  { %6298 = vmatpush.bf16.msrb.mxu2 %v10005_v37  ;;  %v8715_v37 = vld [vmem:[%s15163_s0 + $0x84c] sm:$0xf] }
 0x4fd   :  { %6326 = vmatpush.bf16.msrb.mxu3 %v10007_v46  ;;  %6270 = vmatpush.bf16.msrb.mxu1 %v10008_v49  ;;  %v9417_v46 = vld [vmem:[%s15163_s0 + $0x850] sm:$0xf] }
 0x4fe   :  { %v5288_v34 = vpop.f32.mrf.mxu2  ;;  %v5235_v47 = vpop.f32.mrf.mxu0  ;;  %6243 = vmatpush.bf16.msrb.mxu0 %v10010_v43 }
 0x4ff   :  { %v5316_v26 = vpop.f32.mrf.mxu3  ;;  %v5289_v22 = vadd.f32 %v5288_v34, %v5261_v14  ;;  %v5263_v38 = vpop.f32.mrf.mxu1  ;;  %v5236_v31 = vadd.f32 %v5235_v47, %v14074_v60  ;;  %v10011_v60 = vld [vmem:[%s15161_s1 + $0x300] sm:$0xff]  ;;  %v5863_v14 = vpack.c.b16 %v5763_v52, %v5763_v52  ;;  %v8717_v34 = vld [vmem:[%s15163_s0 + $0x8b0] sm:$0xf0]  ;;  %v9441_v52 = vld [vmem:[%s15163_s0 + $0x910] sm:$0xf] }
 0x500   :  { %6299 = vmatpush.bf16.msrb.mxu2 %v10009_v0 }
 0x501   :  { %v14252_v55 = vadd.f32 %v5316_v26, %v5289_v22  ;;  %6327 = vmatpush.bf16.msrb.mxu3 %v10011_v60  ;;  %v5264_v10 = vadd.f32 %v5263_v38, %v5236_v31  ;;  %6030 = vmatmul.bf16.gmra.mxu0 %v8896_v5  ;;  %v8723_v26 = vld [vmem:[%s15163_s0 + $0x854] sm:$0xf]  ;;  %v9430_v5 = vld [vmem:[%s15163_s0 + $0x8b4] sm:$0xf0]  ;;  %v8716_v38 = vor.u32 %v9429_v11, %v8715_v37 }
 0x502   :  { %6058 = vmatmul.bf16.gmra.mxu1 %v8900_v28  ;;  %v8720_v31 = vor.u32 %v9417_v46, %v8717_v34  ;;  %v8724_v49 = vor.u32 %v9430_v5, %v8723_v26  ;;  %v10013_v60 = vld [vmem:[%s15161_s1 + $0x3f8] sm:$0xff]  ;;  %v10025_v34 = vld [vmem:[%s15161_s1 + $0x3e0] sm:$0xff] }
 0x503   :  { %6086 = vmatmul.bf16.gmra.mxu2 %v8904_v44  ;;  %6271 = vmatpush.bf16.msrb.mxu1 %v10012_v3  ;;  %v10015_v3 = vld [vmem:[%s15161_s1 + $0x438] sm:$0xff]  ;;  %v10026_v26 = vld [vmem:[%s15161_s1 + $0x360] sm:$0xff] }
 0x504   :  { %6114 = vmatmul.bf16.gmra.mxu3 %v8908_v23 }
 0x506   :  { %v5291_v48 = vpop.f32.mrf.mxu2  ;;  %v5237_v53 = vpop.f32.mrf.mxu0 }
 0x507   :  { %v5319_v35 = vpop.f32.mrf.mxu3  ;;  %v5292_v57 = vadd.f32 %v5291_v48, %v5264_v10  ;;  %v5265_v58 = vpop.f32.mrf.mxu1  ;;  %v5238_v21 = vadd.f32 %v5237_v53, %v14078_v18  ;;  %v10014_v10 = vld [vmem:[%s15161_s1 + $0x378] sm:$0xff] }
 0x509   :  { %v14272_v40 = vadd.f32 %v5319_v35, %v5292_v57  ;;  %v5266_v6 = vadd.f32 %v5265_v58, %v5238_v21  ;;  %v10017_v21 = vld [vmem:[%s15161_s1 + $0x3f0] sm:$0xff] }
 0x50e   :  { %v5293_v7 = vpop.f32.mrf.mxu2  ;;  %v5240_v18 = vpop.f32.mrf.mxu0 }
 0x50f   :  { %v5321_v4 = vpop.f32.mrf.mxu3  ;;  %v5294_v30 = vadd.f32 %v5293_v7, %v5266_v6  ;;  %v5268_v41 = vpop.f32.mrf.mxu1  ;;  %v5241_v33 = vadd.f32 %v5240_v18, %v14080_v29  ;;  %v8709_v29 = vld [vmem:[%s15163_s0 + $0x8a8] sm:$0xf0]  ;;  %v10018_v6 = vld [vmem:[%s15161_s1 + $0x370] sm:$0xff]  ;;  %v8817_v18 = vld [vmem:[%s15163_s0 + $0x978] sm:$0xf0] }
 0x510   :  { %v8712_v47 = vor.u32 %v9416_v13, %v8709_v29  ;;  %v8809_v7 = vld [vmem:[%s15163_s0 + $0x970] sm:$0xf0] }
 0x511   :  { %v14277_v17 = vadd.f32 %v5321_v4, %v5294_v30  ;;  %v5269_v2 = vadd.f32 %v5268_v41, %v5241_v33  ;;  %6035 = vmatmul.bf16.gmra.mxu0 %v5860_v16  ;;  %v8815_v16 = vld [vmem:[%s15163_s0 + $0x914] sm:$0xf]  ;;  %v9442_v30 = vld [vmem:[%s15163_s0 + $0x918] sm:$0xf]  ;;  %v9455_v41 = vld [vmem:[%s15163_s0 + $0x97c] sm:$0xf0] }
 0x512   :  { %6063 = vmatmul.bf16.gmra.mxu1 %v5861_v61  ;;  %v9454_v61 = vld [vmem:[%s15163_s0 + $0x974] sm:$0xf0]  ;;  %v10023_v33 = vld [vmem:[%s15161_s1 + $0x428] sm:$0xff]  ;;  %v8820_v37 = vor.u32 %v9442_v30, %v8817_v18 }
 0x513   :  { %6091 = vmatmul.bf16.gmra.mxu2 %v5862_v54  ;;  %v10021_v54 = vld [vmem:[%s15161_s1 + $0x3e8] sm:$0xff] }
 0x514   :  { %6119 = vmatmul.bf16.gmra.mxu3 %v5863_v14  ;;  %v10022_v14 = vld [vmem:[%s15161_s1 + $0x368] sm:$0xff] }
 0x516   :  { %v5296_v24 = vpop.f32.mrf.mxu2  ;;  %v5242_v9 = vpop.f32.mrf.mxu0 }
 0x517   :  { %v5324_v15 = vpop.f32.mrf.mxu3  ;;  %v5297_v8 = vadd.f32 %v5296_v24, %v5269_v2  ;;  %v5270_v56 = vpop.f32.mrf.mxu1  ;;  %v10024_v2 = vld [vmem:[%s15161_s1 + $0x3a8] sm:$0xff]  ;;  %v8816_v9 = vor.u32 %v9454_v61, %v8815_v16 }
 0x518   :  { %v10039_v16 = vld [vmem:[%s15161_s1 + $0x408] sm:$0xff] }
 0x519   :  { %v14279_v50 = vadd.f32 %v5324_v15, %v5297_v8  ;;  %v8812_v8 = vor.u32 %v9441_v52, %v8809_v7  ;;  %v10037_v52 = vld [vmem:[%s15161_s1 + $0x3c8] sm:$0xff] }
 0x51a   :  { %v10038_v7 = vld [vmem:[%s15161_s1 + $0x348] sm:$0xff] }
 0x51b   :  { %v10040_v61 = vld [vmem:[%s15161_s1 + $0x388] sm:$0xff] }
 0x51e   :  { %v5298_v28 = vpop.f32.mrf.mxu2  ;;  %v5337_v44 = vpop.f32.mrf.mxu0 }
 0x51f   :  { %v5326_v22 = vpop.f32.mrf.mxu3  ;;  %v5365_v23 = vpop.f32.mrf.mxu1  ;;  %v5338_v0 = vadd.f32 %v5337_v44, %v14126_v63  ;;  %v10016_v63 = vld [vmem:[%s15161_s1 + $0x3b8] sm:$0xff]  ;;  %v10027_v28 = vld [vmem:[%s15161_s1 + $0x420] sm:$0xff] }
 0x520   :  { %v10030_v44 = vld [vmem:[%s15161_s1 + $0x358] sm:$0xff] }
 0x521   :  { %v5366_v43 = vadd.f32 %v5365_v23, %v5338_v0  ;;  %6132 = vmatmul.bf16.vlgmr.msra.gmra.mxu0 %v8712_v47  ;;  %v10031_v23 = vld [vmem:[%s15161_s1 + $0x418] sm:$0xff] }
 0x522   :  { %6160 = vmatmul.bf16.vlgmr.msra.gmra.mxu1 %v8716_v38  ;;  %6348 = vmatpush.bf16.msra.mxu0 %v10014_v10  ;;  %v10029_v38 = vld [vmem:[%s15161_s1 + $0x3d8] sm:$0xff] }
 0x523   :  { %6188 = vmatmul.bf16.vlgmr.msra.gmra.mxu2 %v8720_v31  ;;  %6376 = vmatpush.bf16.msra.mxu1 %v10016_v63  ;;  %v10034_v63 = vld [vmem:[%s15161_s1 + $0x350] sm:$0xff] }
 0x524   :  { %6216 = vmatmul.bf16.vlgmr.msra.gmra.mxu3 %v8724_v49  ;;  %6404 = vmatpush.bf16.msra.mxu2 %v10013_v60 }
 0x525   :  { %6432 = vmatpush.bf16.msra.mxu3 %v10015_v3  ;;  %v10033_v3 = vld [vmem:[%s15161_s1 + $0x3d0] sm:$0xff] }
 0x526   :  { %v5393_v48 = vpop.f32.mrf.mxu2  ;;  %v5339_v53 = vpop.f32.mrf.mxu0  ;;  %6349 = vmatpush.bf16.msra.mxu0 %v10018_v6  ;;  %v8915_v6 = vld [vmem:[%s15163_s0 + $0x9dc] sm:$0xf] }
 0x527   :  { %v14318_v35 = vpop.f32.mrf.mxu3  ;;  %v5394_v57 = vadd.f32 %v5393_v48, %v5366_v43  ;;  %v5367_v58 = vpop.f32.mrf.mxu1  ;;  %v5340_v25 = vadd.f32 %v5339_v53, %v14177_v36  ;;  %v10020_v36 = vld [vmem:[%s15161_s1 + $0x3b0] sm:$0xff] }
 0x528   :  { %6405 = vmatpush.bf16.msra.mxu2 %v10017_v21  ;;  %6377 = vmatpush.bf16.msra.mxu1 %v10020_v36  ;;  %v8917_v36 = vld [vmem:[%s15163_s0 + $0xa40] sm:$0xf0] }
 0x529   :  { %v5412_v59 = vmax.f32 %v5394_v57, 0.0  ;;  %6433 = vmatpush.bf16.msra.mxu3 %v10019_v51  ;;  %v5368_v39 = vadd.f32 %v5367_v58, %v5340_v25  ;;  %v10035_v57 = vld [vmem:[%s15161_s1 + $0x410] sm:$0xff]  ;;  %v9466_v58 = vld [vmem:[%s15163_s0 + $0x9d8] sm:$0xf]  ;;  %v8909_v25 = vld [vmem:[%s15163_s0 + $0xa38] sm:$0xf0] }
 0x52a   :  { %6350 = vmatpush.bf16.msra.mxu0 %v10022_v14  ;;  %v9467_v51 = vld [vmem:[%s15163_s0 + $0x9e0] sm:$0xf] }
 0x52b   :  { %v14340_v4 = vmax.f32 %v13106_v62, %v5412_v59  ;;  %v8823_v62 = vld [vmem:[%s15163_s0 + $0x91c] sm:$0xf]  ;;  %v9479_v59 = vld [vmem:[%s15163_s0 + $0xa3c] sm:$0xf0] }
 0x52c   :  { %6406 = vmatpush.bf16.msra.mxu2 %v10021_v54  ;;  %6378 = vmatpush.bf16.msra.mxu1 %v10024_v2  ;;  %v8824_v11 = vor.u32 %v9455_v41, %v8823_v62  ;;  %v8912_v62 = vor.u32 %v9466_v58, %v8909_v25  ;;  %v8916_v41 = vor.u32 %v9479_v59, %v8915_v6 }
 0x52d   :  { %6434 = vmatpush.bf16.msra.mxu3 %v10023_v33  ;;  %v8920_v2 = vor.u32 %v9467_v51, %v8917_v36 }
 0x52e   :  { %v5395_v24 = vpop.f32.mrf.mxu2  ;;  %v5342_v13 = vpop.f32.mrf.mxu0  ;;  %6351 = vmatpush.bf16.msra.mxu0 %v10026_v26 }
 0x52f   :  { %v14372_v15 = vpop.f32.mrf.mxu3  ;;  %v5396_v56 = vadd.f32 %v5395_v24, %v5368_v39  ;;  %v5370_v29 = vpop.f32.mrf.mxu1  ;;  %v5343_v46 = vadd.f32 %v5342_v13, %v14201_v42  ;;  %v10028_v42 = vld [vmem:[%s15161_s1 + $0x3a0] sm:$0xff]  ;;  %v9480_v39 = vld [vmem:[%s15163_s0 + $0xa44] sm:$0xf0] }
 0x530   :  { %6407 = vmatpush.bf16.msra.mxu2 %v10025_v34  ;;  %6379 = vmatpush.bf16.msra.mxu1 %v10028_v42  ;;  %v8679_v42 = vld [vmem:[%s15163_s0 + $0xaa4] sm:$0x11] }
 0x531   :  { %v5413_v5 = vmax.f32 %v5396_v56, 0.0  ;;  %6435 = vmatpush.bf16.msra.mxu3 %v10027_v28  ;;  %v5371_v22 = vadd.f32 %v5370_v29, %v5343_v46  ;;  %6137 = vmatmul.bf16.gmra.mxu0 %v8812_v8  ;;  %v10042_v56 = vld [vmem:[%s15161_s1 + $0x340] sm:$0xff] }
 0x532   :  { %6165 = vmatmul.bf16.gmra.mxu1 %v8816_v9  ;;  %6352 = vmatpush.bf16.msra.mxu0 %v10030_v44  ;;  %v10041_v9 = vld [vmem:[%s15161_s1 + $0x3c0] sm:$0xff] }
 0x533   :  { %v14388_v47 = vmax.f32 %v13166_v12, %v5413_v5  ;;  %6193 = vmatmul.bf16.gmra.mxu2 %v8820_v37  ;;  %v10032_v12 = vld [vmem:[%s15161_s1 + $0x398] sm:$0xff]  ;;  %v10043_v29 = vld [vmem:[%s15161_s1 + $0x400] sm:$0xff] }
 0x534   :  { %6221 = vmatmul.bf16.gmra.mxu3 %v8824_v11  ;;  %6408 = vmatpush.bf16.msra.mxu2 %v10029_v38  ;;  %v14483_v38 = vld [vmem:[%s15163_s0 + $0xaac] sm:$0x11] }
 0x535   :  { %6436 = vmatpush.bf16.msra.mxu3 %v10031_v23  ;;  %6380 = vmatpush.bf16.msra.mxu1 %v10032_v12  ;;  %v5764_v23 = vunpack.c.h.b16 %v14270_v20  ;;  %v5765_v12 = vunpack.c.l.b16 %v8679_v42 }
 0x536   :  { %v5398_v31 = vpop.f32.mrf.mxu2  ;;  %v5344_v43 = vpop.f32.mrf.mxu0  ;;  %6353 = vmatpush.bf16.msra.mxu0 %v10034_v63 }
 0x537   :  { %v14402_v49 = vpop.f32.mrf.mxu3  ;;  %v5399_v0 = vadd.f32 %v5398_v31, %v5371_v22  ;;  %v5372_v60 = vpop.f32.mrf.mxu1  ;;  %v5345_v10 = vadd.f32 %v5344_v43, %v14252_v55  ;;  %v10036_v55 = vld [vmem:[%s15161_s1 + $0x390] sm:$0xff]  ;;  %v5767_v43 = vunpack.c.l.b16 %v14483_v38 }
 0x538   :  { %6409 = vmatpush.bf16.msra.mxu2 %v10033_v3  ;;  %v5865_v3 = vpack.c.b16 %v5765_v12, %v5765_v12  ;;  %v10050_v12 = vld [vmem:[%s15161_s1 + $0x4f0] sm:$0xff] }
 0x539   :  { %v5414_v48 = vmax.f32 %v5399_v0, 0.0  ;;  %6437 = vmatpush.bf16.msra.mxu3 %v10035_v57  ;;  %6381 = vmatpush.bf16.msra.mxu1 %v10036_v55  ;;  %v5373_v53 = vadd.f32 %v5372_v60, %v5345_v10  ;;  %v5766_v0 = vunpack.c.h.b16 %v8679_v42 }
 0x53a   :  { %6354 = vmatpush.bf16.msra.mxu0 %v10038_v7  ;;  %v8731_v7 = vld [vmem:[%s15163_s0 + $0x85c] sm:$0xf] }
 0x53b   :  { %v14424_v21 = vmax.f32 %v13194_v32, %v5414_v48  ;;  %v8923_v32 = vld [vmem:[%s15163_s0 + $0x9e4] sm:$0xf]  ;;  %v5866_v55 = vpack.c.b16 %v5766_v0, %v5766_v0  ;;  %v10051_v0 = vld [vmem:[%s15161_s1 + $0x470] sm:$0xff] }
 0x53c   :  { %6410 = vmatpush.bf16.msra.mxu2 %v10037_v52  ;;  %v8924_v24 = vor.u32 %v9480_v39, %v8923_v32  ;;  %v8725_v52 = vld [vmem:[%s15163_s0 + $0x8b8] sm:$0xf0] }
 0x53d   :  { %6438 = vmatpush.bf16.msra.mxu3 %v10039_v16  ;;  %6382 = vmatpush.bf16.msra.mxu1 %v10040_v61  ;;  %v9431_v16 = vld [vmem:[%s15163_s0 + $0x8bc] sm:$0xf0] }
 0x53e   :  { %v5400_v30 = vpop.f32.mrf.mxu2  ;;  %v5347_v14 = vpop.f32.mrf.mxu0  ;;  %6355 = vmatpush.bf16.msra.mxu0 %v10042_v56  ;;  %v9419_v61 = vld [vmem:[%s15163_s0 + $0x860] sm:$0xf] }
 0x53f   :  { %v14456_v18 = vpop.f32.mrf.mxu3  ;;  %v5401_v54 = vadd.f32 %v5400_v30, %v5373_v53  ;;  %v5375_v33 = vpop.f32.mrf.mxu1  ;;  %v5348_v8 = vadd.f32 %v5347_v14, %v14272_v40  ;;  %v10044_v40 = vld [vmem:[%s15161_s1 + $0x380] sm:$0xff]  ;;  %v5867_v53 = vpack.c.b16 %v5767_v43, %v5767_v43 }
 0x540   :  { %6411 = vmatpush.bf16.msra.mxu2 %v10041_v9  ;;  %v8733_v30 = vld [vmem:[%s15163_s0 + $0x8c0] sm:$0xf0] }
 0x541   :  { %v5415_v13 = vmax.f32 %v5401_v54, 0.0  ;;  %6439 = vmatpush.bf16.msra.mxu3 %v10043_v29  ;;  %6383 = vmatpush.bf16.msra.mxu1 %v10044_v40  ;;  %v5376_v37 = vadd.f32 %v5375_v33, %v5348_v8  ;;  %v8736_v56 = vor.u32 %v9419_v61, %v8733_v30 }
 0x542   :  { %6142 = vmatmul.bf16.gmra.mxu0 %v8912_v62  ;;  %6170 = vmatmul.bf16.gmra.mxu1 %v8916_v41  ;;  %v9432_v62 = vld [vmem:[%s15163_s0 + $0x8c4] sm:$0xf0]  ;;  %v14528_v41 = vld [vmem:[%s15162_s2] ss:$0 sm:$0xff] }
 0x543   :  { %v14472_v11 = vmax.f32 %v13249_v27, %v5415_v13  ;;  %6198 = vmatmul.bf16.gmra.mxu2 %v8920_v2  ;;  %v5994_v54 = vadd.f32 %v14528_v41, %v14318_v35  ;;  %v10047_v35 = vld [vmem:[%s15161_s1 + $0x478] sm:$0xff] }
 0x544   :  { %6226 = vmatmul.bf16.gmra.mxu3 %v8924_v24  ;;  %v8732_v24 = vor.u32 %v9431_v16, %v8731_v7 }
 0x546   :  { %v5403_v46 = vpop.f32.mrf.mxu2  ;;  %v5349_v5 = vpop.f32.mrf.mxu0 }
 0x547   :  { %v14474_v34 = vpop.f32.mrf.mxu3  ;;  %v5404_v26 = vadd.f32 %v5403_v46, %v5376_v37  ;;  %v5377_v28 = vpop.f32.mrf.mxu1  ;;  %v5350_v22 = vadd.f32 %v5349_v5, %v14277_v17  ;;  %v5864_v17 = vpack.c.b16 %v5764_v23, %v5764_v23  ;;  %v10046_v37 = vld [vmem:[%s15161_s1 + $0x4f8] sm:$0xff]  ;;  %v5996_v5 = vadd.f32 %v14528_v41, %v14372_v15  ;;  %v10052_v15 = vld [vmem:[%s15161_s1 + $0x530] sm:$0xff] }
 0x548   :  { %v10048_v46 = vld [vmem:[%s15161_s1 + $0x538] sm:$0xff] }
 0x549   :  { %v5416_v27 = vmax.f32 %v5404_v26, 0.0  ;;  %v5378_v44 = vadd.f32 %v5377_v28, %v5350_v22  ;;  %v10049_v26 = vld [vmem:[%s15161_s1 + $0x4b8] sm:$0xff] }
 0x54b   :  { %v14487_v31 = vmax.f32 %v13271_v45, %v5416_v27 }
 0x54e   :  { %v5405_v60 = vpop.f32.mrf.mxu2  ;;  %v5352_v48 = vpop.f32.mrf.mxu0 }
 0x54f   :  { %v14490_v10 = vpop.f32.mrf.mxu3  ;;  %v5406_v63 = vadd.f32 %v5405_v60, %v5378_v44  ;;  %v5380_v57 = vpop.f32.mrf.mxu1  ;;  %v5353_v58 = vadd.f32 %v5352_v48, %v14279_v50  ;;  %v9418_v50 = vld [vmem:[%s15163_s0 + $0x858] sm:$0xf]  ;;  %v10053_v60 = vld [vmem:[%s15161_s1 + $0x4b0] sm:$0xff]  ;;  %v8831_v48 = vld [vmem:[%s15163_s0 + $0x924] sm:$0xf] }
 0x550   :  { %v8728_v2 = vor.u32 %v9418_v50, %v8725_v52 }
 0x551   :  { %v5417_v20 = vmax.f32 %v5406_v63, 0.0  ;;  %v5381_v25 = vadd.f32 %v5380_v57, %v5353_v58  ;;  %v8825_v63 = vld [vmem:[%s15163_s0 + $0x980] sm:$0xf0]  ;;  %v9456_v57 = vld [vmem:[%s15163_s0 + $0x984] sm:$0xf0] }
 0x552   :  { %6147 = vmatmul.bf16.gmra.mxu0 %v5864_v17  ;;  %6175 = vmatmul.bf16.gmra.mxu1 %v5865_v3  ;;  %v9443_v3 = vld [vmem:[%s15163_s0 + $0x920] sm:$0xf]  ;;  %v8839_v58 = vld [vmem:[%s15163_s0 + $0x92c] sm:$0xf]  ;;  %v8832_v7 = vor.u32 %v9456_v57, %v8831_v48  ;;  %v10069_v48 = vld [vmem:[%s15161_s1 + $0x490] sm:$0xff] }
 0x553   :  { %v14494_v45 = vmax.f32 %v13284_v1, %v5417_v20  ;;  %6203 = vmatmul.bf16.gmra.mxu2 %v5866_v55  ;;  %v9444_v55 = vld [vmem:[%s15163_s0 + $0x928] sm:$0xf]  ;;  %v9457_v20 = vld [vmem:[%s15163_s0 + $0x98c] sm:$0xf0]  ;;  %v8828_v52 = vor.u32 %v9443_v3, %v8825_v63  ;;  %v8939_v3 = vld [vmem:[%s15163_s0 + $0x9f4] sm:$0xf] }
 0x554   :  { %6231 = vmatmul.bf16.gmra.mxu3 %v5867_v53  ;;  %v8833_v53 = vld [vmem:[%s15163_s0 + $0x988] sm:$0xf0]  ;;  %v9482_v63 = vld [vmem:[%s15163_s0 + $0xa54] sm:$0xf0] }
 0x555   :  { %v10070_v57 = vld [vmem:[%s15161_s1 + $0x4c8] sm:$0xff] }
 0x556   :  { %v5408_v6 = vpop.f32.mrf.mxu2  ;;  %v5354_v36 = vpop.f32.mrf.mxu0 }
 0x557   :  { %v14496_v59 = vpop.f32.mrf.mxu3  ;;  %v5409_v51 = vadd.f32 %v5408_v6, %v5381_v25  ;;  %v5382_v32 = vpop.f32.mrf.mxu1  ;;  %v10054_v25 = vld [vmem:[%s15161_s1 + $0x4e8] sm:$0xff] }
 0x558   :  { %v10055_v6 = vld [vmem:[%s15161_s1 + $0x468] sm:$0xff]  ;;  %v5999_v32 = vadd.f32 %v14528_v41, %v14402_v49 }
 0x559   :  { %v5418_v39 = vmax.f32 %v5409_v51, 0.0  ;;  %v10056_v51 = vld [vmem:[%s15161_s1 + $0x528] sm:$0xff] }
 0x55a   :  { %v10057_v36 = vld [vmem:[%s15161_s1 + $0x4a8] sm:$0xff] }
 0x55b   :  { %v14505_v1 = vmax.f32 %v13291_v19, %v5418_v39  ;;  %v8739_v19 = vld [vmem:[%s15163_s0 + $0x864] sm:$0xf] }
 0x55c   :  { %v8740_v13 = vor.u32 %v9432_v62, %v8739_v19  ;;  %v8836_v19 = vor.u32 %v9444_v55, %v8833_v53  ;;  %v8840_v62 = vor.u32 %v9457_v20, %v8839_v58  ;;  %v10071_v55 = vld [vmem:[%s15161_s1 + $0x448] sm:$0xff]  ;;  %v6004_v58 = vadd.f32 %v14528_v41, %v14474_v34 }
 0x55d   :  { %v10072_v53 = vld [vmem:[%s15161_s1 + $0x508] sm:$0xff] }
 0x55e   :  { %v5410_v14 = vpop.f32.mrf.mxu2  ;;  %v6021_v8 = vpop.f32.mrf.mxu0 }
 0x55f   :  { %v6010_v33 = vpop.f32.mrf.mxu3  ;;  %v6049_v9 = vpop.f32.mrf.mxu1  ;;  %v6022_v29 = vadd.f32 %v6021_v8, %v5994_v54  ;;  %v10058_v14 = vld [vmem:[%s15161_s1 + $0x4e0] sm:$0xff] }
 0x560   :  { %v10059_v33 = vld [vmem:[%s15161_s1 + $0x460] sm:$0xff] }
 0x561   :  { %v6050_v40 = vadd.f32 %v6049_v9, %v6022_v29  ;;  %v10061_v8 = vld [vmem:[%s15161_s1 + $0x4a0] sm:$0xff]  ;;  %v10062_v9 = vld [vmem:[%s15161_s1 + $0x4d8] sm:$0xff]  ;;  %v6001_v29 = vadd.f32 %v14528_v41, %v14456_v18  ;;  %v10067_v18 = vld [vmem:[%s15161_s1 + $0x450] sm:$0xff] }
 0x562   :  { %6244 = vmatmul.bf16.vlgmr.msrb.gmra.mxu0 %v8728_v2  ;;  %6272 = vmatmul.bf16.vlgmr.msrb.gmra.mxu1 %v8732_v24  ;;  %v10060_v2 = vld [vmem:[%s15161_s1 + $0x520] sm:$0xff] }
 0x563   :  { %6300 = vmatmul.bf16.vlgmr.msrb.gmra.mxu2 %v8736_v56  ;;  %6460 = vmatpush.bf16.msrb.mxu0 %v10047_v35  ;;  %v10063_v56 = vld [vmem:[%s15161_s1 + $0x458] sm:$0xff] }
 0x564   :  { %6328 = vmatmul.bf16.vlgmr.msrb.gmra.mxu3 %v8740_v13  ;;  %6516 = vmatpush.bf16.msrb.mxu2 %v10046_v37  ;;  %v10064_v13 = vld [vmem:[%s15161_s1 + $0x518] sm:$0xff] }
 0x565   :  { %6544 = vmatpush.bf16.msrb.mxu3 %v10048_v46  ;;  %6488 = vmatpush.bf16.msrb.mxu1 %v10049_v26 }
 0x566   :  { %v6077_v28 = vpop.f32.mrf.mxu2  ;;  %v6023_v27 = vpop.f32.mrf.mxu0 }
 0x567   :  { %v6105_v42 = vpop.f32.mrf.mxu3  ;;  %v6078_v22 = vadd.f32 %v6077_v28, %v6050_v40  ;;  %v6051_v44 = vpop.f32.mrf.mxu1  ;;  %v6024_v23 = vadd.f32 %v6023_v27, %v5996_v5  ;;  %6461 = vmatpush.bf16.msrb.mxu0 %v10051_v0  ;;  %v10065_v28 = vld [vmem:[%s15161_s1 + $0x498] sm:$0xff]  ;;  %v10068_v27 = vld [vmem:[%s15161_s1 + $0x510] sm:$0xff]  ;;  %v8931_v0 = vld [vmem:[%s15163_s0 + $0x9ec] sm:$0xf] }
 0x568   :  { %6517 = vmatpush.bf16.msrb.mxu2 %v10050_v12  ;;  %v8925_v12 = vld [vmem:[%s15163_s0 + $0xa48] sm:$0xf0] }
 0x569   :  { %v14552_v43 = vadd.f32 %v6105_v42, %v6078_v22  ;;  %6545 = vmatpush.bf16.msrb.mxu3 %v10052_v15  ;;  %6489 = vmatpush.bf16.msrb.mxu1 %v10053_v60  ;;  %v6052_v17 = vadd.f32 %v6051_v44, %v6024_v23  ;;  %v10066_v42 = vld [vmem:[%s15161_s1 + $0x4d0] sm:$0xff]  ;;  %v9468_v23 = vld [vmem:[%s15163_s0 + $0x9e8] sm:$0xf] }
 0x56a   :  { %v9481_v15 = vld [vmem:[%s15163_s0 + $0xa4c] sm:$0xf0] }
 0x56b   :  { %6462 = vmatpush.bf16.msrb.mxu0 %v10055_v6  ;;  %v9469_v60 = vld [vmem:[%s15163_s0 + $0x9f0] sm:$0xf]  ;;  %v8928_v6 = vor.u32 %v9468_v23, %v8925_v12 }
 0x56c   :  { %6518 = vmatpush.bf16.msrb.mxu2 %v10054_v25 }
 0x56d   :  { %6546 = vmatpush.bf16.msrb.mxu3 %v10056_v51  ;;  %6490 = vmatpush.bf16.msrb.mxu1 %v10057_v36  ;;  %v8932_v51 = vor.u32 %v9481_v15, %v8931_v0 }
 0x56e   :  { %v6079_v39 = vpop.f32.mrf.mxu2  ;;  %v6026_v61 = vpop.f32.mrf.mxu0 }
 0x56f   :  { %v6107_v50 = vpop.f32.mrf.mxu3  ;;  %v6080_v16 = vadd.f32 %v6079_v39, %v6052_v17  ;;  %v6054_v30 = vpop.f32.mrf.mxu1  ;;  %v6027_v54 = vadd.f32 %v6026_v61, %v5999_v32  ;;  %6463 = vmatpush.bf16.msrb.mxu0 %v10059_v33  ;;  %v8933_v17 = vld [vmem:[%s15163_s0 + $0xa50] sm:$0xf0]  ;;  %v10074_v61 = vld [vmem:[%s15161_s1 + $0x4c0] sm:$0xff] }
 0x570   :  { %6519 = vmatpush.bf16.msrb.mxu2 %v10058_v14  ;;  %v6006_v14 = vadd.f32 %v14528_v41, %v14490_v10  ;;  %v5768_v10 = vunpack.c.h.b16 %v14483_v38 }
 0x571   :  { %v14604_v49 = vadd.f32 %v6107_v50, %v6080_v16  ;;  %6547 = vmatpush.bf16.msrb.mxu3 %v10060_v2  ;;  %v6055_v24 = vadd.f32 %v6054_v30, %v6027_v54  ;;  %6491 = vmatpush.bf16.msrb.mxu1 %v10061_v8  ;;  %v8936_v50 = vor.u32 %v9469_v60, %v8933_v17  ;;  %v10073_v16 = vld [vmem:[%s15161_s1 + $0x488] sm:$0xff]  ;;  %v10075_v30 = vld [vmem:[%s15161_s1 + $0x440] sm:$0xff] }
 0x572   :  { %6249 = vmatmul.bf16.gmra.mxu0 %v8828_v52  ;;  %6277 = vmatmul.bf16.gmra.mxu1 %v8832_v7  ;;  %v8940_v52 = vor.u32 %v9482_v63, %v8939_v3  ;;  %v10077_v54 = vld [vmem:[%s15161_s1 + $0x480] sm:$0xff] }
 0x573   :  { %6305 = vmatmul.bf16.gmra.mxu2 %v8836_v19  ;;  %6464 = vmatpush.bf16.msrb.mxu0 %v10063_v56  ;;  %v10076_v19 = vld [vmem:[%s15161_s1 + $0x500] sm:$0xff]  ;;  %v8681_v56 = vld [vmem:[%s15163_s0 + $0xab4] sm:$0x11] }
 0x574   :  { %6333 = vmatmul.bf16.gmra.mxu3 %v8840_v62  ;;  %6520 = vmatpush.bf16.msrb.mxu2 %v10062_v9 }
 0x575   :  { %6548 = vmatpush.bf16.msrb.mxu3 %v10064_v13  ;;  %6492 = vmatpush.bf16.msrb.mxu1 %v10065_v28 }
 0x576   :  { %v6082_v40 = vpop.f32.mrf.mxu2  ;;  %v6028_v46 = vpop.f32.mrf.mxu0 }
 0x577   :  { %v6110_v37 = vpop.f32.mrf.mxu3  ;;  %v6083_v35 = vadd.f32 %v6082_v40, %v6055_v24  ;;  %v6056_v26 = vpop.f32.mrf.mxu1  ;;  %v6029_v5 = vadd.f32 %v6028_v46, %v6001_v29  ;;  %6465 = vmatpush.bf16.msrb.mxu0 %v10067_v18  ;;  %v14700_v29 = vld [vmem:[%s15163_s0 + $0xabc] sm:$0x11]  ;;  %v5770_v46 = vunpack.c.h.b16 %v8681_v56  ;;  %v5868_v18 = vpack.c.b16 %v5768_v10, %v5768_v10  ;;  %v10083_v10 = vld [vmem:[%s15161_s1 + $0x570] sm:$0xff] }
 0x578   :  { %6521 = vmatpush.bf16.msrb.mxu2 %v10066_v42 }
 0x579   :  { %v14629_v22 = vadd.f32 %v6110_v37, %v6083_v35  ;;  %6549 = vmatpush.bf16.msrb.mxu3 %v10068_v27  ;;  %v6057_v44 = vadd.f32 %v6056_v26, %v6029_v5  ;;  %6493 = vmatpush.bf16.msrb.mxu1 %v10069_v48  ;;  %v5769_v35 = vunpack.c.l.b16 %v8681_v56  ;;  %v5771_v26 = vunpack.c.l.b16 %v14700_v29 }
 0x57a   :  { %v6009_v5 = vadd.f32 %v14528_v41, %v14496_v59  ;;  %v5870_v0 = vpack.c.b16 %v5770_v46, %v5770_v46  ;;  %v10084_v46 = vld [vmem:[%s15161_s1 + $0x630] sm:$0xff] }
 0x57b   :  { %6466 = vmatpush.bf16.msrb.mxu0 %v10071_v55  ;;  %v5869_v27 = vpack.c.b16 %v5769_v35, %v5769_v35  ;;  %v5871_v15 = vpack.c.b16 %v5771_v26, %v5771_v26  ;;  %v9420_v55 = vld [vmem:[%s15163_s0 + $0x868] sm:$0xf] }
 0x57c   :  { %6522 = vmatpush.bf16.msrb.mxu2 %v10070_v57 }
 0x57d   :  { %6550 = vmatpush.bf16.msrb.mxu3 %v10072_v53  ;;  %6494 = vmatpush.bf16.msrb.mxu1 %v10073_v16  ;;  %v8741_v53 = vld [vmem:[%s15163_s0 + $0x8c8] sm:$0xf0] }
 0x57e   :  { %v6084_v20 = vpop.f32.mrf.mxu2  ;;  %v6031_v32 = vpop.f32.mrf.mxu0 }
 0x57f   :  { %v6112_v25 = vpop.f32.mrf.mxu3  ;;  %v6085_v36 = vadd.f32 %v6084_v20, %v6057_v44  ;;  %v6059_v39 = vpop.f32.mrf.mxu1  ;;  %v6032_v7 = vadd.f32 %v6031_v32, %v6004_v58  ;;  %6467 = vmatpush.bf16.msrb.mxu0 %v10075_v30  ;;  %v8747_v58 = vld [vmem:[%s15163_s0 + $0x86c] sm:$0xf]  ;;  %v9433_v20 = vld [vmem:[%s15163_s0 + $0x8cc] sm:$0xf0] }
 0x580   :  { %6523 = vmatpush.bf16.msrb.mxu2 %v10074_v61 }
 0x581   :  { %v14681_v34 = vadd.f32 %v6112_v25, %v6085_v36  ;;  %6551 = vmatpush.bf16.msrb.mxu3 %v10076_v19  ;;  %v6060_v62 = vadd.f32 %v6059_v39, %v6032_v7  ;;  %6495 = vmatpush.bf16.msrb.mxu1 %v10077_v54  ;;  %v9421_v25 = vld [vmem:[%s15163_s0 + $0x870] sm:$0xf]  ;;  %v9434_v36 = vld [vmem:[%s15163_s0 + $0x8d4] sm:$0xf0] }
 0x582   :  { %6254 = vmatmul.bf16.gmra.mxu0 %v8928_v6  ;;  %6282 = vmatmul.bf16.gmra.mxu1 %v8932_v51  ;;  %v8749_v6 = vld [vmem:[%s15163_s0 + $0x8d0] sm:$0xf0]  ;;  %v10078_v54 = vld [vmem:[%s15161_s1 + $0x5f8] sm:$0xff] }
 0x583   :  { %6310 = vmatmul.bf16.gmra.mxu2 %v8936_v50  ;;  %v8755_v51 = vld [vmem:[%s15163_s0 + $0x874] sm:$0xf]  ;;  %v8744_v50 = vor.u32 %v9420_v55, %v8741_v53  ;;  %v8752_v61 = vor.u32 %v9421_v25, %v8749_v6  ;;  %v10090_v6 = vld [vmem:[%s15161_s1 + $0x5e0] sm:$0xff] }
 0x584   :  { %6338 = vmatmul.bf16.gmra.mxu3 %v8940_v52  ;;  %v8748_v52 = vor.u32 %v9433_v20, %v8747_v58  ;;  %v8756_v30 = vor.u32 %v9434_v36, %v8755_v51  ;;  %v10091_v51 = vld [vmem:[%s15161_s1 + $0x560] sm:$0xff] }
 0x586   :  { %v6087_v33 = vpop.f32.mrf.mxu2  ;;  %v6033_v8 = vpop.f32.mrf.mxu0 }
 0x587   :  { %v6115_v2 = vpop.f32.mrf.mxu3  ;;  %v6088_v24 = vadd.f32 %v6087_v33, %v6060_v62  ;;  %v6061_v9 = vpop.f32.mrf.mxu1  ;;  %v6034_v13 = vadd.f32 %v6033_v8, %v6006_v14  ;;  %v10079_v14 = vld [vmem:[%s15161_s1 + $0x578] sm:$0xff] }
 0x588   :  { %v10080_v33 = vld [vmem:[%s15161_s1 + $0x638] sm:$0xff] }
 0x589   :  { %v14702_v40 = vadd.f32 %v6115_v2, %v6088_v24  ;;  %v6062_v37 = vadd.f32 %v6061_v9, %v6034_v13 }
 0x58e   :  { %v6089_v28 = vpop.f32.mrf.mxu2  ;;  %v6036_v23 = vpop.f32.mrf.mxu0 }
 0x58f   :  { %v6117_v42 = vpop.f32.mrf.mxu3  ;;  %v6090_v44 = vadd.f32 %v6089_v28, %v6062_v37  ;;  %v6064_v12 = vpop.f32.mrf.mxu1  ;;  %v6037_v60 = vadd.f32 %v6036_v23, %v6009_v5  ;;  %v10082_v37 = vld [vmem:[%s15161_s1 + $0x5f0] sm:$0xff]  ;;  %v8855_v23 = vld [vmem:[%s15163_s0 + $0x93c] sm:$0xf] }
 0x590   :  { %v9445_v5 = vld [vmem:[%s15163_s0 + $0x930] sm:$0xf]  ;;  %v8841_v28 = vld [vmem:[%s15163_s0 + $0x990] sm:$0xf0] }
 0x591   :  { %v14708_v17 = vadd.f32 %v6117_v42, %v6090_v44  ;;  %v6065_v38 = vadd.f32 %v6064_v12, %v6037_v60  ;;  %v8847_v42 = vld [vmem:[%s15163_s0 + $0x934] sm:$0xf]  ;;  %v8849_v44 = vld [vmem:[%s15163_s0 + $0x998] sm:$0xf0]  ;;  %v9459_v12 = vld [vmem:[%s15163_s0 + $0x99c] sm:$0xf0] }
 0x592   :  { %6259 = vmatmul.bf16.gmra.mxu0 %v5868_v18  ;;  %6287 = vmatmul.bf16.gmra.mxu1 %v5869_v27  ;;  %v9458_v18 = vld [vmem:[%s15163_s0 + $0x994] sm:$0xf0]  ;;  %v10088_v60 = vld [vmem:[%s15161_s1 + $0x628] sm:$0xff]  ;;  %v8856_v20 = vor.u32 %v9459_v12, %v8855_v23 }
 0x593   :  { %6315 = vmatmul.bf16.gmra.mxu2 %v5870_v0  ;;  %v9446_v27 = vld [vmem:[%s15163_s0 + $0x938] sm:$0xf]  ;;  %v10086_v0 = vld [vmem:[%s15161_s1 + $0x5e8] sm:$0xff] }
 0x594   :  { %6343 = vmatmul.bf16.gmra.mxu3 %v5871_v15  ;;  %v10087_v15 = vld [vmem:[%s15161_s1 + $0x568] sm:$0xff]  ;;  %v8852_v58 = vor.u32 %v9446_v27, %v8849_v44 }
 0x596   :  { %v6092_v3 = vpop.f32.mrf.mxu2  ;;  %v6038_v41 = vpop.f32.mrf.mxu0 }
 0x597   :  { %v6120_v63 = vpop.f32.mrf.mxu3  ;;  %v6093_v59 = vadd.f32 %v6092_v3, %v6065_v38  ;;  %v6066_v48 = vpop.f32.mrf.mxu1  ;;  %v10089_v38 = vld [vmem:[%s15161_s1 + $0x5a8] sm:$0xff]  ;;  %v8848_v41 = vor.u32 %v9458_v18, %v8847_v42 }
 0x598   :  { %v10104_v42 = vld [vmem:[%s15161_s1 + $0x608] sm:$0xff] }
 0x599   :  { %v14710_v57 = vadd.f32 %v6120_v63, %v6093_v59  ;;  %v8844_v59 = vor.u32 %v9445_v5, %v8841_v28  ;;  %v10102_v5 = vld [vmem:[%s15161_s1 + $0x5c8] sm:$0xff] }
 0x59a   :  { %v10103_v28 = vld [vmem:[%s15161_s1 + $0x548] sm:$0xff] }
 0x59e   :  { %v6094_v32 = vpop.f32.mrf.mxu2  ;;  %v6133_v7 = vpop.f32.mrf.mxu0 }
 0x59f   :  { %v6122_v39 = vpop.f32.mrf.mxu3  ;;  %v6161_v16 = vpop.f32.mrf.mxu1  ;;  %v6134_v19 = vadd.f32 %v6133_v7, %v14552_v43  ;;  %v10081_v43 = vld [vmem:[%s15161_s1 + $0x5b8] sm:$0xff]  ;;  %v10092_v32 = vld [vmem:[%s15161_s1 + $0x620] sm:$0xff] }
 0x5a0   :  { %v10096_v7 = vld [vmem:[%s15161_s1 + $0x618] sm:$0xff] }
 0x5a1   :  { %v6162_v62 = vadd.f32 %v6161_v16, %v6134_v19 }
 0x5a2   :  { %6356 = vmatmul.bf16.vlgmr.msra.gmra.mxu0 %v8744_v50  ;;  %6384 = vmatmul.bf16.vlgmr.msra.gmra.mxu1 %v8748_v52  ;;  %v10094_v50 = vld [vmem:[%s15161_s1 + $0x5d8] sm:$0xff] }
 0x5a3   :  { %6412 = vmatmul.bf16.vlgmr.msra.gmra.mxu2 %v8752_v61  ;;  %6572 = vmatpush.bf16.msra.mxu0 %v10079_v14  ;;  %v10095_v52 = vld [vmem:[%s15161_s1 + $0x558] sm:$0xff] }
 0x5a4   :  { %6440 = vmatmul.bf16.vlgmr.msra.gmra.mxu3 %v8756_v30  ;;  %6628 = vmatpush.bf16.msra.mxu2 %v10078_v54  ;;  %v10097_v14 = vld [vmem:[%s15161_s1 + $0x598] sm:$0xff] }
 0x5a5   :  { %6656 = vmatpush.bf16.msra.mxu3 %v10080_v33  ;;  %6600 = vmatpush.bf16.msra.mxu1 %v10081_v43  ;;  %v10098_v33 = vld [vmem:[%s15161_s1 + $0x5d0] sm:$0xff] }
 0x5a6   :  { %v6189_v2 = vpop.f32.mrf.mxu2  ;;  %v6135_v9 = vpop.f32.mrf.mxu0 }
 0x5a7   :  { %v6217_v24 = vpop.f32.mrf.mxu3  ;;  %v6190_v8 = vadd.f32 %v6189_v2, %v6162_v62  ;;  %v6163_v56 = vpop.f32.mrf.mxu1  ;;  %v6136_v13 = vadd.f32 %v6135_v9, %v14604_v49  ;;  %6573 = vmatpush.bf16.msra.mxu0 %v10083_v10  ;;  %v10085_v49 = vld [vmem:[%s15161_s1 + $0x5b0] sm:$0xff]  ;;  %v8941_v9 = vld [vmem:[%s15163_s0 + $0xa58] sm:$0xf0]  ;;  %v8949_v10 = vld [vmem:[%s15163_s0 + $0xa60] sm:$0xf0] }
 0x5a8   :  { %6629 = vmatpush.bf16.msra.mxu2 %v10082_v37  ;;  %v10099_v2 = vld [vmem:[%s15161_s1 + $0x550] sm:$0xff]  ;;  %v9471_v37 = vld [vmem:[%s15163_s0 + $0xa00] sm:$0xf] }
 0x5a9   :  { %v14756_v35 = vadd.f32 %v6217_v24, %v6190_v8  ;;  %6657 = vmatpush.bf16.msra.mxu3 %v10084_v46  ;;  %6601 = vmatpush.bf16.msra.mxu1 %v10085_v49  ;;  %v6164_v26 = vadd.f32 %v6163_v56, %v6136_v13  ;;  %v9470_v8 = vld [vmem:[%s15163_s0 + $0x9f8] sm:$0xf]  ;;  %v8947_v56 = vld [vmem:[%s15163_s0 + $0x9fc] sm:$0xf]  ;;  %v9483_v13 = vld [vmem:[%s15163_s0 + $0xa5c] sm:$0xf0] }
 0x5aa   :  { %v8955_v46 = vld [vmem:[%s15163_s0 + $0xa04] sm:$0xf]  ;;  %v9484_v49 = vld [vmem:[%s15163_s0 + $0xa64] sm:$0xf0]  ;;  %v8944_v44 = vor.u32 %v9470_v8, %v8941_v9  ;;  %v8948_v23 = vor.u32 %v9483_v13, %v8947_v56 }
 0x5ab   :  { %6574 = vmatpush.bf16.msra.mxu0 %v10087_v15 }
 0x5ac   :  { %6630 = vmatpush.bf16.msra.mxu2 %v10086_v0 }
 0x5ad   :  { %6658 = vmatpush.bf16.msra.mxu3 %v10088_v60  ;;  %6602 = vmatpush.bf16.msra.mxu1 %v10089_v38  ;;  %v8952_v60 = vor.u32 %v9471_v37, %v8949_v10  ;;  %v8956_v38 = vor.u32 %v9484_v49, %v8955_v46 }
 0x5ae   :  { %v6191_v3 = vpop.f32.mrf.mxu2  ;;  %v6138_v55 = vpop.f32.mrf.mxu0 }
 0x5af   :  { %v6219_v63 = vpop.f32.mrf.mxu3  ;;  %v6192_v48 = vadd.f32 %v6191_v3, %v6164_v26  ;;  %v6166_v53 = vpop.f32.mrf.mxu1  ;;  %v6139_v25 = vadd.f32 %v6138_v55, %v14629_v22  ;;  %6575 = vmatpush.bf16.msra.mxu0 %v10091_v51  ;;  %v10093_v22 = vld [vmem:[%s15161_s1 + $0x5a0] sm:$0xff]  ;;  %v10101_v26 = vld [vmem:[%s15161_s1 + $0x590] sm:$0xff] }
 0x5b0   :  { %6631 = vmatpush.bf16.msra.mxu2 %v10090_v6 }
 0x5b1   :  { %v14807_v36 = vadd.f32 %v6219_v63, %v6192_v48  ;;  %6659 = vmatpush.bf16.msra.mxu3 %v10092_v32  ;;  %v6167_v39 = vadd.f32 %v6166_v53, %v6139_v25  ;;  %6603 = vmatpush.bf16.msra.mxu1 %v10093_v22  ;;  %v10105_v63 = vld [vmem:[%s15161_s1 + $0x588] sm:$0xff]  ;;  %v10107_v48 = vld [vmem:[%s15161_s1 + $0x540] sm:$0xff] }
 0x5b2   :  { %6361 = vmatmul.bf16.gmra.mxu0 %v8844_v59  ;;  %6389 = vmatmul.bf16.gmra.mxu1 %v8848_v41  ;;  %v10106_v59 = vld [vmem:[%s15161_s1 + $0x5c0] sm:$0xff]  ;;  %v14900_v22 = vld [vmem:[%s15163_s0 + $0xacc] sm:$0x11] }
 0x5b3   :  { %6417 = vmatmul.bf16.gmra.mxu2 %v8852_v58  ;;  %6576 = vmatpush.bf16.msra.mxu0 %v10095_v52  ;;  %v10109_v53 = vld [vmem:[%s15161_s1 + $0x580] sm:$0xff] }
 0x5b4   :  { %6445 = vmatmul.bf16.gmra.mxu3 %v8856_v20  ;;  %6632 = vmatpush.bf16.msra.mxu2 %v10094_v50  ;;  %v8683_v32 = vld [vmem:[%s15163_s0 + $0xac4] sm:$0x11] }
 0x5b5   :  { %6660 = vmatpush.bf16.msra.mxu3 %v10096_v7  ;;  %6604 = vmatpush.bf16.msra.mxu1 %v10097_v14  ;;  %v5772_v7 = vunpack.c.h.b16 %v14700_v29 }
 0x5b6   :  { %v6194_v16 = vpop.f32.mrf.mxu2  ;;  %v6140_v19 = vpop.f32.mrf.mxu0 }
 0x5b7   :  { %v6222_v61 = vpop.f32.mrf.mxu3  ;;  %v6195_v30 = vadd.f32 %v6194_v16, %v6167_v39  ;;  %v6168_v62 = vpop.f32.mrf.mxu1  ;;  %v6141_v54 = vadd.f32 %v6140_v19, %v14681_v34  ;;  %6577 = vmatpush.bf16.msra.mxu0 %v10099_v2  ;;  %v10100_v34 = vld [vmem:[%s15161_s1 + $0x610] sm:$0xff]  ;;  %v5773_v16 = vunpack.c.l.b16 %v8683_v32 }
 0x5b8   :  { %6633 = vmatpush.bf16.msra.mxu2 %v10098_v33 }
 0x5b9   :  { %v14831_v43 = vadd.f32 %v6222_v61, %v6195_v30  ;;  %6661 = vmatpush.bf16.msra.mxu3 %v10100_v34  ;;  %v6169_v24 = vadd.f32 %v6168_v62, %v6141_v54  ;;  %6605 = vmatpush.bf16.msra.mxu1 %v10101_v26  ;;  %v5774_v61 = vunpack.c.h.b16 %v8683_v32  ;;  %v5775_v30 = vunpack.c.l.b16 %v14900_v22  ;;  %v9422_v26 = vld [vmem:[%s15163_s0 + $0x878] sm:$0xf]  ;;  %v9447_v32 = vld [vmem:[%s15163_s0 + $0x940] sm:$0xf] }
 0x5ba   :  { %v5872_v54 = vpack.c.b16 %v5772_v7, %v5772_v7  ;;  %v5873_v14 = vpack.c.b16 %v5773_v16, %v5773_v16  ;;  %v8865_v7 = vld [vmem:[%s15163_s0 + $0x9a8] sm:$0xf0] }
 0x5bb   :  { %6578 = vmatpush.bf16.msra.mxu0 %v10103_v28  ;;  %v5874_v34 = vpack.c.b16 %v5774_v61, %v5774_v61  ;;  %v9435_v28 = vld [vmem:[%s15163_s0 + $0x8dc] sm:$0xf0]  ;;  %v8871_v16 = vld [vmem:[%s15163_s0 + $0x94c] sm:$0xf]  ;;  %v9461_v61 = vld [vmem:[%s15163_s0 + $0x9ac] sm:$0xf0] }
 0x5bc   :  { %6634 = vmatpush.bf16.msra.mxu2 %v10102_v5  ;;  %v8763_v5 = vld [vmem:[%s15163_s0 + $0x87c] sm:$0xf] }
 0x5bd   :  { %6662 = vmatpush.bf16.msra.mxu3 %v10104_v42  ;;  %6606 = vmatpush.bf16.msra.mxu1 %v10105_v63  ;;  %v9423_v42 = vld [vmem:[%s15163_s0 + $0x880] sm:$0xf] }
 0x5be   :  { %v6196_v18 = vpop.f32.mrf.mxu2 }
 0x5bf   :  { %v6224_v27 = vpop.f32.mrf.mxu3  ;;  %v6197_v12 = vadd.f32 %v6196_v18, %v6169_v24  ;;  %v6143_v0 = vpop.f32.mrf.mxu0  ;;  %6579 = vmatpush.bf16.msra.mxu0 %v10107_v48  ;;  %v5875_v24 = vpack.c.b16 %v5775_v30, %v5775_v30  ;;  %v8765_v18 = vld [vmem:[%s15163_s0 + $0x8e0] sm:$0xf0] }
 0x5c0   :  { %v6171_v15 = vpop.f32.mrf.mxu1  ;;  %v6144_v3 = vadd.f32 %v6143_v0, %v14702_v40  ;;  %6635 = vmatpush.bf16.msra.mxu2 %v10106_v59  ;;  %v10108_v40 = vld [vmem:[%s15161_s1 + $0x600] sm:$0xff] }
 0x5c1   :  { %v14882_v41 = vadd.f32 %v6224_v27, %v6197_v12  ;;  %6663 = vmatpush.bf16.msra.mxu3 %v10108_v40  ;;  %6607 = vmatpush.bf16.msra.mxu1 %v10109_v53  ;;  %v8771_v27 = vld [vmem:[%s15163_s0 + $0x884] sm:$0xf] }
 0x5c2   :  { %v6172_v55 = vadd.f32 %v6171_v15, %v6144_v3  ;;  %6366 = vmatmul.bf16.gmra.mxu0 %v8944_v44  ;;  %6394 = vmatmul.bf16.gmra.mxu1 %v8948_v23  ;;  %v9436_v44 = vld [vmem:[%s15163_s0 + $0x8e4] sm:$0xf0]  ;;  %v8764_v15 = vor.u32 %v9435_v28, %v8763_v5  ;;  %v8768_v3 = vor.u32 %v9423_v42, %v8765_v18  ;;  %v8957_v28 = vld [vmem:[%s15163_s0 + $0xa68] sm:$0xf0]  ;;  %v9485_v18 = vld [vmem:[%s15163_s0 + $0xa6c] sm:$0xf0] }
 0x5c3   :  { %6422 = vmatmul.bf16.gmra.mxu2 %v8952_v60  ;;  %v8772_v63 = vor.u32 %v9436_v44, %v8771_v27  ;;  %v8963_v42 = vld [vmem:[%s15163_s0 + $0xa0c] sm:$0xf]  ;;  %v8965_v27 = vld [vmem:[%s15163_s0 + $0xa70] sm:$0xf0] }
 0x5c4   :  { %6450 = vmatmul.bf16.gmra.mxu3 %v8956_v38  ;;  %v8971_v44 = vld [vmem:[%s15163_s0 + $0xa14] sm:$0xf] }
 0x5c6   :  { %v6199_v58 = vpop.f32.mrf.mxu2 }
 0x5c7   :  { %v6227_v20 = vpop.f32.mrf.mxu3  ;;  %v6200_v25 = vadd.f32 %v6199_v58, %v6172_v55  ;;  %v6145_v6 = vpop.f32.mrf.mxu0 }
 0x5c8   :  { %v6173_v51 = vpop.f32.mrf.mxu1  ;;  %v6146_v39 = vadd.f32 %v6145_v6, %v14708_v17 }
 0x5c9   :  { %v14902_v50 = vadd.f32 %v6227_v20, %v6200_v25 }
 0x5ca   :  { %v6174_v52 = vadd.f32 %v6173_v51, %v6146_v39  ;;  %v8863_v39 = vld [vmem:[%s15163_s0 + $0x944] sm:$0xf] }
 0x5ce   :  { %v6201_v19 = vpop.f32.mrf.mxu2 }
 0x5cf   :  { %v6229_v62 = vpop.f32.mrf.mxu3  ;;  %v6202_v33 = vadd.f32 %v6201_v19, %v6174_v52  ;;  %v6148_v17 = vpop.f32.mrf.mxu0  ;;  %v9460_v52 = vld [vmem:[%s15163_s0 + $0x9a4] sm:$0xf0] }
 0x5d0   :  { %v6176_v2 = vpop.f32.mrf.mxu1  ;;  %v6149_v8 = vadd.f32 %v6148_v17, %v14710_v57  ;;  %v8757_v57 = vld [vmem:[%s15163_s0 + $0x8d8] sm:$0xf0] }
 0x5d1   :  { %v14907_v9 = vadd.f32 %v6229_v62, %v6202_v33  ;;  %v8760_v0 = vor.u32 %v9422_v26, %v8757_v57 }
 0x5d2   :  { %v6177_v56 = vadd.f32 %v6176_v2, %v6149_v8  ;;  %6371 = vmatmul.bf16.gmra.mxu0 %v5872_v54  ;;  %6399 = vmatmul.bf16.gmra.mxu1 %v5873_v14  ;;  %v8864_v54 = vor.u32 %v9460_v52, %v8863_v39 }
 0x5d3   :  { %6427 = vmatmul.bf16.gmra.mxu2 %v5874_v34  ;;  %v8872_v34 = vor.u32 %v9461_v61, %v8871_v16 }
 0x5d4   :  { %6455 = vmatmul.bf16.gmra.mxu3 %v5875_v24 }
 0x5d6   :  { %v6204_v29 = vpop.f32.mrf.mxu2 }
 0x5d7   :  { %v6232_v13 = vpop.f32.mrf.mxu3  ;;  %v6205_v37 = vadd.f32 %v6204_v29, %v6177_v56  ;;  %v6150_v10 = vpop.f32.mrf.mxu0 }
 0x5d8   :  { %v6178_v46 = vpop.f32.mrf.mxu1 }
 0x5d9   :  { %v14909_v49 = vadd.f32 %v6232_v13, %v6205_v37 }
 0x5de   :  { %v6206_v23 = vpop.f32.mrf.mxu2 }
 0x5df   :  { %v6234_v12 = vpop.f32.mrf.mxu3  ;;  %v6245_v60 = vpop.f32.mrf.mxu0  ;;  %v9486_v23 = vld [vmem:[%s15163_s0 + $0xa74] sm:$0xf0] }
 0x5e0   :  { %v6273_v38 = vpop.f32.mrf.mxu1  ;;  %v6246_v59 = vadd.f32 %v6245_v60, %v14756_v35  ;;  %v8857_v35 = vld [vmem:[%s15163_s0 + $0x9a0] sm:$0xf0]  ;;  %v8964_v60 = vor.u32 %v9485_v18, %v8963_v42  ;;  %v9425_v42 = vld [vmem:[%s15163_s0 + $0x890] sm:$0xf]  ;;  %v8781_v18 = vld [vmem:[%s15163_s0 + $0x8f0] sm:$0xf0] }
 0x5e1   :  { %v8860_v62 = vor.u32 %v9447_v32, %v8857_v35  ;;  %v8685_v35 = vld [vmem:[%s15163_s0 + $0xad4] sm:$0x11] }
 0x5e2   :  { %v6274_v48 = vadd.f32 %v6273_v38, %v6246_v59  ;;  %6468 = vmatmul.bf16.vlgmr.msrb.gmra.mxu0 %v8760_v0  ;;  %6496 = vmatmul.bf16.vlgmr.msrb.gmra.mxu1 %v8764_v15  ;;  %v5777_v16 = vunpack.c.l.b16 %v8685_v35  ;;  %v5778_v61 = vunpack.c.h.b16 %v8685_v35  ;;  %v9449_v35 = vld [vmem:[%s15163_s0 + $0x950] sm:$0xf] }
 0x5e3   :  { %6524 = vmatmul.bf16.vlgmr.msrb.gmra.mxu2 %v8768_v3 }
 0x5e4   :  { %6552 = vmatmul.bf16.vlgmr.msrb.gmra.mxu3 %v8772_v63 }
 0x5e6   :  { %v6301_v40 = vpop.f32.mrf.mxu2 }
 0x5e7   :  { %v6329_v55 = vpop.f32.mrf.mxu3  ;;  %v6302_v53 = vadd.f32 %v6301_v40, %v6274_v48  ;;  %v6247_v58 = vpop.f32.mrf.mxu0  ;;  %v8972_v48 = vor.u32 %v9486_v23, %v8971_v44 }
 0x5e8   :  { %v6275_v20 = vpop.f32.mrf.mxu1  ;;  %v6248_v25 = vadd.f32 %v6247_v58, %v14807_v36  ;;  %v9448_v36 = vld [vmem:[%s15163_s0 + $0x948] sm:$0xf] }
 0x5e9   :  { %v14937_v6 = vadd.f32 %v6329_v55, %v6302_v53  ;;  %v8868_v2 = vor.u32 %v9448_v36, %v8865_v7  ;;  %v5776_v7 = vunpack.c.h.b16 %v14900_v22 }
 0x5ea   :  { %v6276_v51 = vadd.f32 %v6275_v20, %v6248_v25 }
 0x5ee   :  { %v6303_v30 = vpop.f32.mrf.mxu2 }
 0x5ef   :  { %v6331_v19 = vpop.f32.mrf.mxu3  ;;  %v6304_v14 = vadd.f32 %v6303_v30, %v6276_v51  ;;  %v6250_v33 = vpop.f32.mrf.mxu0 }
 0x5f0   :  { %v6278_v17 = vpop.f32.mrf.mxu1  ;;  %v6251_v24 = vadd.f32 %v6250_v33, %v14831_v43  ;;  %v9472_v43 = vld [vmem:[%s15163_s0 + $0xa08] sm:$0xf] }
 0x5f1   :  { %v14964_v8 = vadd.f32 %v6331_v19, %v6304_v14  ;;  %v8960_v15 = vor.u32 %v9472_v43, %v8957_v28  ;;  %v5877_v14 = vpack.c.b16 %v5777_v16, %v5777_v16  ;;  %v8779_v43 = vld [vmem:[%s15163_s0 + $0x88c] sm:$0xf]  ;;  %v9437_v28 = vld [vmem:[%s15163_s0 + $0x8ec] sm:$0xf0]  ;;  %v8887_v16 = vld [vmem:[%s15163_s0 + $0x95c] sm:$0xf] }
 0x5f2   :  { %v6279_v56 = vadd.f32 %v6278_v17, %v6251_v24  ;;  %6473 = vmatmul.bf16.gmra.mxu0 %v8860_v62  ;;  %6501 = vmatmul.bf16.gmra.mxu1 %v8864_v54  ;;  %v5876_v54 = vpack.c.b16 %v5776_v7, %v5776_v7  ;;  %v8881_v7 = vld [vmem:[%s15163_s0 + $0x9b8] sm:$0xf0] }
 0x5f3   :  { %6529 = vmatmul.bf16.gmra.mxu2 %v8868_v2  ;;  %v5878_v2 = vpack.c.b16 %v5778_v61, %v5778_v61  ;;  %v9463_v61 = vld [vmem:[%s15163_s0 + $0x9bc] sm:$0xf0] }
 0x5f4   :  { %6557 = vmatmul.bf16.gmra.mxu3 %v8872_v34 }
 0x5f6   :  { %v6306_v29 = vpop.f32.mrf.mxu2 }
 0x5f7   :  { %v6334_v13 = vpop.f32.mrf.mxu3  ;;  %v6307_v37 = vadd.f32 %v6306_v29, %v6279_v56  ;;  %v6252_v10 = vpop.f32.mrf.mxu0 }
 0x5f8   :  { %v6280_v46 = vpop.f32.mrf.mxu1  ;;  %v6253_v26 = vadd.f32 %v6252_v10, %v14882_v41  ;;  %v9473_v41 = vld [vmem:[%s15163_s0 + $0xa10] sm:$0xf] }
 0x5f9   :  { %v14967_v57 = vadd.f32 %v6334_v13, %v6307_v37  ;;  %v8968_v59 = vor.u32 %v9473_v41, %v8965_v27  ;;  %v8787_v41 = vld [vmem:[%s15163_s0 + $0x894] sm:$0xf]  ;;  %v9438_v27 = vld [vmem:[%s15163_s0 + $0x8f4] sm:$0xf0] }
 0x5fa   :  { %v6281_v5 = vadd.f32 %v6280_v46, %v6253_v26 }
 0x5fe   :  { %v6308_v12 = vpop.f32.mrf.mxu2 }
 0x5ff   :  { %v6336_v0 = vpop.f32.mrf.mxu3  ;;  %v6309_v38 = vadd.f32 %v6308_v12, %v6281_v5  ;;  %v6255_v3 = vpop.f32.mrf.mxu0  ;;  %v9424_v5 = vld [vmem:[%s15163_s0 + $0x888] sm:$0xf] }
 0x600   :  { %v6283_v63 = vpop.f32.mrf.mxu1  ;;  %v6256_v40 = vadd.f32 %v6255_v3, %v14902_v50  ;;  %v15003_v50 = vld [vmem:[%s15163_s0 + $0xadc] sm:$0x11]  ;;  %v8788_v3 = vor.u32 %v9438_v27, %v8787_v41  ;;  %v8981_v41 = vld [vmem:[%s15163_s0 + $0xa80] sm:$0xf0] }
 0x601   :  { %v14994_v55 = vadd.f32 %v6336_v0, %v6309_v38  ;;  %v5779_v30 = vunpack.c.l.b16 %v15003_v50  ;;  %v8780_v0 = vor.u32 %v9437_v28, %v8779_v43  ;;  %v8784_v38 = vor.u32 %v9425_v42, %v8781_v18  ;;  %v8973_v28 = vld [vmem:[%s15163_s0 + $0xa78] sm:$0xf0]  ;;  %v9487_v18 = vld [vmem:[%s15163_s0 + $0xa7c] sm:$0xf0]  ;;  %v8987_v27 = vld [vmem:[%s15163_s0 + $0xa24] sm:$0xf] }
 0x602   :  { %v6284_v53 = vadd.f32 %v6283_v63, %v6256_v40  ;;  %6478 = vmatmul.bf16.gmra.mxu0 %v8960_v15  ;;  %6506 = vmatmul.bf16.gmra.mxu1 %v8964_v60  ;;  %v8979_v42 = vld [vmem:[%s15163_s0 + $0xa1c] sm:$0xf] }
 0x603   :  { %6534 = vmatmul.bf16.gmra.mxu2 %v8968_v59  ;;  %v5879_v34 = vpack.c.b16 %v5779_v30, %v5779_v30 }
 0x604   :  { %6562 = vmatmul.bf16.gmra.mxu3 %v8972_v48 }
 0x606   :  { %v6311_v58 = vpop.f32.mrf.mxu2 }
 0x607   :  { %v6339_v20 = vpop.f32.mrf.mxu3  ;;  %v6312_v25 = vadd.f32 %v6311_v58, %v6284_v53  ;;  %v6257_v51 = vpop.f32.mrf.mxu0 }
 0x608   :  { %v6285_v32 = vpop.f32.mrf.mxu1  ;;  %v6258_v39 = vadd.f32 %v6257_v51, %v14907_v9 }
 0x609   :  { %v15005_v52 = vadd.f32 %v6339_v20, %v6312_v25 }
 0x60a   :  { %v6286_v36 = vadd.f32 %v6285_v32, %v6258_v39  ;;  %v8879_v39 = vld [vmem:[%s15163_s0 + $0x954] sm:$0xf] }
 0x60e   :  { %v6313_v19 = vpop.f32.mrf.mxu2 }
 0x60f   :  { %v6341_v62 = vpop.f32.mrf.mxu3  ;;  %v6314_v33 = vadd.f32 %v6313_v19, %v6286_v36  ;;  %v6260_v9 = vpop.f32.mrf.mxu0  ;;  %v9462_v36 = vld [vmem:[%s15163_s0 + $0x9b4] sm:$0xf0] }
 0x610   :  { %v6288_v17 = vpop.f32.mrf.mxu1  ;;  %v6261_v24 = vadd.f32 %v6260_v9, %v14909_v49  ;;  %v8773_v49 = vld [vmem:[%s15163_s0 + $0x8e8] sm:$0xf0] }
 0x611   :  { %v15010_v56 = vadd.f32 %v6341_v62, %v6314_v33  ;;  %v8776_v12 = vor.u32 %v9424_v5, %v8773_v49 }
 0x612   :  { %v6289_v29 = vadd.f32 %v6288_v17, %v6261_v24  ;;  %6483 = vmatmul.bf16.gmra.mxu0 %v5876_v54  ;;  %6511 = vmatmul.bf16.gmra.mxu1 %v5877_v14  ;;  %v8880_v54 = vor.u32 %v9462_v36, %v8879_v39 }
 0x613   :  { %6539 = vmatmul.bf16.gmra.mxu2 %v5878_v2  ;;  %v8888_v2 = vor.u32 %v9463_v61, %v8887_v16 }
 0x614   :  { %6567 = vmatmul.bf16.gmra.mxu3 %v5879_v34 }
 0x616   :  { %v6316_v22 = vpop.f32.mrf.mxu2 }
 0x617   :  { %v6344_v13 = vpop.f32.mrf.mxu3  ;;  %v6317_v37 = vadd.f32 %v6316_v22, %v6289_v29  ;;  %v6262_v10 = vpop.f32.mrf.mxu0 }
 0x618   :  { %v6290_v46 = vpop.f32.mrf.mxu1 }
 0x619   :  { %v15012_v26 = vadd.f32 %v6344_v13, %v6317_v37 }
 0x61e   :  { %v6318_v44 = vpop.f32.mrf.mxu2 }
 0x61f   :  { %v6346_v23 = vpop.f32.mrf.mxu3  ;;  %v6357_v15 = vpop.f32.mrf.mxu0  ;;  %v9488_v44 = vld [vmem:[%s15163_s0 + $0xa84] sm:$0xf0] }
 0x620   :  { %v6385_v60 = vpop.f32.mrf.mxu1  ;;  %v6358_v63 = vadd.f32 %v6357_v15, %v14937_v6  ;;  %v8873_v6 = vld [vmem:[%s15163_s0 + $0x9b0] sm:$0xf0]  ;;  %v8980_v15 = vor.u32 %v9487_v18, %v8979_v42 }
 0x621   :  { %v8876_v62 = vor.u32 %v9449_v35, %v8873_v6  ;;  %v8687_v6 = vld [vmem:[%s15163_s0 + $0xae4] sm:$0x11] }
 0x622   :  { %v6386_v59 = vadd.f32 %v6385_v60, %v6358_v63  ;;  %6580 = vmatmul.bf16.vlgmr.msra.gmra.mxu0 %v8776_v12  ;;  %6608 = vmatmul.bf16.vlgmr.msra.gmra.mxu1 %v8780_v0  ;;  %v5781_v16 = vunpack.c.l.b16 %v8687_v6  ;;  %v5782_v61 = vunpack.c.h.b16 %v8687_v6 }
 0x623   :  { %6636 = vmatmul.bf16.vlgmr.msra.gmra.mxu2 %v8784_v38 }
 0x624   :  { %6664 = vmatmul.bf16.vlgmr.msra.gmra.mxu3 %v8788_v3 }
 0x626   :  { %v6413_v48 = vpop.f32.mrf.mxu2 }
 0x627   :  { %v6441_v40 = vpop.f32.mrf.mxu3  ;;  %v6414_v53 = vadd.f32 %v6413_v48, %v6386_v59  ;;  %v6359_v58 = vpop.f32.mrf.mxu0  ;;  %v8988_v59 = vor.u32 %v9488_v44, %v8987_v27 }
 0x628   :  { %v6387_v20 = vpop.f32.mrf.mxu1  ;;  %v6360_v25 = vadd.f32 %v6359_v58, %v14964_v8  ;;  %v9450_v8 = vld [vmem:[%s15163_s0 + $0x958] sm:$0xf] }
 0x629   :  { %v15040_v51 = vadd.f32 %v6441_v40, %v6414_v53  ;;  %v8884_v17 = vor.u32 %v9450_v8, %v8881_v7  ;;  %v5780_v7 = vunpack.c.h.b16 %v15003_v50 }
 0x62a   :  { %v6388_v32 = vadd.f32 %v6387_v20, %v6360_v25 }
 0x62e   :  { %v6415_v30 = vpop.f32.mrf.mxu2 }
 0x62f   :  { %v6443_v19 = vpop.f32.mrf.mxu3  ;;  %v6416_v14 = vadd.f32 %v6415_v30, %v6388_v32  ;;  %v6362_v33 = vpop.f32.mrf.mxu0 }
 0x630   :  { %v6390_v9 = vpop.f32.mrf.mxu1  ;;  %v6363_v34 = vadd.f32 %v6362_v33, %v14967_v57  ;;  %v9474_v57 = vld [vmem:[%s15163_s0 + $0xa18] sm:$0xf] }
 0x631   :  { %v15067_v24 = vadd.f32 %v6443_v19, %v6416_v14  ;;  %v8976_v0 = vor.u32 %v9474_v57, %v8973_v28  ;;  %v5881_v14 = vpack.c.b16 %v5781_v16, %v5781_v16 }
 0x632   :  { %v6391_v29 = vadd.f32 %v6390_v9, %v6363_v34  ;;  %6585 = vmatmul.bf16.gmra.mxu0 %v8876_v62  ;;  %6613 = vmatmul.bf16.gmra.mxu1 %v8880_v54  ;;  %v5880_v54 = vpack.c.b16 %v5780_v7, %v5780_v7 }
 0x633   :  { %6641 = vmatmul.bf16.gmra.mxu2 %v8884_v17 }
 0x634   :  { %6669 = vmatmul.bf16.gmra.mxu3 %v8888_v2  ;;  %v5882_v2 = vpack.c.b16 %v5782_v61, %v5782_v61 }
 0x636   :  { %v6418_v22 = vpop.f32.mrf.mxu2 }
 0x637   :  { %v6446_v13 = vpop.f32.mrf.mxu3  ;;  %v6419_v37 = vadd.f32 %v6418_v22, %v6391_v29  ;;  %v6364_v10 = vpop.f32.mrf.mxu0 }
 0x638   :  { %v6392_v46 = vpop.f32.mrf.mxu1  ;;  %v6365_v5 = vadd.f32 %v6364_v10, %v14994_v55  ;;  %v9475_v55 = vld [vmem:[%s15163_s0 + $0xa20] sm:$0xf] }
 0x639   :  { %v15070_v49 = vadd.f32 %v6446_v13, %v6419_v37  ;;  %v8984_v63 = vor.u32 %v9475_v55, %v8981_v41 }
 0x63a   :  { %v6393_v43 = vadd.f32 %v6392_v46, %v6365_v5 }
 0x63e   :  { %v6420_v23 = vpop.f32.mrf.mxu2 }
 0x63f   :  { %v6448_v12 = vpop.f32.mrf.mxu3  ;;  %v6421_v60 = vadd.f32 %v6420_v23, %v6393_v43  ;;  %v6367_v38 = vpop.f32.mrf.mxu0 }
 0x640   :  { %v6395_v3 = vpop.f32.mrf.mxu1  ;;  %v6368_v48 = vadd.f32 %v6367_v38, %v15005_v52  ;;  %v8688_v52 = vld [vmem:[%s15163_s0 + $0xaec] sm:$0x1] }
 0x641   :  { %v15097_v40 = vadd.f32 %v6448_v12, %v6421_v60  ;;  %v5783_v30 = vunpack.c.l.b16 %v8688_v52 }
 0x642   :  { %v6396_v53 = vadd.f32 %v6395_v3, %v6368_v48  ;;  %6590 = vmatmul.bf16.gmra.mxu0 %v8976_v0  ;;  %6618 = vmatmul.bf16.gmra.mxu1 %v8980_v15 }
 0x643   :  { %6646 = vmatmul.bf16.gmra.mxu2 %v8984_v63 }
 0x644   :  { %6674 = vmatmul.bf16.gmra.mxu3 %v8988_v59 }
 0x646   :  { %v6423_v58 = vpop.f32.mrf.mxu2 }
 0x647   :  { %v6451_v20 = vpop.f32.mrf.mxu3  ;;  %v6424_v25 = vadd.f32 %v6423_v58, %v6396_v53  ;;  %v6369_v32 = vpop.f32.mrf.mxu0 }
 0x648   :  { %v6397_v35 = vpop.f32.mrf.mxu1  ;;  %v6370_v39 = vadd.f32 %v6369_v32, %v15010_v56  ;;  %v5883_v56 = vpack.c.b16 %v5783_v30, %v5783_v30 }
 0x649   :  { %v6452_v36 = vadd.f32 %v6451_v20, %v6424_v25 }
 0x64a   :  { %v6398_v8 = vadd.f32 %v6397_v35, %v6370_v39 }
 0x64e   :  { %v6425_v19 = vpop.f32.mrf.mxu2 }
 0x64f   :  { %v6453_v62 = vpop.f32.mrf.mxu3  ;;  %v6426_v33 = vadd.f32 %v6425_v19, %v6398_v8  ;;  %v6372_v9 = vpop.f32.mrf.mxu0 }
 0x650   :  { %v6400_v17 = vpop.f32.mrf.mxu1  ;;  %v6373_v34 = vadd.f32 %v6372_v9, %v15012_v26 }
 0x651   :  { %v15108_v29 = vadd.f32 %v6453_v62, %v6426_v33 }
 0x652   :  { %v6401_v22 = vadd.f32 %v6400_v17, %v6373_v34  ;;  %6595 = vmatmul.bf16.gmra.mxu0 %v5880_v54  ;;  %6623 = vmatmul.bf16.gmra.mxu1 %v5881_v14 }
 0x653   :  { %6651 = vmatmul.bf16.gmra.mxu2 %v5882_v2 }
 0x654   :  { %6679 = vmatmul.bf16.gmra.mxu3 %v5883_v56 }
 0x656   :  { %v6428_v50 = vpop.f32.mrf.mxu2 }
 0x657   :  { %v6456_v13 = vpop.f32.mrf.mxu3  ;;  %v6429_v37 = vadd.f32 %v6428_v50, %v6401_v22  ;;  %v6374_v10 = vpop.f32.mrf.mxu0 }
 0x658   :  { %v6402_v46 = vpop.f32.mrf.mxu1 }
 0x659   :  { %v15110_v5 = vadd.f32 %v6456_v13, %v6429_v37 }
 0x65e   :  { %v6430_v43 = vpop.f32.mrf.mxu2 }
 0x65f   :  { %v6458_v57 = vpop.f32.mrf.mxu3  ;;  %v6469_v28 = vpop.f32.mrf.mxu0 }
 0x660   :  { %v6497_v42 = vpop.f32.mrf.mxu1  ;;  %v6470_v26 = vadd.f32 %v6469_v28, %v15040_v51 }
 0x662   :  { %v6498_v18 = vadd.f32 %v6497_v42, %v6470_v26 }
 0x666   :  { %v6525_v55 = vpop.f32.mrf.mxu2 }
 0x667   :  { %v6553_v41 = vpop.f32.mrf.mxu3  ;;  %v6526_v27 = vadd.f32 %v6525_v55, %v6498_v18  ;;  %v6471_v44 = vpop.f32.mrf.mxu0 }
 0x668   :  { %v6499_v23 = vpop.f32.mrf.mxu1  ;;  %v6472_v2 = vadd.f32 %v6471_v44, %v15067_v24 }
 0x669   :  { %v6554_v12 = vadd.f32 %v6553_v41, %v6526_v27 }
 0x66a   :  { %v6500_v13 = vadd.f32 %v6499_v23, %v6472_v2 }
 0x66e   :  { %v6527_v0 = vpop.f32.mrf.mxu2 }
 0x66f   :  { %v6555_v15 = vpop.f32.mrf.mxu3  ;;  %v6474_v60 = vpop.f32.mrf.mxu0  ;;  %v6528_v10 = vadd.f32 %v6527_v0, %v6500_v13 }
 0x670   :  { %v6502_v38 = vpop.f32.mrf.mxu1  ;;  %v6475_v3 = vadd.f32 %v6474_v60, %v15070_v49 }
 0x671   :  { %v6556_v28 = vadd.f32 %v6555_v15, %v6528_v10 }
 0x672   :  { %v6503_v63 = vadd.f32 %v6502_v38, %v6475_v3 }
 0x676   :  { %v6530_v59 = vpop.f32.mrf.mxu2 }
 0x677   :  { %v6558_v48 = vpop.f32.mrf.mxu3  ;;  %v6531_v53 = vadd.f32 %v6530_v59, %v6503_v63  ;;  %v6476_v58 = vpop.f32.mrf.mxu0 }
 0x678   :  { %v6504_v20 = vpop.f32.mrf.mxu1  ;;  %v6477_v60 = vadd.f32 %v6476_v58, %v15097_v40 }
 0x679   :  { %v6559_v51 = vadd.f32 %v6558_v48, %v6531_v53 }
 0x67a   :  { %v6505_v63 = vadd.f32 %v6504_v20, %v6477_v60 }
 0x67e   :  { %v6532_v25 = vpop.f32.mrf.mxu2 }
 0x67f   :  { %v6560_v32 = vpop.f32.mrf.mxu3  ;;  %v6479_v35 = vpop.f32.mrf.mxu0  ;;  %v6533_v15 = vadd.f32 %v6532_v25, %v6505_v63 }
 0x680   :  { %v6507_v6 = vpop.f32.mrf.mxu1  ;;  %v6480_v39 = vadd.f32 %v6479_v35, %v6452_v36 }
 0x682   :  { %v6508_v52 = vadd.f32 %v6507_v6, %v6480_v39 }
 0x686   :  { %v6535_v8 = vpop.f32.mrf.mxu2 }
 0x687   :  { %v6563_v7 = vpop.f32.mrf.mxu3  ;;  %v6536_v16 = vadd.f32 %v6535_v8, %v6508_v52  ;;  %v6481_v61 = vpop.f32.mrf.mxu0  ;;  %v6561_v8 = vadd.f32 %v6560_v32, %v6533_v15 }
 0x688   :  { %v15114_v30 = vpop.f32.mrf.mxu1 }
 0x689   :  { %v15116_v49 = vadd.f32 %v6563_v7, %v6536_v16 }
 0x68e   :  { %v15118_v19 = vpop.f32.mrf.mxu2 }
 0x68f   :  { %v15120_v62 = vpop.f32.mrf.mxu3  ;;  %v15122_v54 = vpop.f32.mrf.mxu0 }
 0x690   :  { %v15124_v14 = vpop.f32.mrf.mxu1 }
 0x696   :  { %v15126_v33 = vpop.f32.mrf.mxu2 }
 0x697   :  { %v15128_v36 = vpop.f32.mrf.mxu3  ;;  %v6486_v9 = vpop.f32.mrf.mxu0 }
 0x698   :  { %v6514_v17 = vpop.f32.mrf.mxu1 }
 0x69e   :  { %v6542_v56 = vpop.f32.mrf.mxu2 }
 0x69f   :  { %v6570_v34 = vpop.f32.mrf.mxu3  ;;  %v6581_v22 = vpop.f32.mrf.mxu0 }
 0x6a0   :  { %v6609_v50 = vpop.f32.mrf.mxu1  ;;  %v6582_v37 = vadd.f32 %v6581_v22, %v6554_v12 }
 0x6a2   :  { %v6610_v46 = vadd.f32 %v6609_v50, %v6582_v37 }
 0x6a6   :  { %v6637_v43 = vpop.f32.mrf.mxu2 }
 0x6a7   :  { %v6665_v57 = vpop.f32.mrf.mxu3  ;;  %v6638_v42 = vadd.f32 %v6637_v43, %v6610_v46  ;;  %v6583_v26 = vpop.f32.mrf.mxu0  ;;  %v6485_v46 = vadd.f32 %v15122_v54, %v15110_v5 }
 0x6a8   :  { %v6611_v18 = vpop.f32.mrf.mxu1  ;;  %v6584_v41 = vadd.f32 %v6583_v26, %v6556_v28 }
 0x6a9   :  { %v6666_v55 = vadd.f32 %v6665_v57, %v6638_v42 }
 0x6aa   :  { %v6612_v44 = vadd.f32 %v6611_v18, %v6584_v41  ;;  %v6513_v18 = vadd.f32 %v15124_v14, %v6485_v46 }
 0x6ab   :  { %v6684_v27 = vmax.f32 %v6666_v55, 0.0 }
 0x6ac   :  { %v6541_v5 = vadd.f32 %v15126_v33, %v6513_v18 }
 0x6ad   :  { %v6691_v24 = vmax.f32 %v14340_v4, %v6684_v27 }
 0x6ae   :  { %v6639_v38 = vpop.f32.mrf.mxu2  ;;  %v6569_v27 = vadd.f32 %v15128_v36, %v6541_v5 }
 0x6af   :  { %v6667_v3 = vpop.f32.mrf.mxu3  ;;  %v6640_v23 = vadd.f32 %v6639_v38, %v6612_v44  ;;  %v6586_v12 = vpop.f32.mrf.mxu0 }
 0x6b0   :  { %v6614_v0 = vpop.f32.mrf.mxu1  ;;  %v6587_v48 = vadd.f32 %v6586_v12, %v6559_v51  ;;  %v6482_v51 = vadd.f32 %v6481_v61, %v15108_v29 }
 0x6b1   :  { %v6668_v59 = vadd.f32 %v6667_v3, %v6640_v23 }
 0x6b2   :  { %v6615_v6 = vadd.f32 %v6614_v0, %v6587_v48  ;;  %v6510_v22 = vadd.f32 %v15114_v30, %v6482_v51 }
 0x6b3   :  { %v6685_v53 = vmax.f32 %v6668_v59, 0.0 }
 0x6b4   :  { %v6538_v37 = vadd.f32 %v15118_v19, %v6510_v22 }
 0x6b5   :  { %v6692_v35 = vmax.f32 %v14388_v47, %v6685_v53 }
 0x6b6   :  { %v6642_v39 = vpop.f32.mrf.mxu2  ;;  %v6566_v57 = vadd.f32 %v15120_v62, %v6538_v37 }
 0x6b7   :  { %v6670_v52 = vpop.f32.mrf.mxu3  ;;  %v9492_v40 = vpack.c.bf16 %v6692_v35, %v6691_v24  ;;  %v6643_v58 = vadd.f32 %v6642_v39, %v6615_v6  ;;  %v6588_v4 = vpop.f32.mrf.mxu0 }
 0x6b8   :  { %v6616_v7 = vpop.f32.mrf.mxu1  ;;  %v6589_v20 = vadd.f32 %v6588_v4, %v6561_v8 }
 0x6b9   :  { %9493 = vst [vmem:[%s15164_s3] sm:$0xff] %v9492_v40   ;;  %v6671_v16 = vadd.f32 %v6670_v52, %v6643_v58 }
 0x6ba   :  { %v6617_v47 = vadd.f32 %v6616_v7, %v6589_v20 }
 0x6bb   :  { %v6686_v9 = vmax.f32 %v6671_v16, 0.0 }
 0x6bd   :  { %v6693_v25 = vmax.f32 %v14424_v21, %v6686_v9 }
 0x6be   :  { %v6644_v17 = vpop.f32.mrf.mxu2 }
 0x6bf   :  { %v6672_v2 = vpop.f32.mrf.mxu3  ;;  %v6645_v56 = vadd.f32 %v6644_v17, %v6617_v47  ;;  %v6591_v32 = vpop.f32.mrf.mxu0 }
 0x6c0   :  { %v6619_v34 = vpop.f32.mrf.mxu1  ;;  %v6592_v13 = vadd.f32 %v6591_v32, %v15116_v49 }
 0x6c1   :  { %v6673_v50 = vadd.f32 %v6672_v2, %v6645_v56 }
 0x6c2   :  { %v6620_v21 = vadd.f32 %v6619_v34, %v6592_v13 }
 0x6c3   :  { %v6687_v10 = vmax.f32 %v6673_v50, 0.0 }
 0x6c5   :  { %v6694_v29 = vmax.f32 %v14472_v11, %v6687_v10 }
 0x6c6   :  { %v6647_v61 = vpop.f32.mrf.mxu2 }
 0x6c7   :  { %v6675_v43 = vpop.f32.mrf.mxu3  ;;  %v9497_v28 = vpack.c.bf16 %v6694_v29, %v6693_v25  ;;  %v6648_v42 = vadd.f32 %v6647_v61, %v6620_v21  ;;  %v6593_v26 = vpop.f32.mrf.mxu0 }
 0x6c8   :  { %v6621_v30 = vpop.f32.mrf.mxu1  ;;  %v6594_v19 = vadd.f32 %v6593_v26, %v6566_v57 }
 0x6c9   :  { %9504 = vst [vmem:[%s15164_s3 + $0x8] sm:$0xff] %v9497_v28   ;;  %v6676_v49 = vadd.f32 %v6675_v43, %v6648_v42 }
 0x6ca   :  { %v6622_v55 = vadd.f32 %v6621_v30, %v6594_v19 }
 0x6cb   :  { %v6688_v11 = vmax.f32 %v6676_v49, 0.0 }
 0x6cd   :  { %v6695_v54 = vmax.f32 %v14487_v31, %v6688_v11 }
 0x6ce   :  { %v6649_v41 = vpop.f32.mrf.mxu2 }
 0x6cf   :  { %v6677_v62 = vpop.f32.mrf.mxu3  ;;  %v6650_v60 = vadd.f32 %v6649_v41, %v6622_v55  ;;  %v6596_v24 = vpop.f32.mrf.mxu0 }
 0x6d0   :  { %v6624_v44 = vpop.f32.mrf.mxu1  ;;  %v6597_v38 = vadd.f32 %v6596_v24, %v6569_v27 }
 0x6d1   :  { %v6678_v14 = vadd.f32 %v6677_v62, %v6650_v60 }
 0x6d2   :  { %v6625_v12 = vadd.f32 %v6624_v44, %v6597_v38 }
 0x6d3   :  { %v6689_v3 = vmax.f32 %v6678_v14, 0.0 }
 0x6d5   :  { %v6696_v23 = vmax.f32 %v14494_v45, %v6689_v3 }
 0x6d6   :  { %v6652_v0 = vpop.f32.mrf.mxu2 }
 0x6d7   :  { %v6680_v63 = vpop.f32.mrf.mxu3  ;;  %v9502_v33 = vpack.c.bf16 %v6696_v23, %v6695_v54  ;;  %v6653_v59 = vadd.f32 %v6652_v0, %v6625_v12  ;;  %v6598_v48 = vpop.f32.mrf.mxu0 }
 0x6d8   :  { %v6626_v31 = vpop.f32.mrf.mxu1 }
 0x6d9   :  { %9505 = vst [vmem:[%s15164_s3 + $0x10] sm:$0xff] %v9502_v33   ;;  %v6681_v36 = vadd.f32 %v6680_v63, %v6653_v59 }
 0x6db   :  { %v6690_v15 = vmax.f32 %v6681_v36, 0.0 }
 0x6dd   :  { %v6697_v53 = vmax.f32 %v14505_v1, %v6690_v15 }
 0x6de   :  { %v6654_v35 = vpop.f32.mrf.mxu2 }
 0x6df   :  { %v6682_v6 = vpop.f32.mrf.mxu3  ;;  %v6704_v39 = vpack.c.bf16 %v6697_v53, %v6697_v53 }
 0x6e1   :  { %6711 = vst [vmem:[%s15164_s3 + $0x18] sm:$0x1] %v6704_v39 }

</bundles_post_ra>
